<compile_context>
chip_gen: v7x
topology: tpu7x:2x2x1
jax: 0.10.0
libtpu: 0.0.40
codegen_flags: <defaults>
</compile_context>

<pallas_src>
import jax
import jax.numpy as jnp
from jax.experimental import pallas as pl
from jax.experimental.pallas import tpu as pltpu

# ---- hyperparameters (small, consistent with the module's argparse args) ----
LATENT_DIM = 32
CHANNELS = 1
IMG_SIZE = 8
IMG_SHAPE = (CHANNELS, IMG_SIZE, IMG_SIZE)
OUT_DIM = CHANNELS * IMG_SIZE * IMG_SIZE      # 64
PAD_OUT = 128                                 # lane-dense padded output width

TILE_ROWS = 128                               # batch rows per grid step
NUM_TILES = 2                                 # demo: 2 independent generator calls
BATCH = NUM_TILES * TILE_ROWS

BN_EPS = 0.8
LRELU_SLOPE = 0.2

# (din, dout) per layer, with the final layer padded to the lane-dense width.
LAYER_DIMS = ((LATENT_DIM, 128), (128, 256), (256, 512), (512, 1024), (1024, PAD_OUT))


def _leaky_relu(x):
    return jnp.where(x > 0, x, LRELU_SLOPE * x)


def _batchnorm_lrelu(x, gamma, beta):
    # BatchNorm1d in training mode: per-feature batch mean / biased variance,
    # computed in f32.
    mean = jnp.mean(x, axis=0, keepdims=True)
    var = jnp.mean((x - mean) * (x - mean), axis=0, keepdims=True)
    y = (x - mean) * jax.lax.rsqrt(var + BN_EPS) * gamma + beta
    return _leaky_relu(y)


def _dot_bias(h, w, b):
    # Cast activations to bf16 only at the matmul boundary; accumulate in f32.
    return jnp.dot(h.astype(jnp.bfloat16), w, preferred_element_type=jnp.float32) + b


def generator_kernel(
    z_ref,
    w1_ref, b1_ref,
    w2_ref, b2_ref, g2_ref, be2_ref,
    w3_ref, b3_ref, g3_ref, be3_ref,
    w4_ref, b4_ref, g4_ref, be4_ref,
    w5_ref, b5_ref,
    out_ref,
):
    # block(latent_dim, 128, normalize=False)
    h = _leaky_relu(_dot_bias(z_ref[...], w1_ref[...], b1_ref[...]))

    # block(128, 256)
    h = _batchnorm_lrelu(_dot_bias(h, w2_ref[...], b2_ref[...]), g2_ref[...], be2_ref[...])

    # block(256, 512)
    h = _batchnorm_lrelu(_dot_bias(h, w3_ref[...], b3_ref[...]), g3_ref[...], be3_ref[...])

    # block(512, 1024)
    h = _batchnorm_lrelu(_dot_bias(h, w4_ref[...], b4_ref[...]), g4_ref[...], be4_ref[...])

    # Linear(1024, prod(img_shape)) + Tanh, into a lane-dense 128-wide slab
    # (padded columns have zero weights/bias -> tanh(0)=0, sliced off in glue).
    out_ref[...] = jnp.tanh(_dot_bias(h, w5_ref[...], b5_ref[...]))


def make_params(key):
    """Deterministic parameter init. Linear weights stored as (in, out) bf16."""
    real_dims = [(LATENT_DIM, 128), (128, 256), (256, 512), (512, 1024), (1024, OUT_DIM)]
    params = {}
    keys = jax.random.split(key, len(real_dims))
    for i, ((din, dout), k) in enumerate(zip(real_dims, keys), start=1):
        bound = 1.0 / float(din) ** 0.5  # PyTorch Linear default range
        wk, bk = jax.random.split(k)
        w = jax.random.uniform(wk, (din, dout), jnp.float32, -bound, bound)
        b = jax.random.uniform(bk, (1, dout), jnp.float32, -bound, bound)
        if i == 5:  # pad final layer columns 64..127 with zeros (lane-dense store)
            w = jnp.pad(w, ((0, 0), (0, PAD_OUT - OUT_DIM)))
            b = jnp.pad(b, ((0, 0), (0, PAD_OUT - OUT_DIM)))
        params[f"w{i}"] = w.astype(jnp.bfloat16)   # MXU-native, halves weight bytes
        params[f"b{i}"] = b                        # biases stay f32
    # BatchNorm affine params (layers 2, 3, 4): gamma=1, beta=0 (PyTorch default)
    for i, feat in zip((2, 3, 4), (256, 512, 1024)):
        params[f"g{i}"] = jnp.ones((1, feat), jnp.float32)
        params[f"be{i}"] = jnp.zeros((1, feat), jnp.float32)
    return params


_ARG_ORDER = ("w1", "b1", "w2", "b2", "g2", "be2", "w3", "b3", "g3", "be3",
              "w4", "b4", "g4", "be4", "w5", "b5")


def generator_forward(z, params, *, tile_rows=TILE_ROWS):
    b_total, latent = z.shape
    assert latent == LATENT_DIM
    assert b_total % tile_rows == 0, "batch must be a multiple of the tile size"
    n_tiles = b_total // tile_rows

    args = tuple(params[n] for n in _ARG_ORDER)

    def resident(p):
        # Full-array block, same block index every grid step -> fetched once,
        # stays VMEM-resident for all batch tiles.
        return pl.BlockSpec(p.shape, lambda i: (0, 0))

    in_specs = [pl.BlockSpec((tile_rows, LATENT_DIM), lambda i: (i, 0))]
    in_specs += [resident(p) for p in args]
    out_spec = pl.BlockSpec((tile_rows, PAD_OUT), lambda i: (i, 0))

    weight_bytes = sum(int(p.size) * p.dtype.itemsize for p in args)
    flops = 2 * b_total * sum(din * dout for din, dout in LAYER_DIMS)
    bytes_accessed = weight_bytes + b_total * (LATENT_DIM + PAD_OUT) * 4

    flat = pl.pallas_call(
        generator_kernel,
        out_shape=jax.ShapeDtypeStruct((b_total, PAD_OUT), jnp.float32),
        grid=(n_tiles,),
        in_specs=in_specs,
        out_specs=out_spec,
        compiler_params=pltpu.CompilerParams(
            dimension_semantics=("parallel",),  # v7x: shard tiles across both TCs
        ),
        cost_estimate=pl.CostEstimate(
            flops=flops,
            transcendentals=b_total * PAD_OUT,   # tanh (rsqrt is negligible)
            bytes_accessed=bytes_accessed,
        ),
    )(z, *args)

    # glue: drop lane padding, then same as img.view(B, *img_shape) in PyTorch.
    return flat[:, :OUT_DIM].reshape(b_total, *IMG_SHAPE)


def reference_forward(z, params, *, tile_rows=TILE_ROWS):
    """Pure-JAX reference with identical per-tile BN semantics / dtypes."""
    def one_tile(zt):
        h = _leaky_relu(_dot_bias(zt, params["w1"], params["b1"]))
        h = _batchnorm_lrelu(_dot_bias(h, params["w2"], params["b2"]), params["g2"], params["be2"])
        h = _batchnorm_lrelu(_dot_bias(h, params["w3"], params["b3"]), params["g3"], params["be3"])
        h = _batchnorm_lrelu(_dot_bias(h, params["w4"], params["b4"]), params["g4"], params["be4"])
        return jnp.tanh(_dot_bias(h, params["w5"], params["b5"]))

    n_tiles = z.shape[0] // tile_rows
    flat = jnp.concatenate(
        [one_tile(z[t * tile_rows:(t + 1) * tile_rows]) for t in range(n_tiles)], axis=0)
    return flat[:, :OUT_DIM].reshape(z.shape[0], *IMG_SHAPE)


if __name__ == "__main__":
    key = jax.random.PRNGKey(0)
    pkey, zkey = jax.random.split(key)
    params = make_params(pkey)
    z = jax.random.normal(zkey, (BATCH, LATENT_DIM), jnp.float32)

    img = generator_forward(z, params)
    jax.block_until_ready(img)

    assert img.shape == (BATCH, CHANNELS, IMG_SIZE, IMG_SIZE), img.shape
    assert bool(jnp.all(jnp.isfinite(img)))
    assert bool(jnp.all(jnp.abs(img) <= 1.0))  # tanh output range

    ref = reference_forward(z, params)
    max_err = float(jnp.max(jnp.abs(img - ref)))
    assert max_err < 5e-3, f"max abs error vs reference: {max_err}"

    print("KERNEL_OK")
</pallas_src>

<mosaic_0001>
module attributes {stable_mosaic.version = 11 : i64} {
  func.func @generator_kernel(%arg0: i32, %arg1: memref<128x32xf32, #tpu.memory_space<vmem>>, %arg2: memref<32x128xbf16, #tpu.memory_space<vmem>>, %arg3: memref<1x128xf32, #tpu.memory_space<vmem>>, %arg4: memref<128x256xbf16, #tpu.memory_space<vmem>>, %arg5: memref<1x256xf32, #tpu.memory_space<vmem>>, %arg6: memref<1x256xf32, #tpu.memory_space<vmem>>, %arg7: memref<1x256xf32, #tpu.memory_space<vmem>>, %arg8: memref<256x512xbf16, #tpu.memory_space<vmem>>, %arg9: memref<1x512xf32, #tpu.memory_space<vmem>>, %arg10: memref<1x512xf32, #tpu.memory_space<vmem>>, %arg11: memref<1x512xf32, #tpu.memory_space<vmem>>, %arg12: memref<512x1024xbf16, #tpu.memory_space<vmem>>, %arg13: memref<1x1024xf32, #tpu.memory_space<vmem>>, %arg14: memref<1x1024xf32, #tpu.memory_space<vmem>>, %arg15: memref<1x1024xf32, #tpu.memory_space<vmem>>, %arg16: memref<1024x128xbf16, #tpu.memory_space<vmem>>, %arg17: memref<1x128xf32, #tpu.memory_space<vmem>>, %arg18: memref<128x128xf32, #tpu.memory_space<vmem>>) attributes {dimension_semantics = [#tpu.dimension_semantics<parallel>], iteration_bounds = array<i64: 2>, scalar_prefetch = 0 : i64, scratch_operands = 0 : i64, tpu.core_type = #tpu.core_type<tc>, window_params = [{transform_indices = @transform_0, window_bounds = array<i64: 128, 32>}, {pipeline_mode = #tpu.pipeline_mode<synchronous>, transform_indices = @transform_1, window_bounds = array<i64: 32, 128>}, {pipeline_mode = #tpu.pipeline_mode<synchronous>, transform_indices = @transform_2, window_bounds = array<i64: 1, 128>}, {pipeline_mode = #tpu.pipeline_mode<synchronous>, transform_indices = @transform_3, window_bounds = array<i64: 128, 256>}, {pipeline_mode = #tpu.pipeline_mode<synchronous>, transform_indices = @transform_4, window_bounds = array<i64: 1, 256>}, {pipeline_mode = #tpu.pipeline_mode<synchronous>, transform_indices = @transform_5, window_bounds = array<i64: 1, 256>}, {pipeline_mode = #tpu.pipeline_mode<synchronous>, transform_indices = @transform_6, window_bounds = array<i64: 1, 256>}, {pipeline_mode = #tpu.pipeline_mode<synchronous>, transform_indices = @transform_7, window_bounds = array<i64: 256, 512>}, {pipeline_mode = #tpu.pipeline_mode<synchronous>, transform_indices = @transform_8, window_bounds = array<i64: 1, 512>}, {pipeline_mode = #tpu.pipeline_mode<synchronous>, transform_indices = @transform_9, window_bounds = array<i64: 1, 512>}, {pipeline_mode = #tpu.pipeline_mode<synchronous>, transform_indices = @transform_10, window_bounds = array<i64: 1, 512>}, {pipeline_mode = #tpu.pipeline_mode<synchronous>, transform_indices = @transform_11, window_bounds = array<i64: 512, 1024>}, {pipeline_mode = #tpu.pipeline_mode<synchronous>, transform_indices = @transform_12, window_bounds = array<i64: 1, 1024>}, {pipeline_mode = #tpu.pipeline_mode<synchronous>, transform_indices = @transform_13, window_bounds = array<i64: 1, 1024>}, {pipeline_mode = #tpu.pipeline_mode<synchronous>, transform_indices = @transform_14, window_bounds = array<i64: 1, 1024>}, {pipeline_mode = #tpu.pipeline_mode<synchronous>, transform_indices = @transform_15, window_bounds = array<i64: 1024, 128>}, {pipeline_mode = #tpu.pipeline_mode<synchronous>, transform_indices = @transform_16, window_bounds = array<i64: 1, 128>}, {transform_indices = @transform_17, window_bounds = array<i64: 128, 128>}]} {
    %c0 = arith.constant 0 : index
    %c0_0 = arith.constant 0 : index
    %0 = vector.load %arg1[%c0, %c0_0] : memref<128x32xf32, #tpu.memory_space<vmem>>, vector<128x32xf32>
    %c0_1 = arith.constant 0 : index
    %c0_2 = arith.constant 0 : index
    %1 = vector.load %arg2[%c0_1, %c0_2] : memref<32x128xbf16, #tpu.memory_space<vmem>>, vector<32x128xbf16>
    %c0_3 = arith.constant 0 : index
    %c0_4 = arith.constant 0 : index
    %2 = vector.load %arg3[%c0_3, %c0_4] : memref<1x128xf32, #tpu.memory_space<vmem>>, vector<1x128xf32>
    %3 = arith.truncf %0 : vector<128x32xf32> to vector<128x32xbf16>
    %cst = arith.constant dense<0.000000e+00> : vector<128x128xf32>
    %4 = tpu.matmul %3, %1, %cst {dimension_numbers = #tpu.dot_dimension_numbers<[1], [0], [0], [1], [0, 0, 1, 1], [], []>} : vector<128x32xbf16>, vector<32x128xbf16>, vector<128x128xf32> -> vector<128x128xf32>
    %5 = vector.broadcast %2 : vector<1x128xf32> to vector<128x128xf32>
    %6 = arith.addf %4, %5 : vector<128x128xf32>
    %cst_5 = arith.constant 0.000000e+00 : f32
    %7 = vector.broadcast %cst_5 : f32 to vector<128x128xf32>
    %8 = arith.cmpf ogt, %6, %7 : vector<128x128xf32>
    %cst_6 = arith.constant 2.000000e-01 : f32
    %9 = vector.broadcast %cst_6 : f32 to vector<128x128xf32>
    %10 = arith.mulf %9, %6 : vector<128x128xf32>
    %11 = arith.select %8, %6, %10 : vector<128x128xi1>, vector<128x128xf32>
    %c0_7 = arith.constant 0 : index
    %c0_8 = arith.constant 0 : index
    %12 = vector.load %arg4[%c0_7, %c0_8] : memref<128x256xbf16, #tpu.memory_space<vmem>>, vector<128x256xbf16>
    %c0_9 = arith.constant 0 : index
    %c0_10 = arith.constant 0 : index
    %13 = vector.load %arg5[%c0_9, %c0_10] : memref<1x256xf32, #tpu.memory_space<vmem>>, vector<1x256xf32>
    %14 = arith.truncf %11 : vector<128x128xf32> to vector<128x128xbf16>
    %cst_11 = arith.constant dense<0.000000e+00> : vector<128x256xf32>
    %15 = tpu.matmul %14, %12, %cst_11 {dimension_numbers = #tpu.dot_dimension_numbers<[1], [0], [0], [1], [0, 0, 1, 1], [], []>} : vector<128x128xbf16>, vector<128x256xbf16>, vector<128x256xf32> -> vector<128x256xf32>
    %16 = vector.broadcast %13 : vector<1x256xf32> to vector<128x256xf32>
    %17 = arith.addf %15, %16 : vector<128x256xf32>
    %c0_12 = arith.constant 0 : index
    %c0_13 = arith.constant 0 : index
    %18 = vector.load %arg6[%c0_12, %c0_13] : memref<1x256xf32, #tpu.memory_space<vmem>>, vector<1x256xf32>
    %c0_14 = arith.constant 0 : index
    %c0_15 = arith.constant 0 : index
    %19 = vector.load %arg7[%c0_14, %c0_15] : memref<1x256xf32, #tpu.memory_space<vmem>>, vector<1x256xf32>
    %cst_16 = arith.constant dense<0.000000e+00> : vector<256xf32>
    %20 = vector.multi_reduction <add>, %17, %cst_16 [0] : vector<128x256xf32> to vector<256xf32>
    %21 = vector.shape_cast %20 : vector<256xf32> to vector<1x256xf32>
    %cst_17 = arith.constant 1.280000e+02 : f32
    %22 = vector.broadcast %cst_17 : f32 to vector<1x256xf32>
    %23 = arith.divf %21, %22 : vector<1x256xf32>
    %24 = vector.broadcast %23 : vector<1x256xf32> to vector<128x256xf32>
    %25 = arith.subf %17, %24 : vector<128x256xf32>
    %26 = vector.broadcast %23 : vector<1x256xf32> to vector<128x256xf32>
    %27 = arith.subf %17, %26 : vector<128x256xf32>
    %28 = arith.mulf %25, %27 : vector<128x256xf32>
    %cst_18 = arith.constant dense<0.000000e+00> : vector<256xf32>
    %29 = vector.multi_reduction <add>, %28, %cst_18 [0] : vector<128x256xf32> to vector<256xf32>
    %30 = vector.shape_cast %29 : vector<256xf32> to vector<1x256xf32>
    %cst_19 = arith.constant 1.280000e+02 : f32
    %31 = vector.broadcast %cst_19 : f32 to vector<1x256xf32>
    %32 = arith.divf %30, %31 : vector<1x256xf32>
    %33 = vector.broadcast %23 : vector<1x256xf32> to vector<128x256xf32>
    %34 = arith.subf %17, %33 : vector<128x256xf32>
    %cst_20 = arith.constant 8.000000e-01 : f32
    %35 = vector.broadcast %cst_20 : f32 to vector<1x256xf32>
    %36 = arith.addf %32, %35 : vector<1x256xf32>
    %37 = math.rsqrt %36 : vector<1x256xf32>
    %38 = vector.broadcast %37 : vector<1x256xf32> to vector<128x256xf32>
    %39 = arith.mulf %34, %38 : vector<128x256xf32>
    %40 = vector.broadcast %18 : vector<1x256xf32> to vector<128x256xf32>
    %41 = arith.mulf %39, %40 : vector<128x256xf32>
    %42 = vector.broadcast %19 : vector<1x256xf32> to vector<128x256xf32>
    %43 = arith.addf %41, %42 : vector<128x256xf32>
    %cst_21 = arith.constant 0.000000e+00 : f32
    %44 = vector.broadcast %cst_21 : f32 to vector<128x256xf32>
    %45 = arith.cmpf ogt, %43, %44 : vector<128x256xf32>
    %cst_22 = arith.constant 2.000000e-01 : f32
    %46 = vector.broadcast %cst_22 : f32 to vector<128x256xf32>
    %47 = arith.mulf %46, %43 : vector<128x256xf32>
    %48 = arith.select %45, %43, %47 : vector<128x256xi1>, vector<128x256xf32>
    %c0_23 = arith.constant 0 : index
    %c0_24 = arith.constant 0 : index
    %49 = vector.load %arg8[%c0_23, %c0_24] : memref<256x512xbf16, #tpu.memory_space<vmem>>, vector<256x512xbf16>
    %c0_25 = arith.constant 0 : index
    %c0_26 = arith.constant 0 : index
    %50 = vector.load %arg9[%c0_25, %c0_26] : memref<1x512xf32, #tpu.memory_space<vmem>>, vector<1x512xf32>
    %51 = arith.truncf %48 : vector<128x256xf32> to vector<128x256xbf16>
    %cst_27 = arith.constant dense<0.000000e+00> : vector<128x512xf32>
    %52 = tpu.matmul %51, %49, %cst_27 {dimension_numbers = #tpu.dot_dimension_numbers<[1], [0], [0], [1], [0, 0, 1, 1], [], []>} : vector<128x256xbf16>, vector<256x512xbf16>, vector<128x512xf32> -> vector<128x512xf32>
    %53 = vector.broadcast %50 : vector<1x512xf32> to vector<128x512xf32>
    %54 = arith.addf %52, %53 : vector<128x512xf32>
    %c0_28 = arith.constant 0 : index
    %c0_29 = arith.constant 0 : index
    %55 = vector.load %arg10[%c0_28, %c0_29] : memref<1x512xf32, #tpu.memory_space<vmem>>, vector<1x512xf32>
    %c0_30 = arith.constant 0 : index
    %c0_31 = arith.constant 0 : index
    %56 = vector.load %arg11[%c0_30, %c0_31] : memref<1x512xf32, #tpu.memory_space<vmem>>, vector<1x512xf32>
    %cst_32 = arith.constant dense<0.000000e+00> : vector<512xf32>
    %57 = vector.multi_reduction <add>, %54, %cst_32 [0] : vector<128x512xf32> to vector<512xf32>
    %58 = vector.shape_cast %57 : vector<512xf32> to vector<1x512xf32>
    %cst_33 = arith.constant 1.280000e+02 : f32
    %59 = vector.broadcast %cst_33 : f32 to vector<1x512xf32>
    %60 = arith.divf %58, %59 : vector<1x512xf32>
    %61 = vector.broadcast %60 : vector<1x512xf32> to vector<128x512xf32>
    %62 = arith.subf %54, %61 : vector<128x512xf32>
    %63 = vector.broadcast %60 : vector<1x512xf32> to vector<128x512xf32>
    %64 = arith.subf %54, %63 : vector<128x512xf32>
    %65 = arith.mulf %62, %64 : vector<128x512xf32>
    %cst_34 = arith.constant dense<0.000000e+00> : vector<512xf32>
    %66 = vector.multi_reduction <add>, %65, %cst_34 [0] : vector<128x512xf32> to vector<512xf32>
    %67 = vector.shape_cast %66 : vector<512xf32> to vector<1x512xf32>
    %cst_35 = arith.constant 1.280000e+02 : f32
    %68 = vector.broadcast %cst_35 : f32 to vector<1x512xf32>
    %69 = arith.divf %67, %68 : vector<1x512xf32>
    %70 = vector.broadcast %60 : vector<1x512xf32> to vector<128x512xf32>
    %71 = arith.subf %54, %70 : vector<128x512xf32>
    %cst_36 = arith.constant 8.000000e-01 : f32
    %72 = vector.broadcast %cst_36 : f32 to vector<1x512xf32>
    %73 = arith.addf %69, %72 : vector<1x512xf32>
    %74 = math.rsqrt %73 : vector<1x512xf32>
    %75 = vector.broadcast %74 : vector<1x512xf32> to vector<128x512xf32>
    %76 = arith.mulf %71, %75 : vector<128x512xf32>
    %77 = vector.broadcast %55 : vector<1x512xf32> to vector<128x512xf32>
    %78 = arith.mulf %76, %77 : vector<128x512xf32>
    %79 = vector.broadcast %56 : vector<1x512xf32> to vector<128x512xf32>
    %80 = arith.addf %78, %79 : vector<128x512xf32>
    %cst_37 = arith.constant 0.000000e+00 : f32
    %81 = vector.broadcast %cst_37 : f32 to vector<128x512xf32>
    %82 = arith.cmpf ogt, %80, %81 : vector<128x512xf32>
    %cst_38 = arith.constant 2.000000e-01 : f32
    %83 = vector.broadcast %cst_38 : f32 to vector<128x512xf32>
    %84 = arith.mulf %83, %80 : vector<128x512xf32>
    %85 = arith.select %82, %80, %84 : vector<128x512xi1>, vector<128x512xf32>
    %c0_39 = arith.constant 0 : index
    %c0_40 = arith.constant 0 : index
    %86 = vector.load %arg12[%c0_39, %c0_40] : memref<512x1024xbf16, #tpu.memory_space<vmem>>, vector<512x1024xbf16>
    %c0_41 = arith.constant 0 : index
    %c0_42 = arith.constant 0 : index
    %87 = vector.load %arg13[%c0_41, %c0_42] : memref<1x1024xf32, #tpu.memory_space<vmem>>, vector<1x1024xf32>
    %88 = arith.truncf %85 : vector<128x512xf32> to vector<128x512xbf16>
    %cst_43 = arith.constant dense<0.000000e+00> : vector<128x1024xf32>
    %89 = tpu.matmul %88, %86, %cst_43 {dimension_numbers = #tpu.dot_dimension_numbers<[1], [0], [0], [1], [0, 0, 1, 1], [], []>} : vector<128x512xbf16>, vector<512x1024xbf16>, vector<128x1024xf32> -> vector<128x1024xf32>
    %90 = vector.broadcast %87 : vector<1x1024xf32> to vector<128x1024xf32>
    %91 = arith.addf %89, %90 : vector<128x1024xf32>
    %c0_44 = arith.constant 0 : index
    %c0_45 = arith.constant 0 : index
    %92 = vector.load %arg14[%c0_44, %c0_45] : memref<1x1024xf32, #tpu.memory_space<vmem>>, vector<1x1024xf32>
    %c0_46 = arith.constant 0 : index
    %c0_47 = arith.constant 0 : index
    %93 = vector.load %arg15[%c0_46, %c0_47] : memref<1x1024xf32, #tpu.memory_space<vmem>>, vector<1x1024xf32>
    %cst_48 = arith.constant dense<0.000000e+00> : vector<1024xf32>
    %94 = vector.multi_reduction <add>, %91, %cst_48 [0] : vector<128x1024xf32> to vector<1024xf32>
    %95 = vector.shape_cast %94 : vector<1024xf32> to vector<1x1024xf32>
    %cst_49 = arith.constant 1.280000e+02 : f32
    %96 = vector.broadcast %cst_49 : f32 to vector<1x1024xf32>
    %97 = arith.divf %95, %96 : vector<1x1024xf32>
    %98 = vector.broadcast %97 : vector<1x1024xf32> to vector<128x1024xf32>
    %99 = arith.subf %91, %98 : vector<128x1024xf32>
    %100 = vector.broadcast %97 : vector<1x1024xf32> to vector<128x1024xf32>
    %101 = arith.subf %91, %100 : vector<128x1024xf32>
    %102 = arith.mulf %99, %101 : vector<128x1024xf32>
    %cst_50 = arith.constant dense<0.000000e+00> : vector<1024xf32>
    %103 = vector.multi_reduction <add>, %102, %cst_50 [0] : vector<128x1024xf32> to vector<1024xf32>
    %104 = vector.shape_cast %103 : vector<1024xf32> to vector<1x1024xf32>
    %cst_51 = arith.constant 1.280000e+02 : f32
    %105 = vector.broadcast %cst_51 : f32 to vector<1x1024xf32>
    %106 = arith.divf %104, %105 : vector<1x1024xf32>
    %107 = vector.broadcast %97 : vector<1x1024xf32> to vector<128x1024xf32>
    %108 = arith.subf %91, %107 : vector<128x1024xf32>
    %cst_52 = arith.constant 8.000000e-01 : f32
    %109 = vector.broadcast %cst_52 : f32 to vector<1x1024xf32>
    %110 = arith.addf %106, %109 : vector<1x1024xf32>
    %111 = math.rsqrt %110 : vector<1x1024xf32>
    %112 = vector.broadcast %111 : vector<1x1024xf32> to vector<128x1024xf32>
    %113 = arith.mulf %108, %112 : vector<128x1024xf32>
    %114 = vector.broadcast %92 : vector<1x1024xf32> to vector<128x1024xf32>
    %115 = arith.mulf %113, %114 : vector<128x1024xf32>
    %116 = vector.broadcast %93 : vector<1x1024xf32> to vector<128x1024xf32>
    %117 = arith.addf %115, %116 : vector<128x1024xf32>
    %cst_53 = arith.constant 0.000000e+00 : f32
    %118 = vector.broadcast %cst_53 : f32 to vector<128x1024xf32>
    %119 = arith.cmpf ogt, %117, %118 : vector<128x1024xf32>
    %cst_54 = arith.constant 2.000000e-01 : f32
    %120 = vector.broadcast %cst_54 : f32 to vector<128x1024xf32>
    %121 = arith.mulf %120, %117 : vector<128x1024xf32>
    %122 = arith.select %119, %117, %121 : vector<128x1024xi1>, vector<128x1024xf32>
    %c0_55 = arith.constant 0 : index
    %c0_56 = arith.constant 0 : index
    %123 = vector.load %arg16[%c0_55, %c0_56] : memref<1024x128xbf16, #tpu.memory_space<vmem>>, vector<1024x128xbf16>
    %c0_57 = arith.constant 0 : index
    %c0_58 = arith.constant 0 : index
    %124 = vector.load %arg17[%c0_57, %c0_58] : memref<1x128xf32, #tpu.memory_space<vmem>>, vector<1x128xf32>
    %125 = arith.truncf %122 : vector<128x1024xf32> to vector<128x1024xbf16>
    %cst_59 = arith.constant dense<0.000000e+00> : vector<128x128xf32>
    %126 = tpu.matmul %125, %123, %cst_59 {dimension_numbers = #tpu.dot_dimension_numbers<[1], [0], [0], [1], [0, 0, 1, 1], [], []>} : vector<128x1024xbf16>, vector<1024x128xbf16>, vector<128x128xf32> -> vector<128x128xf32>
    %127 = vector.broadcast %124 : vector<1x128xf32> to vector<128x128xf32>
    %128 = arith.addf %126, %127 : vector<128x128xf32>
    %129 = math.tanh %128 : vector<128x128xf32>
    %c0_60 = arith.constant 0 : index
    %c0_61 = arith.constant 0 : index
    %130 = vector.load %arg18[%c0_60, %c0_61] : memref<128x128xf32, #tpu.memory_space<vmem>>, vector<128x128xf32>
    tpu.vector_store %arg18[%c0_60, %c0_61], %129 {strides = array<i32>} : memref<128x128xf32, #tpu.memory_space<vmem>>, vector<128x128xf32>,
    return
  }
  func.func @transform_0(%arg0: i32) -> (i32, i32) {
    %c0_i32 = arith.constant 0 : i32
    %c0_i32_0 = arith.constant 0 : i32
    return %arg0, %c0_i32 : i32, i32
  }
  func.func @transform_1(%arg0: i32) -> (i32, i32) {
    %c0_i32 = arith.constant 0 : i32
    %c0_i32_0 = arith.constant 0 : i32
    %c0_i32_1 = arith.constant 0 : i32
    return %c0_i32, %c0_i32_0 : i32, i32
  }
  func.func @transform_2(%arg0: i32) -> (i32, i32) {
    %c0_i32 = arith.constant 0 : i32
    %c0_i32_0 = arith.constant 0 : i32
    %c0_i32_1 = arith.constant 0 : i32
    return %c0_i32, %c0_i32_0 : i32, i32
  }
  func.func @transform_3(%arg0: i32) -> (i32, i32) {
    %c0_i32 = arith.constant 0 : i32
    %c0_i32_0 = arith.constant 0 : i32
    %c0_i32_1 = arith.constant 0 : i32
    return %c0_i32, %c0_i32_0 : i32, i32
  }
  func.func @transform_4(%arg0: i32) -> (i32, i32) {
    %c0_i32 = arith.constant 0 : i32
    %c0_i32_0 = arith.constant 0 : i32
    %c0_i32_1 = arith.constant 0 : i32
    return %c0_i32, %c0_i32_0 : i32, i32
  }
  func.func @transform_5(%arg0: i32) -> (i32, i32) {
    %c0_i32 = arith.constant 0 : i32
    %c0_i32_0 = arith.constant 0 : i32
    %c0_i32_1 = arith.constant 0 : i32
    return %c0_i32, %c0_i32_0 : i32, i32
  }
  func.func @transform_6(%arg0: i32) -> (i32, i32) {
    %c0_i32 = arith.constant 0 : i32
    %c0_i32_0 = arith.constant 0 : i32
    %c0_i32_1 = arith.constant 0 : i32
    return %c0_i32, %c0_i32_0 : i32, i32
  }
  func.func @transform_7(%arg0: i32) -> (i32, i32) {
    %c0_i32 = arith.constant 0 : i32
    %c0_i32_0 = arith.constant 0 : i32
    %c0_i32_1 = arith.constant 0 : i32
    return %c0_i32, %c0_i32_0 : i32, i32
  }
  func.func @transform_8(%arg0: i32) -> (i32, i32) {
    %c0_i32 = arith.constant 0 : i32
    %c0_i32_0 = arith.constant 0 : i32
    %c0_i32_1 = arith.constant 0 : i32
    return %c0_i32, %c0_i32_0 : i32, i32
  }
  func.func @transform_9(%arg0: i32) -> (i32, i32) {
    %c0_i32 = arith.constant 0 : i32
    %c0_i32_0 = arith.constant 0 : i32
    %c0_i32_1 = arith.constant 0 : i32
    return %c0_i32, %c0_i32_0 : i32, i32
  }
  func.func @transform_10(%arg0: i32) -> (i32, i32) {
    %c0_i32 = arith.constant 0 : i32
    %c0_i32_0 = arith.constant 0 : i32
    %c0_i32_1 = arith.constant 0 : i32
    return %c0_i32, %c0_i32_0 : i32, i32
  }
  func.func @transform_11(%arg0: i32) -> (i32, i32) {
    %c0_i32 = arith.constant 0 : i32
    %c0_i32_0 = arith.constant 0 : i32
    %c0_i32_1 = arith.constant 0 : i32
    return %c0_i32, %c0_i32_0 : i32, i32
  }
  func.func @transform_12(%arg0: i32) -> (i32, i32) {
    %c0_i32 = arith.constant 0 : i32
    %c0_i32_0 = arith.constant 0 : i32
    %c0_i32_1 = arith.constant 0 : i32
    return %c0_i32, %c0_i32_0 : i32, i32
  }
  func.func @transform_13(%arg0: i32) -> (i32, i32) {
    %c0_i32 = arith.constant 0 : i32
    %c0_i32_0 = arith.constant 0 : i32
    %c0_i32_1 = arith.constant 0 : i32
    return %c0_i32, %c0_i32_0 : i32, i32
  }
  func.func @transform_14(%arg0: i32) -> (i32, i32) {
    %c0_i32 = arith.constant 0 : i32
    %c0_i32_0 = arith.constant 0 : i32
    %c0_i32_1 = arith.constant 0 : i32
    return %c0_i32, %c0_i32_0 : i32, i32
  }
  func.func @transform_15(%arg0: i32) -> (i32, i32) {
    %c0_i32 = arith.constant 0 : i32
    %c0_i32_0 = arith.constant 0 : i32
    %c0_i32_1 = arith.constant 0 : i32
    return %c0_i32, %c0_i32_0 : i32, i32
  }
  func.func @transform_16(%arg0: i32) -> (i32, i32) {
    %c0_i32 = arith.constant 0 : i32
    %c0_i32_0 = arith.constant 0 : i32
    %c0_i32_1 = arith.constant 0 : i32
    return %c0_i32, %c0_i32_0 : i32, i32
  }
  func.func @transform_17(%arg0: i32) -> (i32, i32) {
    %c0_i32 = arith.constant 0 : i32
    %c0_i32_0 = arith.constant 0 : i32
    return %arg0, %c0_i32 : i32, i32
  }
}

</mosaic_0001>

<bundles_post_ra>
// kernel: tpu_custom_call.1
= control target key start
LH: loop header
LB: loop body
LE: loop exit
PB: predicated region body
PF: predicated region fallthrough
CT: control target
= control target key end

     0   :  { %s14383_s0 = inlined_call_operand.vmem [shape: f32[256,32], index: 0, kind: input, shape index: {}]   ;;  %s14384_s1 = inlined_call_operand.vmem [shape: bf16[32,128], index: 1, kind: input, shape index: {}]   ;;  %s14385_s2 = inlined_call_operand.vmem [shape: f32[1,128], index: 2, kind: input, shape index: {}]   ;;  %s14386_s3 = inlined_call_operand.vmem [shape: bf16[128,256], index: 3, kind: input, shape index: {}]   ;;  %s14387_s4 = inlined_call_operand.vmem [shape: f32[1,256], index: 4, kind: input, shape index: {}]   ;;  %s14388_s5 = inlined_call_operand.vmem [shape: f32[1,256], index: 5, kind: input, shape index: {}]   ;;  %s14389_s6 = inlined_call_operand.vmem [shape: f32[1,256], index: 6, kind: input, shape index: {}]   ;;  %s14390_s7 = inlined_call_operand.hbm [shape: bf16[256,512], index: 7, kind: input, shape index: {}]   ;;  %s14391_s8 = inlined_call_operand.vmem [shape: f32[1,512], index: 8, kind: input, shape index: {}]   ;;  %s14392_s9 = inlined_call_operand.vmem [shape: f32[1,512], index: 9, kind: input, shape index: {}]   ;;  %s14393_s10 = inlined_call_operand.vmem [shape: f32[1,512], index: 10, kind: input, shape index: {}]   ;;  %s14394_s11 = inlined_call_operand.hbm [shape: bf16[512,1024], index: 11, kind: input, shape index: {}]   ;;  %s14395_s12 = inlined_call_operand.vmem [shape: f32[1,1024], index: 12, kind: input, shape index: {}]   ;;  %s14396_s13 = inlined_call_operand.vmem [shape: f32[1,1024], index: 13, kind: input, shape index: {}]   ;;  %s14397_s14 = inlined_call_operand.vmem [shape: f32[1,1024], index: 14, kind: input, shape index: {}]   ;;  %s14398_s15 = inlined_call_operand.hbm [shape: bf16[1024,128], index: 15, kind: input, shape index: {}]   ;;  %s14399_s16 = inlined_call_operand.vmem [shape: f32[1,128], index: 16, kind: input, shape index: {}]   ;;  %s14400_s17 = inlined_call_operand.hbm [shape: f32[256,128], index: 17, kind: output, shape index: {}]  }
   0x1   :  { %14789 = sst [smem:[#allocation116_spill]] %s14383_s0 }
   0x2   :  { %14790 = sst [smem:[#allocation117_spill]] %s14384_s1 }
   0x3   :  { %14791 = sst [smem:[#allocation118_spill]] %s14394_s11 }
   0x4   :  { %14792 = sst [smem:[#allocation119_spill]] %s14399_s16 }
   0x5   :  { %14793 = sst [smem:[#allocation120_spill]] %s14400_s17 }
   0x6   :  { %22 = vsyncpa [#allocation3], 0 }
   0x7   :  { %23 = vsyncpa [#allocation6], 0 }
   0x8   :  { %24 = vsyncpa [#allocation4], 0 }
   0x9   :  { %26 = vsyncpa [#allocation4 + $0x1], 0  ;;  %s9492_s24 = smov 0   ;;  %s9494_s25 = smov 0  }
   0xa   :  { %s9496_s26 = smov 0   ;;  %s9498_s27 = smov 0  }
   0xb LB: > { %14794 = sst [smem:[#allocation12_spill]] %s9375_s24  ;;  %s9513_s28 = sadd.s32 4294967295, %s9387_s27   ;;  %s9387_s27 = sphi %s9498_s27, %s15557_s27   ;;  %s9383_s26 = sphi %s9496_s26, %s15560_s26   ;;  %s9379_s25 = sphi %s9494_s25, %s15559_s25   ;;  %s9375_s24 = sphi %s9492_s24, %s15558_s24  }
   0xc   : > { %14795 = sst [smem:[#allocation13_spill]] %s9379_s25  ;;  %s7902_s29 = sadd.s32 4294967294, %s9387_s27  }
   0xd   : > { %14796 = sst [smem:[#allocation14_spill]] %s9383_s26  ;;  %s9517_s0 = sadd.s32 1, %s9387_s27  }
   0xe   : > { %14797 = sst [smem:[#allocation15_spill]] %s9387_s27  ;;  %s401_s30 = sadd.s32 1, %s9383_s26 }
   0xf   : > { %14798 = sst [smem:[#allocation16_spill]] %s9517_s0  ;;  %s398_s18 = ssub.s32 %s9387_s27, %s9517_s0 }
  0x10   : > { %p411_p0 = scmp.ne.s32.totalorder %s9383_s26, %s9379_s25  ;;  %p399_p1 = scmp.eq.s32.totalorder %s398_s18, 0 }
  0x11   : > { %p412_p2 = scmp.eq.s32.totalorder %s9513_s28, 1  ;;  %p417_p3 = scmp.ne.s32.totalorder %s9379_s25, %s9375_s24 }
  0x12   : > { %p418_p4 = scmp.eq.s32.totalorder %s7902_s29, 1  ;;  %p7903_p7 = scmp.ge.s32.totalorder %s9387_s27, 1 }
  0x13   : > { %s9528_s19 = scalar_select %p399_p1, %s9383_s26, %s401_s30  }
  0x14   : > { %p9530_p5 = por %p412_p2, %p411_p0  ;;  %p9534_p6 = por %p418_p4, %p417_p3 }
  0x15   : > { %14799 = sst [smem:[#allocation17_spill]] %s9528_s19  ;;  %p425_p8 = scmp.lt.s32.totalorder %s9387_s27, 3 }
  0x16   : > { %s14800_s1 = scalar_select %p9530_p5, 1, 0 }
  0x17   : > { %s14802_s20 = scalar_select %p9534_p6, 1, 0 }
  0x18   : > { %14801 = sst [smem:[#allocation18_spill]] %s14800_s1  ;;  %p14408_p9 = scmp.eq.s32.totalorder %s9513_s28, 0 }
  0x19   : > { %14803 = sst [smem:[#allocation19_spill]] %s14802_s20  ;;  %p9541_p10 = pnand %p7903_p7, %p425_p8 }
  0x1a   : > { %s9389_s22 = smov [#allocation5]   ;;  %s9390_s30 = smov [#allocation2]  }
  0x1b   : > { %s14804_s21 = scalar_select %p9541_p10, 1, 0 }
  0x1c   : > { %s477_s23 = sshll.u32 %s9389_s22, 4  ;;  %p8905_p11 = pneg %p9541_p10  ;;  %s478_s23 = int_to_ptr.vmem [resolvable:$true] %s477_s23 }
  0x1d   : > { %s455_s18 = sshll.u32 %s9390_s30, 4  ;;  %s14806_s11 = sld [smem:[#allocation118_spill]]  ;;  %s9553_s18 = int_to_ptr.vmem [resolvable:$true] %s455_s18 }
  0x1e   : > { %p9549_p12 = pnand %p14408_p9, %p8905_p11 }
  0x20   : > { %p9563_p0 = pneg %p9549_p12 }
  0x23   : > { %s9233_s0 = scalar_lea.hbm %s14806_s11, 32768 }
  0x24   : > { %p9234_p13 = scmp.ne.s32.totalorder %s14806_s11, %s9233_s0  ;;  %p9240_p3 = scmp.lt.u32.totalorder %s9233_s0, %s14806_s11 }
  0x26   : > { %p9236_p1 = pnand %p9563_p0, %p9234_p13 }
  0x28   : > { %p9237_p2 = pneg %p9236_p1 }
  0x2a   : > { %p9242_p4 = pnand %p9240_p3, %p9237_p2 }
  0x2c   : > { %9245 = shalt.err (!%p9242_p4)
}
  0x2d   : > { %s9246_s26 = scalar_lea.vmem %s478_s23, 32768  ;;  %p9254_p9 = scmp.lt.s32.totalorder %s478_s23, %s478_s23 }
  0x2e   : > { %p9247_p7 = scmp.ne.s32.totalorder %s478_s23, %s9246_s26  ;;  %p9255_p6 = scmp.lt.s32.totalorder %s9246_s26, %s9246_s26 }
  0x30   : > { %p9249_p8 = pnand %p9247_p7, %p9563_p0  ;;  %p9256_p5 = por %p9255_p6, %p9254_p9 }
  0x32   : > { %p9250_p11 = pneg %p9249_p8 }
  0x34   : > { %p9257_p10 = pnand %p9256_p5, %p9250_p11 }
  0x36   : > { %9260 = shalt.err (!%p9257_p10)
}
  0x37   : > { %s9391_s24 = smov 512   ;;  %s9392_s19 = smov 32  }
  0x38   : > { %8911 = dma.hbm_to_vmem [thread:$0]  (!%p9549_p12), %s14806_s11, 32768, %s478_s23, [#allocation6], %s9391_s24, %s9391_s24, %s9392_s19  }
  0x39   : > { %s9261_s17 = scalar_lea.hbm %s14390_s7, 8192 }
  0x3a   : > { %p9262_p13 = scmp.ne.s32.totalorder %s14390_s7, %s9261_s17  ;;  %p9268_p9 = scmp.lt.u32.totalorder %s9261_s17, %s14390_s7 }
  0x3c   : > { %p9264_p5 = pnand %p9262_p13, %p9563_p0 }
  0x3e   : > { %p9265_p6 = pneg %p9264_p5 }
  0x40   : > { %p9270_p10 = pnand %p9268_p9, %p9265_p6 }
  0x42   : > { %9273 = shalt.err (!%p9270_p10)
}
  0x43   : > { %s9274_s23 = scalar_lea.vmem %s9553_s18, 8192  ;;  %p9282_p4 = scmp.lt.s32.totalorder %s9553_s18, %s9553_s18 }
  0x44   : > { %p9275_p1 = scmp.ne.s32.totalorder %s9553_s18, %s9274_s23  ;;  %p9283_p7 = scmp.lt.s32.totalorder %s9274_s23, %s9274_s23 }
  0x46   : > { %p9277_p2 = pnand %p9275_p1, %p9563_p0  ;;  %p9284_p8 = por %p9283_p7, %p9282_p4 }
  0x48   : > { %p9278_p3 = pneg %p9277_p2 }
  0x4a   : > { %p9285_p11 = pnand %p9284_p8, %p9278_p3 }
  0x4c   : > { %9288 = shalt.err (!%p9285_p11)
}
  0x4d   : > { %s9393_s25 = smov 256   ;;  %s9394_s16 = smov 16  }
  0x4e   : > { %8908 = dma.hbm_to_vmem [thread:$0]  (!%p9549_p12), %s14390_s7, 8192, %s9553_s18, [#allocation3], %s9393_s25, %s9393_s25, %s9394_s16  }
  0x4f   : > { %s9395_s24 = smov [#allocation7]   ;;  %s9289_s20 = scalar_lea.hbm %s14398_s15, 8192 }
  0x50   : > { %s499_s19 = sshll.u32 %s9395_s24, 4  ;;  %p9290_p13 = scmp.ne.s32.totalorder %s14398_s15, %s9289_s20  ;;  %s500_s19 = int_to_ptr.vmem [resolvable:$true] %s499_s19 }
  0x51   : > { %p9296_p9 = scmp.lt.u32.totalorder %s9289_s20, %s14398_s15 }
  0x52   : > { %p9292_p5 = pnand %p9290_p13, %p9563_p0 }
  0x54   : > { %p9293_p6 = pneg %p9292_p5 }
  0x56   : > { %p9298_p10 = pnand %p9296_p9, %p9293_p6 }
  0x58   : > { %9301 = shalt.err (!%p9298_p10)
}
  0x59   : > { %s9302_s18 = scalar_lea.vmem %s500_s19, 8192  ;;  %p9310_p4 = scmp.lt.s32.totalorder %s500_s19, %s500_s19 }
  0x5a   : > { %p9303_p1 = scmp.ne.s32.totalorder %s500_s19, %s9302_s18  ;;  %p9311_p7 = scmp.lt.s32.totalorder %s9302_s18, %s9302_s18 }
  0x5c   : > { %p9305_p2 = pnand %p9303_p1, %p9563_p0  ;;  %p9312_p8 = por %p9311_p7, %p9310_p4 }
  0x5e   : > { %p9306_p3 = pneg %p9305_p2 }
  0x60   : > { %p9313_p11 = pnand %p9312_p8, %p9306_p3 }
  0x62   : > { %9316 = shalt.err (!%p9313_p11)
}
  0x63   : > { %s9396_s25 = smov 64   ;;  %s9397_s16 = smov 4  }
  0x64   : > { %8914 = dma.hbm_to_vmem [thread:$0]  (!%p9549_p12), %s14398_s15, 8192, %s500_s19, [#allocation6], %s9396_s25, %s9396_s25, %s9397_s16  }
  0x65   : > { %p14808_p13 = scmp.ne.s32.totalorder %s14804_s21, 0 }
  0x67   : > { %527 = sbr.rel (%p14808_p13) target bundleno = 2109 (0x83d), region = 88 }
  0x6e   : > { %p14809_p5 = scmp.eq.s32.totalorder %s9513_s28, 0 }
  0x70   : > { %9362 = dma.done.wait (%p14809_p5), [#allocation3], 8192   ;;  %p14810_p0 = pmov %p14809_p5 }
  0x72   : > { %9364 = vsyncadd (%p14810_p0), [#allocation3], 4294959104  ;;  %p14811_p6 = pmov %p14810_p0 }
  0x73   : > { %p14812_p9 = pmov %p14810_p0 }
  0x74   : > { %9366 = dma.done.wait (%p14811_p6), [#allocation6], 40960  }
  0x75   : > { %9368 = vsyncadd (%p14812_p9), [#allocation6], 4294926336  ;;  %s7913_s29 = sshll.u32 %s9513_s28, 4  ;;  %s14813_s24 = sld [smem:[#allocation116_spill]]  ;;  %vm642_vm0 = vcmask 261120   ;;  %v9398_v42 = vmov 0  }
  0x76   : > { %p588_p10 = scmp.lt.s32.totalorder %s7913_s29, 31  ;;  %s14814_s20 = sld [smem:[#allocation117_spill]]  ;;  %v8972_v11 = vld [vmem:[%s14386_s3 + $0x4] ss:$8 sps:$4 sm:$0xff]   ;;  %v8974_v12 = vld [vmem:[%s14386_s3] ss:$8 sps:$4 sm:$0xff]   ;;  %960 = vmatprep.mubr.bf16.mxu1 %v9398_v42 }
  0x77   : > { %v8975_v15 = vld [vmem:[%s14386_s3 + $0x14] ss:$8 sps:$4 sm:$0xff]   ;;  %928 = vmatprep.subr.bf16.mxu1 %v8972_v11  ;;  %v8977_v17 = vld [vmem:[%s14386_s3 + $0x10] ss:$8 sps:$4 sm:$0xff]   ;;  %v8978_v19 = vld [vmem:[%s14386_s3 + $0x24] ss:$8 sps:$4 sm:$0xff]  }
  0x78   : > { %s15562_s29 = smov (!%p588_p10, %s7913_s29), 31  ;;  %929 = vmatpush1.bf16.msra.mxu1 %v8974_v12  ;;  %v8980_v20 = vld [vmem:[%s14386_s3 + $0x20] ss:$8 sps:$4 sm:$0xff]   ;;  %v8981_v22 = vld [vmem:[%s14386_s3 + $0x34] ss:$8 sps:$4 sm:$0xff]   ;;  %s15548_s27 = sld [smem:[#allocation119_spill]] }
  0x79   : > { %s7914_s22 = sshll.u32 %s15562_s29, 3  ;;  %930 = vmatprep.subr.bf16.mxu1 %v8975_v15  ;;  %v8983_v26 = vld [vmem:[%s14386_s3 + $0x30] ss:$8 sps:$4 sm:$0xff]   ;;  %v8984_v29 = vld [vmem:[%s14386_s3 + $0x44] ss:$8 sps:$4 sm:$0xff]   ;;  %s15550_s23 = sld [smem:[#allocation18_spill]] }
  0x7a   : > { %v8986_v30 = vld [vmem:[%s14386_s3 + $0x40] ss:$8 sps:$4 sm:$0xff]   ;;  %v8987_v32 = vld [vmem:[%s14386_s3 + $0x54] ss:$8 sps:$4 sm:$0xff]   ;;  %v8989_v37 = vld [vmem:[%s14386_s3 + $0x50] ss:$8 sps:$4 sm:$0xff]  }
  0x7b   : > { %s9634_s19 = scalar_lea.vmem %s14813_s24, %s7914_s22  ;;  %v8990_v38 = vld [vmem:[%s14386_s3 + $0x64] ss:$8 sps:$4 sm:$0xff]   ;;  %v8992_v39 = vld [vmem:[%s14386_s3 + $0x60] ss:$8 sps:$4 sm:$0xff]   ;;  %v8993_v40 = vld [vmem:[%s14386_s3 + $0x74] ss:$8 sps:$4 sm:$0xff]  }
  0x7c   : > { %v8970_v0 = vld [vmem:[%s14814_s20] sm:$0xff]   ;;  %v8971_v1 = vld [vmem:[%s14814_s20 + $0x8] sm:$0xff]   ;;  %v597_v5 = vld [vmem:[%s9634_s19 + $0x10] sm:$0xff]  ;;  %931 = vmatpush1.bf16.msra.mxu1 %v8977_v17  ;;  %s8332_s18 = sshll.u32 %s9513_s28, 11  ;;  %s15551_s11 = sld [smem:[#allocation120_spill]] }
  0x7d   : > { %8599 = vmatprep.subr.bf16.mxu0 %v8970_v0  ;;  %v595_v2 = vld [vmem:[%s9634_s19] sm:$0xff]  ;;  %v596_v3 = vld [vmem:[%s9634_s19 + $0x8] sm:$0xff]  ;;  %v598_v6 = vld [vmem:[%s9634_s19 + $0x18] sm:$0xff]  ;;  %932 = vmatprep.subr.bf16.mxu1 %v8978_v19  ;;  %s9399_s28 = smov [#allocation8]  }
  0x7e   : > { %8600 = vmatpush3.bf16.msra.mxu0 %v8970_v0  ;;  %v616_v4 = vpack.c.bf16 %v596_v3, %v595_v2  ;;  %v599_v7 = vld [vmem:[%s9634_s19 + $0x20] sm:$0xff]  ;;  %v600_v8 = vld [vmem:[%s9634_s19 + $0x28] sm:$0xff]  ;;  %v617_v9 = vpack.c.bf16 %v598_v6, %v597_v5  ;;  %v601_v13 = vld [vmem:[%s9634_s19 + $0x30] sm:$0xff]  ;;  %s9321_s21 = sshll.u32 %s9399_s28, 4  ;;  %s9322_s21 = int_to_ptr.vmem [resolvable:$false] %s9321_s21 }
  0x7f   : > { %8601 = vmatprep.subr.bf16.mxu0 %v8971_v1  ;;  %v618_v10 = vpack.c.bf16 %v600_v8, %v599_v7  ;;  %v602_v14 = vld [vmem:[%s9634_s19 + $0x38] sm:$0xff]  ;;  %v603_v16 = vld [vmem:[%s9634_s19 + $0x40] sm:$0xff]  ;;  %v604_v18 = vld [vmem:[%s9634_s19 + $0x48] sm:$0xff]  ;;  %p15552_p1 = scmp.ne.s32.totalorder %s15550_s23, 0  ;;  %s9323_s24 = scalar_lea.vmem %s9322_s21, 4096 }
  0x80   : > { %8603 = vmatprep.mubr.msk.bf16.mxu0 %vm642_vm0, %v616_v4  ;;  %v619_v21 = vpack.c.bf16 %v602_v14, %v601_v13  ;;  %v620_v23 = vpack.c.bf16 %v604_v18, %v603_v16  ;;  %v605_v24 = vld [vmem:[%s9634_s19 + $0x50] sm:$0xff]  ;;  %v606_v25 = vld [vmem:[%s9634_s19 + $0x58] sm:$0xff]  ;;  %v607_v27 = vld [vmem:[%s9634_s19 + $0x60] sm:$0xff]  ;;  %933 = vmatpush1.bf16.msra.mxu1 %v8980_v20 }
  0x81   : > { %v608_v28 = vld [vmem:[%s9634_s19 + $0x68] sm:$0xff]  ;;  %934 = vmatprep.subr.bf16.mxu1 %v8981_v22  ;;  %v621_v31 = vpack.c.bf16 %v606_v25, %v605_v24  ;;  %v609_v34 = vld [vmem:[%s9634_s19 + $0x70] sm:$0xff]  ;;  %v610_v35 = vld [vmem:[%s9634_s19 + $0x78] sm:$0xff]  ;;  %s15549_s19 = sld [smem:[#allocation13_spill]] }
  0x82   : > { %8602 = vmatpush3.bf16.msra.mxu0 %v8971_v1  ;;  %v622_v33 = vpack.c.bf16 %v608_v28, %v607_v27  ;;  %v623_v36 = vpack.c.bf16 %v610_v35, %v609_v34  ;;  %v8995_v41 = vld [vmem:[%s14386_s3 + $0x70] ss:$8 sps:$4 sm:$0xff]   ;;  %v9718_v43 = vld [vmem:[%s14385_s2] ss:$0 sm:$0xff]  ;;  %s14334_s29 = scalar_lea.hbm %s15551_s11, %s8332_s18 }
  0x84   : > { %935 = vmatpush1.bf16.msra.mxu1 %v8983_v26 }
  0x85   : > { %8604 = vmatmul.mubr.msk.bf16.vlgmr.msra.gmra.mrb[0].mxu0 %vm642_vm0, %v617_v9  ;;  %936 = vmatprep.subr.bf16.mxu1 %v8984_v29 }
  0x86   : > { %8607 = vmatprep.mubr.msk.bf16.mxu0 %vm642_vm0, %v618_v10 }
  0x87   : > { %s584_s0 = sand.u32 1, %s15549_s19  }
  0x88   : > { %937 = vmatpush1.bf16.msra.mxu1 %v8986_v30  ;;  %s7912_s30 = sshll.u32 %s584_s0, 7  ;;  %s14342_s22 = scalar_lea.sflag [#allocation4], %s584_s0 }
  0x89   : > { %938 = vmatprep.subr.bf16.mxu1 %v8987_v32  ;;  %s14301_s26 = scalar_lea.vmem [#allocation8], %s7912_s30 }
  0x8a   : > { %s7809_s25 = sshll.u32 %s14301_s26, 4  ;;  %s14336_s25 = int_to_ptr.vmem [resolvable:$true] %s7809_s25 }
  0x8b   : > { %s9317_s1 = scalar_lea.vmem %s14336_s25, 2048  ;;  %p9324_p4 = scmp.lt.s32.totalorder %s14336_s25, %s9322_s21 }
  0x8c   : > { %939 = vmatpush1.bf16.msra.mxu1 %v8989_v37  ;;  %p9318_p12 = scmp.ne.s32.totalorder %s14336_s25, %s9317_s1  ;;  %p9325_p7 = scmp.lt.s32.totalorder %s9323_s24, %s9317_s1 }
  0x8d   : > { %8608 = vmatmul.mubr.msk.bf16.gmra.mrb[4].mxu0 %vm642_vm0, %v619_v21  ;;  %940 = vmatprep.subr.bf16.mxu1 %v8990_v38 }
  0x8e   : > { %8611 = vmatprep.mubr.msk.bf16.mxu0 %vm642_vm0, %v620_v23  ;;  %p9319_p2 = pnand %p9318_p12, %p15552_p1  ;;  %p9326_p8 = por %p9325_p7, %p9324_p4 }
  0x90   : > { %941 = vmatpush1.bf16.msra.mxu1 %v8992_v39  ;;  %p9320_p3 = pneg %p9319_p2 }
  0x91   : > { %942 = vmatprep.subr.bf16.mxu1 %v8993_v40 }
  0x92   : > { %p9327_p11 = pnand %p9326_p8, %p9320_p3 }
  0x94   : > { %943 = vmatpush1.bf16.msra.mxu1 %v8995_v41 }
  0x95   : > { %8612 = vmatmul.mubr.msk.bf16.gmra.mrb[8].mxu0 %vm642_vm0, %v621_v31 }
  0x96   : > { %8615 = vmatprep.mubr.msk.bf16.mxu0 %vm642_vm0, %v622_v33 }
  0x9d   : > { %8616 = vmatmul.mubr.msk.bf16.gmra.mrb[12].mxu0 %vm642_vm0, %v623_v36 }
 0x158   : > { %v8605_v44 = vpop.f32.mrb[0].mxu0 }
 0x159   : > { %v710_v45 = vadd.f32 %v8605_v44, %v9718_v43  ;;  %v701_v46 = vpop.f32.mrb[1].mxu0 }
 0x15a   : > { %v702_v47 = vadd.f32 %v9718_v43, %v701_v46  ;;  %v8606_v48 = vpop.f32.mrb[2].mxu0 }
 0x15b   : > { %v782_v49 = vmul.f32 0.2, %v710_v45  ;;  %v713_v50 = vadd.f32 %v8606_v48, %v9718_v43  ;;  %v704_v51 = vpop.f32.mrb[3].mxu0  ;;  %vm766_vm1 = vcmp.gt.f32.partialorder %v710_v45, 0.0 }
 0x15c   : > { %v780_v52 = vmul.f32 0.2, %v702_v47  ;;  %v705_v53 = vadd.f32 %v9718_v43, %v704_v51  ;;  %vm764_vm2 = vcmp.gt.f32.partialorder %v702_v47, 0.0 }
 0x15d   : > { %vm767_vm3 = vcmp.gt.f32.partialorder %v713_v50, 0.0  ;;  %v783_v54 = vmul.f32 0.2, %v713_v50  ;;  %v798_v56 = vsel %vm766_vm1, %v710_v45, %v782_v49 }
 0x15e   : > { %vm765_vm4 = vcmp.gt.f32.partialorder %v705_v53, 0.0  ;;  %v781_v55 = vmul.f32 0.2, %v705_v53  ;;  %v796_v59 = vsel %vm764_vm2, %v702_v47, %v780_v52 }
 0x15f   : > { %v799_v57 = vsel %vm767_vm3, %v713_v50, %v783_v54  ;;  %v9001_v54 = vld [vmem:[#allocation2 + $0xc] ss:$16 sps:$4 sm:$0xff]  }
 0x160   : > { %v8609_v58 = vpop.f32.mrb[4].mxu0  ;;  %v797_v60 = vsel %vm765_vm4, %v705_v53, %v781_v55  ;;  %v830_v61 = vpack.c.bf16 %v799_v57, %v798_v56  ;;  %v8996_v55 = vld [vmem:[#allocation2] ss:$16 sps:$4 sm:$0xff]   ;;  %v8999_v56 = vld [vmem:[#allocation2 + $0x8] ss:$16 sps:$4 sm:$0xff]   ;;  %1949 = vmatprep.subr.bf16.mxu1 %v9001_v54 }
 0x161   : > { %v726_v62 = vadd.f32 %v8609_v58, %v9718_v43  ;;  %v829_v63 = vpack.c.bf16 %v797_v60, %v796_v59  ;;  %v717_v0 = vpop.f32.mrb[5].mxu0  ;;  %v9004_v57 = vld [vmem:[#allocation2 + $0x24] ss:$16 sps:$4 sm:$0xff]   ;;  %v9007_v58 = vld [vmem:[#allocation2 + $0x2c] ss:$16 sps:$4 sm:$0xff]  }
 0x162   : > { %v718_v1 = vadd.f32 %v9718_v43, %v717_v0  ;;  %v8610_v2 = vpop.f32.mrb[6].mxu0  ;;  %v9002_v59 = vld [vmem:[#allocation2 + $0x20] ss:$16 sps:$4 sm:$0xff]   ;;  %v9005_v60 = vld [vmem:[#allocation2 + $0x28] ss:$16 sps:$4 sm:$0xff]  }
 0x163   : > { %vm770_vm5 = vcmp.gt.f32.partialorder %v726_v62, 0.0  ;;  %v786_v3 = vmul.f32 0.2, %v726_v62  ;;  %961 = vmatmul.mubr.bf16.vlgmr.msra.gmra.mrb[0].mxu1 %v829_v63  ;;  %v729_v4 = vadd.f32 %v8610_v2, %v9718_v43  ;;  %v720_v5 = vpop.f32.mrb[7].mxu0  ;;  %v9011_v63 = vld [vmem:[#allocation2 + $0x48] ss:$16 sps:$4 sm:$0xff]  }
 0x164   : > { %vm768_vm6 = vcmp.gt.f32.partialorder %v718_v1, 0.0  ;;  %v784_v6 = vmul.f32 0.2, %v718_v1  ;;  %v721_v7 = vadd.f32 %v9718_v43, %v720_v5  ;;  %970 = vmatprep.mubr.bf16.mxu1 %v9398_v42  ;;  %1950 = vmatpush1.bf16.msra.mxu1 %v8999_v56  ;;  %v9016_v0 = vld [vmem:[#allocation2 + $0x64] ss:$16 sps:$4 sm:$0xff]  }
 0x165   : > { %vm771_vm7 = vcmp.gt.f32.partialorder %v729_v4, 0.0  ;;  %v787_v8 = vmul.f32 0.2, %v729_v4  ;;  %v802_v9 = vsel %vm770_vm5, %v726_v62, %v786_v3  ;;  %1951 = vmatprep.subr.bf16.mxu1 %v9007_v58  ;;  %v9013_v62 = vld [vmem:[#allocation2 + $0x4c] ss:$16 sps:$4 sm:$0xff]  }
 0x166   : > { %vm769_vm8 = vcmp.gt.f32.partialorder %v721_v7, 0.0  ;;  %v785_v10 = vmul.f32 0.2, %v721_v7  ;;  %v800_v11 = vsel %vm768_vm6, %v718_v1, %v784_v6  ;;  %v9019_v1 = vld [vmem:[#allocation2 + $0x6c] ss:$16 sps:$4 sm:$0xff]  }
 0x167   : > { %v803_v12 = vsel %vm771_vm7, %v729_v4, %v787_v8  ;;  %v9014_v2 = vld [vmem:[#allocation2 + $0x60] ss:$16 sps:$4 sm:$0xff]   ;;  %v9017_v3 = vld [vmem:[#allocation2 + $0x68] ss:$16 sps:$4 sm:$0xff]   ;;  %v838_v4 = vlaneseq  ;;  %v9022_v5 = vld [vmem:[#allocation2 + $0x84] ss:$16 sps:$4 sm:$0xff]  }
 0x168   : > { %v8613_v13 = vpop.f32.mrb[8].mxu0  ;;  %v801_v14 = vsel %vm769_vm8, %v721_v7, %v785_v10  ;;  %v832_v15 = vpack.c.bf16 %v803_v12, %v802_v9  ;;  %1952 = vmatpush1.bf16.msra.mxu1 %v9005_v60  ;;  %v9025_v6 = vld [vmem:[#allocation2 + $0x8c] ss:$16 sps:$4 sm:$0xff]   ;;  %v9020_v7 = vld [vmem:[#allocation2 + $0x80] ss:$16 sps:$4 sm:$0xff]  }
 0x169   : > { %v742_v16 = vadd.f32 %v8613_v13, %v9718_v43  ;;  %v831_v17 = vpack.c.bf16 %v801_v14, %v800_v11  ;;  %v733_v18 = vpop.f32.mrb[9].mxu0  ;;  %1953 = vmatprep.subr.bf16.mxu1 %v9013_v62  ;;  %v9023_v8 = vld [vmem:[#allocation2 + $0x88] ss:$16 sps:$4 sm:$0xff]   ;;  %v9743_v9 = vshrl.u32 %v838_v4, 7  ;;  %v9028_v10 = vld [vmem:[#allocation2 + $0xa4] ss:$16 sps:$4 sm:$0xff]  }
 0x16a   : > { %v734_v19 = vadd.f32 %v9718_v43, %v733_v18  ;;  %v8614_v20 = vpop.f32.mrb[10].mxu0  ;;  %v9031_v11 = vld [vmem:[#allocation2 + $0xac] ss:$16 sps:$4 sm:$0xff]   ;;  %v9026_v12 = vld [vmem:[#allocation2 + $0xa0] ss:$16 sps:$4 sm:$0xff]  }
 0x16b   : > { %971 = vmatmul.mubr.bf16.gmra.mrb[4].mxu1 %v830_v61  ;;  %vm774_vm9 = vcmp.gt.f32.partialorder %v742_v16, 0.0  ;;  %v790_v21 = vmul.f32 0.2, %v742_v16  ;;  %v745_v22 = vadd.f32 %v8614_v20, %v9718_v43  ;;  %v736_v23 = vpop.f32.mrb[11].mxu0  ;;  %v9010_v61 = vld [vmem:[#allocation2 + $0x44] ss:$16 sps:$4 sm:$0xff]  }
 0x16c   : > { %980 = vmatprep.mubr.bf16.mxu1 %v9398_v42  ;;  %vm772_vm10 = vcmp.gt.f32.partialorder %v734_v19, 0.0  ;;  %v788_v24 = vmul.f32 0.2, %v734_v19  ;;  %v737_v25 = vadd.f32 %v9718_v43, %v736_v23  ;;  %1954 = vmatpush1.bf16.msra.mxu1 %v9011_v63  ;;  %14815 = vst [vmem:[#allocation20_spill] sm:$0xff] %v9743_v9  ;;  %v9029_v13 = vld [vmem:[#allocation2 + $0xa8] ss:$16 sps:$4 sm:$0xff]  }
 0x16d   : > { %vm775_vm11 = vcmp.gt.f32.partialorder %v745_v22, 0.0  ;;  %v791_v26 = vmul.f32 0.2, %v745_v22  ;;  %v806_v27 = vsel %vm774_vm9, %v742_v16, %v790_v21  ;;  %1955 = vmatprep.subr.bf16.mxu1 %v9019_v1  ;;  %v828_v14 = vld [vmem:[%s14387_s4] sm:$0x3]  ;;  %v9752_v18 = vsub.s32 1, %v9743_v9 }
 0x16e   : > { %vm773_vm12 = vcmp.gt.f32.partialorder %v737_v25, 0.0  ;;  %v789_v28 = vmul.f32 0.2, %v737_v25  ;;  %v804_v29 = vsel %vm772_vm10, %v734_v19, %v788_v24  ;;  %v9034_v16 = vld [vmem:[#allocation2 + $0xc4] ss:$16 sps:$4 sm:$0xff]  }
 0x16f   : > { %v807_v30 = vsel %vm775_vm11, %v745_v22, %v791_v26  ;;  %14817 = vst [vmem:[#allocation22_spill] sm:$0xff] %v9752_v18  ;;  %v9032_v19 = vld [vmem:[#allocation2 + $0xc0] ss:$16 sps:$4 sm:$0xff]   ;;  %v9035_v20 = vld [vmem:[#allocation2 + $0xc8] ss:$16 sps:$4 sm:$0xff]  }
 0x170   : > { %v8617_v31 = vpop.f32.mrb[12].mxu0  ;;  %v805_v32 = vsel %vm773_vm12, %v737_v25, %v789_v28  ;;  %v834_v33 = vpack.c.bf16 %v807_v30, %v806_v27  ;;  %1956 = vmatpush1.bf16.msra.mxu1 %v9017_v3  ;;  %v9040_v22 = vld [vmem:[#allocation2 + $0xe4] ss:$16 sps:$4 sm:$0xff]   ;;  %v9043_v23 = vld [vmem:[#allocation2 + $0xec] ss:$16 sps:$4 sm:$0xff]   ;;  %v9758_v25 = vrot.slane %v828_v14, %v9752_v18 }
 0x171   : > { %v758_v34 = vadd.f32 %v8617_v31, %v9718_v43  ;;  %v833_v35 = vpack.c.bf16 %v805_v32, %v804_v29  ;;  %v749_v36 = vpop.f32.mrb[13].mxu0  ;;  %1957 = vmatprep.subr.bf16.mxu1 %v9025_v6  ;;  %v9038_v26 = vld [vmem:[#allocation2 + $0xe0] ss:$16 sps:$4 sm:$0xff]   ;;  %v9041_v27 = vld [vmem:[#allocation2 + $0xe8] ss:$16 sps:$4 sm:$0xff]  }
 0x172   : > { %v750_v37 = vadd.f32 %v9718_v43, %v749_v36  ;;  %v8618_v38 = vpop.f32.mrb[14].mxu0  ;;  %v9058_v54 = vld [vmem:[#allocation2 + $0x144] ss:$16 sps:$4 sm:$0xff]   ;;  %v9056_v58 = vld [vmem:[#allocation2 + $0x140] ss:$16 sps:$4 sm:$0xff]  }
 0x173   : > { %981 = vmatmul.mubr.bf16.gmra.mrb[8].mxu1 %v831_v17  ;;  %vm778_vm13 = vcmp.gt.f32.partialorder %v758_v34, 0.0  ;;  %v794_v39 = vmul.f32 0.2, %v758_v34  ;;  %v761_v40 = vadd.f32 %v8618_v38, %v9718_v43  ;;  %v752_v41 = vpop.f32.mrb[15].mxu0  ;;  %v9037_v17 = vld [vmem:[#allocation2 + $0xcc] ss:$16 sps:$4 sm:$0xff]  }
 0x174   : > { %990 = vmatprep.mubr.bf16.mxu1 %v9398_v42  ;;  %vm776_vm14 = vcmp.gt.f32.partialorder %v750_v37, 0.0  ;;  %v792_v44 = vmul.f32 0.2, %v750_v37  ;;  %v753_v45 = vadd.f32 %v9718_v43, %v752_v41  ;;  %v8998_v43 = vld [vmem:[#allocation2 + $0x4] ss:$16 sps:$4 sm:$0xff]   ;;  %1958 = vmatpush1.bf16.msra.mxu1 %v9023_v8 }
 0x175   : > { %vm779_vm15 = vcmp.gt.f32.partialorder %v761_v40, 0.0  ;;  %v795_v46 = vmul.f32 0.2, %v761_v40  ;;  %v810_v47 = vsel %vm778_vm13, %v758_v34, %v794_v39  ;;  %1836 = vmatprep.subr.bf16.mxu0 %v8998_v43  ;;  %1959 = vmatprep.subr.bf16.mxu1 %v9031_v11  ;;  %v9049_v34 = vld [vmem:[#allocation2 + $0x10c] ss:$16 sps:$4 sm:$0xff]  }
 0x176   : > { %vm777_vm0 = vcmp.gt.f32.partialorder %v753_v45, 0.0  ;;  %v793_v48 = vmul.f32 0.2, %v753_v45  ;;  %v808_v49 = vsel %vm776_vm14, %v750_v37, %v792_v44  ;;  %1837 = vmatpush1.bf16.msra.mxu0 %v8996_v55  ;;  %v9044_v37 = vld [vmem:[#allocation2 + $0x100] ss:$16 sps:$4 sm:$0xff]  }
 0x177   : > { %v811_v50 = vsel %vm779_vm15, %v761_v40, %v795_v46  ;;  %1838 = vmatprep.subr.bf16.mxu0 %v9004_v57  ;;  %v9047_v38 = vld [vmem:[#allocation2 + $0x108] ss:$16 sps:$4 sm:$0xff]   ;;  %v9052_v41 = vld [vmem:[#allocation2 + $0x124] ss:$16 sps:$4 sm:$0xff]   ;;  %v9055_v44 = vld [vmem:[#allocation2 + $0x12c] ss:$16 sps:$4 sm:$0xff]  }
 0x178   : > { %v809_v51 = vsel %vm777_vm0, %v753_v45, %v793_v48  ;;  %v836_v52 = vpack.c.bf16 %v811_v50, %v810_v47  ;;  %1960 = vmatpush1.bf16.msra.mxu1 %v9029_v13  ;;  %v9050_v46 = vld [vmem:[#allocation2 + $0x120] ss:$16 sps:$4 sm:$0xff]   ;;  %v9053_v47 = vld [vmem:[#allocation2 + $0x128] ss:$16 sps:$4 sm:$0xff]   ;;  %v9061_v55 = vld [vmem:[#allocation2 + $0x14c] ss:$16 sps:$4 sm:$0xff]  }
 0x179   : > { %v835_v53 = vpack.c.bf16 %v809_v51, %v808_v49  ;;  %1961 = vmatprep.subr.bf16.mxu1 %v9037_v17  ;;  %v9064_v62 = vld [vmem:[#allocation2 + $0x164] ss:$16 sps:$4 sm:$0xff]   ;;  %v9065_v1 = vld [vmem:[#allocation2 + $0x168] ss:$16 sps:$4 sm:$0xff]   ;;  %v9073_v11 = vld [vmem:[#allocation2 + $0x18c] ss:$16 sps:$4 sm:$0xff]  }
 0x17a   : > { %1839 = vmatpush1.bf16.msra.mxu0 %v9002_v59  ;;  %v9059_v59 = vld [vmem:[#allocation2 + $0x148] ss:$16 sps:$4 sm:$0xff]  }
 0x17b   : > { %991 = vmatmul.mubr.bf16.gmra.mrb[12].mxu1 %v832_v15  ;;  %1840 = vmatprep.subr.bf16.mxu0 %v9010_v61  ;;  %v9749_v15 = vsub.s32 0, %v9743_v9 }
 0x17c   : > { %1000 = vmatprep.mubr.bf16.mxu1 %v9398_v42  ;;  %1962 = vmatpush1.bf16.msra.mxu1 %v9035_v20  ;;  %v9076_v20 = vld [vmem:[#allocation2 + $0x1a4] ss:$16 sps:$4 sm:$0xff]  }
 0x17d   : > { %14816 = vst [vmem:[#allocation21_spill] sm:$0xff] %v9749_v15  ;;  %v9755_v21 = vrot.slane %v828_v14, %v9749_v15  ;;  %1963 = vmatprep.subr.bf16.mxu1 %v9043_v23  ;;  %v9068_v14 = vld [vmem:[#allocation2 + $0x180] ss:$16 sps:$4 sm:$0xff]  }
 0x180   : > { %1964 = vmatpush1.bf16.msra.mxu1 %v9041_v27 }
 0x181   : > { %1965 = vmatprep.subr.bf16.mxu1 %v9049_v34 }
 0x183   : > { %1001 = vmatmul.mubr.bf16.gmra.mrb[16].mxu1 %v833_v35 }
 0x184   : > { %1010 = vmatprep.mubr.bf16.mxu1 %v9398_v42  ;;  %1966 = vmatpush1.bf16.msra.mxu1 %v9047_v38  ;;  %v9080_v38 = vld [vmem:[#allocation2 + $0x1c0] ss:$16 sps:$4 sm:$0xff]  }
 0x185   : > { %1967 = vmatprep.subr.bf16.mxu1 %v9055_v44  ;;  %v9083_v44 = vld [vmem:[#allocation2 + $0x1c8] ss:$16 sps:$4 sm:$0xff]  }
 0x188   : > { %1968 = vmatpush1.bf16.msra.mxu1 %v9053_v47  ;;  %v9088_v47 = vld [vmem:[#allocation2 + $0x1e4] ss:$16 sps:$4 sm:$0xff]  }
 0x189   : > { %1969 = vmatprep.subr.bf16.mxu1 %v9061_v55 }
 0x18b   : > { %1011 = vmatmul.mubr.bf16.gmra.mrb[20].mxu1 %v834_v33  ;;  %v9046_v33 = vld [vmem:[#allocation2 + $0x104] ss:$16 sps:$4 sm:$0xff]  }
 0x18c   : > { %1020 = vmatprep.mubr.bf16.mxu1 %v9398_v42  ;;  %1970 = vmatpush1.bf16.msra.mxu1 %v9059_v59 }
 0x193   : > { %1021 = vmatmul.mubr.bf16.gmra.mrb[24].mxu1 %v835_v53 }
 0x194   : > { %1030 = vmatprep.mubr.bf16.mxu1 %v9398_v42  ;;  %v9008_v42 = vld [vmem:[#allocation2 + $0x40] ss:$16 sps:$4 sm:$0xff]  }
 0x195   : > { %1841 = vmatpush1.bf16.msra.mxu0 %v9008_v42  ;;  %v9067_v42 = vld [vmem:[#allocation2 + $0x16c] ss:$16 sps:$4 sm:$0xff]  }
 0x196   : > { %1842 = vmatprep.subr.bf16.mxu0 %v9016_v0  ;;  %v9062_v0 = vld [vmem:[#allocation2 + $0x160] ss:$16 sps:$4 sm:$0xff]   ;;  %1971 = vmatprep.subr.bf16.mxu1 %v9067_v42 }
 0x197   : > { %1972 = vmatpush1.bf16.msra.mxu1 %v9065_v1 }
 0x198   : > { %1973 = vmatprep.subr.bf16.mxu1 %v9073_v11 }
 0x199   : > { %1843 = vmatpush1.bf16.msra.mxu0 %v9014_v2 }
 0x19a   : > { %1844 = vmatprep.subr.bf16.mxu0 %v9022_v5 }
 0x19b   : > { %1031 = vmatmul.mubr.bf16.gmra.mrb[28].mxu1 %v836_v52 }
 0x19d   : > { %1845 = vmatpush1.bf16.msra.mxu0 %v9020_v7 }
 0x19e   : > { %1846 = vmatprep.subr.bf16.mxu0 %v9028_v10  ;;  %v9070_v10 = vld [vmem:[#allocation2 + $0x184] ss:$16 sps:$4 sm:$0xff]  }
 0x1a1   : > { %1847 = vmatpush1.bf16.msra.mxu0 %v9026_v12 }
 0x1a2   : > { %1848 = vmatprep.subr.bf16.mxu0 %v9034_v16  ;;  %v9071_v16 = vld [vmem:[#allocation2 + $0x188] ss:$16 sps:$4 sm:$0xff]  }
 0x1a3   : > { %1974 = vmatpush1.bf16.msra.mxu1 %v9071_v16 }
 0x1a5   : > { %1849 = vmatpush1.bf16.msra.mxu0 %v9032_v19 }
 0x1a6   : > { %1850 = vmatprep.subr.bf16.mxu0 %v9040_v22  ;;  %v9079_v22 = vld [vmem:[#allocation2 + $0x1ac] ss:$16 sps:$4 sm:$0xff]  }
 0x1a7   : > { %1975 = vmatprep.subr.bf16.mxu1 %v9079_v22 }
 0x1a9   : > { %1851 = vmatpush1.bf16.msra.mxu0 %v9038_v26  ;;  %v9077_v26 = vld [vmem:[#allocation2 + $0x1a8] ss:$16 sps:$4 sm:$0xff]  }
 0x1aa   : > { %1852 = vmatprep.subr.bf16.mxu0 %v9046_v33  ;;  %1976 = vmatpush1.bf16.msra.mxu1 %v9077_v26 }
 0x1ad   : > { %1853 = vmatpush1.bf16.msra.mxu0 %v9044_v37 }
 0x1ae   : > { %1854 = vmatprep.subr.bf16.mxu0 %v9052_v41 }
 0x1b1   : > { %1855 = vmatpush1.bf16.msra.mxu0 %v9050_v46 }
 0x1b2   : > { %1856 = vmatprep.subr.bf16.mxu0 %v9058_v54 }
 0x1b5   : > { %1857 = vmatpush1.bf16.msra.mxu0 %v9056_v58 }
 0x1b6   : > { %1858 = vmatprep.subr.bf16.mxu0 %v9064_v62 }
 0x1b9   : > { %1859 = vmatpush1.bf16.msra.mxu0 %v9062_v0 }
 0x1ba   : > { %1860 = vmatprep.subr.bf16.mxu0 %v9070_v10 }
 0x1bd   : > { %1861 = vmatpush1.bf16.msra.mxu0 %v9068_v14 }
 0x1be   : > { %1862 = vmatprep.subr.bf16.mxu0 %v9076_v20 }
 0x236   : > { %v962_v24 = vpop.f32.mrb[0].mxu1 }
 0x237   : > { %v964_v28 = vpop.f32.mrb[1].mxu1  ;;  %v9761_v30 = vadd.f32 %v962_v24, %v9755_v21  ;;  %v9074_v24 = vld [vmem:[#allocation2 + $0x1a0] ss:$16 sps:$4 sm:$0xff]  }
 0x238   : > { %v966_v29 = vpop.f32.mrb[2].mxu1  ;;  %v9767_v35 = vadd.f32 %v964_v28, %v9758_v25  ;;  %1863 = vmatpush1.bf16.msra.mxu0 %v9074_v24 }
 0x239   : > { %v9764_v31 = vadd.f32 %v966_v29, %v9755_v21  ;;  %v968_v32 = vpop.f32.mrb[3].mxu1 }
 0x23a   : > { %v9770_v36 = vadd.f32 %v968_v32, %v9758_v25 }
 0x23b   : > { %v1043_v39 = vadd.f32 %v9764_v31, %v9761_v30 }
 0x23c   : > { %v1064_v40 = vadd.f32 %v9770_v36, %v9767_v35 }
 0x23e   : > { %v972_v45 = vpop.f32.mrb[4].mxu1 }
 0x23f   : > { %v9777_v48 = vadd.f32 %v972_v45, %v9755_v21  ;;  %v974_v49 = vpop.f32.mrb[5].mxu1  ;;  %v9085_v45 = vld [vmem:[#allocation2 + $0x1cc] ss:$16 sps:$4 sm:$0xff]  }
 0x240   : > { %v9780_v50 = vadd.f32 %v974_v49, %v9758_v25  ;;  %v976_v51 = vpop.f32.mrb[6].mxu1  ;;  %v9091_v49 = vld [vmem:[#allocation2 + $0x1ec] ss:$16 sps:$4 sm:$0xff]   ;;  %1977 = vmatprep.subr.bf16.mxu1 %v9085_v45 }
 0x241   : > { %v1044_v52 = vadd.f32 %v1043_v39, %v9777_v48  ;;  %v9784_v53 = vadd.f32 %v976_v51, %v9755_v21  ;;  %v978_v43 = vpop.f32.mrb[7].mxu1  ;;  %v9082_v39 = vld [vmem:[#allocation2 + $0x1c4] ss:$16 sps:$4 sm:$0xff]   ;;  %1978 = vmatpush1.bf16.msra.mxu1 %v9083_v44 }
 0x242   : > { %v1065_v56 = vadd.f32 %v1064_v40, %v9780_v50  ;;  %v9788_v57 = vadd.f32 %v978_v43, %v9758_v25  ;;  %1864 = vmatprep.subr.bf16.mxu0 %v9082_v39  ;;  %v9089_v43 = vld [vmem:[#allocation2 + $0x1e8] ss:$16 sps:$4 sm:$0xff]   ;;  %1979 = vmatprep.subr.bf16.mxu1 %v9091_v49 }
 0x243   : > { %v1045_v60 = vadd.f32 %v1044_v52, %v9784_v53  ;;  %1865 = vmatpush1.bf16.msra.mxu0 %v9080_v38  ;;  %v9086_v52 = vld [vmem:[#allocation2 + $0x1e0] ss:$16 sps:$4 sm:$0xff]  }
 0x244   : > { %v1066_v61 = vadd.f32 %v1065_v56, %v9788_v57  ;;  %1866 = vmatprep.subr.bf16.mxu0 %v9088_v47 }
 0x245   : > { %1980 = vmatpush1.bf16.msra.mxu1 %v9089_v43 }
 0x246   : > { %v982_v63 = vpop.f32.mrb[8].mxu1 }
 0x247   : > { %v9793_v2 = vadd.f32 %v982_v63, %v9755_v21  ;;  %v984_v3 = vpop.f32.mrb[9].mxu1  ;;  %1867 = vmatpush1.bf16.msra.mxu0 %v9086_v52 }
 0x248   : > { %v9796_v4 = vadd.f32 %v984_v3, %v9758_v25  ;;  %v986_v5 = vpop.f32.mrb[10].mxu1 }
 0x249   : > { %v1046_v6 = vadd.f32 %v1045_v60, %v9793_v2  ;;  %v9800_v7 = vadd.f32 %v986_v5, %v9755_v21  ;;  %v988_v8 = vpop.f32.mrb[11].mxu1 }
 0x24a   : > { %v1067_v12 = vadd.f32 %v1066_v61, %v9796_v4  ;;  %v9804_v13 = vadd.f32 %v988_v8, %v9758_v25 }
 0x24b   : > { %v1047_v17 = vadd.f32 %v1046_v6, %v9800_v7 }
 0x24c   : > { %v1068_v19 = vadd.f32 %v1067_v12, %v9804_v13 }
 0x24e   : > { %v992_v23 = vpop.f32.mrb[12].mxu1 }
 0x24f   : > { %v9809_v27 = vadd.f32 %v992_v23, %v9755_v21  ;;  %v994_v28 = vpop.f32.mrb[13].mxu1 }
 0x250   : > { %v9812_v29 = vadd.f32 %v994_v28, %v9758_v25  ;;  %v996_v32 = vpop.f32.mrb[14].mxu1 }
 0x251   : > { %v1048_v33 = vadd.f32 %v1047_v17, %v9809_v27  ;;  %v9816_v34 = vadd.f32 %v996_v32, %v9755_v21  ;;  %v998_v37 = vpop.f32.mrb[15].mxu1 }
 0x252   : > { %v1069_v40 = vadd.f32 %v1068_v19, %v9812_v29  ;;  %v9820_v41 = vadd.f32 %v998_v37, %v9758_v25 }
 0x253   : > { %v1049_v46 = vadd.f32 %v1048_v33, %v9816_v34 }
 0x254   : > { %v1070_v51 = vadd.f32 %v1069_v40, %v9820_v41 }
 0x256   : > { %v1002_v54 = vpop.f32.mrb[16].mxu1 }
 0x257   : > { %v9825_v55 = vadd.f32 %v1002_v54, %v9755_v21  ;;  %v1004_v56 = vpop.f32.mrb[17].mxu1 }
 0x258   : > { %v9828_v58 = vadd.f32 %v1004_v56, %v9758_v25  ;;  %v1006_v59 = vpop.f32.mrb[18].mxu1 }
 0x259   : > { %v1050_v60 = vadd.f32 %v1049_v46, %v9825_v55  ;;  %v9832_v61 = vadd.f32 %v1006_v59, %v9755_v21  ;;  %v1008_v62 = vpop.f32.mrb[19].mxu1 }
 0x25a   : > { %v1071_v42 = vadd.f32 %v1070_v51, %v9828_v58  ;;  %v9836_v63 = vadd.f32 %v1008_v62, %v9758_v25 }
 0x25b   : > { %v1051_v0 = vadd.f32 %v1050_v60, %v9832_v61 }
 0x25c   : > { %v1072_v1 = vadd.f32 %v1071_v42, %v9836_v63 }
 0x25e   : > { %v1012_v3 = vpop.f32.mrb[20].mxu1 }
 0x25f   : > { %v1013_v5 = vadd.f32 %v1012_v3, %v9755_v21  ;;  %v1014_v6 = vpop.f32.mrb[21].mxu1 }
 0x260   : > { %v9842_v8 = vadd.f32 %v1014_v6, %v9758_v25  ;;  %v1016_v10 = vpop.f32.mrb[22].mxu1 }
 0x261   : > { %v1052_v11 = vadd.f32 %v1051_v0, %v1013_v5  ;;  %v1017_v12 = vadd.f32 %v1016_v10, %v9755_v21  ;;  %v1018_v14 = vpop.f32.mrb[23].mxu1 }
 0x262   : > { %v1073_v16 = vadd.f32 %v1072_v1, %v9842_v8  ;;  %v9847_v17 = vadd.f32 %v1018_v14, %v9758_v25 }
 0x263   : > { %v1053_v19 = vadd.f32 %v1052_v11, %v1017_v12 }
 0x264   : > { %v1074_v20 = vadd.f32 %v1073_v16, %v9847_v17 }
 0x266   : > { %v1022_v22 = vpop.f32.mrb[24].mxu1 }
 0x267   : > { %v1023_v23 = vadd.f32 %v1022_v22, %v9755_v21  ;;  %v1024_v24 = vpop.f32.mrb[25].mxu1 }
 0x268   : > { %v9852_v26 = vadd.f32 %v1024_v24, %v9758_v25  ;;  %v1026_v28 = vpop.f32.mrb[26].mxu1 }
 0x269   : > { %v1054_v32 = vadd.f32 %v1053_v19, %v1023_v23  ;;  %v1027_v33 = vadd.f32 %v1026_v28, %v9755_v21  ;;  %v1028_v37 = vpop.f32.mrb[27].mxu1 }
 0x26a   : > { %v1075_v38 = vadd.f32 %v1074_v20, %v9852_v26  ;;  %v9857_v39 = vadd.f32 %v1028_v37, %v9758_v25 }
 0x26b   : > { %v1055_v40 = vadd.f32 %v1054_v32, %v1027_v33 }
 0x26c   : > { %v1076_v44 = vadd.f32 %v1075_v38, %v9857_v39 }
 0x26e   : > { %v1032_v45 = vpop.f32.mrb[28].mxu1 }
 0x26f   : > { %v1033_v46 = vadd.f32 %v1032_v45, %v9755_v21  ;;  %v1034_v47 = vpop.f32.mrb[29].mxu1 }
 0x270   : > { %v1035_v49 = vadd.f32 %v1034_v47, %v9758_v25  ;;  %v1036_v51 = vpop.f32.mrb[30].mxu1 }
 0x271   : > { %v1056_v52 = vadd.f32 %v1055_v40, %v1033_v46  ;;  %v1037_v43 = vadd.f32 %v1036_v51, %v9755_v21  ;;  %v1038_v54 = vpop.f32.mrb[31].mxu1 }
 0x272   : > { %v1077_v56 = vadd.f32 %v1076_v44, %v1035_v49  ;;  %v1039_v59 = vadd.f32 %v1038_v54, %v9758_v25 }
 0x273   : > { %v1057_v60 = vadd.f32 %v1056_v52, %v1037_v43 }
 0x274   : > { %v1078_v62 = vadd.f32 %v1077_v56, %v1039_v59 }
 0x275   : > { %v1058_v42 = vrot.slane %v1057_v60, 4 }
 0x276   : > { %v1079_v0 = vrot.slane %v1078_v62, 4 }
 0x277   : > { %v1059_v1 = vadd.f32 %v1058_v42, %v1057_v60 }
 0x278   : > { %v1080_v3 = vadd.f32 %v1079_v0, %v1078_v62 }
 0x279   : > { %v1060_v6 = vrot.slane %v1059_v1, 2 }
 0x27a   : > { %v1081_v10 = vrot.slane %v1080_v3, 2 }
 0x27b   : > { %v1061_v11 = vadd.f32 %v1060_v6, %v1059_v1 }
 0x27c   : > { %v1082_v14 = vadd.f32 %v1081_v10, %v1080_v3 }
 0x27d   : > { %v1062_v16 = vrot.slane %v1061_v11, 1 }
 0x27e   : > { %v1083_v19 = vrot.slane %v1082_v14, 1 }
 0x27f   : > { %v1063_v20 = vadd.f32 %v1062_v16, %v1061_v11 }
 0x280   : > { %v1084_v24 = vadd.f32 %v1083_v19, %v1082_v14 }
 0x281   : > { %v1086_v22 = vmul.f32 0.0078125, %v1063_v20 }
 0x283   : > { %v9865_v21 = vsub.f32 %v9761_v30, %v1086_v22  ;;  %v9868_v25 = vsub.f32 %v9764_v31, %v1086_v22  ;;  %v9871_v28 = vsub.f32 %v9777_v48, %v1086_v22  ;;  %v9874_v32 = vsub.f32 %v9784_v53, %v1086_v22 }
 0x284   : > { %v9877_v37 = vsub.f32 %v9793_v2, %v1086_v22  ;;  %v9880_v38 = vsub.f32 %v9800_v7, %v1086_v22  ;;  %v9883_v40 = vsub.f32 %v9809_v27, %v1086_v22  ;;  %v9886_v30 = vsub.f32 %v9816_v34, %v1086_v22 }
 0x285   : > { %v9889_v31 = vsub.f32 %v9825_v55, %v1086_v22  ;;  %v9892_v48 = vsub.f32 %v9832_v61, %v1086_v22  ;;  %v9894_v53 = vsub.f32 %v1013_v5, %v1086_v22  ;;  %v9896_v44 = vsub.f32 %v1017_v12, %v1086_v22 }
 0x286   : > { %v9898_v2 = vsub.f32 %v1023_v23, %v1086_v22  ;;  %v9900_v7 = vsub.f32 %v1027_v33, %v1086_v22  ;;  %v9902_v45 = vsub.f32 %v1033_v46, %v1086_v22  ;;  %v9904_v27 = vsub.f32 %v1037_v43, %v1086_v22 }
 0x287   : > { %v1120_v34 = vmul.f32 %v9865_v21, %v9865_v21  ;;  %v1122_v55 = vmul.f32 %v9868_v25, %v9868_v25  ;;  %v1087_v61 = vmul.f32 0.0078125, %v1084_v24  ;;  %v1124_v5 = vmul.f32 %v9871_v28, %v9871_v28 }
 0x288   : > { %v1126_v12 = vmul.f32 %v9874_v32, %v9874_v32  ;;  %v1136_v10 = vmul.f32 %v9889_v31, %v9889_v31  ;;  %v1138_v19 = vmul.f32 %v9892_v48, %v9892_v48 }
 0x289   : > { %v1152_v23 = vadd.f32 %v1122_v55, %v1120_v34  ;;  %v9915_v33 = vsub.f32 %v9767_v35, %v1087_v61  ;;  %v9918_v46 = vsub.f32 %v9770_v36, %v1087_v61  ;;  %v9921_v47 = vsub.f32 %v9780_v50, %v1087_v61 }
 0x28a   : > { %v9924_v51 = vsub.f32 %v9788_v57, %v1087_v61  ;;  %v9927_v52 = vsub.f32 %v9796_v4, %v1087_v61  ;;  %v9930_v43 = vsub.f32 %v9804_v13, %v1087_v61  ;;  %v9933_v54 = vsub.f32 %v9812_v29, %v1087_v61 }
 0x28b   : > { %v1153_v35 = vadd.f32 %v1152_v23, %v1124_v5  ;;  %v9936_v56 = vsub.f32 %v9820_v41, %v1087_v61  ;;  %v9939_v36 = vsub.f32 %v9828_v58, %v1087_v61  ;;  %v9942_v50 = vsub.f32 %v9836_v63, %v1087_v61 }
 0x28c   : > { %v9945_v57 = vsub.f32 %v9842_v8, %v1087_v61  ;;  %v9948_v4 = vsub.f32 %v9847_v17, %v1087_v61  ;;  %v9951_v13 = vsub.f32 %v9852_v26, %v1087_v61  ;;  %v9954_v29 = vsub.f32 %v9857_v39, %v1087_v61 }
 0x28d   : > { %v1128_v41 = vmul.f32 %v9877_v37, %v9877_v37  ;;  %v1154_v58 = vadd.f32 %v1153_v35, %v1126_v12  ;;  %v9958_v60 = vsub.f32 %v1035_v49, %v1087_v61  ;;  %v9960_v63 = vsub.f32 %v1039_v59, %v1087_v61 }
 0x28e   : > { %v1121_v8 = vmul.f32 %v9915_v33, %v9915_v33  ;;  %v1123_v17 = vmul.f32 %v9918_v46, %v9918_v46  ;;  %v1130_v26 = vmul.f32 %v9880_v38, %v9880_v38  ;;  %v1132_v39 = vmul.f32 %v9883_v40, %v9883_v40 }
 0x28f   : > { %v1155_v62 = vadd.f32 %v1154_v58, %v1128_v41  ;;  %v1125_v49 = vmul.f32 %v9921_v47, %v9921_v47  ;;  %v1134_v59 = vmul.f32 %v9886_v30, %v9886_v30  ;;  %v1127_v3 = vmul.f32 %v9924_v51, %v9924_v51 }
 0x290   : > { %v1173_v0 = vadd.f32 %v1123_v17, %v1121_v8  ;;  %v1129_v14 = vmul.f32 %v9927_v52, %v9927_v52  ;;  %v1131_v22 = vmul.f32 %v9930_v43, %v9930_v43  ;;  %v1140_v34 = vmul.f32 %v9894_v53, %v9894_v53 }
 0x291   : > { %v1156_v42 = vadd.f32 %v1155_v62, %v1130_v26  ;;  %v1133_v61 = vmul.f32 %v9933_v54, %v9933_v54  ;;  %v1142_v12 = vmul.f32 %v9896_v44, %v9896_v44  ;;  %v1135_v35 = vmul.f32 %v9936_v56, %v9936_v56 }
 0x292   : > { %v1174_v6 = vadd.f32 %v1173_v0, %v1125_v49  ;;  %v1144_v58 = vmul.f32 %v9898_v2, %v9898_v2  ;;  %v1137_v17 = vmul.f32 %v9939_v36, %v9939_v36  ;;  %v1146_v62 = vmul.f32 %v9900_v7, %v9900_v7 }
 0x293   : > { %v1157_v1 = vadd.f32 %v1156_v42, %v1132_v39  ;;  %v1139_v42 = vmul.f32 %v9942_v50, %v9942_v50  ;;  %v1148_v0 = vmul.f32 %v9902_v45, %v9902_v45 }
 0x294   : > { %v1175_v16 = vadd.f32 %v1174_v6, %v1127_v3  ;;  %v1150_v6 = vmul.f32 %v9904_v27, %v9904_v27 }
 0x295   : > { %v1158_v11 = vadd.f32 %v1157_v1, %v1134_v59  ;;  %v1141_v1 = vmul.f32 %v9945_v57, %v9945_v57 }
 0x296   : > { %v1176_v24 = vadd.f32 %v1175_v16, %v1129_v14 }
 0x297   : > { %v1159_v20 = vadd.f32 %v1158_v11, %v1136_v10  ;;  %v1143_v11 = vmul.f32 %v9948_v4, %v9948_v4 }
 0x298   : > { %v1177_v5 = vadd.f32 %v1176_v24, %v1131_v22  ;;  %v1147_v24 = vmul.f32 %v9954_v29, %v9954_v29 }
 0x299   : > { %v1160_v55 = vadd.f32 %v1159_v20, %v1138_v19  ;;  %v1145_v19 = vmul.f32 %v9951_v13, %v9951_v13 }
 0x29a   : > { %v1178_v41 = vadd.f32 %v1177_v5, %v1133_v61  ;;  %v1149_v61 = vmul.f32 %v9958_v60, %v9958_v60 }
 0x29b   : > { %v1161_v23 = vadd.f32 %v1160_v55, %v1140_v34 }
 0x29c   : > { %v1179_v26 = vadd.f32 %v1178_v41, %v1135_v35 }
 0x29d   : > { %v1162_v8 = vadd.f32 %v1161_v23, %v1142_v12  ;;  %v1151_v23 = vmul.f32 %v9960_v63, %v9960_v63 }
 0x29e   : > { %v1180_v49 = vadd.f32 %v1179_v26, %v1137_v17 }
 0x29f   : > { %v1163_v39 = vadd.f32 %v1162_v8, %v1144_v58 }
 0x2a0   : > { %v1181_v3 = vadd.f32 %v1180_v49, %v1139_v42 }
 0x2a1   : > { %v1164_v59 = vadd.f32 %v1163_v39, %v1146_v62 }
 0x2a2   : > { %v1182_v14 = vadd.f32 %v1181_v3, %v1141_v1 }
 0x2a3   : > { %v1165_v10 = vadd.f32 %v1164_v59, %v1148_v0 }
 0x2a4   : > { %v1183_v20 = vadd.f32 %v1182_v14, %v1143_v11 }
 0x2a5   : > { %v1166_v16 = vadd.f32 %v1165_v10, %v1150_v6  ;;  %v1041_v6 = vld [vmem:[%s14388_s5] sm:$0x3] }
 0x2a6   : > { %v1184_v34 = vadd.f32 %v1183_v20, %v1145_v19  ;;  %v1042_v10 = vld [vmem:[%s14389_s6] sm:$0x3]  ;;  %v10023_v14 = vrot.slane %v1041_v6, %v9749_v15 }
 0x2a7   : > { %v1167_v22 = vrot.slane %v1166_v16, 4  ;;  %v10028_v19 = vrot.slane %v1042_v10, %v9749_v15 }
 0x2a8   : > { %v1185_v5 = vadd.f32 %v1184_v34, %v1147_v24 }
 0x2a9   : > { %v1168_v55 = vadd.f32 %v1167_v22, %v1166_v16 }
 0x2aa   : > { %v1186_v35 = vadd.f32 %v1185_v5, %v1149_v61 }
 0x2ab   : > { %v1169_v12 = vrot.slane %v1168_v55, 2 }
 0x2ac   : > { %v1187_v58 = vadd.f32 %v1186_v35, %v1151_v23 }
 0x2ad   : > { %v1170_v41 = vadd.f32 %v1169_v12, %v1168_v55 }
 0x2ae   : > { %v1188_v17 = vrot.slane %v1187_v58, 4 }
 0x2af   : > { %v1171_v8 = vrot.slane %v1170_v41, 1 }
 0x2b0   : > { %v1189_v62 = vadd.f32 %v1188_v17, %v1187_v58  ;;  %v10065_v58 = vrot.slane %v1042_v10, %v9752_v18 }
 0x2b1   : > { %v1172_v26 = vadd.f32 %v1171_v8, %v1170_v41  ;;  %v10062_v41 = vrot.slane %v1041_v6, %v9752_v18 }
 0x2b2   : > { %v1190_v42 = vrot.slane %v1189_v62, 2 }
 0x2b3   : > { %v1194_v39 = vmul.f32 0.0078125, %v1172_v26 }
 0x2b4   : > { %v1191_v0 = vadd.f32 %v1190_v42, %v1189_v62 }
 0x2b5   : > { %v1196_v49 = vadd.f32 0.8, %v1194_v39 }
 0x2b6   : > { %v1192_v59 = vrot.slane %v1191_v0, 1 }
 0x2b7   : > { %9156 = vrsqrt.f32 %v1196_v49 }
 0x2b8   : > { %v1193_v1 = vadd.f32 %v1192_v59, %v1191_v0 }
 0x2ba   : > { %v1195_v3 = vmul.f32 0.0078125, %v1193_v1 }
 0x2bc   : > { %v1197_v11 = vadd.f32 0.8, %v1195_v3 }
 0x2be   : > { %9158 = vrsqrt.f32 %v1197_v11 }
 0x2c1   : > { %v10025_v16 = vpop.eup %9156 }
 0x2c2   : > { %v10032_v20 = vmul.f32 %v10025_v16, %v9904_v27  ;;  %v1200_v22 = vmul.f32 %v10025_v16, %v9865_v21  ;;  %v1202_v24 = vmul.f32 %v10025_v16, %v9868_v25  ;;  %v1204_v34 = vmul.f32 %v10025_v16, %v9871_v28 }
 0x2c3   : > { %v1206_v55 = vmul.f32 %v10025_v16, %v9874_v32  ;;  %v1208_v61 = vmul.f32 %v10025_v16, %v9877_v37  ;;  %v1210_v5 = vmul.f32 %v10025_v16, %v9880_v38  ;;  %v1212_v27 = vmul.f32 %v10025_v16, %v9883_v40 }
 0x2c4   : > { %v1243_v21 = vmul.f32 %v10023_v14, %v1200_v22  ;;  %v1245_v12 = vmul.f32 %v10023_v14, %v1202_v24  ;;  %v1247_v25 = vmul.f32 %v10023_v14, %v1204_v34  ;;  %v10055_v32 = vmul.f32 %v10025_v16, %v9886_v30 }
 0x2c5   : > { %v1249_v28 = vmul.f32 %v10023_v14, %v1206_v55  ;;  %v1251_v23 = vmul.f32 %v10023_v14, %v1208_v61  ;;  %v1253_v35 = vmul.f32 %v10023_v14, %v1210_v5  ;;  %v10073_v1 = vmul.f32 %v10023_v14, %v1212_v27 }
 0x2c6   : > { %v1286_v37 = vadd.f32 %v10028_v19, %v1243_v21  ;;  %v1288_v38 = vadd.f32 %v10028_v19, %v1245_v12  ;;  %v1290_v40 = vadd.f32 %v10028_v19, %v1247_v25 }
 0x2c7   : > { %v1292_v8 = vadd.f32 %v10028_v19, %v1249_v28  ;;  %v1294_v17 = vadd.f32 %v10028_v19, %v1251_v23  ;;  %v1296_v59 = vadd.f32 %v10028_v19, %v1253_v35 }
 0x2c8   : > { %vm1318_vm1 = vcmp.gt.f32.partialorder %v1286_v37, 0.0  ;;  %vm1320_vm2 = vcmp.gt.f32.partialorder %v1288_v38, 0.0  ;;  %v1350_v30 = vmul.f32 0.2, %v1286_v37  ;;  %v1352_v26 = vmul.f32 0.2, %v1288_v38  ;;  %v10069_v42 = vpop.eup %9158 }
 0x2c9   : > { %vm1322_vm3 = vcmp.gt.f32.partialorder %v1290_v40, 0.0  ;;  %vm1324_vm4 = vcmp.gt.f32.partialorder %v1292_v8, 0.0  ;;  %v1354_v62 = vmul.f32 0.2, %v1290_v40  ;;  %v1356_v39 = vmul.f32 0.2, %v1292_v8 }
 0x2ca   : > { %v1382_v49 = vsel %vm1318_vm1, %v1286_v37, %v1350_v30  ;;  %v1384_v0 = vsel %vm1320_vm2, %v1288_v38, %v1352_v26  ;;  %v10077_v3 = vmul.f32 %v10069_v42, %v9960_v63  ;;  %v1201_v6 = vmul.f32 %v10069_v42, %v9915_v33 }
 0x2cb   : > { %v1203_v10 = vmul.f32 %v10069_v42, %v9918_v46  ;;  %v1479_v11 = vpack.c.bf16 %v1384_v0, %v1382_v49  ;;  %v1205_v22 = vmul.f32 %v10069_v42, %v9921_v47  ;;  %v1207_v24 = vmul.f32 %v10069_v42, %v9924_v51 }
 0x2cc   : > { %v1386_v34 = vsel %vm1322_vm3, %v1290_v40, %v1354_v62  ;;  %v1388_v55 = vsel %vm1324_vm4, %v1292_v8, %v1356_v39  ;;  %v1244_v61 = vmul.f32 %v10062_v41, %v1201_v6  ;;  %vm1326_vm5 = vcmp.gt.f32.partialorder %v1294_v17, 0.0 }
 0x2cd   : > { %v1246_v63 = vmul.f32 %v10062_v41, %v1203_v10  ;;  %v10089_v5 = vpack.c.bf16 %v1388_v55, %v1386_v34  ;;  %v1248_v33 = vmul.f32 %v10062_v41, %v1205_v22  ;;  %v1250_v46 = vmul.f32 %v10062_v41, %v1207_v24 }
 0x2ce   : > { %v1209_v27 = vmul.f32 %v10069_v42, %v9927_v52  ;;  %v1211_v47 = vmul.f32 %v10069_v42, %v9930_v43  ;;  %v1287_v51 = vadd.f32 %v10065_v58, %v1244_v61  ;;  %vm1328_vm6 = vcmp.gt.f32.partialorder %v1296_v59, 0.0 }
 0x2cf   : > { %v1289_v21 = vadd.f32 %v10065_v58, %v1246_v63  ;;  %v1358_v12 = vmul.f32 0.2, %v1294_v17  ;;  %v1291_v25 = vadd.f32 %v10065_v58, %v1248_v33  ;;  %v1293_v28 = vadd.f32 %v10065_v58, %v1250_v46 }
 0x2d0   : > { %v1252_v23 = vmul.f32 %v10062_v41, %v1209_v27  ;;  %v1254_v37 = vmul.f32 %v10062_v41, %v1211_v47  ;;  %vm1319_vm7 = vcmp.gt.f32.partialorder %v1287_v51, 0.0  ;;  %v1351_v52 = vmul.f32 0.2, %v1287_v51 }
 0x2d1   : > { %vm1321_vm8 = vcmp.gt.f32.partialorder %v1289_v21, 0.0  ;;  %v1353_v38 = vmul.f32 0.2, %v1289_v21  ;;  %vm1323_vm9 = vcmp.gt.f32.partialorder %v1291_v25, 0.0  ;;  %vm1325_vm10 = vcmp.gt.f32.partialorder %v1293_v28, 0.0 }
 0x2d2   : > { %v1355_v43 = vmul.f32 0.2, %v1291_v25  ;;  %v1357_v40 = vmul.f32 0.2, %v1293_v28  ;;  %v1383_v35 = vsel %vm1319_vm7, %v1287_v51, %v1351_v52  ;;  %v1295_v30 = vadd.f32 %v10065_v58, %v1252_v23 }
 0x2d3   : > { %v1385_v8 = vsel %vm1321_vm8, %v1289_v21, %v1353_v38  ;;  %v1297_v26 = vadd.f32 %v10065_v58, %v1254_v37  ;;  %v1360_v0 = vmul.f32 0.2, %v1296_v59  ;;  %v1390_v24 = vsel %vm1326_vm5, %v1294_v17, %v1358_v12 }
 0x2d4   : > { %v1480_v62 = vpack.c.bf16 %v1385_v8, %v1383_v35  ;;  %v1387_v39 = vsel %vm1323_vm9, %v1291_v25, %v1355_v43  ;;  %v1389_v49 = vsel %vm1325_vm10, %v1293_v28, %v1357_v40  ;;  %vm1327_vm11 = vcmp.gt.f32.partialorder %v1295_v30, 0.0 }
 0x2d5   : > { %v1482_v6 = vpack.c.bf16 %v1389_v49, %v1387_v39  ;;  %vm1329_vm12 = vcmp.gt.f32.partialorder %v1297_v26, 0.0  ;;  %v1359_v10 = vmul.f32 0.2, %v1295_v30  ;;  %v1361_v22 = vmul.f32 0.2, %v1297_v26 }
 0x2d6   : > { %1868 = vmatprep.mubr.bf16.mxu0 %v1480_v62  ;;  %1981 = vmatprep.mubr.bf16.mxu1 %v1480_v62  ;;  %v1392_v34 = vsel %vm1328_vm6, %v1296_v59, %v1360_v0  ;;  %v1213_v55 = vmul.f32 %v10069_v42, %v9933_v54  ;;  %v1215_v33 = vmul.f32 %v10069_v42, %v9936_v56 }
 0x2d7   : > { %1869 = vmatmul.mubr.bf16.vlgmr.msra.gmra.mrb[16].mxu0 %v1479_v11  ;;  %1982 = vmatmul.mubr.bf16.vlgmr.msra.gmra.mrb[32].mxu1 %v1479_v11  ;;  %v1391_v61 = vsel %vm1327_vm11, %v1295_v30, %v1359_v10  ;;  %v1483_v63 = vpack.c.bf16 %v1392_v34, %v1390_v24  ;;  %v1393_v46 = vsel %vm1329_vm12, %v1297_v26, %v1361_v22 }
 0x2d8   : > { %1878 = vmatprep.mubr.bf16.mxu0 %v1482_v6  ;;  %1991 = vmatprep.mubr.bf16.mxu1 %v1482_v6  ;;  %v1256_v27 = vmul.f32 %v10062_v41, %v1213_v55  ;;  %v1257_v17 = vmul.f32 %v10023_v14, %v10055_v32  ;;  %v1484_v47 = vpack.c.bf16 %v1393_v46, %v1391_v61 }
 0x2d9   : > { %v1258_v59 = vmul.f32 %v10062_v41, %v1215_v33  ;;  %v1298_v54 = vadd.f32 %v10028_v19, %v10073_v1  ;;  %v1217_v51 = vmul.f32 %v10069_v42, %v9939_v36  ;;  %v1219_v56 = vmul.f32 %v10069_v42, %v9942_v50 }
 0x2da   : > { %v1300_v11 = vadd.f32 %v10028_v19, %v1257_v17  ;;  %v1299_v21 = vadd.f32 %v10065_v58, %v1256_v27  ;;  %v1216_v1 = vmul.f32 %v10025_v16, %v9889_v31  ;;  %v1218_v43 = vmul.f32 %v10025_v16, %v9892_v48 }
 0x2db   : > { %v1301_v12 = vadd.f32 %v10065_v58, %v1258_v59  ;;  %vm1330_vm13 = vcmp.gt.f32.partialorder %v1298_v54, 0.0  ;;  %v1362_v32 = vmul.f32 0.2, %v1298_v54  ;;  %v1260_v37 = vmul.f32 %v10062_v41, %v1217_v51 }
 0x2dc   : > { %vm1332_vm14 = vcmp.gt.f32.partialorder %v1300_v11, 0.0  ;;  %v1364_v25 = vmul.f32 0.2, %v1300_v11  ;;  %v1262_v36 = vmul.f32 %v10062_v41, %v1219_v56  ;;  %v1363_v50 = vmul.f32 0.2, %v1299_v21 }
 0x2dd   : > { %v1394_v28 = vsel %vm1330_vm13, %v1298_v54, %v1362_v32  ;;  %v1365_v52 = vmul.f32 0.2, %v1301_v12  ;;  %vm1331_vm15 = vcmp.gt.f32.partialorder %v1299_v21, 0.0  ;;  %vm1333_vm0 = vcmp.gt.f32.partialorder %v1301_v12, 0.0 }
 0x2de   : > { %v1396_v23 = vsel %vm1332_vm14, %v1300_v11, %v1364_v25  ;;  %v1259_v31 = vmul.f32 %v10023_v14, %v1216_v1  ;;  %v1221_v40 = vmul.f32 %v10069_v42, %v9945_v57  ;;  %v1303_v35 = vadd.f32 %v10065_v58, %v1260_v37 }
 0x2df   : > { %1879 = vmatmul.mubr.bf16.gmra.mrb[20].mxu0 %v10089_v5  ;;  %1992 = vmatmul.mubr.bf16.gmra.mrb[36].mxu1 %v10089_v5  ;;  %v1485_v38 = vpack.c.bf16 %v1396_v23, %v1394_v28  ;;  %v1305_v8 = vadd.f32 %v10065_v58, %v1262_v36  ;;  %v1223_v5 = vmul.f32 %v10069_v42, %v9948_v4 }
 0x2e0   : > { %1888 = vmatprep.mubr.bf16.mxu0 %v1484_v47  ;;  %2001 = vmatprep.mubr.bf16.mxu1 %v1484_v47  ;;  %v1274_v30 = vmul.f32 %v10062_v41, %v10077_v3  ;;  %v1395_v48 = vsel %vm1331_vm15, %v1299_v21, %v1363_v50  ;;  %v1397_v26 = vsel %vm1333_vm0, %v1301_v12, %v1365_v52  ;;  %v1367_v10 = vmul.f32 0.2, %v1303_v35 }
 0x2e1   : > { %v1261_v62 = vmul.f32 %v10023_v14, %v1218_v43  ;;  %v1302_v39 = vadd.f32 %v10028_v19, %v1259_v31  ;;  %v1264_v49 = vmul.f32 %v10062_v41, %v1221_v40  ;;  %v1266_v57 = vmul.f32 %v10062_v41, %v1223_v5 }
 0x2e2   : > { %v1273_v0 = vmul.f32 %v10023_v14, %v10032_v20  ;;  %v1486_v6 = vpack.c.bf16 %v1397_v26, %v1395_v48  ;;  %v1369_v22 = vmul.f32 0.2, %v1305_v8  ;;  %v1317_v4 = vadd.f32 %v10065_v58, %v1274_v30 }
 0x2e3   : > { %vm1335_vm1 = vcmp.gt.f32.partialorder %v1303_v35, 0.0  ;;  %vm1337_vm2 = vcmp.gt.f32.partialorder %v1305_v8, 0.0  ;;  %v1304_v3 = vadd.f32 %v10028_v19, %v1261_v62  ;;  %v1220_v24 = vmul.f32 %v10025_v16, %v9894_v53 }
 0x2e4   : > { %v1222_v34 = vmul.f32 %v10025_v16, %v9896_v44  ;;  %v1366_v20 = vmul.f32 0.2, %v1302_v39  ;;  %v1307_v55 = vadd.f32 %v10065_v58, %v1264_v49  ;;  %v1309_v61 = vadd.f32 %v10065_v58, %v1266_v57 }
 0x2e5   : > { %v1399_v33 = vsel %vm1335_vm1, %v1303_v35, %v1367_v10  ;;  %v1401_v46 = vsel %vm1337_vm2, %v1305_v8, %v1369_v22  ;;  %vm1334_vm3 = vcmp.gt.f32.partialorder %v1302_v39, 0.0  ;;  %v1316_v27 = vadd.f32 %v10028_v19, %v1273_v0 }
 0x2e6   : > { %v1368_v17 = vmul.f32 0.2, %v1304_v3  ;;  %v1227_v53 = vmul.f32 %v10069_v42, %v9954_v29  ;;  %vm1349_vm4 = vcmp.gt.f32.partialorder %v1317_v4, 0.0  ;;  %vm1336_vm5 = vcmp.gt.f32.partialorder %v1304_v3, 0.0 }
 0x2e7   : > { %1889 = vmatmul.mubr.bf16.gmra.mrb[24].mxu0 %v1483_v63  ;;  %2002 = vmatmul.mubr.bf16.gmra.mrb[40].mxu1 %v1483_v63  ;;  %v1225_v63 = vmul.f32 %v10069_v42, %v9951_v13  ;;  %v1263_v44 = vmul.f32 %v10023_v14, %v1220_v24  ;;  %v1265_v47 = vmul.f32 %v10023_v14, %v1222_v34  ;;  %v1371_v51 = vmul.f32 0.2, %v1307_v55 }
 0x2e8   : > { %1898 = vmatprep.mubr.bf16.mxu0 %v1486_v6  ;;  %2011 = vmatprep.mubr.bf16.mxu1 %v1486_v6  ;;  %v1229_v59 = vmul.f32 %v10069_v42, %v9958_v60  ;;  %v1488_v54 = vpack.c.bf16 %v1401_v46, %v1399_v33  ;;  %v1398_v11 = vsel %vm1334_vm3, %v1302_v39, %v1366_v20  ;;  %v1373_v56 = vmul.f32 0.2, %v1309_v61  ;;  %v2806_v33 = vld [vmem:[#allocation5 + $0x20] sm:$0xff]  ;;  %v2803_v46 = vld [vmem:[#allocation5 + $0x8] sm:$0xff] }
 0x2e9   : > { %vm1339_vm6 = vcmp.gt.f32.partialorder %v1307_v55, 0.0  ;;  %vm1341_vm7 = vcmp.gt.f32.partialorder %v1309_v61, 0.0  ;;  %v1268_v13 = vmul.f32 %v10062_v41, %v1225_v63  ;;  %v1400_v29 = vsel %vm1336_vm5, %v1304_v3, %v1368_v17  ;;  %v2807_v17 = vld [vmem:[#allocation5 + $0x28] sm:$0xff] }
 0x2ea   : > { %v1272_v21 = vmul.f32 %v10062_v41, %v1229_v59  ;;  %v1270_v12 = vmul.f32 %v10062_v41, %v1227_v53  ;;  %v1381_v32 = vmul.f32 0.2, %v1317_v4  ;;  %v1228_v25 = vmul.f32 %v10025_v16, %v9902_v45  ;;  %v1478_v53 = vld [vmem:[%s14391_s8] sm:$0xf] }
 0x2eb   : > { %v1306_v60 = vadd.f32 %v10028_v19, %v1263_v44  ;;  %v1308_v42 = vadd.f32 %v10028_v19, %v1265_v47  ;;  %vm1348_vm8 = vcmp.gt.f32.partialorder %v1316_v27, 0.0  ;;  %v1403_v1 = vsel %vm1339_vm6, %v1307_v55, %v1371_v51  ;;  %v2814_v51 = vld [vmem:[#allocation5 + $0x60] sm:$0xff] }
 0x2ec   : > { %v1315_v28 = vadd.f32 %v10065_v58, %v1272_v21  ;;  %v1405_v23 = vsel %vm1341_vm7, %v1309_v61, %v1373_v56  ;;  %v1271_v37 = vmul.f32 %v10023_v14, %v1228_v25  ;;  %v1380_v41 = vmul.f32 0.2, %v1316_v27  ;;  %v2811_v56 = vld [vmem:[#allocation5 + $0x48] sm:$0xff] }
 0x2ed   : > { %v1311_v36 = vadd.f32 %v10065_v58, %v1268_v13  ;;  %v1224_v45 = vmul.f32 %v10025_v16, %v9898_v2  ;;  %v1226_v50 = vmul.f32 %v10025_v16, %v9900_v7  ;;  %v1313_v52 = vadd.f32 %v10065_v58, %v1270_v12 }
 0x2ee   : > { %vm1347_vm9 = vcmp.gt.f32.partialorder %v1315_v28, 0.0  ;;  %v1413_v43 = vsel %vm1349_vm4, %v1317_v4, %v1381_v32  ;;  %v1314_v31 = vadd.f32 %v10028_v19, %v1271_v37  ;;  %v1487_v40 = vpack.c.bf16 %v1400_v29, %v1398_v11  ;;  %v2810_v11 = vld [vmem:[#allocation5 + $0x40] sm:$0xff]  ;;  %v2815_v32 = vld [vmem:[#allocation5 + $0x68] sm:$0xff] }
 0x2ef   : > { %1899 = vmatmul.mubr.bf16.gmra.mrb[28].mxu0 %v1485_v38  ;;  %2012 = vmatmul.mubr.bf16.gmra.mrb[44].mxu1 %v1485_v38  ;;  %v1379_v38 = vmul.f32 0.2, %v1315_v28  ;;  %vm1338_vm10 = vcmp.gt.f32.partialorder %v1306_v60, 0.0  ;;  %v1370_v35 = vmul.f32 0.2, %v1306_v60  ;;  %v1412_v2 = vsel %vm1348_vm8, %v1316_v27, %v1380_v41 }
 0x2f0   : > { %1908 = vmatprep.mubr.bf16.mxu0 %v1488_v54  ;;  %2021 = vmatprep.mubr.bf16.mxu1 %v1488_v54  ;;  %v1372_v8 = vmul.f32 0.2, %v1308_v42  ;;  %vm1346_vm11 = vcmp.gt.f32.partialorder %v1314_v31, 0.0  ;;  %v1378_v30 = vmul.f32 0.2, %v1314_v31  ;;  %v1490_v48 = vpack.c.bf16 %v1405_v23, %v1403_v1 }
 0x2f1   : > { %v1411_v5 = vsel %vm1347_vm9, %v1315_v28, %v1379_v38  ;;  %v1267_v7 = vmul.f32 %v10023_v14, %v1224_v45  ;;  %v1269_v16 = vmul.f32 %v10023_v14, %v1226_v50  ;;  %vm1340_vm12 = vcmp.gt.f32.partialorder %v1308_v42, 0.0  ;;  %v2822_v45 = vld [vmem:[#allocation5 + $0xa0] sm:$0xff]  ;;  %v2819_v50 = vld [vmem:[#allocation5 + $0x88] sm:$0xff] }
 0x2f2   : > { %v1494_v58 = vpack.c.bf16 %v1413_v43, %v1411_v5  ;;  %v1375_v26 = vmul.f32 0.2, %v1311_v36  ;;  %v1377_v62 = vmul.f32 0.2, %v1313_v52  ;;  %v1410_v39 = vsel %vm1346_vm11, %v1314_v31, %v1378_v30 }
 0x2f3   : > { %vm1343_vm13 = vcmp.gt.f32.partialorder %v1311_v36, 0.0  ;;  %vm1345_vm14 = vcmp.gt.f32.partialorder %v1313_v52, 0.0  ;;  %v1493_v49 = vpack.c.bf16 %v1412_v2, %v1410_v39  ;;  %v1402_v57 = vsel %vm1338_vm10, %v1306_v60, %v1370_v35 }
 0x2f4   : > { %v1404_v0 = vsel %vm1340_vm12, %v1308_v42, %v1372_v8  ;;  %v1310_v6 = vadd.f32 %v10028_v19, %v1267_v7  ;;  %v1312_v10 = vadd.f32 %v10028_v19, %v1269_v16  ;;  %v1407_v14 = vsel %vm1343_vm13, %v1311_v36, %v1375_v26  ;;  %v2802_v19 = vld [vmem:[#allocation5] sm:$0xff]  ;;  %v2823_v8 = vld [vmem:[#allocation5 + $0xa8] sm:$0xff] }
 0x2f5   : > { %v1409_v22 = vsel %vm1345_vm14, %v1313_v52, %v1377_v62  ;;  %v1489_v4 = vpack.c.bf16 %v1404_v0, %v1402_v57  ;;  %v10190_v63 = vsub.s32 2, %v9743_v9  ;;  %v8007_v27 = vcombine.high %v2802_v19, %v2806_v33  ;;  %v2818_v36 = vld [vmem:[#allocation5 + $0x80] sm:$0xff] }
 0x2f6   : > { %v1492_v3 = vpack.c.bf16 %v1409_v22, %v1407_v14  ;;  %v1374_v24 = vmul.f32 0.2, %v1310_v6  ;;  %v1376_v34 = vmul.f32 0.2, %v1312_v10  ;;  %vm1342_vm15 = vcmp.gt.f32.partialorder %v1310_v6, 0.0  ;;  %v2826_v0 = vld [vmem:[#allocation5 + $0xc0] sm:$0xff] }
 0x2f7   : > { %1909 = vmatmul.mubr.bf16.gmra.mrb[32].mxu0 %v1487_v40  ;;  %2022 = vmatmul.mubr.bf16.gmra.mrb[48].mxu1 %v1487_v40  ;;  %vm1344_vm0 = vcmp.gt.f32.partialorder %v1312_v10, 0.0  ;;  %14818 = vst [vmem:[#allocation23_spill] sm:$0xff] %v10190_v63  ;;  %v8006_v44 = vcombine.low %v2802_v19, %v2806_v33  ;;  %v8008_v47 = vcombine.low %v2803_v46, %v2807_v17  ;;  %v10196_v54 = vsub.s32 3, %v9743_v9 }
 0x2f8   : > { %1918 = vmatprep.mubr.bf16.mxu0 %v1490_v48  ;;  %2031 = vmatprep.mubr.bf16.mxu1 %v1490_v48  ;;  %v1406_v20 = vsel %vm1342_vm15, %v1310_v6, %v1374_v24  ;;  %v1408_v55 = vsel %vm1344_vm0, %v1312_v10, %v1376_v34  ;;  %v8009_v59 = vcombine.high %v2803_v46, %v2807_v17  ;;  %v2830_v6 = vld [vmem:[#allocation5 + $0xe0] sm:$0xff]  ;;  %v2827_v10 = vld [vmem:[#allocation5 + $0xc8] sm:$0xff] }
 0x2f9   : > { %v1491_v61 = vpack.c.bf16 %v1408_v55, %v1406_v20  ;;  %14819 = vst [vmem:[#allocation24_spill] sm:$0xff] %v10196_v54  ;;  %4412 = vmatprep.subr.bf16.mxu0 %v8007_v27  ;;  %v10199_v13 = vrot.slane %v1478_v53, %v9749_v15  ;;  %v10202_v21 = vrot.slane %v1478_v53, %v10190_v63  ;;  %v2834_v17 = vld [vmem:[#allocation5 + $0x100] sm:$0xff] }
 0x2fa   : > { %4413 = vmatpush1.bf16.msra.mxu0 %v8006_v44  ;;  %4638 = vmatprep.subr.bf16.mxu1 %v8009_v59  ;;  %v10205_v29 = vrot.slane %v1478_v53, %v9752_v18  ;;  %v8015_v12 = vcombine.high %v2810_v11, %v2814_v51  ;;  %v8014_v25 = vcombine.low %v2810_v11, %v2814_v51 }
 0x2fb   : > { %4639 = vmatpush1.bf16.msra.mxu1 %v8008_v47  ;;  %v8016_v60 = vcombine.low %v2811_v56, %v2815_v32  ;;  %v8017_v42 = vcombine.high %v2811_v56, %v2815_v32  ;;  %v10208_v23 = vrot.slane %v1478_v53, %v10196_v54  ;;  %v8023_v35 = vcombine.high %v2818_v36, %v2822_v45  ;;  %v2838_v53 = vld [vmem:[#allocation5 + $0x120] sm:$0xff]  ;;  %v2835_v56 = vld [vmem:[#allocation5 + $0x108] sm:$0xff] }
 0x2fc   : > { %4414 = vmatprep.subr.bf16.mxu0 %v8015_v12  ;;  %v8022_v7 = vcombine.low %v2818_v36, %v2822_v45  ;;  %v8024_v16 = vcombine.low %v2819_v50, %v2823_v8  ;;  %v8025_v39 = vcombine.high %v2819_v50, %v2823_v8  ;;  %v8030_v24 = vcombine.low %v2826_v0, %v2830_v6  ;;  %v2839_v12 = vld [vmem:[#allocation5 + $0x128] sm:$0xff]  ;;  %v2842_v8 = vld [vmem:[#allocation5 + $0x140] sm:$0xff] }
 0x2fd   : > { %4640 = vmatprep.subr.bf16.mxu1 %v8017_v42  ;;  %v8039_v51 = vcombine.high %v2834_v17, %v2838_v53 }
 0x2fe   : > { %4415 = vmatpush1.bf16.msra.mxu0 %v8014_v25 }
 0x2ff   : > { %1919 = vmatmul.mubr.bf16.gmra.mrb[36].mxu0 %v1489_v4  ;;  %2032 = vmatmul.mubr.bf16.gmra.mrb[52].mxu1 %v1489_v4  ;;  %v8031_v4 = vcombine.high %v2826_v0, %v2830_v6 }
 0x300   : > { %1928 = vmatprep.mubr.bf16.mxu0 %v1492_v3  ;;  %2041 = vmatprep.mubr.bf16.mxu1 %v1492_v3  ;;  %v2831_v3 = vld [vmem:[#allocation5 + $0xe8] sm:$0xff] }
 0x301   : > { %4641 = vmatpush1.bf16.msra.mxu1 %v8016_v60  ;;  %4416 = vmatprep.subr.bf16.mxu0 %v8023_v35  ;;  %v8032_v34 = vcombine.low %v2827_v10, %v2831_v3  ;;  %v8033_v20 = vcombine.high %v2827_v10, %v2831_v3  ;;  %v8040_v35 = vcombine.low %v2835_v56, %v2839_v12 }
 0x302   : > { %4417 = vmatpush1.bf16.msra.mxu0 %v8022_v7  ;;  %4642 = vmatprep.subr.bf16.mxu1 %v8025_v39  ;;  %v8041_v39 = vcombine.high %v2835_v56, %v2839_v12 }
 0x303   : > { %4418 = vmatprep.subr.bf16.mxu0 %v8031_v4 }
 0x305   : > { %4643 = vmatpush1.bf16.msra.mxu1 %v8024_v16 }
 0x306   : > { %4419 = vmatpush1.bf16.msra.mxu0 %v8030_v24  ;;  %4644 = vmatprep.subr.bf16.mxu1 %v8033_v20  ;;  %v2850_v20 = vld [vmem:[#allocation5 + $0x180] sm:$0xff] }
 0x307   : > { %1929 = vmatmul.mubr.bf16.gmra.mrb[40].mxu0 %v1491_v61  ;;  %2042 = vmatmul.mubr.bf16.gmra.mrb[56].mxu1 %v1491_v61 }
 0x308   : > { %1938 = vmatprep.mubr.bf16.mxu0 %v1494_v58  ;;  %2051 = vmatprep.mubr.bf16.mxu1 %v1494_v58 }
 0x309   : > { %4645 = vmatpush1.bf16.msra.mxu1 %v8032_v34  ;;  %4420 = vmatprep.subr.bf16.mxu0 %v8039_v51 }
 0x30a   : > { %4646 = vmatprep.subr.bf16.mxu1 %v8041_v39  ;;  %v2859_v39 = vld [vmem:[#allocation5 + $0x1c8] sm:$0xff] }
 0x30d   : > { %4647 = vmatpush1.bf16.msra.mxu1 %v8040_v35 }
 0x30f   : > { %1939 = vmatmul.mubr.bf16.gmra.mrb[44].mxu0 %v1493_v49  ;;  %2052 = vmatmul.mubr.bf16.gmra.mrb[60].mxu1 %v1493_v49 }
 0x3aa   : > { %v1870_v28 = vpop.f32.mrb[16].mxu0  ;;  %v1983_v1 = vpop.f32.mrb[32].mxu1 }
 0x3ab   : > { %v1872_v37 = vpop.f32.mrb[17].mxu0  ;;  %v1985_v41 = vpop.f32.mrb[33].mxu1  ;;  %v10211_v52 = vadd.f32 %v1870_v28, %v10199_v13  ;;  %v10214_v38 = vadd.f32 %v1983_v1, %v10202_v21 }
 0x3ac   : > { %v10217_v43 = vadd.f32 %v1872_v37, %v10205_v29  ;;  %v1874_v31 = vpop.f32.mrb[18].mxu0  ;;  %v1987_v40 = vpop.f32.mrb[34].mxu1  ;;  %v10226_v58 = vadd.f32 %v1985_v41, %v10208_v23 }
 0x3ad   : > { %v10220_v5 = vadd.f32 %v1874_v31, %v10199_v13  ;;  %v10223_v30 = vadd.f32 %v1987_v40, %v10202_v21  ;;  %v1876_v2 = vpop.f32.mrb[19].mxu0  ;;  %v1989_v48 = vpop.f32.mrb[35].mxu1  ;;  %v8038_v40 = vcombine.low %v2834_v17, %v2838_v53 }
 0x3ae   : > { %14820 = vst [vmem:[#allocation25_spill] sm:$0xff] %v10217_v43  ;;  %14821 = vst [vmem:[#allocation26_spill] sm:$0xff] %v10226_v58  ;;  %v10229_v26 = vadd.f32 %v1876_v2, %v10205_v29  ;;  %v10232_v62 = vadd.f32 %v1989_v48, %v10208_v23  ;;  %v2846_v2 = vld [vmem:[#allocation5 + $0x160] sm:$0xff]  ;;  %v2843_v48 = vld [vmem:[#allocation5 + $0x148] sm:$0xff] }
 0x3af   : > { %v2064_v49 = vadd.f32 %v10220_v5, %v10211_v52  ;;  %v2106_v57 = vadd.f32 %v10223_v30, %v10214_v38  ;;  %4421 = vmatpush1.bf16.msra.mxu0 %v8038_v40  ;;  %v8047_v0 = vcombine.high %v2842_v8, %v2846_v2 }
 0x3b0   : > { %14822 = vst [vmem:[#allocation27_spill] sm:$0xff] %v10229_v26  ;;  %14823 = vst [vmem:[#allocation28_spill] sm:$0xff] %v10232_v62  ;;  %v2085_v14 = vadd.f32 %v10229_v26, %v10217_v43  ;;  %v2127_v22 = vadd.f32 %v10232_v62, %v10226_v58 }
 0x3b1   : > { %4422 = vmatprep.subr.bf16.mxu0 %v8047_v0  ;;  %v2863_v0 = vld [vmem:[#allocation5 + $0x1e8] sm:$0xff] }
 0x3b2   : > { %v1880_v55 = vpop.f32.mrb[20].mxu0  ;;  %v1993_v61 = vpop.f32.mrb[36].mxu1 }
 0x3b3   : > { %v10243_v19 = vadd.f32 %v1880_v55, %v10199_v13  ;;  %v10246_v33 = vadd.f32 %v1993_v61, %v10202_v21  ;;  %v1882_v46 = vpop.f32.mrb[21].mxu0  ;;  %v1995_v27 = vpop.f32.mrb[37].mxu1  ;;  %v2854_v55 = vld [vmem:[#allocation5 + $0x1a0] sm:$0xff] }
 0x3b4   : > { %v10249_v44 = vadd.f32 %v1882_v46, %v10205_v29  ;;  %v10252_v47 = vadd.f32 %v1995_v27, %v10208_v23  ;;  %v1884_v59 = vpop.f32.mrb[22].mxu0  ;;  %v1997_v11 = vpop.f32.mrb[38].mxu1  ;;  %v8055_v53 = vcombine.high %v2850_v20, %v2854_v55  ;;  %v8054_v35 = vcombine.low %v2850_v20, %v2854_v55 }
 0x3b5   : > { %v2065_v32 = vadd.f32 %v2064_v49, %v10243_v19  ;;  %v2107_v25 = vadd.f32 %v2106_v57, %v10246_v33  ;;  %v10257_v60 = vadd.f32 %v1884_v59, %v10199_v13  ;;  %v10260_v42 = vadd.f32 %v1997_v11, %v10202_v21  ;;  %v1886_v28 = vpop.f32.mrb[23].mxu0  ;;  %v1999_v1 = vpop.f32.mrb[39].mxu1  ;;  %v2847_v49 = vld [vmem:[#allocation5 + $0x168] sm:$0xff] }
 0x3b6   : > { %14824 = vst [vmem:[#allocation29_spill] sm:$0xff] %v10249_v44  ;;  %14825 = vst [vmem:[#allocation30_spill] sm:$0xff] %v10252_v47  ;;  %v2086_v37 = vadd.f32 %v2085_v14, %v10249_v44  ;;  %v2128_v41 = vadd.f32 %v2127_v22, %v10252_v47  ;;  %v10265_v36 = vadd.f32 %v1886_v28, %v10205_v29  ;;  %v2851_v59 = vld [vmem:[#allocation5 + $0x188] sm:$0xff] }
 0x3b7   : > { %v10268_v45 = vadd.f32 %v1999_v1, %v10208_v23  ;;  %v2066_v50 = vadd.f32 %v2065_v32, %v10257_v60  ;;  %v2108_v31 = vadd.f32 %v2107_v25, %v10260_v42  ;;  %v8046_v57 = vcombine.low %v2842_v8, %v2846_v2  ;;  %v2855_v11 = vld [vmem:[#allocation5 + $0x1a8] sm:$0xff]  ;;  %v2858_v2 = vld [vmem:[#allocation5 + $0x1c0] sm:$0xff] }
 0x3b8   : > { %14826 = vst [vmem:[#allocation31_spill] sm:$0xff] %v10265_v36  ;;  %v2087_v7 = vadd.f32 %v2086_v37, %v10265_v36  ;;  %v8049_v6 = vcombine.high %v2843_v48, %v2847_v49  ;;  %v8048_v34 = vcombine.low %v2843_v48, %v2847_v49  ;;  %v8056_v8 = vcombine.low %v2851_v59, %v2855_v11  ;;  %v2862_v48 = vld [vmem:[#allocation5 + $0x1e0] sm:$0xff] }
 0x3b9   : > { %14827 = vst [vmem:[#allocation32_spill] sm:$0xff] %v10268_v45  ;;  %v2129_v16 = vadd.f32 %v2128_v41, %v10268_v45  ;;  %4423 = vmatpush1.bf16.msra.mxu0 %v8046_v57  ;;  %v8057_v49 = vcombine.high %v2851_v59, %v2855_v11  ;;  %v8063_v57 = vcombine.high %v2858_v2, %v2862_v48  ;;  %v2895_v45 = vld [vmem:[#allocation5 + $0x2e8] sm:$0xff]  ;;  %v10432_v36 = vld [vmem:[#allocation5 + $0x420] sm:$0xff] }
 0x3ba   : > { %v1890_v10 = vpop.f32.mrb[24].mxu0  ;;  %v2003_v14 = vpop.f32.mrb[40].mxu1  ;;  %4648 = vmatprep.subr.bf16.mxu1 %v8049_v6  ;;  %4424 = vmatprep.subr.bf16.mxu0 %v8055_v53  ;;  %v8062_v6 = vcombine.low %v2858_v2, %v2862_v48  ;;  %v2870_v53 = vld [vmem:[#allocation5 + $0x220] sm:$0xff]  ;;  %14848 = vst [vmem:[#allocation53_spill] sm:$0xff] %v10432_v36 }
 0x3bb   : > { %v10275_v22 = vadd.f32 %v1890_v10, %v10199_v13  ;;  %v10278_v4 = vadd.f32 %v2003_v14, %v10202_v21  ;;  %v1892_v3 = vpop.f32.mrb[25].mxu0  ;;  %v2005_v24 = vpop.f32.mrb[41].mxu1  ;;  %4649 = vmatpush1.bf16.msra.mxu1 %v8048_v34  ;;  %v8065_v10 = vcombine.high %v2859_v39, %v2863_v0 }
 0x3bc   : > { %v10281_v61 = vadd.f32 %v1892_v3, %v10205_v29  ;;  %v10284_v46 = vadd.f32 %v2005_v24, %v10208_v23  ;;  %v1894_v27 = vpop.f32.mrb[26].mxu0  ;;  %v2007_v17 = vpop.f32.mrb[42].mxu1  ;;  %4650 = vmatprep.subr.bf16.mxu1 %v8057_v49 }
 0x3bd   : > { %v2067_v51 = vadd.f32 %v2066_v50, %v10275_v22  ;;  %v2109_v56 = vadd.f32 %v2108_v31, %v10278_v4  ;;  %v10289_v12 = vadd.f32 %v1894_v27, %v10199_v13  ;;  %v10292_v32 = vadd.f32 %v2007_v17, %v10202_v21  ;;  %v1896_v25 = vpop.f32.mrb[27].mxu0  ;;  %v2009_v28 = vpop.f32.mrb[43].mxu1  ;;  %4425 = vmatpush1.bf16.msra.mxu0 %v8054_v35  ;;  %v2866_v17 = vld [vmem:[#allocation5 + $0x200] sm:$0xff] }
 0x3be   : > { %14828 = vst [vmem:[#allocation33_spill] sm:$0xff] %v10281_v61  ;;  %14829 = vst [vmem:[#allocation34_spill] sm:$0xff] %v10284_v46  ;;  %v2088_v1 = vadd.f32 %v2087_v7, %v10281_v61  ;;  %v2130_v37 = vadd.f32 %v2129_v16, %v10284_v46  ;;  %v10297_v41 = vadd.f32 %v1896_v25, %v10205_v29  ;;  %4426 = vmatprep.subr.bf16.mxu0 %v8063_v57  ;;  %v2891_v46 = vld [vmem:[#allocation5 + $0x2c8] sm:$0xff] }
 0x3bf   : > { %v10300_v50 = vadd.f32 %v2009_v28, %v10208_v23  ;;  %v2068_v31 = vadd.f32 %v2067_v51, %v10289_v12  ;;  %v2110_v40 = vadd.f32 %v2109_v56, %v10292_v32  ;;  %4651 = vmatpush1.bf16.msra.mxu1 %v8056_v8  ;;  %v8064_v27 = vcombine.low %v2859_v39, %v2863_v0  ;;  %v2867_v28 = vld [vmem:[#allocation5 + $0x208] sm:$0xff] }
 0x3c0   : > { %14830 = vst [vmem:[#allocation35_spill] sm:$0xff] %v10297_v41  ;;  %v2089_v7 = vadd.f32 %v2088_v1, %v10297_v41  ;;  %4652 = vmatprep.subr.bf16.mxu1 %v8065_v10  ;;  %v8071_v25 = vcombine.high %v2866_v17, %v2870_v53  ;;  %v2871_v1 = vld [vmem:[#allocation5 + $0x228] sm:$0xff] }
 0x3c1   : > { %14831 = vst [vmem:[#allocation36_spill] sm:$0xff] %v10300_v50  ;;  %v2131_v16 = vadd.f32 %v2130_v37, %v10300_v50  ;;  %4427 = vmatpush1.bf16.msra.mxu0 %v8062_v6  ;;  %v2878_v6 = vld [vmem:[#allocation5 + $0x260] sm:$0xff]  ;;  %v2923_v41 = vld [vmem:[#allocation5 + $0x3c8] sm:$0xff] }
 0x3c2   : > { %v1900_v14 = vpop.f32.mrb[28].mxu0  ;;  %v2013_v3 = vpop.f32.mrb[44].mxu1  ;;  %4428 = vmatprep.subr.bf16.mxu0 %v8071_v25  ;;  %v2894_v50 = vld [vmem:[#allocation5 + $0x2e0] sm:$0xff] }
 0x3c3   : > { %v10307_v24 = vadd.f32 %v1900_v14, %v10199_v13  ;;  %v10310_v34 = vadd.f32 %v2013_v3, %v10202_v21  ;;  %v1902_v20 = vpop.f32.mrb[29].mxu0  ;;  %v2015_v55 = vpop.f32.mrb[45].mxu1  ;;  %4653 = vmatpush1.bf16.msra.mxu1 %v8064_v27  ;;  %v8070_v14 = vcombine.low %v2866_v17, %v2870_v53  ;;  %v8072_v3 = vcombine.low %v2867_v28, %v2871_v1 }
 0x3c4   : > { %v10313_v59 = vadd.f32 %v1902_v20, %v10205_v29  ;;  %v10316_v11 = vadd.f32 %v2015_v55, %v10208_v23  ;;  %v1904_v51 = vpop.f32.mrb[30].mxu0  ;;  %v2017_v56 = vpop.f32.mrb[46].mxu1  ;;  %v2874_v20 = vld [vmem:[#allocation5 + $0x240] sm:$0xff]  ;;  %v2875_v55 = vld [vmem:[#allocation5 + $0x248] sm:$0xff] }
 0x3c5   : > { %v2069_v37 = vadd.f32 %v2068_v31, %v10307_v24  ;;  %v2111_v35 = vadd.f32 %v2110_v40, %v10310_v34  ;;  %v10321_v8 = vadd.f32 %v1904_v51, %v10199_v13  ;;  %v10324_v2 = vadd.f32 %v2017_v56, %v10202_v21  ;;  %v1906_v48 = vpop.f32.mrb[31].mxu0  ;;  %v2019_v39 = vpop.f32.mrb[47].mxu1  ;;  %4429 = vmatpush1.bf16.msra.mxu0 %v8070_v14 }
 0x3c6   : > { %14832 = vst [vmem:[#allocation37_spill] sm:$0xff] %v10313_v59  ;;  %14833 = vst [vmem:[#allocation38_spill] sm:$0xff] %v10316_v11  ;;  %v2090_v49 = vadd.f32 %v2089_v7, %v10313_v59  ;;  %v2132_v57 = vadd.f32 %v2131_v16, %v10316_v11  ;;  %v10329_v0 = vadd.f32 %v1906_v48, %v10205_v29  ;;  %v2879_v48 = vld [vmem:[#allocation5 + $0x268] sm:$0xff] }
 0x3c7   : > { %v10332_v31 = vadd.f32 %v2019_v39, %v10208_v23  ;;  %v2070_v40 = vadd.f32 %v2069_v37, %v10321_v8  ;;  %v2112_v10 = vadd.f32 %v2111_v35, %v10324_v2  ;;  %v8073_v51 = vcombine.high %v2867_v28, %v2871_v1  ;;  %v2882_v28 = vld [vmem:[#allocation5 + $0x280] sm:$0xff] }
 0x3c8   : > { %14834 = vst [vmem:[#allocation39_spill] sm:$0xff] %v10329_v0  ;;  %v2091_v7 = vadd.f32 %v2090_v49, %v10329_v0  ;;  %v8079_v56 = vcombine.high %v2874_v20, %v2878_v6  ;;  %v8078_v39 = vcombine.low %v2874_v20, %v2878_v6  ;;  %v8081_v25 = vcombine.high %v2875_v55, %v2879_v48  ;;  %v2886_v1 = vld [vmem:[#allocation5 + $0x2a0] sm:$0xff]  ;;  %v2907_v0 = vld [vmem:[#allocation5 + $0x348] sm:$0xff] }
 0x3c9   : > { %14835 = vst [vmem:[#allocation40_spill] sm:$0xff] %v10332_v31  ;;  %v2133_v16 = vadd.f32 %v2132_v57, %v10332_v31  ;;  %4654 = vmatprep.subr.bf16.mxu1 %v8073_v51  ;;  %v8080_v49 = vcombine.low %v2875_v55, %v2879_v48 }
 0x3ca   : > { %v1910_v9 = vpop.f32.mrb[32].mxu0  ;;  %v2023_v37 = vpop.f32.mrb[48].mxu1  ;;  %4430 = vmatprep.subr.bf16.mxu0 %v8079_v56  ;;  %4655 = vmatpush1.bf16.msra.mxu1 %v8072_v3 }
 0x3cb   : > { %v10339_v27 = vadd.f32 %v1910_v9, %v10199_v13  ;;  %v10342_v17 = vadd.f32 %v2023_v37, %v10202_v21  ;;  %v1912_v53 = vpop.f32.mrb[33].mxu0  ;;  %v2025_v35 = vpop.f32.mrb[49].mxu1  ;;  %4656 = vmatprep.subr.bf16.mxu1 %v8081_v25  ;;  %v8087_v9 = vcombine.high %v2882_v28, %v2886_v1  ;;  %4431 = vmatpush1.bf16.msra.mxu0 %v8078_v39  ;;  %v2890_v39 = vld [vmem:[#allocation5 + $0x2c0] sm:$0xff] }
 0x3cc   : > { %v10345_v57 = vadd.f32 %v1912_v53, %v10205_v29  ;;  %v10348_v14 = vadd.f32 %v2025_v35, %v10208_v23  ;;  %v1914_v20 = vpop.f32.mrb[34].mxu0  ;;  %v2027_v6 = vpop.f32.mrb[50].mxu1  ;;  %v2883_v53 = vld [vmem:[#allocation5 + $0x288] sm:$0xff]  ;;  %v8095_v47 = vcombine.high %v2890_v39, %v2894_v50 }
 0x3cd   : > { %v2071_v51 = vadd.f32 %v2070_v40, %v10339_v27  ;;  %v2113_v56 = vadd.f32 %v2112_v10, %v10342_v17  ;;  %v10353_v37 = vadd.f32 %v1914_v20, %v10199_v13  ;;  %v10356_v3 = vadd.f32 %v2027_v6, %v10202_v21  ;;  %v1916_v55 = vpop.f32.mrb[35].mxu0  ;;  %v2029_v48 = vpop.f32.mrb[51].mxu1  ;;  %v2887_v35 = vld [vmem:[#allocation5 + $0x2a8] sm:$0xff]  ;;  %4432 = vmatprep.subr.bf16.mxu0 %v8087_v9 }
 0x3ce   : > { %14836 = vst [vmem:[#allocation41_spill] sm:$0xff] %v10345_v57  ;;  %14837 = vst [vmem:[#allocation42_spill] sm:$0xff] %v10348_v14  ;;  %v2092_v31 = vadd.f32 %v2091_v7, %v10345_v57  ;;  %v2134_v25 = vadd.f32 %v2133_v16, %v10348_v14  ;;  %v10361_v11 = vadd.f32 %v1916_v55, %v10205_v29  ;;  %4657 = vmatpush1.bf16.msra.mxu1 %v8080_v49  ;;  %v2906_v57 = vld [vmem:[#allocation5 + $0x340] sm:$0xff] }
 0x3cf   : > { %v10364_v40 = vadd.f32 %v2029_v48, %v10208_v23  ;;  %v2072_v10 = vadd.f32 %v2071_v51, %v10353_v37  ;;  %v2114_v20 = vadd.f32 %v2113_v56, %v10356_v3  ;;  %v8086_v6 = vcombine.low %v2882_v28, %v2886_v1 }
 0x3d0   : > { %14838 = vst [vmem:[#allocation43_spill] sm:$0xff] %v10361_v11  ;;  %v2093_v7 = vadd.f32 %v2092_v31, %v10361_v11  ;;  %v8088_v14 = vcombine.low %v2883_v53, %v2887_v35  ;;  %v8089_v55 = vcombine.high %v2883_v53, %v2887_v35  ;;  %v8094_v48 = vcombine.low %v2890_v39, %v2894_v50  ;;  %v2898_v53 = vld [vmem:[#allocation5 + $0x300] sm:$0xff] }
 0x3d1   : > { %14839 = vst [vmem:[#allocation44_spill] sm:$0xff] %v10364_v40  ;;  %v2135_v16 = vadd.f32 %v2134_v25, %v10364_v40  ;;  %4433 = vmatpush1.bf16.msra.mxu0 %v8086_v6  ;;  %v8097_v9 = vcombine.high %v2891_v46, %v2895_v45  ;;  %v8096_v56 = vcombine.low %v2891_v46, %v2895_v45  ;;  %v2902_v35 = vld [vmem:[#allocation5 + $0x320] sm:$0xff] }
 0x3d2   : > { %v1920_v62 = vpop.f32.mrb[36].mxu0  ;;  %v2033_v51 = vpop.f32.mrb[52].mxu1  ;;  %4658 = vmatprep.subr.bf16.mxu1 %v8089_v55  ;;  %4434 = vmatprep.subr.bf16.mxu0 %v8095_v47  ;;  %v2899_v55 = vld [vmem:[#allocation5 + $0x308] sm:$0xff] }
 0x3d3   : > { %v10371_v49 = vadd.f32 %v1920_v62, %v10199_v13  ;;  %v10374_v28 = vadd.f32 %v2033_v51, %v10202_v21  ;;  %v1922_v1 = vpop.f32.mrb[37].mxu0  ;;  %v2035_v31 = vpop.f32.mrb[53].mxu1  ;;  %4659 = vmatpush1.bf16.msra.mxu1 %v8088_v14  ;;  %v8103_v62 = vcombine.high %v2898_v53, %v2902_v35  ;;  %v2903_v51 = vld [vmem:[#allocation5 + $0x328] sm:$0xff] }
 0x3d4   : > { %v10377_v25 = vadd.f32 %v1922_v1, %v10205_v29  ;;  %v10380_v50 = vadd.f32 %v2035_v31, %v10208_v23  ;;  %v1924_v6 = vpop.f32.mrb[38].mxu0  ;;  %v2037_v39 = vpop.f32.mrb[54].mxu1  ;;  %4660 = vmatprep.subr.bf16.mxu1 %v8097_v9  ;;  %v8104_v11 = vcombine.low %v2899_v55, %v2903_v51 }
 0x3d5   : > { %v2073_v40 = vadd.f32 %v2072_v10, %v10371_v49  ;;  %v2115_v14 = vadd.f32 %v2114_v20, %v10374_v28  ;;  %v10385_v47 = vadd.f32 %v1924_v6, %v10199_v13  ;;  %v10388_v45 = vadd.f32 %v2037_v39, %v10202_v21  ;;  %v1926_v46 = vpop.f32.mrb[39].mxu0  ;;  %v2039_v1 = vpop.f32.mrb[55].mxu1  ;;  %4435 = vmatpush1.bf16.msra.mxu0 %v8094_v48  ;;  %v2910_v48 = vld [vmem:[#allocation5 + $0x360] sm:$0xff] }
 0x3d6   : > { %14840 = vst [vmem:[#allocation45_spill] sm:$0xff] %v10377_v25  ;;  %14841 = vst [vmem:[#allocation46_spill] sm:$0xff] %v10380_v50  ;;  %v2094_v31 = vadd.f32 %v2093_v7, %v10377_v25  ;;  %v2136_v9 = vadd.f32 %v2135_v16, %v10380_v50  ;;  %v10393_v58 = vadd.f32 %v1926_v46, %v10205_v29  ;;  %4436 = vmatprep.subr.bf16.mxu0 %v8103_v62  ;;  %v2911_v25 = vld [vmem:[#allocation5 + $0x368] sm:$0xff] }
 0x3d7   : > { %v10396_v10 = vadd.f32 %v2039_v1, %v10208_v23  ;;  %v2074_v20 = vadd.f32 %v2073_v40, %v10385_v47  ;;  %v2116_v6 = vadd.f32 %v2115_v14, %v10388_v45  ;;  %4661 = vmatpush1.bf16.msra.mxu1 %v8096_v56  ;;  %v8102_v39 = vcombine.low %v2898_v53, %v2902_v35 }
 0x3d8   : > { %14842 = vst [vmem:[#allocation47_spill] sm:$0xff] %v10393_v58  ;;  %v2095_v7 = vadd.f32 %v2094_v31, %v10393_v58  ;;  %v8105_v46 = vcombine.high %v2899_v55, %v2903_v51  ;;  %v8111_v50 = vcombine.high %v2906_v57, %v2910_v48  ;;  %v8110_v1 = vcombine.low %v2906_v57, %v2910_v48  ;;  %v2914_v55 = vld [vmem:[#allocation5 + $0x380] sm:$0xff]  ;;  %v2915_v48 = vld [vmem:[#allocation5 + $0x388] sm:$0xff] }
 0x3d9   : > { %14843 = vst [vmem:[#allocation48_spill] sm:$0xff] %v10396_v10  ;;  %v2137_v16 = vadd.f32 %v2136_v9, %v10396_v10  ;;  %4437 = vmatpush1.bf16.msra.mxu0 %v8102_v39  ;;  %v8113_v62 = vcombine.high %v2907_v0, %v2911_v25  ;;  %v8112_v31 = vcombine.low %v2907_v0, %v2911_v25  ;;  %v2918_v51 = vld [vmem:[#allocation5 + $0x3a0] sm:$0xff] }
 0x3da   : > { %v1930_v59 = vpop.f32.mrb[40].mxu0  ;;  %v2043_v40 = vpop.f32.mrb[56].mxu1  ;;  %4662 = vmatprep.subr.bf16.mxu1 %v8105_v46  ;;  %4438 = vmatprep.subr.bf16.mxu0 %v8111_v50  ;;  %v2919_v46 = vld [vmem:[#allocation5 + $0x3a8] sm:$0xff]  ;;  %v2926_v58 = vld [vmem:[#allocation5 + $0x3e0] sm:$0xff] }
 0x3db   : > { %v10403_v56 = vadd.f32 %v1930_v59, %v10199_v13  ;;  %v10406_v53 = vadd.f32 %v2043_v40, %v10202_v21  ;;  %v1932_v35 = vpop.f32.mrb[41].mxu0  ;;  %v2045_v14 = vpop.f32.mrb[57].mxu1  ;;  %4663 = vmatpush1.bf16.msra.mxu1 %v8104_v11  ;;  %v8119_v59 = vcombine.high %v2914_v55, %v2918_v51 }
 0x3dc   : > { %v10409_v9 = vadd.f32 %v1932_v35, %v10205_v29  ;;  %v10412_v57 = vadd.f32 %v2045_v14, %v10208_v23  ;;  %v1934_v39 = vpop.f32.mrb[42].mxu0  ;;  %v2047_v50 = vpop.f32.mrb[58].mxu1  ;;  %4664 = vmatprep.subr.bf16.mxu1 %v8113_v62  ;;  %v2922_v14 = vld [vmem:[#allocation5 + $0x3c0] sm:$0xff] }
 0x3dd   : > { %14844 = vst [vmem:[#allocation49_spill] sm:$0xff] %v10406_v53  ;;  %v2075_v40 = vadd.f32 %v2074_v20, %v10403_v56  ;;  %v2117_v10 = vadd.f32 %v2116_v6, %v10406_v53  ;;  %v10417_v11 = vadd.f32 %v1934_v39, %v10199_v13  ;;  %v10420_v0 = vadd.f32 %v2047_v50, %v10202_v21  ;;  %v1936_v25 = vpop.f32.mrb[43].mxu0  ;;  %v2049_v35 = vpop.f32.mrb[59].mxu1  ;;  %v2927_v39 = vld [vmem:[#allocation5 + $0x3e8] sm:$0xff]  ;;  %v10430_v50 = vld [vmem:[#allocation5 + $0x400] sm:$0xff] }
 0x3de   : > { %14845 = vst [vmem:[#allocation50_spill] sm:$0xff] %v10409_v9  ;;  %14846 = vst [vmem:[#allocation51_spill] sm:$0xff] %v10412_v57  ;;  %4439 = vmatpush1.bf16.msra.mxu0 %v8110_v1  ;;  %v2096_v62 = vadd.f32 %v2095_v7, %v10409_v9  ;;  %v2138_v61 = vadd.f32 %v2137_v16, %v10412_v57  ;;  %v10425_v20 = vadd.f32 %v1936_v25, %v10205_v29  ;;  %v10436_v16 = vld [vmem:[#allocation5 + $0x408] sm:$0xff] }
 0x3df   : > { %v10428_v6 = vadd.f32 %v2049_v35, %v10208_v23  ;;  %4440 = vmatprep.subr.bf16.mxu0 %v8119_v59  ;;  %14847 = vst [vmem:[#allocation52_spill] sm:$0xff] %v10430_v50  ;;  %v2076_v1 = vadd.f32 %v2075_v40, %v10417_v11  ;;  %v2118_v44 = vadd.f32 %v2117_v10, %v10420_v0  ;;  %14849 = vst [vmem:[#allocation54_spill] sm:$0xff] %v10436_v16  ;;  %v10438_v25 = vld [vmem:[#allocation5 + $0x428] sm:$0xff] }
 0x3e0   : > { %4665 = vmatpush1.bf16.msra.mxu1 %v8112_v31  ;;  %v8118_v7 = vcombine.low %v2914_v55, %v2918_v51  ;;  %v8120_v9 = vcombine.low %v2915_v48, %v2919_v46  ;;  %14850 = vst [vmem:[#allocation55_spill] sm:$0xff] %v10438_v25  ;;  %v2097_v35 = vadd.f32 %v2096_v62, %v10425_v20 }
 0x3e1   : > { %v2139_v59 = vadd.f32 %v2138_v61, %v10428_v6  ;;  %v8121_v57 = vcombine.high %v2915_v48, %v2919_v46  ;;  %v8126_v26 = vcombine.low %v2922_v14, %v2926_v58  ;;  %v8127_v43 = vcombine.high %v2922_v14, %v2926_v58 }
 0x3e2   : > { %4441 = vmatpush1.bf16.msra.mxu0 %v8118_v7  ;;  %v8129_v53 = vcombine.high %v2923_v41, %v2927_v39  ;;  %v1940_v10 = vpop.f32.mrb[44].mxu0  ;;  %v2053_v31 = vpop.f32.mrb[60].mxu1  ;;  %v8135_v55 = vcombine.high %v10430_v50, %v10432_v36  ;;  %v8128_v46 = vcombine.low %v2923_v41, %v2927_v39 }
 0x3e3   : > { %4666 = vmatprep.subr.bf16.mxu1 %v8121_v57  ;;  %v10449_v62 = vadd.f32 %v1940_v10, %v10199_v13  ;;  %v10452_v61 = vadd.f32 %v2053_v31, %v10202_v21  ;;  %v1942_v58 = vpop.f32.mrb[45].mxu0  ;;  %v2055_v48 = vpop.f32.mrb[61].mxu1  ;;  %4442 = vmatprep.subr.bf16.mxu0 %v8127_v43  ;;  %v8137_v10 = vcombine.high %v10436_v16, %v10438_v25 }
 0x3e4   : > { %4667 = vmatpush1.bf16.msra.mxu1 %v8120_v9  ;;  %v10455_v14 = vadd.f32 %v1942_v58, %v10205_v29  ;;  %v10458_v57 = vadd.f32 %v2055_v48, %v10208_v23  ;;  %v1944_v7 = vpop.f32.mrb[46].mxu0  ;;  %v2057_v40 = vpop.f32.mrb[62].mxu1 }
 0x3e5   : > { %4668 = vmatprep.subr.bf16.mxu1 %v8129_v53  ;;  %v2077_v31 = vadd.f32 %v2076_v1, %v10449_v62  ;;  %v2119_v51 = vadd.f32 %v2118_v44, %v10452_v61  ;;  %v1945_v9 = vadd.f32 %v1944_v7, %v10199_v13  ;;  %v10466_v43 = vadd.f32 %v2057_v40, %v10202_v21  ;;  %v1946_v41 = vpop.f32.mrb[47].mxu0  ;;  %v2059_v39 = vpop.f32.mrb[63].mxu1 }
 0x3e6   : > { %14851 = vst [vmem:[#allocation56_spill] sm:$0xff] %v10458_v57  ;;  %4443 = vmatpush1.bf16.msra.mxu0 %v8126_v26  ;;  %v2098_v58 = vadd.f32 %v2097_v35, %v10455_v14  ;;  %v2140_v48 = vadd.f32 %v2139_v59, %v10458_v57  ;;  %v10471_v53 = vadd.f32 %v1946_v41, %v10205_v29 }
 0x3e7   : > { %v10474_v25 = vadd.f32 %v2059_v39, %v10208_v23  ;;  %4525 = vmatprep.subr.bf16.mxu0 %v8135_v55  ;;  %v2078_v44 = vadd.f32 %v2077_v31, %v1945_v9  ;;  %v2120_v13 = vadd.f32 %v2119_v51, %v10466_v43 }
 0x3e8   : > { %4669 = vmatpush1.bf16.msra.mxu1 %v8128_v46  ;;  %v2099_v21 = vadd.f32 %v2098_v58, %v10471_v53 }
 0x3e9   : > { %14852 = vst [vmem:[#allocation57_spill] sm:$0xff] %v10474_v25  ;;  %v2141_v1 = vadd.f32 %v2140_v48, %v10474_v25  ;;  %4751 = vmatprep.subr.bf16.mxu1 %v8137_v10  ;;  %v2079_v26 = vrot.slane %v2078_v44, 4  ;;  %v2121_v35 = vrot.slane %v2120_v13, 4  ;;  %v2062_v10 = vld [vmem:[%s14392_s9] sm:$0xf] }
 0x3ea   : > { %v2100_v40 = vrot.slane %v2099_v21, 4 }
 0x3eb   : > { %v2142_v59 = vrot.slane %v2141_v1, 4  ;;  %v2080_v7 = vadd.f32 %v2079_v26, %v2078_v44  ;;  %v2122_v29 = vadd.f32 %v2121_v35, %v2120_v13  ;;  %v10483_v44 = vrot.slane %v2062_v10, %v9749_v15 }
 0x3ec   : > { %v2101_v41 = vadd.f32 %v2100_v40, %v2099_v21 }
 0x3ed   : > { %v2143_v16 = vadd.f32 %v2142_v59, %v2141_v1  ;;  %v2081_v23 = vrot.slane %v2080_v7, 2  ;;  %v2123_v39 = vrot.slane %v2122_v29, 2 }
 0x3ee   : > { %v2102_v55 = vrot.slane %v2101_v41, 2 }
 0x3ef   : > { %v2144_v31 = vrot.slane %v2143_v16, 2  ;;  %v2082_v36 = vadd.f32 %v2081_v23, %v2080_v7  ;;  %v2124_v51 = vadd.f32 %v2123_v39, %v2122_v29  ;;  %v10535_v29 = vld [vmem:[#allocation5 + $0x440] sm:$0xff]  ;;  %v10559_v23 = vrot.slane %v2062_v10, %v10196_v54 }
 0x3f0   : > { %v2103_v58 = vadd.f32 %v2102_v55, %v2101_v41  ;;  %14860 = vst [vmem:[#allocation65_spill] sm:$0xff] %v10535_v29  ;;  %v10547_v41 = vrot.slane %v2062_v10, %v10190_v63 }
 0x3f1   : > { %v2083_v46 = vrot.slane %v2082_v36, 1  ;;  %v2125_v50 = vrot.slane %v2124_v51, 1  ;;  %v2145_v57 = vadd.f32 %v2144_v31, %v2143_v16  ;;  %14866 = vst [vmem:[#allocation71_spill] sm:$0xff] %v10559_v23 }
 0x3f2   : > { %v2104_v21 = vrot.slane %v2103_v58, 1  ;;  %14862 = vst [vmem:[#allocation67_spill] sm:$0xff] %v10547_v41 }
 0x3f3   : > { %v2084_v48 = vadd.f32 %v2083_v46, %v2082_v36  ;;  %v2126_v13 = vadd.f32 %v2125_v50, %v2124_v51  ;;  %v2146_v1 = vrot.slane %v2145_v57, 1  ;;  %v2063_v36 = vld [vmem:[%s14393_s10] sm:$0xf] }
 0x3f4   : > { %v10562_v39 = vrot.slane %v2063_v36, %v10196_v54 }
 0x3f5   : > { %v2148_v25 = vmul.f32 0.0078125, %v2084_v48  ;;  %v2105_v48 = vadd.f32 %v2104_v21, %v2103_v58 }
 0x3f6   : > { %14867 = vst [vmem:[#allocation72_spill] sm:$0xff] %v10562_v39  ;;  %v14884_v39 = vld [vmem:[#allocation25_spill] sm:$0xff] }
 0x3f7   : > { %v10486_v26 = vsub.f32 %v10211_v52, %v2148_v25  ;;  %v10489_v35 = vsub.f32 %v10220_v5, %v2148_v25  ;;  %v10492_v16 = vsub.f32 %v10243_v19, %v2148_v25  ;;  %v10495_v40 = vsub.f32 %v10257_v60, %v2148_v25 }
 0x3f8   : > { %v10501_v50 = vsub.f32 %v10275_v22, %v2148_v25  ;;  %v10504_v59 = vsub.f32 %v10289_v12, %v2148_v25  ;;  %v10507_v52 = vsub.f32 %v10307_v24, %v2148_v25  ;;  %v10510_v5 = vsub.f32 %v10321_v8, %v2148_v25 }
 0x3f9   : > { %v10513_v19 = vsub.f32 %v10339_v27, %v2148_v25  ;;  %v10516_v60 = vsub.f32 %v10353_v37, %v2148_v25  ;;  %v10519_v7 = vsub.f32 %v10371_v49, %v2148_v25  ;;  %v10522_v22 = vsub.f32 %v10385_v47, %v2148_v25  ;;  %v10537_v37 = vld [vmem:[#allocation5 + $0x460] sm:$0xff] }
 0x3fa   : > { %14853 = vst [vmem:[#allocation58_spill] sm:$0xff] %v10507_v52  ;;  %14854 = vst [vmem:[#allocation59_spill] sm:$0xff] %v10510_v5  ;;  %v10525_v12 = vsub.f32 %v10403_v56, %v2148_v25  ;;  %v10528_v24 = vsub.f32 %v10417_v11, %v2148_v25  ;;  %v10531_v8 = vsub.f32 %v10449_v62, %v2148_v25  ;;  %v2150_v11 = vmul.f32 0.0078125, %v2126_v13 }
 0x3fb   : > { %14855 = vst [vmem:[#allocation60_spill] sm:$0xff] %v10513_v19  ;;  %14856 = vst [vmem:[#allocation61_spill] sm:$0xff] %v10516_v60  ;;  %v10533_v27 = vsub.f32 %v1945_v9, %v2148_v25  ;;  %v2216_v49 = vmul.f32 %v10486_v26, %v10486_v26  ;;  %v2220_v47 = vmul.f32 %v10489_v35, %v10489_v35 }
 0x3fc   : > { %14857 = vst [vmem:[#allocation62_spill] sm:$0xff] %v10519_v7  ;;  %14858 = vst [vmem:[#allocation63_spill] sm:$0xff] %v10522_v22  ;;  %v10544_v56 = vrot.slane %v2063_v36, %v9749_v15  ;;  %v10550_v25 = vrot.slane %v2063_v36, %v10190_v63  ;;  %v10553_v62 = vrot.slane %v2062_v10, %v9752_v18 }
 0x3fd   : > { %14859 = vst [vmem:[#allocation64_spill] sm:$0xff] %v10525_v12  ;;  %14861 = vst [vmem:[#allocation66_spill] sm:$0xff] %v10537_v37  ;;  %v10556_v9 = vrot.slane %v2063_v36, %v9752_v18  ;;  %v2224_v51 = vmul.f32 %v10492_v16, %v10492_v16  ;;  %v2228_v46 = vmul.f32 %v10495_v40, %v10495_v40 }
 0x3fe   : > { %14863 = vst [vmem:[#allocation68_spill] sm:$0xff] %v10550_v25  ;;  %14864 = vst [vmem:[#allocation69_spill] sm:$0xff] %v10553_v62  ;;  %v2147_v13 = vadd.f32 %v2146_v1, %v2145_v57  ;;  %v2280_v18 = vadd.f32 %v2220_v47, %v2216_v49  ;;  %v10573_v10 = vsub.f32 %v10214_v38, %v2150_v11  ;;  %v2149_v47 = vmul.f32 0.0078125, %v2105_v48  ;;  %v14898_v62 = vld [vmem:[#allocation43_spill] sm:$0xff] }
 0x3ff   : > { %14865 = vst [vmem:[#allocation70_spill] sm:$0xff] %v10556_v9  ;;  %v10576_v36 = vsub.f32 %v10223_v30, %v2150_v11  ;;  %v10579_v55 = vsub.f32 %v10246_v33, %v2150_v11  ;;  %v10582_v31 = vsub.f32 %v10260_v42, %v2150_v11  ;;  %v10585_v54 = vsub.f32 %v10278_v4, %v2150_v11  ;;  %v10602_v42 = vld [vmem:[#allocation5 + $0x448] sm:$0xff]  ;;  %v14894_v9 = vld [vmem:[#allocation35_spill] sm:$0xff] }
 0x400   : > { %14868 = vst [vmem:[#allocation73_spill] sm:$0xff] %v10573_v10  ;;  %v10588_v63 = vsub.f32 %v10292_v32, %v2150_v11  ;;  %v10591_v57 = vsub.f32 %v10310_v34, %v2150_v11  ;;  %v2281_v38 = vadd.f32 %v2280_v18, %v2224_v51  ;;  %v10594_v58 = vsub.f32 %v10324_v2, %v2150_v11  ;;  %v10604_v4 = vld [vmem:[#allocation5 + $0x468] sm:$0xff] }
 0x401   : > { %14869 = vst [vmem:[#allocation74_spill] sm:$0xff] %v10576_v36  ;;  %14870 = vst [vmem:[#allocation75_spill] sm:$0xff] %v10579_v55  ;;  %v10597_v30 = vsub.f32 %v10342_v17, %v2150_v11  ;;  %v10600_v33 = vsub.f32 %v10356_v3, %v2150_v11  ;;  %v10607_v32 = vsub.f32 %v10374_v28, %v2150_v11  ;;  %v14882_v18 = vld [vmem:[#allocation49_spill] sm:$0xff] }
 0x402   : > { %14871 = vst [vmem:[#allocation76_spill] sm:$0xff] %v10582_v31  ;;  %14872 = vst [vmem:[#allocation77_spill] sm:$0xff] %v10585_v54  ;;  %v10610_v34 = vsub.f32 %v10388_v45, %v2150_v11  ;;  %v10613_v21 = vsub.f32 %v14882_v18, %v2150_v11  ;;  %v10616_v2 = vsub.f32 %v10420_v0, %v2150_v11 }
 0x403   : > { %14873 = vst [vmem:[#allocation78_spill] sm:$0xff] %v10588_v63  ;;  %14874 = vst [vmem:[#allocation79_spill] sm:$0xff] %v10591_v57  ;;  %v2232_v17 = vmul.f32 %v10501_v50, %v10501_v50  ;;  %v2282_v3 = vadd.f32 %v2281_v38, %v2228_v46  ;;  %v10621_v1 = vsub.f32 %v10452_v61, %v2150_v11  ;;  %v10634_v38 = vmul.f32 0.0078125, %v2147_v13 }
 0x404   : > { %14875 = vst [vmem:[#allocation80_spill] sm:$0xff] %v10594_v58  ;;  %14876 = vst [vmem:[#allocation81_spill] sm:$0xff] %v10597_v30  ;;  %v10624_v49 = vsub.f32 %v10466_v43, %v2150_v11  ;;  %v2218_v28 = vmul.f32 %v10573_v10, %v10573_v10  ;;  %v2222_v45 = vmul.f32 %v10576_v36, %v10576_v36  ;;  %v14886_v10 = vld [vmem:[#allocation27_spill] sm:$0xff] }
 0x405   : > { %14877 = vst [vmem:[#allocation82_spill] sm:$0xff] %v10600_v33  ;;  %14878 = vst [vmem:[#allocation83_spill] sm:$0xff] %v10602_v42  ;;  %v2236_v51 = vmul.f32 %v10504_v59, %v10504_v59  ;;  %v2283_v46 = vadd.f32 %v2282_v3, %v2232_v17  ;;  %v2240_v43 = vmul.f32 %v10507_v52, %v10507_v52  ;;  %v14888_v42 = vld [vmem:[#allocation29_spill] sm:$0xff] }
 0x406   : > { %14879 = vst [vmem:[#allocation84_spill] sm:$0xff] %v10604_v4  ;;  %14880 = vst [vmem:[#allocation85_spill] sm:$0xff] %v10607_v32  ;;  %v2244_v11 = vmul.f32 %v10510_v5, %v10510_v5  ;;  %v2248_v48 = vmul.f32 %v10513_v19, %v10513_v19  ;;  %v2252_v18 = vmul.f32 %v10516_v60, %v10516_v60  ;;  %v14901_v60 = vld [vmem:[#allocation50_spill] sm:$0xff]  ;;  %v14927_v19 = vld [vmem:[#allocation51_spill] sm:$0xff] }
 0x407   : > { %14881 = vst [vmem:[#allocation86_spill] sm:$0xff] %v10610_v34  ;;  %14883 = vst [vmem:[#allocation49_spill] sm:$0xff] %v10613_v21  ;;  %v2256_v17 = vmul.f32 %v10519_v7, %v10519_v7  ;;  %v2284_v13 = vadd.f32 %v2283_v46, %v2236_v51  ;;  %v2226_v3 = vmul.f32 %v10579_v55, %v10579_v55  ;;  %v14890_v51 = vld [vmem:[#allocation31_spill] sm:$0xff]  ;;  %v14892_v55 = vld [vmem:[#allocation33_spill] sm:$0xff] }
 0x408   : > { %v2230_v0 = vmul.f32 %v10582_v31, %v10582_v31  ;;  %v2234_v61 = vmul.f32 %v10585_v54, %v10585_v54  ;;  %v2322_v15 = vadd.f32 %v2222_v45, %v2218_v28  ;;  %v10655_v36 = vsub.f32 %v14884_v39, %v2149_v47  ;;  %v14895_v28 = vld [vmem:[#allocation37_spill] sm:$0xff]  ;;  %v14896_v45 = vld [vmem:[#allocation39_spill] sm:$0xff] }
 0x409   : > { %v10658_v23 = vsub.f32 %v14886_v10, %v2149_v47  ;;  %v2285_v4 = vadd.f32 %v2284_v13, %v2240_v43  ;;  %v10661_v37 = vsub.f32 %v14888_v42, %v2149_v47  ;;  %v10664_v46 = vsub.f32 %v14890_v51, %v2149_v47  ;;  %v14897_v13 = vld [vmem:[#allocation41_spill] sm:$0xff] }
 0x40a   : > { %14885 = vst [vmem:[#allocation25_spill] sm:$0xff] %v10655_v36  ;;  %v10667_v29 = vsub.f32 %v14892_v55, %v2149_v47  ;;  %v2323_v31 = vadd.f32 %v2322_v15, %v2226_v3  ;;  %v10670_v54 = vsub.f32 %v14894_v9, %v2149_v47  ;;  %v10673_v39 = vsub.f32 %v14895_v28, %v2149_v47  ;;  %v14899_v7 = vld [vmem:[#allocation45_spill] sm:$0xff]  ;;  %v14900_v3 = vld [vmem:[#allocation47_spill] sm:$0xff] }
 0x40b   : > { %14887 = vst [vmem:[#allocation27_spill] sm:$0xff] %v10658_v23  ;;  %14889 = vst [vmem:[#allocation29_spill] sm:$0xff] %v10661_v37  ;;  %v10676_v10 = vsub.f32 %v14896_v45, %v2149_v47  ;;  %v2286_v43 = vadd.f32 %v2285_v4, %v2244_v11  ;;  %v10679_v42 = vsub.f32 %v14897_v13, %v2149_v47 }
 0x40c   : > { %14891 = vst [vmem:[#allocation31_spill] sm:$0xff] %v10664_v46  ;;  %14893 = vst [vmem:[#allocation33_spill] sm:$0xff] %v10667_v29  ;;  %v10682_v51 = vsub.f32 %v14898_v62, %v2149_v47  ;;  %v10685_v55 = vsub.f32 %v14899_v7, %v2149_v47  ;;  %v2324_v15 = vadd.f32 %v2323_v31, %v2230_v0 }
 0x40d   : > { %v10688_v9 = vsub.f32 %v14900_v3, %v2149_v47  ;;  %v10691_v28 = vsub.f32 %v14901_v60, %v2149_v47  ;;  %v10694_v45 = vsub.f32 %v10425_v20, %v2149_v47  ;;  %v2260_v4 = vmul.f32 %v10522_v22, %v10522_v22 }
 0x40e   : > { %v2287_v11 = vadd.f32 %v2286_v43, %v2248_v48  ;;  %v10699_v62 = vsub.f32 %v10455_v14, %v2149_v47  ;;  %v10702_v7 = vsub.f32 %v10471_v53, %v2149_v47  ;;  %v2264_v31 = vmul.f32 %v10525_v12, %v10525_v12 }
 0x40f   : > { %v2268_v60 = vmul.f32 %v10528_v24, %v10528_v24  ;;  %v2238_v20 = vmul.f32 %v10588_v63, %v10588_v63  ;;  %v2325_v0 = vadd.f32 %v2324_v15, %v2234_v61  ;;  %v2272_v13 = vmul.f32 %v10531_v8, %v10531_v8 }
 0x410   : > { %v2288_v48 = vadd.f32 %v2287_v11, %v2252_v18  ;;  %v2217_v14 = vmul.f32 %v10655_v36, %v10655_v36  ;;  %v2221_v53 = vmul.f32 %v10658_v23, %v10658_v23  ;;  %v2276_v47 = vmul.f32 %v10533_v27, %v10533_v27 }
 0x411   : > { %v2242_v43 = vmul.f32 %v10591_v57, %v10591_v57  ;;  %v2246_v3 = vmul.f32 %v10594_v58, %v10594_v58  ;;  %v2326_v61 = vadd.f32 %v2325_v0, %v2238_v20  ;;  %v2250_v18 = vmul.f32 %v10597_v30, %v10597_v30 }
 0x412   : > { %v2289_v15 = vadd.f32 %v2288_v48, %v2256_v17  ;;  %v2254_v11 = vmul.f32 %v10600_v33, %v10600_v33  ;;  %v2258_v63 = vmul.f32 %v10607_v32, %v10607_v32  ;;  %v2225_v23 = vmul.f32 %v10661_v37, %v10661_v37  ;;  %v14902_v48 = vld [vmem:[#allocation26_spill] sm:$0xff]  ;;  %v14904_v33 = vld [vmem:[#allocation28_spill] sm:$0xff] }
 0x413   : > { %v2327_v12 = vadd.f32 %v2326_v61, %v2242_v43  ;;  %v2229_v57 = vmul.f32 %v10664_v46, %v10664_v46  ;;  %v2233_v20 = vmul.f32 %v10667_v29, %v10667_v29  ;;  %v2301_v0 = vadd.f32 %v2221_v53, %v2217_v14  ;;  %v14906_v61 = vld [vmem:[#allocation30_spill] sm:$0xff]  ;;  %v14908_v46 = vld [vmem:[#allocation32_spill] sm:$0xff] }
 0x414   : > { %v2290_v17 = vadd.f32 %v2289_v15, %v2260_v4  ;;  %v10736_v30 = vsub.f32 %v14902_v48, %v10634_v38  ;;  %v10740_v58 = vsub.f32 %v14904_v33, %v10634_v38  ;;  %v10744_v32 = vsub.f32 %v14906_v61, %v10634_v38  ;;  %v14910_v4 = vld [vmem:[#allocation34_spill] sm:$0xff]  ;;  %v14912_v48 = vld [vmem:[#allocation36_spill] sm:$0xff] }
 0x415   : > { %v2328_v43 = vadd.f32 %v2327_v12, %v2246_v3  ;;  %v10748_v37 = vsub.f32 %v14908_v46, %v10634_v38  ;;  %v10752_v14 = vsub.f32 %v14910_v4, %v10634_v38  ;;  %v2302_v15 = vadd.f32 %v2301_v0, %v2225_v23  ;;  %v14914_v12 = vld [vmem:[#allocation38_spill] sm:$0xff]  ;;  %v14916_v61 = vld [vmem:[#allocation40_spill] sm:$0xff] }
 0x416   : > { %14903 = vst [vmem:[#allocation35_spill] sm:$0xff] %v10736_v30  ;;  %14905 = vst [vmem:[#allocation37_spill] sm:$0xff] %v10740_v58  ;;  %v2291_v53 = vadd.f32 %v2290_v17, %v2264_v31  ;;  %v10756_v29 = vsub.f32 %v14912_v48, %v10634_v38  ;;  %v10760_v33 = vsub.f32 %v14914_v12, %v10634_v38  ;;  %v14918_v46 = vld [vmem:[#allocation42_spill] sm:$0xff]  ;;  %v14920_v31 = vld [vmem:[#allocation44_spill] sm:$0xff] }
 0x417   : > { %14907 = vst [vmem:[#allocation39_spill] sm:$0xff] %v10744_v32  ;;  %14909 = vst [vmem:[#allocation41_spill] sm:$0xff] %v10748_v37  ;;  %v2329_v3 = vadd.f32 %v2328_v43, %v2250_v18  ;;  %v10764_v36 = vsub.f32 %v14916_v61, %v10634_v38  ;;  %v10768_v22 = vsub.f32 %v14918_v46, %v10634_v38  ;;  %v14922_v4 = vld [vmem:[#allocation46_spill] sm:$0xff]  ;;  %v14924_v18 = vld [vmem:[#allocation48_spill] sm:$0xff] }
 0x418   : > { %14911 = vst [vmem:[#allocation43_spill] sm:$0xff] %v10752_v14  ;;  %14913 = vst [vmem:[#allocation45_spill] sm:$0xff] %v10756_v29  ;;  %v10772_v23 = vsub.f32 %v14920_v31, %v10634_v38  ;;  %v2292_v17 = vadd.f32 %v2291_v53, %v2268_v60  ;;  %v2303_v0 = vadd.f32 %v2302_v15, %v2229_v57  ;;  %v10782_v12 = vld [vmem:[#allocation5 + $0x480] sm:$0xff]  ;;  %v10798_v15 = vld [vmem:[#allocation5 + $0x488] sm:$0xff] }
 0x419   : > { %14915 = vst [vmem:[#allocation47_spill] sm:$0xff] %v10760_v33  ;;  %14917 = vst [vmem:[#allocation50_spill] sm:$0xff] %v10764_v36  ;;  %v10776_v48 = vsub.f32 %v14922_v4, %v10634_v38  ;;  %v10780_v43 = vsub.f32 %v14924_v18, %v10634_v38  ;;  %v10784_v61 = vld [vmem:[#allocation5 + $0x4a0] sm:$0xff]  ;;  %v2330_v46 = vadd.f32 %v2329_v3, %v2254_v11  ;;  %v10800_v31 = vld [vmem:[#allocation5 + $0x4a8] sm:$0xff] }
 0x41a   : > { %14919 = vst [vmem:[#allocation26_spill] sm:$0xff] %v10768_v22  ;;  %14921 = vst [vmem:[#allocation28_spill] sm:$0xff] %v10772_v23  ;;  %v10788_v5 = vsub.f32 %v14927_v19, %v10634_v38  ;;  %v10792_v57 = vsub.f32 %v10428_v6, %v10634_v38  ;;  %v14929_v60 = vld [vmem:[#allocation56_spill] sm:$0xff]  ;;  %v2293_v4 = vadd.f32 %v2292_v17, %v2272_v13  ;;  %v14931_v19 = vld [vmem:[#allocation57_spill] sm:$0xff] }
 0x41b   : > { %14923 = vst [vmem:[#allocation30_spill] sm:$0xff] %v10776_v48  ;;  %14925 = vst [vmem:[#allocation32_spill] sm:$0xff] %v10780_v43  ;;  %v10796_v53 = vsub.f32 %v14929_v60, %v10634_v38  ;;  %v2237_v11 = vmul.f32 %v10670_v54, %v10670_v54  ;;  %v2304_v3 = vadd.f32 %v2303_v0, %v2233_v20  ;;  %v10820_v0 = vld [vmem:[#allocation5 + $0x4e0] sm:$0xff] }
 0x41c   : > { %14926 = vst [vmem:[#allocation34_spill] sm:$0xff] %v10784_v61  ;;  %14928 = vst [vmem:[#allocation36_spill] sm:$0xff] %v10788_v5  ;;  %v10806_v18 = vsub.f32 %v14931_v19, %v10634_v38  ;;  %v2262_v6 = vmul.f32 %v10610_v34, %v10610_v34  ;;  %v2331_v25 = vadd.f32 %v2330_v46, %v2258_v63  ;;  %v10818_v38 = vld [vmem:[#allocation5 + $0x4c0] sm:$0xff]  ;;  %v10864_v34 = vld [vmem:[#allocation5 + $0x528] sm:$0xff] }
 0x41d   : > { %14930 = vst [vmem:[#allocation38_spill] sm:$0xff] %v10800_v31  ;;  %v2294_v41 = vadd.f32 %v2293_v4, %v2276_v47  ;;  %v2241_v13 = vmul.f32 %v10673_v39, %v10673_v39  ;;  %v2305_v17 = vadd.f32 %v2304_v3, %v2237_v11  ;;  %14932 = vst [vmem:[#allocation40_spill] sm:$0xff] %v10820_v0  ;;  %v10828_v4 = vld [vmem:[#allocation5 + $0x4c8] sm:$0xff]  ;;  %v10852_v31 = vld [vmem:[#allocation5 + $0x520] sm:$0xff] }
 0x41e   : > { %v2266_v63 = vmul.f32 %v10613_v21, %v10613_v21  ;;  %v2332_v46 = vadd.f32 %v2331_v25, %v2262_v6  ;;  %v2219_v19 = vmul.f32 %v10736_v30, %v10736_v30  ;;  %v2223_v47 = vmul.f32 %v10740_v58, %v10740_v58  ;;  %v10830_v11 = vld [vmem:[#allocation5 + $0x4e8] sm:$0xff]  ;;  %v10850_v21 = vld [vmem:[#allocation5 + $0x500] sm:$0xff]  ;;  %14933 = vst [vmem:[#allocation42_spill] sm:$0xff] %v10852_v31 }
 0x41f   : > { %v2295_v3 = vrot.slane %v2294_v41, 4  ;;  %v2245_v20 = vmul.f32 %v10676_v10, %v10676_v10  ;;  %v2306_v60 = vadd.f32 %v2305_v17, %v2241_v13  ;;  %v2270_v25 = vmul.f32 %v10616_v2, %v10616_v2  ;;  %14934 = vst [vmem:[#allocation44_spill] sm:$0xff] %v10864_v34  ;;  %v10900_v34 = vld [vmem:[#allocation5 + $0x5a0] sm:$0xff] }
 0x420   : > { %v2333_v6 = vadd.f32 %v2332_v46, %v2266_v63  ;;  %v2249_v30 = vmul.f32 %v10679_v42, %v10679_v42  ;;  %v2274_v17 = vmul.f32 %v10621_v1, %v10621_v1  ;;  %v2227_v63 = vmul.f32 %v10744_v32, %v10744_v32  ;;  %14938 = vst [vmem:[#allocation56_spill] sm:$0xff] %v10900_v34 }
 0x421   : > { %v2296_v58 = vadd.f32 %v2295_v3, %v2294_v41  ;;  %v2307_v61 = vadd.f32 %v2306_v60, %v2245_v20  ;;  %v2343_v46 = vadd.f32 %v2223_v47, %v2219_v19  ;;  %v2253_v3 = vmul.f32 %v10682_v51, %v10682_v51  ;;  %v10862_v47 = vld [vmem:[#allocation5 + $0x508] sm:$0xff] }
 0x422   : > { %v2334_v52 = vadd.f32 %v2333_v6, %v2270_v25  ;;  %v2278_v13 = vmul.f32 %v10624_v49, %v10624_v49  ;;  %v2231_v6 = vmul.f32 %v10748_v37, %v10748_v37  ;;  %v2257_v0 = vmul.f32 %v10685_v55, %v10685_v55  ;;  %v10876_v37 = vld [vmem:[#allocation5 + $0x560] sm:$0xff] }
 0x423   : > { %v2297_v41 = vrot.slane %v2296_v58, 2  ;;  %v2308_v60 = vadd.f32 %v2307_v61, %v2249_v30  ;;  %v2344_v19 = vadd.f32 %v2343_v46, %v2227_v63  ;;  %v10874_v46 = vld [vmem:[#allocation5 + $0x540] sm:$0xff]  ;;  %v10886_v61 = vld [vmem:[#allocation5 + $0x548] sm:$0xff]  ;;  %v2265_v31 = vmul.f32 %v10691_v28, %v10691_v28 }
 0x424   : > { %v2335_v25 = vadd.f32 %v2334_v52, %v2274_v17  ;;  %v2235_v52 = vmul.f32 %v10752_v14, %v10752_v14  ;;  %14935 = vst [vmem:[#allocation46_spill] sm:$0xff] %v10886_v61  ;;  %v10888_v63 = vld [vmem:[#allocation5 + $0x568] sm:$0xff]  ;;  %v10992_v61 = vld [vmem:[#allocation5 + $0x6c0] sm:$0xff] }
 0x425   : > { %v2298_v32 = vadd.f32 %v2297_v41, %v2296_v58  ;;  %v2309_v30 = vadd.f32 %v2308_v60, %v2253_v3  ;;  %v2345_v17 = vadd.f32 %v2344_v19, %v2231_v6  ;;  %v2261_v41 = vmul.f32 %v10688_v9, %v10688_v9  ;;  %14936 = vst [vmem:[#allocation48_spill] sm:$0xff] %v10888_v63  ;;  %v10898_v19 = vld [vmem:[#allocation5 + $0x580] sm:$0xff] }
 0x426   : > { %v2336_v20 = vadd.f32 %v2335_v25, %v2278_v13  ;;  %v2239_v25 = vmul.f32 %v10756_v29, %v10756_v29  ;;  %v2243_v29 = vmul.f32 %v10760_v33, %v10760_v33  ;;  %14937 = vst [vmem:[#allocation51_spill] sm:$0xff] %v10898_v19  ;;  %v2273_v33 = vmul.f32 %v10699_v62, %v10699_v62  ;;  %v10924_v63 = vld [vmem:[#allocation5 + $0x5e0] sm:$0xff]  ;;  %v10990_v19 = vld [vmem:[#allocation5 + $0x6a8] sm:$0xff] }
 0x427   : > { %v2299_v58 = vrot.slane %v2298_v32, 1  ;;  %v2310_v3 = vadd.f32 %v2309_v30, %v2257_v0  ;;  %v2346_v6 = vadd.f32 %v2345_v17, %v2235_v52  ;;  %v10910_v30 = vld [vmem:[#allocation5 + $0x588] sm:$0xff]  ;;  %14942 = vst [vmem:[#allocation89_spill] sm:$0xff] %v10924_v63  ;;  %14955 = vst [vmem:[#allocation102_spill] sm:$0xff] %v10990_v19 }
 0x428   : > { %v2337_v13 = vrot.slane %v2336_v20, 4  ;;  %14939 = vst [vmem:[#allocation57_spill] sm:$0xff] %v10910_v30  ;;  %v10912_v17 = vld [vmem:[#allocation5 + $0x5a8] sm:$0xff]  ;;  %14956 = vst [vmem:[#allocation103_spill] sm:$0xff] %v10992_v61 }
 0x429   : > { %v2300_v14 = vadd.f32 %v2299_v58, %v2298_v32  ;;  %v2311_v0 = vadd.f32 %v2310_v3, %v2261_v41  ;;  %v2347_v52 = vadd.f32 %v2346_v6, %v2239_v25  ;;  %v2269_v58 = vmul.f32 %v10694_v45, %v10694_v45  ;;  %14940 = vst [vmem:[#allocation87_spill] sm:$0xff] %v10912_v17  ;;  %v10922_v6 = vld [vmem:[#allocation5 + $0x5c0] sm:$0xff]  ;;  %v10970_v17 = vld [vmem:[#allocation5 + $0x648] sm:$0xff] }
 0x42a   : > { %v2338_v60 = vadd.f32 %v2337_v13, %v2336_v20  ;;  %v2247_v13 = vmul.f32 %v10764_v36, %v10764_v36  ;;  %v2251_v36 = vmul.f32 %v10768_v22, %v10768_v22  ;;  %14941 = vst [vmem:[#allocation88_spill] sm:$0xff] %v10922_v6  ;;  %v10944_v22 = vld [vmem:[#allocation5 + $0x600] sm:$0xff]  ;;  %14950 = vst [vmem:[#allocation97_spill] sm:$0xff] %v10970_v17  ;;  %v10972_v30 = vld [vmem:[#allocation5 + $0x668] sm:$0xff] }
 0x42b   : > { %v2364_v32 = vmul.f32 0.0078125, %v2300_v14  ;;  %v2312_v41 = vadd.f32 %v2311_v0, %v2265_v31  ;;  %v2348_v25 = vadd.f32 %v2347_v52, %v2243_v29  ;;  %v2259_v52 = vmul.f32 %v10776_v48, %v10776_v48  ;;  %14944 = vst [vmem:[#allocation91_spill] sm:$0xff] %v10944_v22  ;;  %v10954_v48 = vld [vmem:[#allocation5 + $0x628] sm:$0xff]  ;;  %14951 = vst [vmem:[#allocation98_spill] sm:$0xff] %v10972_v30 }
 0x42c   : > { %v2339_v20 = vrot.slane %v2338_v60, 2  ;;  %14947 = vst [vmem:[#allocation94_spill] sm:$0xff] %v10954_v48  ;;  %v10984_v63 = vld [vmem:[#allocation5 + $0x688] sm:$0xff] }
 0x42d   : > { %v2368_v14 = vadd.f32 0.8, %v2364_v32  ;;  %v2313_v31 = vadd.f32 %v2312_v41, %v2269_v58  ;;  %v2349_v29 = vadd.f32 %v2348_v25, %v2247_v13  ;;  %v2277_v32 = vmul.f32 %v10702_v7, %v10702_v7  ;;  %v10942_v41 = vld [vmem:[#allocation5 + $0x5e8] sm:$0xff]  ;;  %v10950_v25 = vld [vmem:[#allocation5 + $0x620] sm:$0xff]  ;;  %14954 = vst [vmem:[#allocation101_spill] sm:$0xff] %v10984_v63  ;;  %v14974_v63 = vld [vmem:[#allocation31_spill] sm:$0xff] }
 0x42e   : > { %v2340_v3 = vadd.f32 %v2339_v20, %v2338_v60  ;;  %v2255_v20 = vmul.f32 %v10772_v23, %v10772_v23  ;;  %14943 = vst [vmem:[#allocation90_spill] sm:$0xff] %v10942_v41  ;;  %14945 = vst [vmem:[#allocation92_spill] sm:$0xff] %v10950_v25  ;;  %v2271_v23 = vmul.f32 %v10792_v57, %v10792_v57  ;;  %v10994_v25 = vld [vmem:[#allocation5 + $0x6e0] sm:$0xff] }
 0x42f   : > { %9160 = vrsqrt.f32 %v2368_v14  ;;  %v2314_v58 = vadd.f32 %v2313_v31, %v2273_v33  ;;  %v2350_v13 = vadd.f32 %v2349_v29, %v2251_v36  ;;  %v10940_v31 = vld [vmem:[#allocation5 + $0x5c8] sm:$0xff]  ;;  %v2263_v29 = vmul.f32 %v10780_v43, %v10780_v43  ;;  %v10962_v43 = vld [vmem:[#allocation5 + $0x640] sm:$0xff]  ;;  %14957 = vst [vmem:[#allocation104_spill] sm:$0xff] %v10994_v25 }
 0x430   : > { %v2341_v60 = vrot.slane %v2340_v3, 1  ;;  %v10952_v14 = vld [vmem:[#allocation5 + $0x608] sm:$0xff]  ;;  %14948 = vst [vmem:[#allocation95_spill] sm:$0xff] %v10962_v43 }
 0x431   : > { %v2315_v0 = vadd.f32 %v2314_v58, %v2277_v32  ;;  %v2267_v32 = vmul.f32 %v10788_v5, %v10788_v5  ;;  %v2351_v58 = vadd.f32 %v2350_v13, %v2255_v20  ;;  %14946 = vst [vmem:[#allocation93_spill] sm:$0xff] %v10952_v14  ;;  %v10964_v5 = vld [vmem:[#allocation5 + $0x660] sm:$0xff] }
 0x432   : > { %v2342_v36 = vadd.f32 %v2341_v60, %v2340_v3  ;;  %v2275_v3 = vmul.f32 %v10796_v53, %v10796_v53  ;;  %v2279_v60 = vmul.f32 %v10806_v18, %v10806_v18  ;;  %14949 = vst [vmem:[#allocation96_spill] sm:$0xff] %v10964_v5 }
 0x433   : > { %v2316_v33 = vrot.slane %v2315_v0, 4  ;;  %v2352_v13 = vadd.f32 %v2351_v58, %v2259_v52  ;;  %v10982_v58 = vld [vmem:[#allocation5 + $0x6a0] sm:$0xff] }
 0x434   : > { %v2366_v20 = vmul.f32 0.0078125, %v2342_v36  ;;  %v10980_v36 = vld [vmem:[#allocation5 + $0x680] sm:$0xff]  ;;  %14953 = vst [vmem:[#allocation100_spill] sm:$0xff] %v10982_v58 }
 0x435   : > { %v2317_v34 = vadd.f32 %v2316_v33, %v2315_v0  ;;  %14952 = vst [vmem:[#allocation99_spill] sm:$0xff] %v10980_v36  ;;  %v2353_v41 = vadd.f32 %v2352_v13, %v2263_v29 }
 0x436   : > { %v2370_v6 = vadd.f32 0.8, %v2366_v20 }
 0x437   : > { %v2318_v52 = vrot.slane %v2317_v34, 2  ;;  %v2354_v13 = vadd.f32 %v2353_v41, %v2267_v32 }
 0x438   : > { %9162 = vrsqrt.f32 %v2370_v6 }
 0x439   : > { %v11006_v48 = vpop.eup %9160  ;;  %v2319_v14 = vadd.f32 %v2318_v52, %v2317_v34  ;;  %v2355_v32 = vadd.f32 %v2354_v13, %v2271_v23 }
 0x43a   : > { %v11016_v6 = vmul.f32 %v11006_v48, %v10528_v24  ;;  %v11020_v41 = vmul.f32 %v11006_v48, %v10531_v8  ;;  %v2436_v34 = vmul.f32 %v11006_v48, %v10533_v27  ;;  %v2376_v22 = vmul.f32 %v11006_v48, %v10486_v26 }
 0x43b   : > { %v2320_v52 = vrot.slane %v2319_v14, 1  ;;  %v2380_v33 = vmul.f32 %v11006_v48, %v10489_v35  ;;  %v2384_v29 = vmul.f32 %v11006_v48, %v10492_v16  ;;  %v2356_v24 = vadd.f32 %v2355_v32, %v2275_v3 }
 0x43c   : > { %v2388_v20 = vmul.f32 %v11006_v48, %v10495_v40  ;;  %v2392_v8 = vmul.f32 %v11006_v48, %v10501_v50  ;;  %v2461_v13 = vmul.f32 %v10483_v44, %v2376_v22  ;;  %v2521_v0 = vmul.f32 %v10483_v44, %v2436_v34 }
 0x43d   : > { %v2321_v23 = vadd.f32 %v2320_v52, %v2319_v14  ;;  %v2465_v26 = vmul.f32 %v10483_v44, %v2380_v33  ;;  %v2469_v35 = vmul.f32 %v10483_v44, %v2384_v29  ;;  %v2357_v16 = vadd.f32 %v2356_v24, %v2279_v60 }
 0x43e   : > { %v2473_v3 = vmul.f32 %v10483_v44, %v2388_v20  ;;  %v2396_v40 = vmul.f32 %v11006_v48, %v10504_v59  ;;  %v2546_v50 = vadd.f32 %v10544_v56, %v2461_v13  ;;  %v2477_v29 = vmul.f32 %v10483_v44, %v2392_v8 }
 0x43f   : > { %v2365_v32 = vmul.f32 0.0078125, %v2321_v23  ;;  %v2550_v27 = vadd.f32 %v10544_v56, %v2465_v26  ;;  %v2554_v14 = vadd.f32 %v10544_v56, %v2469_v35  ;;  %v2358_v22 = vrot.slane %v2357_v16, 4 }
 0x440   : > { %v2558_v33 = vadd.f32 %v10544_v56, %v2473_v3  ;;  %v2481_v34 = vmul.f32 %v10483_v44, %v2396_v40  ;;  %vm2610_vm1 = vcmp.gt.f32.partialorder %v2546_v50, 0.0  ;;  %v2674_v20 = vmul.f32 0.2, %v2546_v50 }
 0x441   : > { %v2369_v60 = vadd.f32 0.8, %v2365_v32  ;;  %vm2614_vm2 = vcmp.gt.f32.partialorder %v2550_v27, 0.0  ;;  %v2359_v59 = vadd.f32 %v2358_v22, %v2357_v16  ;;  %v2678_v24 = vmul.f32 0.2, %v2550_v27  ;;  %v14960_v16 = vld [vmem:[#allocation67_spill] sm:$0xff] }
 0x442   : > { %v11049_v52 = vpop.eup %9162  ;;  %vm2618_vm3 = vcmp.gt.f32.partialorder %v2554_v14, 0.0  ;;  %vm2622_vm4 = vcmp.gt.f32.partialorder %v2558_v33, 0.0  ;;  %v2738_v35 = vsel %vm2610_vm1, %v2546_v50, %v2674_v20  ;;  %v2682_v40 = vmul.f32 0.2, %v2554_v14 }
 0x443   : > { %v11053_v23 = vmul.f32 %v11049_v52, %v10616_v2  ;;  %v11057_v13 = vmul.f32 %v11049_v52, %v10621_v1  ;;  %v2438_v8 = vmul.f32 %v11049_v52, %v10624_v49  ;;  %9164 = vrsqrt.f32 %v2369_v60  ;;  %v14962_v49 = vld [vmem:[#allocation68_spill] sm:$0xff] }
 0x444   : > { %v2360_v26 = vrot.slane %v2359_v59, 2  ;;  %v2742_v3 = vsel %vm2614_vm2, %v2550_v27, %v2678_v24  ;;  %v2686_v25 = vmul.f32 0.2, %v2558_v33  ;;  %v2562_v2 = vadd.f32 %v10544_v56, %v2477_v29  ;;  %v11074_v29 = vld [vmem:[#allocation5 + $0x6c8] sm:$0xff] }
 0x445   : > { %14958 = vst [vmem:[#allocation105_spill] sm:$0xff] %v11053_v23  ;;  %14959 = vst [vmem:[#allocation106_spill] sm:$0xff] %v11057_v13  ;;  %v2523_v32 = vmul.f32 %v14960_v16, %v2438_v8  ;;  %v11062_v22 = vpack.c.bf16 %v2742_v3, %v2738_v35  ;;  %v2746_v61 = vsel %vm2618_vm3, %v2554_v14, %v2682_v40  ;;  %v14961_v13 = vld [vmem:[#allocation58_spill] sm:$0xff]  ;;  %v11076_v14 = vld [vmem:[#allocation5 + $0x6e8] sm:$0xff] }
 0x446   : > { %v2361_v23 = vadd.f32 %v2360_v26, %v2359_v59  ;;  %v2566_v1 = vadd.f32 %v10544_v56, %v2481_v34  ;;  %v2400_v19 = vmul.f32 %v11006_v48, %v14961_v13  ;;  %v2750_v27 = vsel %vm2622_vm4, %v2558_v33, %v2686_v25  ;;  %14964 = vst [vmem:[#allocation107_spill] sm:$0xff] %v11074_v29  ;;  %v14966_v59 = vld [vmem:[#allocation59_spill] sm:$0xff]  ;;  %v14967_v35 = vld [vmem:[#allocation60_spill] sm:$0xff]  ;;  %v14968_v40 = vld [vmem:[#allocation61_spill] sm:$0xff] }
 0x447   : > { %v11069_v60 = vadd.f32 %v14962_v49, %v2523_v32  ;;  %vm2626_vm5 = vcmp.gt.f32.partialorder %v2562_v2, 0.0  ;;  %v2690_v50 = vmul.f32 0.2, %v2562_v2  ;;  %v11072_v24 = vpack.c.bf16 %v2750_v27, %v2746_v61  ;;  %14965 = vst [vmem:[#allocation108_spill] sm:$0xff] %v11076_v14  ;;  %v14969_v32 = vld [vmem:[#allocation62_spill] sm:$0xff] }
 0x448   : > { %v2362_v20 = vrot.slane %v2361_v23, 1  ;;  %vm2630_vm6 = vcmp.gt.f32.partialorder %v2566_v1, 0.0  ;;  %v2694_v8 = vmul.f32 0.2, %v2566_v1  ;;  %v2404_v13 = vmul.f32 %v11006_v48, %v14966_v59  ;;  %v14977_v14 = vld [vmem:[#allocation70_spill] sm:$0xff] }
 0x449   : > { %14963 = vst [vmem:[#allocation58_spill] sm:$0xff] %v11069_v60  ;;  %v2754_v34 = vsel %vm2626_vm5, %v2562_v2, %v2690_v50  ;;  %v2485_v26 = vmul.f32 %v10483_v44, %v2400_v19  ;;  %v2408_v25 = vmul.f32 %v11006_v48, %v14967_v35  ;;  %v2412_v61 = vmul.f32 %v11006_v48, %v14968_v40 }
 0x44a   : > { %v2363_v33 = vadd.f32 %v2362_v20, %v2361_v23  ;;  %v2758_v3 = vsel %vm2630_vm6, %v2566_v1, %v2694_v8  ;;  %v2416_v27 = vmul.f32 %v11006_v48, %v14969_v32  ;;  %v2489_v2 = vmul.f32 %v10483_v44, %v2404_v13 }
 0x44b   : > { %v11087_v60 = vpack.c.bf16 %v2758_v3, %v2754_v34  ;;  %v11091_v50 = vadd.f32 %v10544_v56, %v2485_v26  ;;  %v11096_v59 = vadd.f32 %v10544_v56, %v2521_v0  ;;  %v2493_v1 = vmul.f32 %v10483_v44, %v2408_v25  ;;  %v14970_v26 = vld [vmem:[#allocation63_spill] sm:$0xff] }
 0x44c   : > { %v2367_v23 = vmul.f32 0.0078125, %v2363_v33  ;;  %v11100_v20 = vmul.f32 %v10483_v44, %v2412_v61  ;;  %v11105_v34 = vadd.f32 %v10544_v56, %v2489_v2  ;;  %v11110_v35 = vmul.f32 %v11006_v48, %v14970_v26  ;;  %v14971_v61 = vld [vmem:[#allocation25_spill] sm:$0xff]  ;;  %v14972_v2 = vld [vmem:[#allocation27_spill] sm:$0xff] }
 0x44d   : > { %v11102_v8 = vpop.eup %9164  ;;  %v2698_v13 = vmul.f32 0.2, %v11091_v50  ;;  %v11113_v0 = vmul.f32 %v10483_v44, %v2416_v27  ;;  %v14973_v27 = vld [vmem:[#allocation29_spill] sm:$0xff]  ;;  %vm2634_vm7 = vcmp.gt.f32.partialorder %v11091_v50, 0.0 }
 0x44e   : > { %v11117_v25 = vmul.f32 %v11102_v8, %v10694_v45  ;;  %v11121_v33 = vmul.f32 %v11102_v8, %v10699_v62  ;;  %v2437_v3 = vmul.f32 %v11102_v8, %v10702_v7  ;;  %v2371_v40 = vadd.f32 0.8, %v2367_v23  ;;  %v14975_v62 = vld [vmem:[#allocation33_spill] sm:$0xff] }
 0x44f   : > { %v2377_v32 = vmul.f32 %v11102_v8, %v14971_v61  ;;  %v2381_v26 = vmul.f32 %v11102_v8, %v14972_v2  ;;  %v2385_v19 = vmul.f32 %v11102_v8, %v14973_v27  ;;  %v2389_v45 = vmul.f32 %v11102_v8, %v14974_v63  ;;  %v14976_v61 = vld [vmem:[#allocation69_spill] sm:$0xff] }
 0x450   : > { %9166 = vrsqrt.f32 %v2371_v40  ;;  %v2393_v58 = vmul.f32 %v11102_v8, %v14975_v62  ;;  %v2397_v7 = vmul.f32 %v11102_v8, %v10670_v54  ;;  %v11139_v23 = vadd.f32 %v10544_v56, %v2493_v1 }
 0x451   : > { %v2462_v2 = vmul.f32 %v14976_v61, %v2377_v32  ;;  %v2466_v36 = vmul.f32 %v14976_v61, %v2381_v26  ;;  %v2470_v27 = vmul.f32 %v14976_v61, %v2385_v19  ;;  %v2474_v63 = vmul.f32 %v14976_v61, %v2389_v45 }
 0x452   : > { %v2522_v29 = vmul.f32 %v14976_v61, %v2437_v3  ;;  %v2478_v40 = vmul.f32 %v14976_v61, %v2393_v58  ;;  %v2482_v62 = vmul.f32 %v14976_v61, %v2397_v7  ;;  %v2401_v54 = vmul.f32 %v11102_v8, %v10673_v39 }
 0x453   : > { %v2547_v1 = vadd.f32 %v14977_v14, %v2462_v2  ;;  %v2551_v30 = vadd.f32 %v14977_v14, %v2466_v36  ;;  %v2555_v32 = vadd.f32 %v14977_v14, %v2470_v27  ;;  %v2559_v26 = vadd.f32 %v14977_v14, %v2474_v63 }
 0x454   : > { %v2563_v19 = vadd.f32 %v14977_v14, %v2478_v40  ;;  %v2567_v45 = vadd.f32 %v14977_v14, %v2482_v62  ;;  %v2405_v58 = vmul.f32 %v11102_v8, %v10676_v10  ;;  %v2486_v3 = vmul.f32 %v14976_v61, %v2401_v54 }
 0x455   : > { %vm2611_vm8 = vcmp.gt.f32.partialorder %v2547_v1, 0.0  ;;  %vm2615_vm9 = vcmp.gt.f32.partialorder %v2551_v30, 0.0  ;;  %v2675_v39 = vmul.f32 0.2, %v2547_v1  ;;  %v2679_v7 = vmul.f32 0.2, %v2551_v30 }
 0x456   : > { %vm2619_vm10 = vcmp.gt.f32.partialorder %v2555_v32, 0.0  ;;  %vm2623_vm11 = vcmp.gt.f32.partialorder %v2559_v26, 0.0  ;;  %v2683_v36 = vmul.f32 0.2, %v2555_v32  ;;  %v2687_v2 = vmul.f32 0.2, %v2559_v26 }
 0x457   : > { %v2739_v27 = vsel %vm2611_vm8, %v2547_v1, %v2675_v39  ;;  %v2743_v17 = vsel %vm2615_vm9, %v2551_v30, %v2679_v7  ;;  %vm2627_vm12 = vcmp.gt.f32.partialorder %v2563_v19, 0.0  ;;  %vm2631_vm13 = vcmp.gt.f32.partialorder %v2567_v45, 0.0  ;;  %v14981_v39 = vld [vmem:[#allocation54_spill] sm:$0xff]  ;;  %v14982_v7 = vld [vmem:[#allocation55_spill] sm:$0xff] }
 0x458   : > { %v11159_v63 = vpack.c.bf16 %v2743_v17, %v2739_v27  ;;  %v2747_v40 = vsel %vm2619_vm10, %v2555_v32, %v2683_v36  ;;  %v2751_v62 = vsel %vm2623_vm11, %v2559_v26, %v2687_v2  ;;  %v2691_v5 = vmul.f32 0.2, %v2563_v19 }
 0x459   : > { %v11161_v10 = vpack.c.bf16 %v2751_v62, %v2747_v40  ;;  %v2695_v54 = vmul.f32 0.2, %v2567_v45  ;;  %v2490_v43 = vmul.f32 %v14976_v61, %v2405_v58  ;;  %v2571_v49 = vadd.f32 %v14977_v14, %v2486_v3  ;;  %v14984_v40 = vld [vmem:[#allocation65_spill] sm:$0xff] }
 0x45a   : > { %v11165_v16 = vpop.eup %9166  ;;  %4444 = vmatprep.mubr.bf16.mxu0 %v11159_v63  ;;  %4670 = vmatprep.mubr.bf16.mxu1 %v11159_v63  ;;  %v2755_v30 = vsel %vm2627_vm12, %v2563_v19, %v2691_v5  ;;  %vm2638_vm14 = vcmp.gt.f32.partialorder %v11105_v34, 0.0  ;;  %v2702_v17 = vmul.f32 0.2, %v11105_v34  ;;  %v2762_v1 = vsel %vm2634_vm7, %v11091_v50, %v2698_v13  ;;  %v14978_v5 = vld [vmem:[#allocation52_spill] sm:$0xff]  ;;  %v14979_v19 = vld [vmem:[#allocation53_spill] sm:$0xff] }
 0x45b   : > { %v11176_v32 = vmul.f32 %v11165_v16, %v10792_v57  ;;  %v11180_v26 = vmul.f32 %v11165_v16, %v10796_v53  ;;  %v11184_v58 = vmul.f32 %v11165_v16, %v10806_v18  ;;  %4445 = vmatmul.mubr.bf16.vlgmr.msra.gmra.mrb[48].mxu0 %v11062_v22  ;;  %4671 = vmatmul.mubr.bf16.vlgmr.msra.gmra.mrb[64].mxu1 %v11062_v22  ;;  %vm2635_vm15 = vcmp.gt.f32.partialorder %v2571_v49, 0.0 }
 0x45c   : > { %v14980_v50 = vcombine.low %v14978_v5, %v14979_v19  ;;  %4454 = vmatprep.mubr.bf16.mxu0 %v11161_v10  ;;  %v2759_v57 = vsel %vm2631_vm13, %v2567_v45, %v2695_v54  ;;  %v2575_v53 = vadd.f32 %v14977_v14, %v2490_v43  ;;  %v2699_v13 = vmul.f32 0.2, %v2571_v49  ;;  %4680 = vmatprep.mubr.bf16.mxu1 %v11161_v10  ;;  %v14985_v45 = vld [vmem:[#allocation66_spill] sm:$0xff]  ;;  %v14987_v43 = vld [vmem:[#allocation83_spill] sm:$0xff]  ;;  %v14988_v54 = vld [vmem:[#allocation84_spill] sm:$0xff] }
 0x45d   : > { %v2766_v3 = vsel %vm2638_vm14, %v11105_v34, %v2702_v17  ;;  %v11196_v18 = vadd.f32 %v14977_v14, %v2522_v29  ;;  %v14983_v36 = vcombine.low %v14981_v39, %v14982_v7  ;;  %v11202_v2 = vpack.c.bf16 %v2759_v57, %v2755_v30 }
 0x45e   : > { %4526 = vmatpush1.bf16.msra.mxu0 %v14980_v50  ;;  %v11204_v27 = vpack.c.bf16 %v2766_v3, %v2762_v1  ;;  %v14986_v62 = vcombine.high %v14984_v40, %v14985_v45  ;;  %v14989_v34 = vcombine.high %v14987_v43, %v14988_v54  ;;  %vm2639_vm0 = vcmp.gt.f32.partialorder %v2575_v53, 0.0 }
 0x45f   : > { %4752 = vmatpush1.bf16.msra.mxu1 %v14983_v36  ;;  %v2703_v29 = vmul.f32 0.2, %v2575_v53  ;;  %v2763_v17 = vsel %vm2635_vm15, %v2571_v49, %v2699_v13  ;;  %v2409_v5 = vmul.f32 %v11102_v8, %v10679_v42  ;;  %v2413_v30 = vmul.f32 %v11102_v8, %v10682_v51  ;;  %v14992_v13 = vld [vmem:[#allocation34_spill] sm:$0xff] }
 0x460   : > { %4527 = vmatprep.subr.bf16.mxu0 %v14986_v62  ;;  %4753 = vmatprep.subr.bf16.mxu1 %v14989_v34  ;;  %v2582_v1 = vadd.f32 %v10544_v56, %v11100_v20  ;;  %vm2642_vm1 = vcmp.gt.f32.partialorder %v11139_v23, 0.0  ;;  %v2706_v19 = vmul.f32 0.2, %v11139_v23  ;;  %v14990_v50 = vcombine.low %v14984_v40, %v14985_v45  ;;  %v14994_v36 = vld [vmem:[#allocation38_spill] sm:$0xff] }
 0x461   : > { %v2767_v57 = vsel %vm2639_vm0, %v2575_v53, %v2703_v29  ;;  %v2494_v49 = vmul.f32 %v14976_v61, %v2409_v5  ;;  %v2417_v42 = vmul.f32 %v11102_v8, %v10685_v55  ;;  %v2421_v51 = vmul.f32 %v11102_v8, %v10688_v9 }
 0x462   : > { %4528 = vmatpush1.bf16.msra.mxu0 %v14990_v50  ;;  %v14991_v20 = vcombine.low %v14987_v43, %v14988_v54  ;;  %v14993_v3 = vcombine.high %v10782_v12, %v14992_v13  ;;  %v11235_v39 = vpack.c.bf16 %v2767_v57, %v2763_v17  ;;  %v2498_v53 = vmul.f32 %v14976_v61, %v2413_v30 }
 0x463   : > { %vm2646_vm2 = vcmp.gt.f32.partialorder %v2582_v1, 0.0  ;;  %v2710_v7 = vmul.f32 0.2, %v2582_v1  ;;  %v14995_v55 = vcombine.high %v10798_v15, %v14994_v36  ;;  %v2579_v9 = vadd.f32 %v14977_v14, %v2494_v49  ;;  %4455 = vmatmul.mubr.bf16.gmra.mrb[52].mxu0 %v11072_v24  ;;  %4681 = vmatmul.mubr.bf16.gmra.mrb[68].mxu1 %v11072_v24 }
 0x464   : > { %4754 = vmatpush1.bf16.msra.mxu1 %v14991_v20  ;;  %4529 = vmatprep.subr.bf16.mxu0 %v14993_v3  ;;  %v2770_v40 = vsel %vm2642_vm1, %v11139_v23, %v2706_v19  ;;  %v2502_v45 = vmul.f32 %v14976_v61, %v2417_v42  ;;  %v2506_v62 = vmul.f32 %v14976_v61, %v2421_v51  ;;  %vm2671_vm4 = vcmp.gt.f32.partialorder %v11196_v18, 0.0 }
 0x465   : > { %4755 = vmatprep.subr.bf16.mxu1 %v14995_v55  ;;  %v2583_v43 = vadd.f32 %v14977_v14, %v2498_v53  ;;  %v2774_v54 = vsel %vm2646_vm2, %v2582_v1, %v2710_v7  ;;  %v2505_v34 = vmul.f32 %v10483_v44, %v11110_v35  ;;  %v14996_v29 = vcombine.low %v10782_v12, %v14992_v13  ;;  %v14998_v1 = vld [vmem:[#allocation40_spill] sm:$0xff]  ;;  %v15004_v7 = vld [vmem:[#allocation42_spill] sm:$0xff] }
 0x466   : > { %4464 = vmatprep.mubr.bf16.mxu0 %v11202_v2  ;;  %vm2643_vm3 = vcmp.gt.f32.partialorder %v2579_v9, 0.0  ;;  %v2707_v23 = vmul.f32 0.2, %v2579_v9  ;;  %v2587_v17 = vadd.f32 %v14977_v14, %v2502_v45  ;;  %4690 = vmatprep.mubr.bf16.mxu1 %v11202_v2  ;;  %v14997_v5 = vcombine.low %v10798_v15, %v14994_v36  ;;  %v15006_v45 = vld [vmem:[#allocation44_spill] sm:$0xff] }
 0x467   : > { %4530 = vmatpush1.bf16.msra.mxu0 %v14996_v29  ;;  %vm2647_vm5 = vcmp.gt.f32.partialorder %v2583_v43, 0.0  ;;  %v2711_v35 = vmul.f32 0.2, %v2583_v43  ;;  %v2591_v30 = vadd.f32 %v14977_v14, %v2506_v62  ;;  %v2586_v12 = vadd.f32 %v10544_v56, %v11113_v0 }
 0x468   : > { %4756 = vmatpush1.bf16.msra.mxu1 %v14997_v5  ;;  %v14999_v19 = vcombine.high %v10818_v38, %v14998_v1  ;;  %v15000_v50 = vcombine.high %v10828_v4, %v10830_v11  ;;  %v11269_v57 = vpack.c.bf16 %v2774_v54, %v2770_v40  ;;  %vm2651_vm6 = vcmp.gt.f32.partialorder %v2587_v17, 0.0 }
 0x469   : > { %v2715_v15 = vmul.f32 0.2, %v2587_v17  ;;  %v2590_v49 = vadd.f32 %v10544_v56, %v2505_v34  ;;  %v2771_v42 = vsel %vm2643_vm3, %v2579_v9, %v2707_v23  ;;  %v2775_v51 = vsel %vm2647_vm5, %v2583_v43, %v2711_v35 }
 0x46a   : > { %4531 = vmatprep.subr.bf16.mxu0 %v14999_v19  ;;  %4757 = vmatprep.subr.bf16.mxu1 %v15000_v50  ;;  %15001 = vst [vmem:[#allocation59_spill] sm:$0xff] %v11269_v57  ;;  %vm2655_vm7 = vcmp.gt.f32.partialorder %v2591_v30, 0.0  ;;  %v2719_v20 = vmul.f32 0.2, %v2591_v30  ;;  %v15002_v0 = vcombine.low %v10818_v38, %v14998_v1  ;;  %vm2650_vm8 = vcmp.gt.f32.partialorder %v2586_v12, 0.0  ;;  %v15013_v1 = vld [vmem:[#allocation46_spill] sm:$0xff] }
 0x46b   : > { %v2779_v13 = vsel %vm2651_vm6, %v2587_v17, %v2715_v15  ;;  %vm2654_vm9 = vcmp.gt.f32.partialorder %v2590_v49, 0.0  ;;  %v2714_v3 = vmul.f32 0.2, %v2586_v12  ;;  %v15003_v53 = vcombine.low %v10828_v4, %v10830_v11  ;;  %v15009_v11 = vld [vmem:[#allocation64_spill] sm:$0xff]  ;;  %4465 = vmatmul.mubr.bf16.gmra.mrb[56].mxu0 %v11087_v60  ;;  %4691 = vmatmul.mubr.bf16.gmra.mrb[72].mxu1 %v11087_v60 }
 0x46c   : > { %4532 = vmatpush1.bf16.msra.mxu0 %v15002_v0  ;;  %v15005_v36 = vcombine.high %v10850_v21, %v15004_v7  ;;  %v2783_v55 = vsel %vm2655_vm7, %v2591_v30, %v2719_v20  ;;  %v2718_v9 = vmul.f32 0.2, %v2590_v49  ;;  %v2425_v40 = vmul.f32 %v11102_v8, %v10691_v28  ;;  %4474 = vmatprep.mubr.bf16.mxu0 %v11235_v39  ;;  %v15014_v19 = vld [vmem:[#allocation48_spill] sm:$0xff] }
 0x46d   : > { %4758 = vmatpush1.bf16.msra.mxu1 %v15003_v53  ;;  %v2514_v38 = vmul.f32 %v14976_v61, %v11117_v25  ;;  %v15007_v62 = vcombine.high %v10862_v47, %v15006_v45  ;;  %v11289_v43 = vpack.c.bf16 %v2775_v51, %v2771_v42  ;;  %v11291_v4 = vpack.c.bf16 %v2783_v55, %v2779_v13  ;;  %v15019_v53 = vld [vmem:[#allocation56_spill] sm:$0xff]  ;;  %v15022_v55 = vld [vmem:[#allocation87_spill] sm:$0xff] }
 0x46e   : > { %4533 = vmatprep.subr.bf16.mxu0 %v15005_v36  ;;  %v2424_v54 = vmul.f32 %v11006_v48, %v15009_v11  ;;  %v2513_v34 = vmul.f32 %v10483_v44, %v11016_v6  ;;  %v11300_v28 = vsel %vm2650_vm8, %v2586_v12, %v2714_v3  ;;  %v2510_v8 = vmul.f32 %v14976_v61, %v2425_v40 }
 0x46f   : > { %4759 = vmatprep.subr.bf16.mxu1 %v15007_v62  ;;  %15008 = vst [vmem:[#allocation60_spill] sm:$0xff] %v11291_v4  ;;  %v2599_v25 = vadd.f32 %v14977_v14, %v2514_v38  ;;  %v2735_v29 = vmul.f32 0.2, %v11196_v18  ;;  %v15010_v23 = vcombine.low %v10850_v21, %v15004_v7  ;;  %v11310_v48 = vsel %vm2654_vm9, %v2590_v49, %v2718_v9  ;;  %v15025_v38 = vld [vmem:[#allocation35_spill] sm:$0xff] }
 0x470   : > { %v2509_v6 = vmul.f32 %v10483_v44, %v2424_v54  ;;  %v2598_v17 = vadd.f32 %v10544_v56, %v2513_v34  ;;  %vm2670_vm10 = vcmp.gt.f32.partialorder %v11096_v59, 0.0  ;;  %4700 = vmatprep.mubr.bf16.mxu1 %v11235_v39  ;;  %v15011_v5 = vcombine.low %v10862_v47, %v15006_v45 }
 0x471   : > { %4534 = vmatpush1.bf16.msra.mxu0 %v15010_v23  ;;  %v2595_v21 = vadd.f32 %v14977_v14, %v2510_v8  ;;  %vm2663_vm11 = vcmp.gt.f32.partialorder %v2599_v25, 0.0  ;;  %v2727_v35 = vmul.f32 0.2, %v2599_v25  ;;  %v2518_v30 = vmul.f32 %v14976_v61, %v11121_v33 }
 0x472   : > { %4760 = vmatpush1.bf16.msra.mxu1 %v15011_v5  ;;  %v15012_v12 = vcombine.high %v10874_v46, %v10876_v37  ;;  %v15015_v50 = vcombine.high %v15013_v1, %v15014_v19  ;;  %v2594_v15 = vadd.f32 %v10544_v56, %v2509_v6  ;;  %vm2662_vm12 = vcmp.gt.f32.partialorder %v2598_v17, 0.0 }
 0x473   : > { %v2726_v47 = vmul.f32 0.2, %v2598_v17  ;;  %v2799_v49 = vsel %vm2671_vm4, %v11196_v18, %v2735_v29  ;;  %vm2659_vm13 = vcmp.gt.f32.partialorder %v2595_v21, 0.0  ;;  %v2723_v42 = vmul.f32 0.2, %v2595_v21  ;;  %v15018_v18 = vld [vmem:[#allocation51_spill] sm:$0xff]  ;;  %4475 = vmatmul.mubr.bf16.gmra.mrb[60].mxu0 %v11204_v27  ;;  %4701 = vmatmul.mubr.bf16.gmra.mrb[76].mxu1 %v11204_v27 }
 0x474   : > { %4535 = vmatprep.subr.bf16.mxu0 %v15012_v12  ;;  %4761 = vmatprep.subr.bf16.mxu1 %v15015_v50  ;;  %v2791_v51 = vsel %vm2663_vm11, %v2599_v25, %v2727_v35  ;;  %v2603_v33 = vadd.f32 %v14977_v14, %v2518_v30  ;;  %v15016_v61 = vcombine.low %v10874_v46, %v10876_v37  ;;  %vm2658_vm14 = vcmp.gt.f32.partialorder %v2594_v15, 0.0  ;;  %v15021_v46 = vld [vmem:[#allocation57_spill] sm:$0xff]  ;;  %v15034_v30 = vld [vmem:[#allocation88_spill] sm:$0xff] }
 0x475   : > { %v2722_v20 = vmul.f32 0.2, %v2594_v15  ;;  %v2790_v0 = vsel %vm2662_vm12, %v2598_v17, %v2726_v47  ;;  %v2517_v13 = vmul.f32 %v10483_v44, %v11020_v41  ;;  %v15017_v3 = vcombine.low %v15013_v1, %v15014_v19  ;;  %4484 = vmatprep.mubr.bf16.mxu0 %v11289_v43  ;;  %v15029_v25 = vld [vmem:[#allocation37_spill] sm:$0xff]  ;;  %4710 = vmatprep.mubr.bf16.mxu1 %v11289_v43  ;;  %v15037_v19 = vld [vmem:[#allocation90_spill] sm:$0xff] }
 0x476   : > { %4536 = vmatpush1.bf16.msra.mxu0 %v15016_v61  ;;  %v15020_v7 = vcombine.high %v15018_v18, %v15019_v53  ;;  %v2787_v36 = vsel %vm2659_vm13, %v2595_v21, %v2723_v42  ;;  %vm2667_vm15 = vcmp.gt.f32.partialorder %v2603_v33, 0.0  ;;  %v2731_v14 = vmul.f32 0.2, %v2603_v33  ;;  %v15032_v17 = vld [vmem:[#allocation73_spill] sm:$0xff]  ;;  %v15033_v21 = vld [vmem:[#allocation74_spill] sm:$0xff] }
 0x477   : > { %4762 = vmatpush1.bf16.msra.mxu1 %v15017_v3  ;;  %v2734_v37 = vmul.f32 0.2, %v11096_v59  ;;  %v15023_v9 = vcombine.high %v15021_v46, %v15022_v55  ;;  %v11348_v40 = vpack.c.bf16 %v2791_v51, %v2787_v36  ;;  %v2786_v44 = vsel %vm2658_vm14, %v2594_v15, %v2722_v20  ;;  %v15035_v12 = vld [vmem:[#allocation89_spill] sm:$0xff]  ;;  %v15042_v20 = vld [vmem:[#allocation67_spill] sm:$0xff] }
 0x478   : > { %4537 = vmatprep.subr.bf16.mxu0 %v15020_v7  ;;  %v2602_v41 = vadd.f32 %v10544_v56, %v2517_v13  ;;  %v2379_v45 = vmul.f32 %v11165_v16, %v15025_v38  ;;  %v11355_v62 = vpack.c.bf16 %v2790_v0, %v2786_v44  ;;  %v2795_v11 = vsel %vm2667_vm15, %v2603_v33, %v2731_v14  ;;  %v15041_v33 = vld [vmem:[#allocation72_spill] sm:$0xff]  ;;  %v15045_v14 = vld [vmem:[#allocation75_spill] sm:$0xff] }
 0x479   : > { %4763 = vmatprep.subr.bf16.mxu1 %v15023_v9  ;;  %15024 = vst [vmem:[#allocation61_spill] sm:$0xff] %v11348_v40  ;;  %v2798_v54 = vsel %vm2670_vm10, %v11096_v59, %v2734_v37  ;;  %v15027_v34 = vcombine.low %v15018_v18, %v15019_v53  ;;  %v11364_v56 = vpack.c.bf16 %v2799_v49, %v2795_v11  ;;  %v15031_v59 = vld [vmem:[#allocation71_spill] sm:$0xff]  ;;  %v15044_v53 = vld [vmem:[#allocation41_spill] sm:$0xff]  ;;  %v15048_v9 = vld [vmem:[#allocation92_spill] sm:$0xff] }
 0x47a   : > { %15026 = vst [vmem:[#allocation62_spill] sm:$0xff] %v11355_v62  ;;  %vm2666_vm0 = vcmp.gt.f32.partialorder %v2602_v41, 0.0  ;;  %v2730_v8 = vmul.f32 0.2, %v2602_v41  ;;  %v2383_v29 = vmul.f32 %v11165_v16, %v15029_v25  ;;  %v15030_v23 = vcombine.low %v15021_v46, %v15022_v55  ;;  %v15039_v49 = vld [vmem:[#allocation39_spill] sm:$0xff]  ;;  %v15050_v38 = vld [vmem:[#allocation68_spill] sm:$0xff] }
 0x47b   : > { %4538 = vmatpush1.bf16.msra.mxu0 %v15027_v34  ;;  %15028 = vst [vmem:[#allocation63_spill] sm:$0xff] %v11364_v56  ;;  %v2464_v6 = vmul.f32 %v15031_v59, %v2379_v45  ;;  %v2378_v5 = vmul.f32 %v11049_v52, %v15032_v17  ;;  %v2382_v35 = vmul.f32 %v11049_v52, %v15033_v21  ;;  %v15047_v55 = vld [vmem:[#allocation91_spill] sm:$0xff]  ;;  %v15052_v34 = vld [vmem:[#allocation94_spill] sm:$0xff] }
 0x47c   : > { %4764 = vmatpush1.bf16.msra.mxu1 %v15030_v23  ;;  %v15036_v1 = vcombine.high %v15034_v30, %v15035_v12  ;;  %v15038_v50 = vcombine.high %v10940_v31, %v15037_v19  ;;  %v2794_v15 = vsel %vm2666_vm0, %v2602_v41, %v2730_v8  ;;  %v2468_v47 = vmul.f32 %v15031_v59, %v2383_v29 }
 0x47d   : > { %v2387_v42 = vmul.f32 %v11165_v16, %v15039_v49  ;;  %v11386_v51 = vpack.c.bf16 %v2798_v54, %v2794_v15  ;;  %v2549_v61 = vadd.f32 %v15041_v33, %v2464_v6  ;;  %v2463_v0 = vmul.f32 %v15042_v20, %v2378_v5  ;;  %v15051_v54 = vld [vmem:[#allocation93_spill] sm:$0xff]  ;;  %4485 = vmatmul.mubr.bf16.gmra.mrb[64].mxu0 %v11269_v57 }
 0x47e   : > { %4539 = vmatprep.subr.bf16.mxu0 %v15036_v1  ;;  %4765 = vmatprep.subr.bf16.mxu1 %v15038_v50  ;;  %v2467_v13 = vmul.f32 %v15042_v20, %v2382_v35  ;;  %v15043_v3 = vcombine.low %v15034_v30, %v15035_v12  ;;  %v2553_v18 = vadd.f32 %v15041_v33, %v2468_v47  ;;  %v11424_v12 = vld [vmem:[#allocation5 + $0x700] sm:$0xff] }
 0x47f   : > { %15040 = vst [vmem:[#allocation25_spill] sm:$0xff] %v11386_v51  ;;  %v2391_v7 = vmul.f32 %v11165_v16, %v15044_v53  ;;  %v2472_v36 = vmul.f32 %v15031_v59, %v2387_v42  ;;  %v2386_v37 = vmul.f32 %v11049_v52, %v15045_v14  ;;  %v15046_v46 = vcombine.low %v10940_v31, %v15037_v19  ;;  %v11426_v1 = vld [vmem:[#allocation5 + $0x720] sm:$0xff]  ;;  %v15058_v42 = vld [vmem:[#allocation95_spill] sm:$0xff] }
 0x480   : > { %4540 = vmatpush1.bf16.msra.mxu0 %v15043_v3  ;;  %v15049_v44 = vcombine.high %v15047_v55, %v15048_v9  ;;  %vm2613_vm1 = vcmp.gt.f32.partialorder %v2549_v61, 0.0  ;;  %v2677_v41 = vmul.f32 0.2, %v2549_v61  ;;  %v2548_v45 = vadd.f32 %v15050_v38, %v2463_v0  ;;  %4711 = vmatmul.mubr.bf16.gmra.mrb[80].mxu1 %v11269_v57  ;;  %v15057_v47 = vld [vmem:[#allocation76_spill] sm:$0xff]  ;;  %v15062_v3 = vld [vmem:[#allocation98_spill] sm:$0xff] }
 0x481   : > { %4766 = vmatpush1.bf16.msra.mxu1 %v15046_v46  ;;  %v2552_v11 = vadd.f32 %v15050_v38, %v2467_v13  ;;  %v15053_v8 = vcombine.high %v15051_v54, %v15052_v34  ;;  %vm2617_vm2 = vcmp.gt.f32.partialorder %v2553_v18, 0.0  ;;  %v2681_v25 = vmul.f32 0.2, %v2553_v18  ;;  %4494 = vmatprep.mubr.bf16.mxu0 %v11291_v4  ;;  %v15061_v13 = vld [vmem:[#allocation97_spill] sm:$0xff]  ;;  %v15064_v14 = vld [vmem:[#allocation108_spill] sm:$0xff]  ;;  %v15065_v46 = vld [vmem:[#allocation107_spill] sm:$0xff] }
 0x482   : > { %4541 = vmatprep.subr.bf16.mxu0 %v15049_v44  ;;  %v2476_v29 = vmul.f32 %v15031_v59, %v2391_v7  ;;  %v2557_v31 = vadd.f32 %v15041_v33, %v2472_v36  ;;  %v2741_v23 = vsel %vm2613_vm1, %v2549_v61, %v2677_v41  ;;  %vm2612_vm3 = vcmp.gt.f32.partialorder %v2548_v45, 0.0  ;;  %4720 = vmatprep.mubr.bf16.mxu1 %v11291_v4  ;;  %v15059_v61 = vld [vmem:[#allocation96_spill] sm:$0xff] }
 0x483   : > { %4767 = vmatprep.subr.bf16.mxu1 %v15053_v8  ;;  %vm2616_vm4 = vcmp.gt.f32.partialorder %v2552_v11, 0.0  ;;  %v2676_v6 = vmul.f32 0.2, %v2548_v45  ;;  %v15054_v17 = vcombine.low %v15047_v55, %v15048_v9  ;;  %v2745_v5 = vsel %vm2617_vm2, %v2553_v18, %v2681_v25  ;;  %v15068_v25 = vld [vmem:[#allocation77_spill] sm:$0xff] }
 0x484   : > { %v2680_v21 = vmul.f32 0.2, %v2552_v11  ;;  %v2561_v35 = vadd.f32 %v15041_v33, %v2476_v29  ;;  %vm2621_vm5 = vcmp.gt.f32.partialorder %v2557_v31, 0.0  ;;  %v15055_v30 = vcombine.low %v15051_v54, %v15052_v34  ;;  %v11451_v54 = vld [vmem:[#allocation5 + $0x708] sm:$0xff] }
 0x485   : > { %4542 = vmatpush1.bf16.msra.mxu0 %v15054_v17  ;;  %v11428_v19 = vpack.c.bf16 %v2745_v5, %v2741_v23  ;;  %v2740_v50 = vsel %vm2612_vm3, %v2548_v45, %v2676_v6  ;;  %v2685_v15 = vmul.f32 0.2, %v2557_v31  ;;  %v2390_v49 = vmul.f32 %v11049_v52, %v15057_v47  ;;  %v11453_v34 = vld [vmem:[#allocation5 + $0x728] sm:$0xff]  ;;  %v15070_v23 = vld [vmem:[#allocation99_spill] sm:$0xff]  ;;  %v15071_v6 = vld [vmem:[#allocation100_spill] sm:$0xff] }
 0x486   : > { %4768 = vmatpush1.bf16.msra.mxu1 %v15055_v30  ;;  %v15060_v0 = vcombine.high %v15058_v42, %v15059_v61  ;;  %v15063_v18 = vcombine.high %v15061_v13, %v15062_v3  ;;  %v2744_v53 = vsel %vm2616_vm4, %v2552_v11, %v2680_v21  ;;  %vm2625_vm6 = vcmp.gt.f32.partialorder %v2561_v35, 0.0  ;;  %v15075_v30 = vld [vmem:[#allocation101_spill] sm:$0xff] }
 0x487   : > { %15056 = vst [vmem:[#allocation27_spill] sm:$0xff] %v11428_v19  ;;  %v2689_v7 = vmul.f32 0.2, %v2561_v35  ;;  %v2471_v36 = vmul.f32 %v15042_v20, %v2386_v37  ;;  %v8225_v55 = vcombine.high %v15065_v46, %v15064_v14  ;;  %v11442_v9 = vpack.c.bf16 %v2744_v53, %v2740_v50  ;;  %v15076_v50 = vld [vmem:[#allocation102_spill] sm:$0xff] }
 0x488   : > { %4543 = vmatprep.subr.bf16.mxu0 %v15060_v0  ;;  %4769 = vmatprep.subr.bf16.mxu1 %v15063_v18  ;;  %v2749_v44 = vsel %vm2621_vm5, %v2557_v31, %v2685_v15  ;;  %v2475_v41 = vmul.f32 %v15042_v20, %v2390_v49  ;;  %v15067_v45 = vcombine.low %v15058_v42, %v15059_v61  ;;  %v11476_v49 = vld [vmem:[#allocation5 + $0x740] sm:$0xff]  ;;  %v15078_v0 = vld [vmem:[#allocation78_spill] sm:$0xff] }
 0x489   : > { %15066 = vst [vmem:[#allocation29_spill] sm:$0xff] %v11442_v9  ;;  %v8230_v11 = vcombine.low %v11424_v12, %v11426_v1  ;;  %v2753_v37 = vsel %vm2625_vm6, %v2561_v35, %v2689_v7  ;;  %v2556_v8 = vadd.f32 %v15050_v38, %v2471_v36  ;;  %v2394_v29 = vmul.f32 %v11049_v52, %v15068_v25  ;;  %v11478_v42 = vld [vmem:[#allocation5 + $0x760] sm:$0xff]  ;;  %v11493_v7 = vld [vmem:[#allocation5 + $0x748] sm:$0xff] }
 0x48a   : > { %4544 = vmatpush1.bf16.msra.mxu0 %v15067_v45  ;;  %v15069_v31 = vcombine.low %v15061_v13, %v15062_v3  ;;  %v15072_v17 = vcombine.high %v15070_v23, %v15071_v6  ;;  %v11466_v5 = vpack.c.bf16 %v11310_v48, %v11300_v28  ;;  %v11468_v21 = vpack.c.bf16 %v2753_v37, %v2749_v44  ;;  %v11495_v36 = vld [vmem:[#allocation5 + $0x768] sm:$0xff] }
 0x48b   : > { %v2560_v35 = vadd.f32 %v15050_v38, %v2475_v41  ;;  %v15077_v15 = vcombine.high %v15075_v30, %v15076_v50  ;;  %v8231_v47 = vcombine.high %v11424_v12, %v11426_v1  ;;  %vm2620_vm7 = vcmp.gt.f32.partialorder %v2556_v8, 0.0 }
 0x48c   : > { %4770 = vmatpush1.bf16.msra.mxu1 %v15069_v31  ;;  %4545 = vmatprep.subr.bf16.mxu0 %v15072_v17  ;;  %15073 = vst [vmem:[#allocation31_spill] sm:$0xff] %v11466_v5  ;;  %15074 = vst [vmem:[#allocation33_spill] sm:$0xff] %v11468_v21  ;;  %v2684_v61 = vmul.f32 0.2, %v2556_v8  ;;  %v2398_v28 = vmul.f32 %v11049_v52, %v15078_v0  ;;  %v2479_v3 = vmul.f32 %v15042_v20, %v2394_v29  ;;  %v15081_v31 = vld [vmem:[#allocation103_spill] sm:$0xff]  ;;  %v11510_v17 = vld [vmem:[#allocation5 + $0x780] sm:$0xff] }
 0x48d   : > { %4771 = vmatprep.subr.bf16.mxu1 %v15077_v15  ;;  %4495 = vmatmul.mubr.bf16.gmra.mrb[68].mxu0 %v11466_v5  ;;  %vm2624_vm8 = vcmp.gt.f32.partialorder %v2560_v35, 0.0  ;;  %v2688_v13 = vmul.f32 0.2, %v2560_v35  ;;  %v15079_v18 = vcombine.low %v15070_v23, %v15071_v6  ;;  %v8233_v53 = vcombine.high %v11451_v54, %v11453_v34  ;;  %v15082_v23 = vld [vmem:[#allocation104_spill] sm:$0xff]  ;;  %v11521_v0 = vld [vmem:[#allocation5 + $0x7a8] sm:$0xff] }
 0x48e   : > { %4721 = vmatmul.mubr.bf16.gmra.mrb[84].mxu1 %v11466_v5  ;;  %4504 = vmatprep.mubr.bf16.mxu0 %v11348_v40  ;;  %v2748_v44 = vsel %vm2620_vm7, %v2556_v8, %v2684_v61  ;;  %v2483_v41 = vmul.f32 %v15042_v20, %v2398_v28  ;;  %v15080_v45 = vcombine.low %v15075_v30, %v15076_v50  ;;  %v11512_v15 = vld [vmem:[#allocation5 + $0x7a0] sm:$0xff]  ;;  %v11514_v30 = vld [vmem:[#allocation5 + $0x788] sm:$0xff] }
 0x48f   : > { %4546 = vmatpush1.bf16.msra.mxu0 %v15079_v18  ;;  %4730 = vmatprep.mubr.bf16.mxu1 %v11348_v40  ;;  %v2752_v25 = vsel %vm2624_vm8, %v2560_v35, %v2688_v13  ;;  %v2564_v29 = vadd.f32 %v15050_v38, %v2479_v3  ;;  %v15083_v6 = vcombine.high %v15081_v31, %v15082_v23  ;;  %v11523_v28 = vld [vmem:[#allocation5 + $0x7c0] sm:$0xff]  ;;  %v15084_v13 = vld [vmem:[#allocation43_spill] sm:$0xff] }
 0x490   : > { %4772 = vmatpush1.bf16.msra.mxu1 %v15080_v45  ;;  %v8239_v8 = vcombine.high %v11476_v49, %v11478_v42  ;;  %v11516_v50 = vpack.c.bf16 %v2752_v25, %v2748_v44  ;;  %v2568_v35 = vadd.f32 %v15050_v38, %v2483_v41  ;;  %v2395_v3 = vmul.f32 %v11165_v16, %v15084_v13  ;;  %v15086_v45 = vld [vmem:[#allocation45_spill] sm:$0xff] }
 0x491   : > { %4547 = vmatprep.subr.bf16.mxu0 %v15083_v6  ;;  %4773 = vmatprep.subr.bf16.mxu1 %v8225_v55  ;;  %v11525_v55 = vld [vmem:[#allocation5 + $0x7e0] sm:$0xff]  ;;  %vm2628_vm9 = vcmp.gt.f32.partialorder %v2564_v29, 0.0  ;;  %v2692_v18 = vmul.f32 0.2, %v2564_v29  ;;  %v15085_v44 = vcombine.low %v15081_v31, %v15082_v23  ;;  %v8241_v41 = vcombine.high %v11493_v7, %v11495_v36  ;;  %v11543_v23 = vld [vmem:[#allocation5 + $0x7c8] sm:$0xff] }
 0x492   : > { %v2399_v25 = vmul.f32 %v11165_v16, %v15086_v45  ;;  %vm2632_vm10 = vcmp.gt.f32.partialorder %v2568_v35, 0.0  ;;  %v2696_v6 = vmul.f32 0.2, %v2568_v35  ;;  %v15087_v61 = vcombine.low %v15065_v46, %v15064_v14  ;;  %v11576_v46 = vld [vmem:[#allocation5 + $0x50] sm:$0xff] }
 0x493   : > { %4548 = vmatpush1.bf16.msra.mxu0 %v15085_v44  ;;  %v8247_v31 = vcombine.high %v11510_v17, %v11512_v15  ;;  %v11545_v44 = vld [vmem:[#allocation5 + $0x7e8] sm:$0xff]  ;;  %v2756_v37 = vsel %vm2628_vm9, %v2564_v29, %v2692_v18  ;;  %v8249_v14 = vcombine.high %v11514_v30, %v11521_v0  ;;  %v11561_v29 = vld [vmem:[#allocation5 + $0x18] sm:$0xff]  ;;  %v2480_v45 = vmul.f32 %v15031_v59, %v2395_v3 }
 0x494   : > { %4774 = vmatpush1.bf16.msra.mxu1 %v15087_v61  ;;  %4549 = vmatprep.subr.bf16.mxu0 %v8231_v47  ;;  %v11553_v47 = vld [vmem:[#allocation5 + $0x10] sm:$0xff]  ;;  %v2760_v13 = vsel %vm2632_vm10, %v2568_v35, %v2696_v6  ;;  %v11563_v18 = vld [vmem:[#allocation5 + $0x38] sm:$0xff]  ;;  %v8257_v6 = vcombine.high %v11543_v23, %v11545_v44  ;;  %v2484_v3 = vmul.f32 %v15031_v59, %v2399_v25 }
 0x495   : > { %4775 = vmatprep.subr.bf16.mxu1 %v8233_v53  ;;  %v11555_v61 = vld [vmem:[#allocation5 + $0x30] sm:$0xff]  ;;  %4505 = vmatmul.mubr.bf16.gmra.mrb[72].mxu0 %v11355_v62  ;;  %v11566_v48 = vpack.c.bf16 %v2760_v13, %v2756_v37  ;;  %v15088_v12 = vcombine.low %v11451_v54, %v11453_v34  ;;  %v11589_v37 = vld [vmem:[#allocation5 + $0x58] sm:$0xff]  ;;  %v2565_v25 = vadd.f32 %v15041_v33, %v2480_v45 }
 0x496   : > { %4731 = vmatmul.mubr.bf16.gmra.mrb[88].mxu1 %v11355_v62  ;;  %4514 = vmatprep.mubr.bf16.mxu0 %v11364_v56  ;;  %v11578_v53 = vld [vmem:[#allocation5 + $0x70] sm:$0xff]  ;;  %v11591_v13 = vld [vmem:[#allocation5 + $0x78] sm:$0xff]  ;;  %v15091_v40 = vcombine.low %v11476_v49, %v11478_v42  ;;  %v15093_v57 = vcombine.low %v11493_v7, %v11495_v36 }
 0x497   : > { %4550 = vmatpush1.bf16.msra.mxu0 %v8230_v11  ;;  %4740 = vmatprep.mubr.bf16.mxu1 %v11364_v56  ;;  %v15089_v35 = vld [vmem:[#allocation79_spill] sm:$0xff]  ;;  %v11599_v34 = vld [vmem:[#allocation5 + $0x90] sm:$0xff]  ;;  %v2569_v11 = vadd.f32 %v15041_v33, %v2484_v3  ;;  %v2693_v3 = vmul.f32 0.2, %v2565_v25  ;;  %vm2629_vm13 = vcmp.gt.f32.partialorder %v2565_v25, 0.0 }
 0x498   : > { %4776 = vmatpush1.bf16.msra.mxu1 %v15088_v12  ;;  %v2402_v62 = vmul.f32 %v11049_v52, %v15089_v35  ;;  %4551 = vmatprep.subr.bf16.mxu0 %v8239_v8  ;;  %v15090_v12 = vld [vmem:[#allocation80_spill] sm:$0xff]  ;;  %v11607_v35 = vld [vmem:[#allocation5 + $0xb0] sm:$0xff]  ;;  %v11609_v8 = vld [vmem:[#allocation5 + $0x98] sm:$0xff] }
 0x499   : > { %4777 = vmatprep.subr.bf16.mxu1 %v8241_v41  ;;  %v2406_v1 = vmul.f32 %v11049_v52, %v15090_v12  ;;  %v11611_v41 = vld [vmem:[#allocation5 + $0xb8] sm:$0xff]  ;;  %v15094_v49 = vld [vmem:[#allocation50_spill] sm:$0xff]  ;;  %v2697_v7 = vmul.f32 0.2, %v2569_v11  ;;  %vm2633_vm14 = vcmp.gt.f32.partialorder %v2569_v11, 0.0 }
 0x49a   : > { %v2487_v54 = vmul.f32 %v15042_v20, %v2402_v62  ;;  %v15092_v56 = vld [vmem:[#allocation47_spill] sm:$0xff]  ;;  %v11640_v36 = vld [vmem:[#allocation5 + $0xf0] sm:$0xff] }
 0x49b   : > { %4552 = vmatpush1.bf16.msra.mxu0 %v15091_v40  ;;  %v2403_v5 = vmul.f32 %v11165_v16, %v15092_v56  ;;  %v2491_v4 = vmul.f32 %v15042_v20, %v2406_v1  ;;  %v2407_v40 = vmul.f32 %v11165_v16, %v15094_v49  ;;  %v11647_v1 = vld [vmem:[#allocation5 + $0xd8] sm:$0xff]  ;;  %v15095_v49 = vcombine.low %v11510_v17, %v11512_v15  ;;  %v15100_v62 = vld [vmem:[#allocation82_spill] sm:$0xff] }
 0x49c   : > { %4778 = vmatpush1.bf16.msra.mxu1 %v15093_v57  ;;  %4553 = vmatprep.subr.bf16.mxu0 %v8247_v31  ;;  %v2572_v42 = vadd.f32 %v15050_v38, %v2487_v54  ;;  %v11638_v57 = vld [vmem:[#allocation5 + $0xd0] sm:$0xff] }
 0x49d   : > { %4779 = vmatprep.subr.bf16.mxu1 %v8249_v14  ;;  %v2576_v31 = vadd.f32 %v15050_v38, %v2491_v4  ;;  %4515 = vmatmul.mubr.bf16.gmra.mrb[76].mxu0 %v11386_v51  ;;  %v11653_v4 = vld [vmem:[#allocation5 + $0xf8] sm:$0xff]  ;;  %v2488_v45 = vmul.f32 %v15031_v59, %v2403_v5  ;;  %v15096_v14 = vcombine.low %v11514_v30, %v11521_v0  ;;  %v11668_v30 = vld [vmem:[#allocation5 + $0x110] sm:$0xff]  ;;  %v15098_v5 = vld [vmem:[#allocation81_spill] sm:$0xff] }
 0x49e   : > { %4741 = vmatmul.mubr.bf16.gmra.mrb[92].mxu1 %v11386_v51  ;;  %vm2636_vm11 = vcmp.gt.f32.partialorder %v2572_v42, 0.0  ;;  %v2700_v54 = vmul.f32 0.2, %v2572_v42  ;;  %4557 = vmatprep.mubr.bf16.mxu0 %v11428_v19  ;;  %v2492_v17 = vmul.f32 %v15031_v59, %v2407_v40  ;;  %v2410_v56 = vmul.f32 %v11049_v52, %v15098_v5 }
 0x49f   : > { %4554 = vmatpush1.bf16.msra.mxu0 %v15095_v49  ;;  %vm2640_vm12 = vcmp.gt.f32.partialorder %v2576_v31, 0.0  ;;  %v2704_v12 = vmul.f32 0.2, %v2576_v31  ;;  %4783 = vmatprep.mubr.bf16.mxu1 %v11428_v19  ;;  %v15097_v49 = vcombine.high %v11523_v28, %v11525_v55  ;;  %v2573_v40 = vadd.f32 %v15041_v33, %v2488_v45 }
 0x4a0   : > { %4780 = vmatpush1.bf16.msra.mxu1 %v15096_v14  ;;  %v2764_v15 = vsel %vm2636_vm11, %v2572_v42, %v2700_v54  ;;  %v2524_v14 = vmul.f32 %v15031_v59, %v11184_v58  ;;  %v11674_v42 = vld [vmem:[#allocation5 + $0x130] sm:$0xff]  ;;  %v11676_v54 = vld [vmem:[#allocation5 + $0x118] sm:$0xff]  ;;  %v2757_v58 = vsel %vm2629_vm13, %v2565_v25, %v2693_v3  ;;  %v2414_v19 = vmul.f32 %v11049_v52, %v15100_v62 }
 0x4a1   : > { %4555 = vmatprep.subr.bf16.mxu0 %v15097_v49  ;;  %4781 = vmatprep.subr.bf16.mxu1 %v8257_v6  ;;  %v2768_v0 = vsel %vm2640_vm12, %v2576_v31, %v2704_v12  ;;  %v11678_v6 = vld [vmem:[#allocation5 + $0x138] sm:$0xff]  ;;  %v15099_v12 = vcombine.low %v11523_v28, %v11525_v55  ;;  %v2761_v31 = vsel %vm2633_vm14, %v2569_v11, %v2697_v7  ;;  %v11701_v25 = vld [vmem:[#allocation5 + $0x150] sm:$0xff]  ;;  %vm2637_vm15 = vcmp.gt.f32.partialorder %v2573_v40, 0.0 }
 0x4a2   : > { %v11680_v49 = vpack.c.bf16 %v2768_v0, %v2764_v15  ;;  %v15101_v15 = vcombine.low %v11543_v23, %v11545_v44  ;;  %v15102_v5 = vcombine.high %v11553_v47, %v11555_v61  ;;  %v2577_v55 = vadd.f32 %v15041_v33, %v2492_v17  ;;  %v11703_v11 = vld [vmem:[#allocation5 + $0x170] sm:$0xff]  ;;  %v15110_v44 = vld [vmem:[#allocation85_spill] sm:$0xff] }
 0x4a3   : > { %4556 = vmatpush1.bf16.msra.mxu0 %v15099_v12  ;;  %v2495_v45 = vmul.f32 %v15042_v20, %v2410_v56  ;;  %v15103_v62 = vcombine.high %v11561_v29, %v11563_v18  ;;  %v2499_v3 = vmul.f32 %v15042_v20, %v2414_v19  ;;  %v11717_v17 = vadd.f32 %v15041_v33, %v2524_v14  ;;  %v11753_v0 = vld [vmem:[#allocation5 + $0x190] sm:$0xff] }
 0x4a4   : > { %4782 = vmatpush1.bf16.msra.mxu1 %v15101_v15  ;;  %4864 = vmatprep.subr.bf16.mxu0 %v15102_v5  ;;  %v11720_v56 = vpack.c.bf16 %v2761_v31, %v2757_v58  ;;  %v15104_v15 = vcombine.low %v11553_v47, %v11555_v61  ;;  %v2701_v19 = vmul.f32 0.2, %v2573_v40  ;;  %v11731_v5 = vld [vmem:[#allocation5 + $0x158] sm:$0xff]  ;;  %v15107_v14 = vcombine.high %v11576_v46, %v11578_v53 }
 0x4a5   : > { %5090 = vmatprep.subr.bf16.mxu1 %v15103_v62  ;;  %v2580_v12 = vadd.f32 %v15050_v38, %v2495_v45  ;;  %v11733_v58 = vld [vmem:[#allocation5 + $0x178] sm:$0xff]  ;;  %v2584_v31 = vadd.f32 %v15050_v38, %v2499_v3  ;;  %v2705_v45 = vmul.f32 0.2, %v2577_v55  ;;  %v15105_v62 = vld [vmem:[#allocation26_spill] sm:$0xff]  ;;  %vm2641_vm1 = vcmp.gt.f32.partialorder %v2577_v55, 0.0 }
 0x4a6   : > { %4558 = vmatmul.mubr.bf16.vlgmr.msra.gmra.mrb[48].mxu0 %v11442_v9  ;;  %v2411_v47 = vmul.f32 %v11165_v16, %v15105_v62  ;;  %v15108_v23 = vcombine.high %v11589_v37, %v11591_v13  ;;  %v2418_v3 = vmul.f32 %v11049_v52, %v15110_v44  ;;  %v15111_v28 = vcombine.low %v11576_v46, %v11578_v53 }
 0x4a7   : > { %4784 = vmatmul.mubr.bf16.vlgmr.msra.gmra.mrb[64].mxu1 %v11442_v9  ;;  %4865 = vmatpush1.bf16.msra.mxu0 %v15104_v15  ;;  %vm2644_vm0 = vcmp.gt.f32.partialorder %v2580_v12, 0.0  ;;  %v2708_v61 = vmul.f32 0.2, %v2580_v12  ;;  %v15106_v15 = vcombine.low %v11561_v29, %v11563_v18  ;;  %vm2648_vm2 = vcmp.gt.f32.partialorder %v2584_v31, 0.0  ;;  %v11755_v29 = vld [vmem:[#allocation5 + $0x1b0] sm:$0xff]  ;;  %v15109_v18 = vld [vmem:[#allocation28_spill] sm:$0xff] }
 0x4a8   : > { %4567 = vmatprep.mubr.bf16.mxu0 %v11468_v21  ;;  %4793 = vmatprep.mubr.bf16.mxu1 %v11468_v21  ;;  %v2712_v7 = vmul.f32 0.2, %v2584_v31  ;;  %v8053_v62 = vcombine.high %v11731_v5, %v11733_v58  ;;  %v15112_v9 = vld [vmem:[#allocation86_spill] sm:$0xff]  ;;  %v2496_v44 = vmul.f32 %v15031_v59, %v2411_v47  ;;  %v2503_v46 = vmul.f32 %v15042_v20, %v2418_v3 }
 0x4a9   : > { %5091 = vmatpush1.bf16.msra.mxu1 %v15106_v15  ;;  %4866 = vmatprep.subr.bf16.mxu0 %v15107_v14  ;;  %v2415_v14 = vmul.f32 %v11165_v16, %v15109_v18  ;;  %v2772_v15 = vsel %vm2644_vm0, %v2580_v12, %v2708_v61  ;;  %v2422_v51 = vmul.f32 %v11049_v52, %v15112_v9  ;;  %vm2673_vm3 = vcmp.gt.f32.partialorder %v11717_v17, 0.0 }
 0x4aa   : > { %5092 = vmatprep.subr.bf16.mxu1 %v15108_v23  ;;  %v2765_v23 = vsel %vm2637_vm15, %v2573_v40, %v2701_v19  ;;  %v2776_v21 = vsel %vm2648_vm2, %v2584_v31, %v2712_v7  ;;  %v15113_v18 = vcombine.high %v11599_v34, %v11607_v35  ;;  %v2769_v12 = vsel %vm2641_vm1, %v2577_v55, %v2705_v45  ;;  %v15115_v7 = vld [vmem:[#allocation36_spill] sm:$0xff] }
 0x4ab   : > { %4867 = vmatpush1.bf16.msra.mxu0 %v15111_v28  ;;  %v11774_v61 = vpack.c.bf16 %v2776_v21, %v2772_v15  ;;  %v15114_v53 = vcombine.low %v11589_v37, %v11591_v13  ;;  %v8058_v40 = vcombine.low %v11753_v0, %v11755_v29  ;;  %v8059_v9 = vcombine.high %v11753_v0, %v11755_v29 }
 0x4ac   : > { %4868 = vmatprep.subr.bf16.mxu0 %v15113_v18  ;;  %v2507_v28 = vmul.f32 %v15042_v20, %v2422_v51  ;;  %v2427_v55 = vmul.f32 %v11165_v16, %v15115_v7  ;;  %v15116_v21 = vcombine.high %v11609_v8, %v11611_v41  ;;  %v2500_v37 = vmul.f32 %v15031_v59, %v2415_v14  ;;  %v15123_v7 = vld [vmem:[#allocation32_spill] sm:$0xff] }
 0x4ad   : > { %5093 = vmatpush1.bf16.msra.mxu1 %v15114_v53  ;;  %v2588_v13 = vadd.f32 %v15050_v38, %v2503_v46  ;;  %v2516_v19 = vmul.f32 %v15031_v59, %v11176_v32  ;;  %v15117_v51 = vcombine.low %v11599_v34, %v11607_v35  ;;  %v11800_v31 = vpack.c.bf16 %v2769_v12, %v2765_v23  ;;  %v15120_v23 = vld [vmem:[#allocation30_spill] sm:$0xff] }
 0x4ae   : > { %4568 = vmatmul.mubr.bf16.gmra.mrb[52].mxu0 %v11516_v50  ;;  %5094 = vmatprep.subr.bf16.mxu1 %v15116_v21  ;;  %v2592_v45 = vadd.f32 %v15050_v38, %v2507_v28  ;;  %v2512_v47 = vmul.f32 %v15031_v59, %v2427_v55  ;;  %v2737_v3 = vmul.f32 0.2, %v11717_v17  ;;  %v2581_v32 = vadd.f32 %v15041_v33, %v2496_v44 }
 0x4af   : > { %4794 = vmatmul.mubr.bf16.gmra.mrb[68].mxu1 %v11516_v50  ;;  %4869 = vmatpush1.bf16.msra.mxu0 %v15117_v51  ;;  %vm2652_vm4 = vcmp.gt.f32.partialorder %v2588_v13, 0.0  ;;  %v2716_v14 = vmul.f32 0.2, %v2588_v13  ;;  %v2601_v15 = vadd.f32 %v15041_v33, %v2516_v19  ;;  %v15118_v34 = vcombine.low %v11609_v8, %v11611_v41 }
 0x4b0   : > { %4577 = vmatprep.mubr.bf16.mxu0 %v11720_v56  ;;  %4803 = vmatprep.mubr.bf16.mxu1 %v11720_v56  ;;  %v15119_v35 = vcombine.high %v11638_v57, %v11640_v36  ;;  %v2419_v18 = vmul.f32 %v11165_v16, %v15120_v23  ;;  %vm2656_vm5 = vcmp.gt.f32.partialorder %v2592_v45, 0.0  ;;  %v2720_v12 = vmul.f32 0.2, %v2592_v45  ;;  %v15127_v23 = vld [vmem:[#allocation105_spill] sm:$0xff] }
 0x4b1   : > { %5095 = vmatpush1.bf16.msra.mxu1 %v15118_v34  ;;  %v2597_v46 = vadd.f32 %v15041_v33, %v2512_v47  ;;  %v15121_v44 = vcombine.high %v11647_v1, %v11653_v4  ;;  %v2585_v53 = vadd.f32 %v15041_v33, %v2500_v37  ;;  %v2780_v28 = vsel %vm2652_vm4, %v2588_v13, %v2716_v14  ;;  %v11830_v47 = vld [vmem:[#allocation5 + $0x198] sm:$0xff] }
 0x4b2   : > { %4870 = vmatprep.subr.bf16.mxu0 %v15119_v35  ;;  %vm2665_vm6 = vcmp.gt.f32.partialorder %v2601_v15, 0.0  ;;  %v2729_v8 = vmul.f32 0.2, %v2601_v15  ;;  %v15122_v41 = vcombine.low %v11638_v57, %v11640_v36  ;;  %v2423_v55 = vmul.f32 %v11165_v16, %v15123_v7  ;;  %v11832_v37 = vld [vmem:[#allocation5 + $0x1b8] sm:$0xff]  ;;  %v15125_v57 = vld [vmem:[#allocation49_spill] sm:$0xff] }
 0x4b3   : > { %5096 = vmatprep.subr.bf16.mxu1 %v15121_v44  ;;  %v2784_v21 = vsel %vm2656_vm5, %v2592_v45, %v2720_v12  ;;  %vm2661_vm7 = vcmp.gt.f32.partialorder %v2597_v46, 0.0  ;;  %v2725_v19 = vmul.f32 0.2, %v2597_v46  ;;  %v15124_v51 = vcombine.high %v11668_v30, %v11674_v42 }
 0x4b4   : > { %4871 = vmatpush1.bf16.msra.mxu0 %v15122_v41  ;;  %v2709_v13 = vmul.f32 0.2, %v2581_v32  ;;  %v11834_v14 = vpack.c.bf16 %v2784_v21, %v2780_v28  ;;  %v2793_v34 = vsel %vm2665_vm6, %v2601_v15, %v2729_v8  ;;  %v2426_v36 = vmul.f32 %v11049_v52, %v15125_v57 }
 0x4b5   : > { %4872 = vmatprep.subr.bf16.mxu0 %v15124_v51  ;;  %v15126_v16 = vcombine.low %v11647_v1, %v11653_v4  ;;  %vm2645_vm8 = vcmp.gt.f32.partialorder %v2581_v32, 0.0  ;;  %v2504_v45 = vmul.f32 %v15031_v59, %v2419_v18  ;;  %v2789_v35 = vsel %vm2661_vm7, %v2597_v46, %v2725_v19  ;;  %v15129_v4 = vld [vmem:[#allocation58_spill] sm:$0xff] }
 0x4b6   : > { %v2515_v12 = vmul.f32 %v15042_v20, %v15127_v23  ;;  %4578 = vmatmul.mubr.bf16.gmra.mrb[56].mxu0 %v11566_v48  ;;  %v15128_v44 = vcombine.high %v11676_v54, %v11678_v6  ;;  %v11848_v15 = vpack.c.bf16 %v2793_v34, %v2789_v35  ;;  %v2511_v52 = vmul.f32 %v15042_v20, %v2426_v36  ;;  %v2864_v19 = vld [vmem:[#allocation5 + $0x1f0] sm:$0xff]  ;;  %v2861_v36 = vld [vmem:[#allocation5 + $0x1d8] sm:$0xff] }
 0x4b7   : > { %5097 = vmatpush1.bf16.msra.mxu1 %v15126_v16  ;;  %v2520_v1 = vmul.f32 %v15031_v59, %v11180_v26  ;;  %v2736_v28 = vmul.f32 0.2, %v15129_v4  ;;  %v15130_v18 = vcombine.low %v11668_v30, %v11674_v42  ;;  %v8061_v46 = vcombine.high %v11830_v47, %v11832_v37  ;;  %4587 = vmatprep.mubr.bf16.mxu0 %v11800_v31  ;;  %v2865_v16 = vld [vmem:[#allocation5 + $0x1f8] sm:$0xff] }
 0x4b8   : > { %5098 = vmatprep.subr.bf16.mxu1 %v15128_v44  ;;  %4804 = vmatmul.mubr.bf16.gmra.mrb[72].mxu1 %v11566_v48  ;;  %v2713_v8 = vmul.f32 0.2, %v2585_v53  ;;  %v2508_v41 = vmul.f32 %v15031_v59, %v2423_v55  ;;  %v2600_v7 = vadd.f32 %v15050_v38, %v2515_v12  ;;  %vm2649_vm9 = vcmp.gt.f32.partialorder %v2585_v53, 0.0  ;;  %v2860_v55 = vld [vmem:[#allocation5 + $0x1d0] sm:$0xff] }
 0x4b9   : > { %4873 = vmatpush1.bf16.msra.mxu0 %v15130_v18  ;;  %4813 = vmatprep.mubr.bf16.mxu1 %v11800_v31  ;;  %v2773_v26 = vsel %vm2645_vm8, %v2581_v32, %v2709_v13  ;;  %v2596_v21 = vadd.f32 %v15050_v38, %v2511_v52  ;;  %v2605_v30 = vadd.f32 %v15041_v33, %v2520_v1  ;;  %vm2672_vm13 = vcmp.gt.f32.partialorder %v15129_v4, 0.0  ;;  %v2872_v12 = vld [vmem:[#allocation5 + $0x230] sm:$0xff]  ;;  %v2869_v1 = vld [vmem:[#allocation5 + $0x218] sm:$0xff] }
 0x4ba   : > { %v15131_v42 = vcombine.low %v11676_v54, %v11678_v6  ;;  %v15132_v59 = vcombine.high %v11701_v25, %v11703_v11  ;;  %v2589_v51 = vadd.f32 %v15041_v33, %v2504_v45  ;;  %vm2664_vm10 = vcmp.gt.f32.partialorder %v2600_v7, 0.0 }
 0x4bb   : > { %v2728_v34 = vmul.f32 0.2, %v2600_v7  ;;  %v2801_v32 = vsel %vm2673_vm3, %v11717_v17, %v2737_v3  ;;  %vm2660_vm11 = vcmp.gt.f32.partialorder %v2596_v21, 0.0  ;;  %v2724_v54 = vmul.f32 0.2, %v2596_v21  ;;  %v15134_v17 = vld [vmem:[#allocation106_spill] sm:$0xff] }
 0x4bc   : > { %5099 = vmatpush1.bf16.msra.mxu1 %v15131_v42  ;;  %4874 = vmatprep.subr.bf16.mxu0 %v15132_v59  ;;  %vm2669_vm12 = vcmp.gt.f32.partialorder %v2605_v30, 0.0  ;;  %v2733_v6 = vmul.f32 0.2, %v2605_v30  ;;  %v15133_v13 = vcombine.low %v11701_v25, %v11703_v11  ;;  %v2777_v57 = vsel %vm2649_vm9, %v2585_v53, %v2713_v8  ;;  %v2868_v53 = vld [vmem:[#allocation5 + $0x210] sm:$0xff]  ;;  %v2881_v42 = vld [vmem:[#allocation5 + $0x278] sm:$0xff] }
 0x4bd   : > { %5100 = vmatprep.subr.bf16.mxu1 %v8053_v62  ;;  %v2593_v45 = vadd.f32 %v15041_v33, %v2508_v41  ;;  %v2792_v35 = vsel %vm2664_vm10, %v2600_v7, %v2728_v34  ;;  %v2519_v3 = vmul.f32 %v15042_v20, %v15134_v17  ;;  %v8060_v62 = vcombine.low %v11830_v47, %v11832_v37  ;;  %v2880_v7 = vld [vmem:[#allocation5 + $0x270] sm:$0xff] }
 0x4be   : > { %4875 = vmatpush1.bf16.msra.mxu0 %v15133_v13  ;;  %v2788_v23 = vsel %vm2660_vm11, %v2596_v21, %v2724_v54  ;;  %v2797_v25 = vsel %vm2669_vm12, %v2605_v30, %v2733_v6  ;;  %v15135_v11 = vcombine.low %v11731_v5, %v11733_v58  ;;  %v8067_v33 = vcombine.high %v2860_v55, %v2864_v19  ;;  %v2873_v5 = vld [vmem:[#allocation5 + $0x238] sm:$0xff]  ;;  %v2888_v34 = vld [vmem:[#allocation5 + $0x2b0] sm:$0xff] }
 0x4bf   : > { %4876 = vmatprep.subr.bf16.mxu0 %v8059_v9  ;;  %v11896_v44 = vpack.c.bf16 %v2792_v35, %v2788_v23  ;;  %v11898_v20 = vpack.c.bf16 %v2801_v32, %v2797_v25  ;;  %v2604_v9 = vadd.f32 %v15050_v38, %v2519_v3  ;;  %4588 = vmatmul.mubr.bf16.gmra.mrb[60].mxu0 %v11680_v49  ;;  %v2717_v18 = vmul.f32 0.2, %v2589_v51  ;;  %v2877_v30 = vld [vmem:[#allocation5 + $0x258] sm:$0xff]  ;;  %v2896_v35 = vld [vmem:[#allocation5 + $0x2f0] sm:$0xff] }
 0x4c0   : > { %5101 = vmatpush1.bf16.msra.mxu1 %v15135_v11  ;;  %v11902_v47 = vpack.c.bf16 %v2777_v57, %v2773_v26  ;;  %v8066_v37 = vcombine.low %v2860_v55, %v2864_v19  ;;  %v8069_v52 = vcombine.high %v2861_v36, %v2865_v16  ;;  %v2721_v58 = vmul.f32 0.2, %v2593_v45  ;;  %v2884_v19 = vld [vmem:[#allocation5 + $0x290] sm:$0xff]  ;;  %v2889_v13 = vld [vmem:[#allocation5 + $0x2b8] sm:$0xff] }
 0x4c1   : > { %5102 = vmatprep.subr.bf16.mxu1 %v8061_v46  ;;  %4814 = vmatmul.mubr.bf16.gmra.mrb[76].mxu1 %v11680_v49  ;;  %vm2668_vm14 = vcmp.gt.f32.partialorder %v2604_v9, 0.0  ;;  %v2732_v8 = vmul.f32 0.2, %v2604_v9  ;;  %v2800_v38 = vsel %vm2672_vm13, %v15129_v4, %v2736_v28  ;;  %v8075_v46 = vcombine.high %v2868_v53, %v2872_v12  ;;  %v2893_v3 = vld [vmem:[#allocation5 + $0x2d8] sm:$0xff]  ;;  %v2900_v11 = vld [vmem:[#allocation5 + $0x310] sm:$0xff] }
 0x4c2   : > { %4877 = vmatpush1.bf16.msra.mxu0 %v8058_v40  ;;  %4597 = vmatprep.mubr.bf16.mxu0 %v11902_v47  ;;  %vm2653_vm15 = vcmp.gt.f32.partialorder %v2589_v51, 0.0  ;;  %vm2657_vm0 = vcmp.gt.f32.partialorder %v2593_v45, 0.0  ;;  %v8068_v41 = vcombine.low %v2861_v36, %v2865_v16  ;;  %v8077_v29 = vcombine.high %v2869_v1, %v2873_v5  ;;  %v2876_v40 = vld [vmem:[#allocation5 + $0x250] sm:$0xff] }
 0x4c3   : > { %4823 = vmatprep.mubr.bf16.mxu1 %v11902_v47  ;;  %4878 = vmatprep.subr.bf16.mxu0 %v8067_v33  ;;  %v2796_v0 = vsel %vm2668_vm14, %v2604_v9, %v2732_v8  ;;  %v8074_v21 = vcombine.low %v2868_v53, %v2872_v12  ;;  %v2781_v4 = vsel %vm2653_vm15, %v2589_v51, %v2717_v18  ;;  %v2885_v51 = vld [vmem:[#allocation5 + $0x298] sm:$0xff]  ;;  %v2904_v33 = vld [vmem:[#allocation5 + $0x330] sm:$0xff] }
 0x4c4   : > { %5103 = vmatpush1.bf16.msra.mxu1 %v8060_v62  ;;  %v11913_v26 = vpack.c.bf16 %v2800_v38, %v2796_v0  ;;  %v2785_v28 = vsel %vm2657_vm0, %v2593_v45, %v2721_v58  ;;  %v8076_v59 = vcombine.low %v2869_v1, %v2873_v5  ;;  %v8083_v55 = vcombine.high %v2876_v40, %v2880_v7  ;;  %v2892_v45 = vld [vmem:[#allocation5 + $0x2d0] sm:$0xff]  ;;  %v2897_v62 = vld [vmem:[#allocation5 + $0x2f8] sm:$0xff] }
 0x4c5   : > { %5104 = vmatprep.subr.bf16.mxu1 %v8069_v52  ;;  %v11916_v32 = vpack.c.bf16 %v2785_v28, %v2781_v4  ;;  %v8085_v54 = vcombine.high %v2877_v30, %v2881_v42  ;;  %v8082_v6 = vcombine.low %v2876_v40, %v2880_v7  ;;  %v8091_v57 = vcombine.high %v2884_v19, %v2888_v34  ;;  %v2901_v9 = vld [vmem:[#allocation5 + $0x318] sm:$0xff]  ;;  %v2908_v5 = vld [vmem:[#allocation5 + $0x350] sm:$0xff] }
 0x4c6   : > { %4879 = vmatpush1.bf16.msra.mxu0 %v8066_v37  ;;  %v8084_v36 = vcombine.low %v2877_v30, %v2881_v42  ;;  %v8093_v16 = vcombine.high %v2885_v51, %v2889_v13  ;;  %v8090_v17 = vcombine.low %v2884_v19, %v2888_v34  ;;  %v8092_v23 = vcombine.low %v2885_v51, %v2889_v13  ;;  %v2905_v37 = vld [vmem:[#allocation5 + $0x338] sm:$0xff]  ;;  %v2912_v58 = vld [vmem:[#allocation5 + $0x370] sm:$0xff] }
 0x4c7   : > { %4880 = vmatprep.subr.bf16.mxu0 %v8075_v46  ;;  %4598 = vmatmul.mubr.bf16.gmra.mrb[64].mxu0 %v11774_v61  ;;  %v8099_v25 = vcombine.high %v2892_v45, %v2896_v35  ;;  %v8101_v53 = vcombine.high %v2893_v3, %v2897_v62  ;;  %v8098_v12 = vcombine.low %v2892_v45, %v2896_v35  ;;  %v2909_v38 = vld [vmem:[#allocation5 + $0x358] sm:$0xff]  ;;  %v2920_v40 = vld [vmem:[#allocation5 + $0x3b0] sm:$0xff] }
 0x4c8   : > { %5105 = vmatpush1.bf16.msra.mxu1 %v8068_v41  ;;  %4607 = vmatprep.mubr.bf16.mxu0 %v11916_v32  ;;  %v8107_v52 = vcombine.high %v2900_v11, %v2904_v33  ;;  %v8100_v1 = vcombine.low %v2893_v3, %v2897_v62  ;;  %v8109_v18 = vcombine.high %v2901_v9, %v2905_v37  ;;  %v2913_v46 = vld [vmem:[#allocation5 + $0x378] sm:$0xff]  ;;  %v2928_v19 = vld [vmem:[#allocation5 + $0x3f0] sm:$0xff] }
 0x4c9   : > { %5106 = vmatprep.subr.bf16.mxu1 %v8077_v29  ;;  %4824 = vmatmul.mubr.bf16.gmra.mrb[80].mxu1 %v11774_v61  ;;  %v8106_v8 = vcombine.low %v2900_v11, %v2904_v33  ;;  %v8108_v41 = vcombine.low %v2901_v9, %v2905_v37  ;;  %v8115_v0 = vcombine.high %v2908_v5, %v2912_v58  ;;  %v2916_v29 = vld [vmem:[#allocation5 + $0x390] sm:$0xff]  ;;  %v2917_v4 = vld [vmem:[#allocation5 + $0x398] sm:$0xff] }
 0x4ca   : > { %4881 = vmatpush1.bf16.msra.mxu0 %v8074_v21  ;;  %4833 = vmatprep.mubr.bf16.mxu1 %v11916_v32  ;;  %v8117_v7 = vcombine.high %v2909_v38, %v2913_v46  ;;  %v8114_v21 = vcombine.low %v2908_v5, %v2912_v58  ;;  %v2921_v28 = vld [vmem:[#allocation5 + $0x3b8] sm:$0xff]  ;;  %v8123_v30 = vcombine.high %v2916_v29, %v2920_v40 }
 0x4cb   : > { %4882 = vmatprep.subr.bf16.mxu0 %v8083_v55  ;;  %v8116_v42 = vcombine.low %v2909_v38, %v2913_v46  ;;  %v2924_v55 = vld [vmem:[#allocation5 + $0x3d0] sm:$0xff]  ;;  %v8122_v34 = vcombine.low %v2916_v29, %v2920_v40  ;;  %v8124_v51 = vcombine.low %v2917_v4, %v2921_v28  ;;  %v2933_v35 = vld [vmem:[#allocation5 + $0x418] sm:$0xff] }
 0x4cc   : > { %5107 = vmatpush1.bf16.msra.mxu1 %v8076_v59  ;;  %v8125_v59 = vcombine.high %v2917_v4, %v2921_v28  ;;  %v8131_v13 = vcombine.high %v2924_v55, %v2928_v19  ;;  %v8130_v45 = vcombine.low %v2924_v55, %v2928_v19  ;;  %v2949_v5 = vld [vmem:[#allocation5 + $0x498] sm:$0xff]  ;;  %v2956_v46 = vld [vmem:[#allocation5 + $0x4d0] sm:$0xff] }
 0x4cd   : > { %5108 = vmatprep.subr.bf16.mxu1 %v8085_v54  ;;  %v2925_v54 = vld [vmem:[#allocation5 + $0x3d8] sm:$0xff]  ;;  %v2964_v28 = vld [vmem:[#allocation5 + $0x510] sm:$0xff] }
 0x4ce   : > { %4883 = vmatpush1.bf16.msra.mxu0 %v8082_v6  ;;  %v2929_v6 = vld [vmem:[#allocation5 + $0x3f8] sm:$0xff] }
 0x4cf   : > { %4884 = vmatprep.subr.bf16.mxu0 %v8091_v57  ;;  %4608 = vmatmul.mubr.bf16.gmra.mrb[68].mxu0 %v11834_v14  ;;  %v2932_v57 = vld [vmem:[#allocation5 + $0x410] sm:$0xff]  ;;  %v8132_v62 = vcombine.low %v2925_v54, %v2929_v6  ;;  %v2953_v58 = vld [vmem:[#allocation5 + $0x4b8] sm:$0xff] }
 0x4d0   : > { %5109 = vmatpush1.bf16.msra.mxu1 %v8084_v36  ;;  %4617 = vmatprep.mubr.bf16.mxu0 %v11848_v15  ;;  %v2936_v36 = vld [vmem:[#allocation5 + $0x430] sm:$0xff]  ;;  %v2957_v40 = vld [vmem:[#allocation5 + $0x4d8] sm:$0xff]  ;;  %v8156_v4 = vcombine.low %v2949_v5, %v2953_v58 }
 0x4d1   : > { %5110 = vmatprep.subr.bf16.mxu1 %v8093_v16  ;;  %4834 = vmatmul.mubr.bf16.gmra.mrb[84].mxu1 %v11834_v14  ;;  %v8133_v16 = vcombine.high %v2925_v54, %v2929_v6  ;;  %v8139_v3 = vcombine.high %v2932_v57, %v2936_v36  ;;  %v8138_v33 = vcombine.low %v2932_v57, %v2936_v36  ;;  %v2976_v54 = vld [vmem:[#allocation5 + $0x570] sm:$0xff]  ;;  %v2977_v57 = vld [vmem:[#allocation5 + $0x578] sm:$0xff] }
 0x4d2   : > { %4885 = vmatpush1.bf16.msra.mxu0 %v8090_v17  ;;  %4843 = vmatprep.mubr.bf16.mxu1 %v11848_v15  ;;  %v2937_v17 = vld [vmem:[#allocation5 + $0x438] sm:$0xff] }
 0x4d3   : > { %4886 = vmatprep.subr.bf16.mxu0 %v8099_v25  ;;  %v2944_v25 = vld [vmem:[#allocation5 + $0x470] sm:$0xff]  ;;  %v8141_v11 = vcombine.high %v2933_v35, %v2937_v17  ;;  %v8140_v37 = vcombine.low %v2933_v35, %v2937_v17  ;;  %v2981_v17 = vld [vmem:[#allocation5 + $0x598] sm:$0xff] }
 0x4d4   : > { %5111 = vmatpush1.bf16.msra.mxu1 %v8092_v23  ;;  %v2940_v23 = vld [vmem:[#allocation5 + $0x450] sm:$0xff] }
 0x4d5   : > { %5112 = vmatprep.subr.bf16.mxu1 %v8101_v53  ;;  %v2941_v53 = vld [vmem:[#allocation5 + $0x458] sm:$0xff]  ;;  %v8147_v9 = vcombine.high %v2940_v23, %v2944_v25 }
 0x4d6   : > { %4887 = vmatpush1.bf16.msra.mxu0 %v8098_v12  ;;  %v2945_v12 = vld [vmem:[#allocation5 + $0x478] sm:$0xff] }
 0x4d7   : > { %4888 = vmatprep.subr.bf16.mxu0 %v8107_v52  ;;  %4618 = vmatmul.mubr.bf16.gmra.mrb[72].mxu0 %v11896_v44  ;;  %v2948_v52 = vld [vmem:[#allocation5 + $0x490] sm:$0xff]  ;;  %v8148_v38 = vcombine.low %v2941_v53, %v2945_v12 }
 0x4d8   : > { %5113 = vmatpush1.bf16.msra.mxu1 %v8100_v1  ;;  %4627 = vmatprep.mubr.bf16.mxu0 %v11898_v20  ;;  %v2952_v1 = vld [vmem:[#allocation5 + $0x4b0] sm:$0xff] }
 0x4d9   : > { %5114 = vmatprep.subr.bf16.mxu1 %v8109_v18  ;;  %4844 = vmatmul.mubr.bf16.gmra.mrb[88].mxu1 %v11896_v44  ;;  %v8146_v18 = vcombine.low %v2940_v23, %v2944_v25  ;;  %v8154_v29 = vcombine.low %v2948_v52, %v2952_v1  ;;  %v2988_v25 = vld [vmem:[#allocation5 + $0x5d0] sm:$0xff] }
 0x4da   : > { %4889 = vmatpush1.bf16.msra.mxu0 %v8106_v8  ;;  %4853 = vmatprep.mubr.bf16.mxu1 %v11898_v20  ;;  %v8155_v8 = vcombine.high %v2948_v52, %v2952_v1  ;;  %v2996_v1 = vld [vmem:[#allocation5 + $0x610] sm:$0xff] }
 0x4db   : > { %4890 = vmatprep.subr.bf16.mxu0 %v8115_v0  ;;  %v8157_v0 = vcombine.high %v2949_v5, %v2953_v58  ;;  %v3001_v5 = vld [vmem:[#allocation5 + $0x638] sm:$0xff] }
 0x4dc   : > { %5115 = vmatpush1.bf16.msra.mxu1 %v8108_v41  ;;  %v2960_v41 = vld [vmem:[#allocation5 + $0x4f0] sm:$0xff] }
 0x4dd   : > { %5116 = vmatprep.subr.bf16.mxu1 %v8117_v7  ;;  %v2961_v7 = vld [vmem:[#allocation5 + $0x4f8] sm:$0xff] }
 0x4de   : > { %4891 = vmatpush1.bf16.msra.mxu0 %v8114_v21  ;;  %v8163_v21 = vcombine.high %v2956_v46, %v2960_v41  ;;  %v8164_v19 = vcombine.low %v2957_v40, %v2961_v7 }
 0x4df   : > { %4892 = vmatprep.subr.bf16.mxu0 %v8123_v30  ;;  %4628 = vmatmul.mubr.bf16.gmra.mrb[76].mxu0 %v11913_v26  ;;  %v8162_v30 = vcombine.low %v2956_v46, %v2960_v41  ;;  %v3008_v46 = vld [vmem:[#allocation5 + $0x670] sm:$0xff] }
 0x4e0   : > { %5117 = vmatpush1.bf16.msra.mxu1 %v8116_v42  ;;  %4896 = vmatprep.mubr.bf16.mxu0 %v11159_v63  ;;  %v2965_v42 = vld [vmem:[#allocation5 + $0x518] sm:$0xff] }
 0x4e1   : > { %5118 = vmatprep.subr.bf16.mxu1 %v8125_v59  ;;  %4854 = vmatmul.mubr.bf16.gmra.mrb[92].mxu1 %v11913_v26  ;;  %v2969_v59 = vld [vmem:[#allocation5 + $0x538] sm:$0xff] }
 0x4e2   : > { %4893 = vmatpush1.bf16.msra.mxu0 %v8122_v34  ;;  %5122 = vmatprep.mubr.bf16.mxu1 %v11159_v63  ;;  %v8149_v63 = vcombine.high %v2941_v53, %v2945_v12  ;;  %v2972_v34 = vld [vmem:[#allocation5 + $0x550] sm:$0xff]  ;;  %v8173_v6 = vcombine.high %v2965_v42, %v2969_v59  ;;  %v2989_v12 = vld [vmem:[#allocation5 + $0x5d8] sm:$0xff] }
 0x4e3   : > { %4894 = vmatprep.subr.bf16.mxu0 %v8131_v13  ;;  %v2973_v13 = vld [vmem:[#allocation5 + $0x558] sm:$0xff]  ;;  %v8179_v36 = vcombine.high %v2972_v34, %v2976_v54  ;;  %v8178_v35 = vcombine.low %v2972_v34, %v2976_v54  ;;  %v3024_v34 = vld [vmem:[#allocation5 + $0x6f0] sm:$0xff] }
 0x4e4   : > { %5119 = vmatpush1.bf16.msra.mxu1 %v8124_v51  ;;  %v8180_v23 = vcombine.low %v2973_v13, %v2977_v57 }
 0x4e5   : > { %5120 = vmatprep.subr.bf16.mxu1 %v8133_v16  ;;  %v8172_v16 = vcombine.low %v2965_v42, %v2969_v59  ;;  %v3017_v42 = vld [vmem:[#allocation5 + $0x6b8] sm:$0xff] }
 0x4e6   : > { %4895 = vmatpush1.bf16.msra.mxu0 %v8130_v45  ;;  %v2980_v45 = vld [vmem:[#allocation5 + $0x590] sm:$0xff] }
 0x4e7   : > { %4977 = vmatprep.subr.bf16.mxu0 %v8139_v3  ;;  %v2985_v3 = vld [vmem:[#allocation5 + $0x5b8] sm:$0xff] }
 0x4e8   : > { %5121 = vmatpush1.bf16.msra.mxu1 %v8132_v62  ;;  %v8188_v52 = vcombine.low %v2981_v17, %v2985_v3 }
 0x4e9   : > { %4897 = vmatmul.mubr.bf16.vlgmr.msra.gmra.mrb[80].mxu0 %v11062_v22  ;;  %5203 = vmatprep.subr.bf16.mxu1 %v8141_v11  ;;  %v2992_v11 = vld [vmem:[#allocation5 + $0x5f0] sm:$0xff] }
 0x4ea   : > { %4978 = vmatpush1.bf16.msra.mxu0 %v8138_v33  ;;  %4906 = vmatprep.mubr.bf16.mxu0 %v11161_v10  ;;  %v8189_v33 = vcombine.high %v2981_v17, %v2985_v3  ;;  %v3029_v3 = vld [vmem:[#allocation5 + $0x718] sm:$0xff] }
 0x4eb   : > { %5123 = vmatmul.mubr.bf16.vlgmr.msra.gmra.mrb[96].mxu1 %v11062_v22  ;;  %4979 = vmatprep.subr.bf16.mxu0 %v8147_v9  ;;  %v2968_v22 = vld [vmem:[#allocation5 + $0x530] sm:$0xff]  ;;  %v2993_v9 = vld [vmem:[#allocation5 + $0x5f8] sm:$0xff] }
 0x4ec   : > { %5132 = vmatprep.mubr.bf16.mxu1 %v11161_v10  ;;  %5204 = vmatpush1.bf16.msra.mxu1 %v8140_v37  ;;  %v8165_v10 = vcombine.high %v2957_v40, %v2961_v7  ;;  %v8171_v55 = vcombine.high %v2964_v28, %v2968_v22  ;;  %v8170_v51 = vcombine.low %v2964_v28, %v2968_v22  ;;  %v3009_v40 = vld [vmem:[#allocation5 + $0x678] sm:$0xff]  ;;  %v15137_v22 = vld [vmem:[#allocation60_spill] sm:$0xff] }
 0x4ed   : > { %5205 = vmatprep.subr.bf16.mxu1 %v8149_v63  ;;  %v8195_v37 = vcombine.high %v2988_v25, %v2992_v11  ;;  %v8194_v63 = vcombine.low %v2988_v25, %v2992_v11  ;;  %v15136_v28 = vld [vmem:[#allocation59_spill] sm:$0xff]  ;;  %v3036_v11 = vld [vmem:[#allocation5 + $0x750] sm:$0xff] }
 0x4ee   : > { %4980 = vmatpush1.bf16.msra.mxu0 %v8146_v18  ;;  %v2997_v18 = vld [vmem:[#allocation5 + $0x618] sm:$0xff] }
 0x4ef   : > { %4981 = vmatprep.subr.bf16.mxu0 %v8155_v8  ;;  %v8196_v8 = vcombine.low %v2989_v12, %v2993_v9  ;;  %v8205_v41 = vcombine.high %v2997_v18, %v3001_v5 }
 0x4f0   : > { %5206 = vmatpush1.bf16.msra.mxu1 %v8148_v38  ;;  %v3004_v38 = vld [vmem:[#allocation5 + $0x650] sm:$0xff] }
 0x4f1   : > { %4907 = vmatmul.mubr.bf16.gmra.mrb[84].mxu0 %v11072_v24  ;;  %5207 = vmatprep.subr.bf16.mxu1 %v8157_v0  ;;  %v8211_v7 = vcombine.high %v3004_v38, %v3008_v46 }
 0x4f2   : > { %4982 = vmatpush1.bf16.msra.mxu0 %v8154_v29  ;;  %4916 = vmatprep.mubr.bf16.mxu0 %v11202_v2  ;;  %v3005_v29 = vld [vmem:[#allocation5 + $0x658] sm:$0xff] }
 0x4f3   : > { %5133 = vmatmul.mubr.bf16.gmra.mrb[100].mxu1 %v11072_v24  ;;  %4983 = vmatprep.subr.bf16.mxu0 %v8163_v21  ;;  %v2984_v24 = vld [vmem:[#allocation5 + $0x5b0] sm:$0xff]  ;;  %v8204_v21 = vcombine.low %v2997_v18, %v3001_v5  ;;  %v15141_v5 = vld [vmem:[#allocation63_spill] sm:$0xff] }
 0x4f4   : > { %5142 = vmatprep.mubr.bf16.mxu1 %v11202_v2  ;;  %5208 = vmatpush1.bf16.msra.mxu1 %v8156_v4  ;;  %v8181_v2 = vcombine.high %v2973_v13, %v2977_v57  ;;  %v8187_v62 = vcombine.high %v2980_v45, %v2984_v24  ;;  %v8186_v53 = vcombine.low %v2980_v45, %v2984_v24  ;;  %v3012_v4 = vld [vmem:[#allocation5 + $0x690] sm:$0xff]  ;;  %v3025_v13 = vld [vmem:[#allocation5 + $0x6f8] sm:$0xff] }
 0x4f5   : > { %5209 = vmatprep.subr.bf16.mxu1 %v8165_v10  ;;  %v8210_v10 = vcombine.low %v3004_v38, %v3008_v46  ;;  %v3032_v45 = vld [vmem:[#allocation5 + $0x730] sm:$0xff]  ;;  %v15138_v24 = vld [vmem:[#allocation31_spill] sm:$0xff] }
 0x4f6   : > { %4984 = vmatpush1.bf16.msra.mxu0 %v8162_v30  ;;  %v3013_v30 = vld [vmem:[#allocation5 + $0x698] sm:$0xff] }
 0x4f7   : > { %4985 = vmatprep.subr.bf16.mxu0 %v8171_v55  ;;  %v8212_v55 = vcombine.low %v3005_v29, %v3009_v40  ;;  %v8221_v54 = vcombine.high %v3013_v30, %v3017_v42  ;;  %v3049_v38 = vld [vmem:[#allocation5 + $0x7b8] sm:$0xff] }
 0x4f8   : > { %5210 = vmatpush1.bf16.msra.mxu1 %v8164_v19  ;;  %v3020_v19 = vld [vmem:[#allocation5 + $0x6d0] sm:$0xff] }
 0x4f9   : > { %4917 = vmatmul.mubr.bf16.gmra.mrb[88].mxu0 %v11087_v60  ;;  %5211 = vmatprep.subr.bf16.mxu1 %v8173_v6  ;;  %v8227_v57 = vcombine.high %v3020_v19, %v3024_v34  ;;  %v8226_v17 = vcombine.low %v3020_v19, %v3024_v34 }
 0x4fa   : > { %4986 = vmatpush1.bf16.msra.mxu0 %v8170_v51  ;;  %4926 = vmatprep.mubr.bf16.mxu0 %v11235_v39  ;;  %v3021_v51 = vld [vmem:[#allocation5 + $0x6d8] sm:$0xff] }
 0x4fb   : > { %5143 = vmatmul.mubr.bf16.gmra.mrb[104].mxu1 %v11087_v60  ;;  %4987 = vmatprep.subr.bf16.mxu0 %v8179_v36  ;;  %v3000_v60 = vld [vmem:[#allocation5 + $0x630] sm:$0xff]  ;;  %v8220_v36 = vcombine.low %v3013_v30, %v3017_v42  ;;  %v8228_v25 = vcombine.low %v3021_v51, %v3025_v13 }
 0x4fc   : > { %5152 = vmatprep.mubr.bf16.mxu1 %v11235_v39  ;;  %5212 = vmatpush1.bf16.msra.mxu1 %v8172_v16  ;;  %v8197_v39 = vcombine.high %v2989_v12, %v2993_v9  ;;  %v8203_v58 = vcombine.high %v2996_v1, %v3000_v60  ;;  %v8202_v0 = vcombine.low %v2996_v1, %v3000_v60  ;;  %v3028_v16 = vld [vmem:[#allocation5 + $0x710] sm:$0xff]  ;;  %v3037_v9 = vld [vmem:[#allocation5 + $0x758] sm:$0xff] }
 0x4fd   : > { %5213 = vmatprep.subr.bf16.mxu1 %v8181_v2  ;;  %v8229_v2 = vcombine.high %v3021_v51, %v3025_v13  ;;  %v8234_v12 = vcombine.low %v3028_v16, %v3032_v45  ;;  %v3044_v60 = vld [vmem:[#allocation5 + $0x790] sm:$0xff] }
 0x4fe   : > { %4988 = vmatpush1.bf16.msra.mxu0 %v8178_v35  ;;  %v15139_v35 = vld [vmem:[#allocation61_spill] sm:$0xff] }
 0x4ff   : > { %4989 = vmatprep.subr.bf16.mxu0 %v8187_v62  ;;  %v3033_v62 = vld [vmem:[#allocation5 + $0x738] sm:$0xff] }
 0x500   : > { %5214 = vmatpush1.bf16.msra.mxu1 %v8180_v23  ;;  %v8235_v23 = vcombine.high %v3028_v16, %v3032_v45  ;;  %v8236_v1 = vcombine.low %v3029_v3, %v3033_v62 }
 0x501   : > { %4927 = vmatmul.mubr.bf16.gmra.mrb[92].mxu0 %v11204_v27  ;;  %5215 = vmatprep.subr.bf16.mxu1 %v8189_v33  ;;  %v3040_v33 = vld [vmem:[#allocation5 + $0x770] sm:$0xff] }
 0x502   : > { %4990 = vmatpush1.bf16.msra.mxu0 %v8186_v53  ;;  %4936 = vmatprep.mubr.bf16.mxu0 %v11289_v43  ;;  %v8237_v53 = vcombine.high %v3029_v3, %v3033_v62 }
 0x503   : > { %5153 = vmatmul.mubr.bf16.gmra.mrb[108].mxu1 %v11204_v27  ;;  %4991 = vmatprep.subr.bf16.mxu0 %v8195_v37  ;;  %v3016_v27 = vld [vmem:[#allocation5 + $0x6b0] sm:$0xff]  ;;  %v3041_v37 = vld [vmem:[#allocation5 + $0x778] sm:$0xff] }
 0x504   : > { %5162 = vmatprep.mubr.bf16.mxu1 %v11289_v43  ;;  %5216 = vmatpush1.bf16.msra.mxu1 %v8188_v52  ;;  %v8213_v43 = vcombine.high %v3005_v29, %v3009_v40  ;;  %v8219_v59 = vcombine.high %v3012_v4, %v3016_v27  ;;  %v8218_v6 = vcombine.low %v3012_v4, %v3016_v27  ;;  %v3056_v29 = vld [vmem:[#allocation5 + $0x7f0] sm:$0xff]  ;;  %v3057_v4 = vld [vmem:[#allocation5 + $0x7f8] sm:$0xff] }
 0x505   : > { %5217 = vmatprep.subr.bf16.mxu1 %v8197_v39  ;;  %v8243_v52 = vcombine.high %v3036_v11, %v3040_v33  ;;  %v3048_v39 = vld [vmem:[#allocation5 + $0x7b0] sm:$0xff]  ;;  %v8245_v18 = vcombine.high %v3037_v9, %v3041_v37 }
 0x506   : > { %4992 = vmatpush1.bf16.msra.mxu0 %v8194_v63  ;;  %v15140_v63 = vld [vmem:[#allocation62_spill] sm:$0xff]  ;;  %v8251_v46 = vcombine.high %v3044_v60, %v3048_v39 }
 0x507   : > { %4993 = vmatprep.subr.bf16.mxu0 %v8203_v58  ;;  %v8242_v58 = vcombine.low %v3036_v11, %v3040_v33 }
 0x508   : > { %5218 = vmatpush1.bf16.msra.mxu1 %v8196_v8  ;;  %v3045_v8 = vld [vmem:[#allocation5 + $0x798] sm:$0xff] }
 0x509   : > { %4937 = vmatmul.mubr.bf16.gmra.mrb[96].mxu0 %v15136_v28  ;;  %5219 = vmatprep.subr.bf16.mxu1 %v8205_v41  ;;  %v8244_v41 = vcombine.low %v3037_v9, %v3041_v37  ;;  %v8253_v40 = vcombine.high %v3045_v8, %v3049_v38 }
 0x50a   : > { %4994 = vmatpush1.bf16.msra.mxu0 %v8202_v0  ;;  %4946 = vmatprep.mubr.bf16.mxu0 %v15137_v22  ;;  %v3052_v0 = vld [vmem:[#allocation5 + $0x7d0] sm:$0xff] }
 0x50b   : > { %5163 = vmatmul.mubr.bf16.gmra.mrb[112].mxu1 %v15136_v28  ;;  %4995 = vmatprep.subr.bf16.mxu0 %v8211_v7  ;;  %v8250_v7 = vcombine.low %v3044_v60, %v3048_v39  ;;  %v8259_v27 = vcombine.high %v3052_v0, %v3056_v29  ;;  %v8252_v28 = vcombine.low %v3045_v8, %v3049_v38 }
 0x50c   : > { %5172 = vmatprep.mubr.bf16.mxu1 %v15137_v22  ;;  %5220 = vmatpush1.bf16.msra.mxu1 %v8204_v21  ;;  %v3053_v21 = vld [vmem:[#allocation5 + $0x7d8] sm:$0xff]  ;;  %v8258_v30 = vcombine.low %v3052_v0, %v3056_v29 }
 0x50d   : > { %5221 = vmatprep.subr.bf16.mxu1 %v8213_v43  ;;  %v15142_v43 = vld [vmem:[#allocation25_spill] sm:$0xff]  ;;  %v8261_v22 = vcombine.high %v3053_v21, %v3057_v4  ;;  %v8260_v42 = vcombine.low %v3053_v21, %v3057_v4 }
 0x50e   : > { %4996 = vmatpush1.bf16.msra.mxu0 %v8210_v10  ;;  %v15143_v10 = vld [vmem:[#allocation27_spill] sm:$0xff] }
 0x50f   : > { %4997 = vmatprep.subr.bf16.mxu0 %v8219_v59  ;;  %v15144_v59 = vld [vmem:[#allocation29_spill] sm:$0xff] }
 0x510   : > { %5222 = vmatpush1.bf16.msra.mxu1 %v8212_v55  ;;  %v15145_v55 = vld [vmem:[#allocation33_spill] sm:$0xff] }
 0x511   : > { %4947 = vmatmul.mubr.bf16.gmra.mrb[100].mxu0 %v15138_v24  ;;  %5223 = vmatprep.subr.bf16.mxu1 %v8221_v54 }
 0x512   : > { %4998 = vmatpush1.bf16.msra.mxu0 %v8218_v6  ;;  %4956 = vmatprep.mubr.bf16.mxu0 %v15139_v35 }
 0x513   : > { %5173 = vmatmul.mubr.bf16.gmra.mrb[116].mxu1 %v15138_v24  ;;  %4999 = vmatprep.subr.bf16.mxu0 %v8227_v57 }
 0x514   : > { %5182 = vmatprep.mubr.bf16.mxu1 %v15139_v35  ;;  %5224 = vmatpush1.bf16.msra.mxu1 %v8220_v36 }
 0x515   : > { %5225 = vmatprep.subr.bf16.mxu1 %v8229_v2 }
 0x516   : > { %5000 = vmatpush1.bf16.msra.mxu0 %v8226_v17 }
 0x517   : > { %5001 = vmatprep.subr.bf16.mxu0 %v8235_v23 }
 0x518   : > { %5226 = vmatpush1.bf16.msra.mxu1 %v8228_v25 }
 0x519   : > { %4957 = vmatmul.mubr.bf16.gmra.mrb[104].mxu0 %v15140_v63  ;;  %5227 = vmatprep.subr.bf16.mxu1 %v8237_v53 }
 0x51a   : > { %5002 = vmatpush1.bf16.msra.mxu0 %v8234_v12  ;;  %4966 = vmatprep.mubr.bf16.mxu0 %v15141_v5 }
 0x51b   : > { %5183 = vmatmul.mubr.bf16.gmra.mrb[120].mxu1 %v15140_v63  ;;  %5003 = vmatprep.subr.bf16.mxu0 %v8243_v52 }
 0x51c   : > { %5192 = vmatprep.mubr.bf16.mxu1 %v15141_v5  ;;  %5228 = vmatpush1.bf16.msra.mxu1 %v8236_v1 }
 0x51d   : > { %5229 = vmatprep.subr.bf16.mxu1 %v8245_v18 }
 0x51e   : > { %5004 = vmatpush1.bf16.msra.mxu0 %v8242_v58 }
 0x51f   : > { %5005 = vmatprep.subr.bf16.mxu0 %v8251_v46 }
 0x520   : > { %5230 = vmatpush1.bf16.msra.mxu1 %v8244_v41 }
 0x521   : > { %4967 = vmatmul.mubr.bf16.gmra.mrb[108].mxu0 %v15142_v43  ;;  %5231 = vmatprep.subr.bf16.mxu1 %v8253_v40 }
 0x522   : > { %5006 = vmatpush1.bf16.msra.mxu0 %v8250_v7  ;;  %5009 = vmatprep.mubr.bf16.mxu0 %v15143_v10 }
 0x523   : > { %5193 = vmatmul.mubr.bf16.gmra.mrb[124].mxu1 %v15142_v43  ;;  %5007 = vmatprep.subr.bf16.mxu0 %v8259_v27 }
 0x524   : > { %5232 = vmatpush1.bf16.msra.mxu1 %v8252_v28  ;;  %5235 = vmatprep.mubr.bf16.mxu1 %v15143_v10 }
 0x525   : > { %5233 = vmatprep.subr.bf16.mxu1 %v8261_v22 }
 0x526   : > { %5008 = vmatpush1.bf16.msra.mxu0 %v8258_v30 }
 0x528   : > { %5234 = vmatpush1.bf16.msra.mxu1 %v8260_v42 }
 0x529   : > { %5010 = vmatmul.mubr.bf16.vlgmr.msra.gmra.mrb[80].mxu0 %v15144_v59 }
 0x52a   : > { %5019 = vmatprep.mubr.bf16.mxu0 %v15145_v55 }
 0x52b   : > { %5236 = vmatmul.mubr.bf16.vlgmr.msra.gmra.mrb[96].mxu1 %v15144_v59 }
 0x52c   : > { %5245 = vmatprep.mubr.bf16.mxu1 %v15145_v55 }
 0x531   : > { %5020 = vmatmul.mubr.bf16.gmra.mrb[84].mxu0 %v11516_v50 }
 0x532   : > { %5029 = vmatprep.mubr.bf16.mxu0 %v11720_v56 }
 0x533   : > { %5246 = vmatmul.mubr.bf16.gmra.mrb[100].mxu1 %v11516_v50  ;;  %v15147_v50 = vld [vmem:[#allocation21_spill] sm:$0xff] }
 0x534   : > { %5255 = vmatprep.mubr.bf16.mxu1 %v11720_v56 }
 0x539   : > { %5030 = vmatmul.mubr.bf16.gmra.mrb[88].mxu0 %v11566_v48 }
 0x53a   : > { %5039 = vmatprep.mubr.bf16.mxu0 %v11800_v31 }
 0x53b   : > { %5256 = vmatmul.mubr.bf16.gmra.mrb[104].mxu1 %v11566_v48  ;;  %v11998_v48 = vld [vmem:[%s14395_s12] sm:$0xff] }
 0x53c   : > { %5265 = vmatprep.mubr.bf16.mxu1 %v11800_v31  ;;  %15146 = vst [vmem:[#allocation69_spill] sm:$0xff] %v11998_v48 }
 0x541   : > { %5040 = vmatmul.mubr.bf16.gmra.mrb[92].mxu0 %v11680_v49 }
 0x542   : > { %5049 = vmatprep.mubr.bf16.mxu0 %v11902_v47 }
 0x543   : > { %5266 = vmatmul.mubr.bf16.gmra.mrb[108].mxu1 %v11680_v49  ;;  %v12002_v49 = vrot.slane %v11998_v48, %v15147_v50 }
 0x544   : > { %5275 = vmatprep.mubr.bf16.mxu1 %v11902_v47  ;;  %v15150_v47 = vld [vmem:[#allocation24_spill] sm:$0xff] }
 0x549   : > { %5050 = vmatmul.mubr.bf16.gmra.mrb[96].mxu0 %v11774_v61 }
 0x54a   : > { %5059 = vmatprep.mubr.bf16.mxu0 %v11916_v32 }
 0x54b   : > { %5276 = vmatmul.mubr.bf16.gmra.mrb[112].mxu1 %v11774_v61  ;;  %v15148_v61 = vld [vmem:[#allocation23_spill] sm:$0xff] }
 0x54c   : > { %5285 = vmatprep.mubr.bf16.mxu1 %v11916_v32  ;;  %v12006_v31 = vrot.slane %v11998_v48, %v15148_v61 }
 0x551   : > { %5060 = vmatmul.mubr.bf16.gmra.mrb[100].mxu0 %v11834_v14 }
 0x552   : > { %5069 = vmatprep.mubr.bf16.mxu0 %v11848_v15 }
 0x553   : > { %5286 = vmatmul.mubr.bf16.gmra.mrb[116].mxu1 %v11834_v14  ;;  %v15149_v14 = vld [vmem:[#allocation22_spill] sm:$0xff] }
 0x554   : > { %5295 = vmatprep.mubr.bf16.mxu1 %v11848_v15  ;;  %v12010_v15 = vrot.slane %v11998_v48, %v15149_v14 }
 0x559   : > { %5070 = vmatmul.mubr.bf16.gmra.mrb[104].mxu0 %v11896_v44 }
 0x55a   : > { %5079 = vmatprep.mubr.bf16.mxu0 %v11898_v20 }
 0x55b   : > { %5296 = vmatmul.mubr.bf16.gmra.mrb[120].mxu1 %v11896_v44 }
 0x55c   : > { %5305 = vmatprep.mubr.bf16.mxu1 %v11898_v20 }
 0x561   : > { %5080 = vmatmul.mubr.bf16.gmra.mrb[108].mxu0 %v11913_v26 }
 0x563   : > { %5306 = vmatmul.mubr.bf16.gmra.mrb[124].mxu1 %v11913_v26  ;;  %v12014_v26 = vrot.slane %v11998_v48, %v15150_v47 }
 0x579   : > { %v4559_v56 = vpop.f32.mrb[48].mxu0 }
 0x57a   : > { %v4785_v44 = vpop.f32.mrb[64].mxu1  ;;  %v4561_v20 = vpop.f32.mrb[49].mxu0  ;;  %v12017_v34 = vadd.f32 %v4559_v56, %v12002_v49 }
 0x57b   : > { %v4787_v32 = vpop.f32.mrb[65].mxu1  ;;  %v4563_v19 = vpop.f32.mrb[50].mxu0  ;;  %v12023_v13 = vadd.f32 %v4785_v44, %v12006_v31  ;;  %v12026_v57 = vadd.f32 %v4561_v20, %v12010_v15 }
 0x57c   : > { %v12020_v54 = vadd.f32 %v4563_v19, %v12002_v49  ;;  %v4789_v6 = vpop.f32.mrb[66].mxu1  ;;  %v4565_v51 = vpop.f32.mrb[51].mxu0  ;;  %v12035_v24 = vadd.f32 %v4787_v32, %v12014_v26 }
 0x57d   : > { %v12029_v36 = vadd.f32 %v4789_v6, %v12006_v31  ;;  %v12032_v16 = vadd.f32 %v4565_v51, %v12010_v15  ;;  %v4791_v45 = vpop.f32.mrb[67].mxu1 }
 0x57e   : > { %15151 = vst [vmem:[#allocation70_spill] sm:$0xff] %v12035_v24  ;;  %v5318_v2 = vadd.f32 %v12020_v54, %v12017_v34  ;;  %v12040_v35 = vadd.f32 %v4791_v45, %v12014_v26 }
 0x57f   : > { %v5360_v17 = vadd.f32 %v12029_v36, %v12023_v13  ;;  %v5339_v3 = vadd.f32 %v12032_v16, %v12026_v57 }
 0x580   : > { %15152 = vst [vmem:[#allocation52_spill] sm:$0xff] %v12040_v35  ;;  %v5381_v62 = vadd.f32 %v12040_v35, %v12035_v24  ;;  %v9094_v35 = vld [vmem:[#allocation7] sm:$0xff]   ;;  %v9096_v24 = vld [vmem:[#allocation7 + $0x48] sm:$0xff]  }
 0x581   : > { %v4569_v23 = vpop.f32.mrb[52].mxu0 }
 0x582   : > { %v12049_v25 = vadd.f32 %v4569_v23, %v12002_v49  ;;  %v4795_v11 = vpop.f32.mrb[68].mxu1  ;;  %v4571_v33 = vpop.f32.mrb[53].mxu0 }
 0x583   : > { %v12052_v53 = vadd.f32 %v4795_v11, %v12006_v31  ;;  %v12055_v12 = vadd.f32 %v4571_v33, %v12010_v15  ;;  %v4797_v9 = vpop.f32.mrb[69].mxu1  ;;  %v4573_v37 = vpop.f32.mrb[54].mxu0 }
 0x584   : > { %v5319_v52 = vadd.f32 %v12049_v25, %v5318_v2  ;;  %v12059_v1 = vadd.f32 %v4797_v9, %v12014_v26  ;;  %v12062_v60 = vadd.f32 %v4573_v37, %v12002_v49  ;;  %v4799_v39 = vpop.f32.mrb[70].mxu1  ;;  %v4575_v63 = vpop.f32.mrb[55].mxu0 }
 0x585   : > { %v5361_v18 = vadd.f32 %v12052_v53, %v5360_v17  ;;  %v5340_v5 = vadd.f32 %v12055_v12, %v5339_v3  ;;  %v12067_v58 = vadd.f32 %v4799_v39, %v12006_v31  ;;  %v12070_v8 = vadd.f32 %v4575_v63, %v12010_v15  ;;  %v4801_v38 = vpop.f32.mrb[71].mxu1 }
 0x586   : > { %15153 = vst [vmem:[#allocation53_spill] sm:$0xff] %v12059_v1  ;;  %v5382_v46 = vadd.f32 %v12059_v1, %v5381_v62  ;;  %v5320_v41 = vadd.f32 %v12062_v60, %v5319_v52  ;;  %v12075_v0 = vadd.f32 %v4801_v38, %v12014_v26  ;;  %v9093_v1 = vld [vmem:[#allocation7 + $0xc0] sm:$0xff]  }
 0x587   : > { %v5362_v29 = vadd.f32 %v12067_v58, %v5361_v18  ;;  %v5341_v40 = vadd.f32 %v12070_v8, %v5340_v5  ;;  %8407 = vmatprep.subr.bf16.mxu1 %v9093_v1 }
 0x588   : > { %15154 = vst [vmem:[#allocation54_spill] sm:$0xff] %v12075_v0  ;;  %v5383_v7 = vadd.f32 %v12075_v0, %v5382_v46  ;;  %v9092_v0 = vld [vmem:[#allocation7 + $0x40] sm:$0xff]  }
 0x589   : > { %v4579_v21 = vpop.f32.mrb[56].mxu0  ;;  %8343 = vmatprep.subr.bf16.mxu0 %v9092_v0 }
 0x58a   : > { %v12081_v4 = vadd.f32 %v4579_v21, %v12002_v49  ;;  %v4581_v28 = vpop.f32.mrb[57].mxu0  ;;  %8344 = vmatpush3.bf16.msra.mxu0 %v9094_v35  ;;  %v9101_v35 = vld [vmem:[#allocation7 + $0xd0] sm:$0xff]  }
 0x58b   : > { %v4805_v27 = vpop.f32.mrb[72].mxu1  ;;  %v12087_v22 = vadd.f32 %v4581_v28, %v12010_v15  ;;  %v4583_v30 = vpop.f32.mrb[58].mxu0  ;;  %8345 = vmatprep.subr.bf16.mxu0 %v9096_v24 }
 0x58c   : > { %v12084_v43 = vadd.f32 %v4805_v27, %v12006_v31  ;;  %v4807_v10 = vpop.f32.mrb[73].mxu1  ;;  %v5321_v42 = vadd.f32 %v12081_v4, %v5320_v41  ;;  %v12094_v55 = vadd.f32 %v4583_v30, %v12002_v49  ;;  %v4585_v44 = vpop.f32.mrb[59].mxu0 }
 0x58d   : > { %v12091_v59 = vadd.f32 %v4807_v10, %v12014_v26  ;;  %v4809_v56 = vpop.f32.mrb[74].mxu1  ;;  %v5342_v32 = vadd.f32 %v12087_v22, %v5341_v40  ;;  %v12102_v6 = vadd.f32 %v4585_v44, %v12010_v15 }
 0x58e   : > { %v5363_v20 = vadd.f32 %v12084_v43, %v5362_v29  ;;  %v12099_v19 = vadd.f32 %v4809_v56, %v12006_v31  ;;  %v4811_v51 = vpop.f32.mrb[75].mxu1  ;;  %v5322_v2 = vadd.f32 %v12094_v55, %v5321_v42 }
 0x58f   : > { %15155 = vst [vmem:[#allocation55_spill] sm:$0xff] %v12091_v59  ;;  %15156 = vst [vmem:[#allocation65_spill] sm:$0xff] %v12102_v6  ;;  %v5384_v45 = vadd.f32 %v12091_v59, %v5383_v7  ;;  %v12107_v17 = vadd.f32 %v4811_v51, %v12014_v26  ;;  %v5343_v62 = vadd.f32 %v12102_v6, %v5342_v32 }
 0x590   : > { %v5364_v3 = vadd.f32 %v12099_v19, %v5363_v20 }
 0x591   : > { %15157 = vst [vmem:[#allocation66_spill] sm:$0xff] %v12107_v17  ;;  %v5385_v23 = vadd.f32 %v12107_v17, %v5384_v45 }
 0x592   : > { %v4589_v11 = vpop.f32.mrb[60].mxu0 }
 0x593   : > { %v12113_v33 = vadd.f32 %v4589_v11, %v12002_v49  ;;  %v4591_v37 = vpop.f32.mrb[61].mxu0 }
 0x594   : > { %v4815_v9 = vpop.f32.mrb[76].mxu1  ;;  %v12119_v39 = vadd.f32 %v4591_v37, %v12010_v15  ;;  %v4593_v18 = vpop.f32.mrb[62].mxu0 }
 0x595   : > { %v12116_v52 = vadd.f32 %v4815_v9, %v12006_v31  ;;  %v4817_v63 = vpop.f32.mrb[77].mxu1  ;;  %v5323_v5 = vadd.f32 %v12113_v33, %v5322_v2  ;;  %v12126_v46 = vadd.f32 %v4593_v18, %v12002_v49  ;;  %v4595_v29 = vpop.f32.mrb[63].mxu0 }
 0x596   : > { %15158 = vst [vmem:[#allocation83_spill] sm:$0xff] %v12119_v39  ;;  %v12123_v38 = vadd.f32 %v4817_v63, %v12014_v26  ;;  %v4819_v41 = vpop.f32.mrb[78].mxu1  ;;  %v5344_v7 = vadd.f32 %v12119_v39, %v5343_v62  ;;  %v12134_v27 = vadd.f32 %v4595_v29, %v12010_v15 }
 0x597   : > { %v5365_v40 = vadd.f32 %v12116_v52, %v5364_v3  ;;  %v12131_v21 = vadd.f32 %v4819_v41, %v12006_v31  ;;  %v4821_v28 = vpop.f32.mrb[79].mxu1  ;;  %v5324_v30 = vadd.f32 %v12126_v46, %v5323_v5 }
 0x598   : > { %15159 = vst [vmem:[#allocation84_spill] sm:$0xff] %v12123_v38  ;;  %15160 = vst [vmem:[#allocation34_spill] sm:$0xff] %v12134_v27  ;;  %v5386_v10 = vadd.f32 %v12123_v38, %v5385_v23  ;;  %v12139_v42 = vadd.f32 %v4821_v28, %v12014_v26  ;;  %v5345_v44 = vadd.f32 %v12134_v27, %v5344_v7 }
 0x599   : > { %v5366_v56 = vadd.f32 %v12131_v21, %v5365_v40 }
 0x59a   : > { %15161 = vst [vmem:[#allocation38_spill] sm:$0xff] %v12139_v42  ;;  %v5387_v20 = vadd.f32 %v12139_v42, %v5386_v10  ;;  %v4599_v32 = vpop.f32.mrb[64].mxu0 }
 0x59b   : > { %v12145_v51 = vadd.f32 %v4599_v32, %v12002_v49  ;;  %v4601_v2 = vpop.f32.mrb[65].mxu0 }
 0x59c   : > { %v4825_v45 = vpop.f32.mrb[80].mxu1  ;;  %v12151_v62 = vadd.f32 %v4601_v2, %v12010_v15  ;;  %v4603_v11 = vpop.f32.mrb[66].mxu0 }
 0x59d   : > { %v12148_v3 = vadd.f32 %v4825_v45, %v12006_v31  ;;  %v4827_v23 = vpop.f32.mrb[81].mxu1  ;;  %v5325_v9 = vadd.f32 %v12145_v51, %v5324_v30  ;;  %v12158_v63 = vadd.f32 %v4603_v11, %v12002_v49  ;;  %v4605_v5 = vpop.f32.mrb[67].mxu0 }
 0x59e   : > { %15162 = vst [vmem:[#allocation40_spill] sm:$0xff] %v12151_v62  ;;  %v12155_v37 = vadd.f32 %v4827_v23, %v12014_v26  ;;  %v4829_v18 = vpop.f32.mrb[82].mxu1  ;;  %v5346_v29 = vadd.f32 %v12151_v62, %v5345_v44  ;;  %v12166_v7 = vadd.f32 %v4605_v5, %v12010_v15 }
 0x59f   : > { %v5367_v41 = vadd.f32 %v12148_v3, %v5366_v56  ;;  %v12163_v40 = vadd.f32 %v4829_v18, %v12006_v31  ;;  %v4831_v28 = vpop.f32.mrb[83].mxu1  ;;  %v5326_v30 = vadd.f32 %v12158_v63, %v5325_v9 }
 0x5a0   : > { %15163 = vst [vmem:[#allocation42_spill] sm:$0xff] %v12155_v37  ;;  %15164 = vst [vmem:[#allocation44_spill] sm:$0xff] %v12166_v7  ;;  %v5388_v10 = vadd.f32 %v12155_v37, %v5387_v20  ;;  %v12171_v32 = vadd.f32 %v4831_v28, %v12014_v26  ;;  %v5347_v56 = vadd.f32 %v12166_v7, %v5346_v29 }
 0x5a1   : > { %v5368_v45 = vadd.f32 %v12163_v40, %v5367_v41 }
 0x5a2   : > { %15165 = vst [vmem:[#allocation64_spill] sm:$0xff] %v12171_v32  ;;  %v5389_v44 = vadd.f32 %v12171_v32, %v5388_v10  ;;  %v4609_v2 = vpop.f32.mrb[68].mxu0 }
 0x5a3   : > { %v12177_v23 = vadd.f32 %v4609_v2, %v12002_v49  ;;  %v4611_v18 = vpop.f32.mrb[69].mxu0 }
 0x5a4   : > { %v4835_v11 = vpop.f32.mrb[84].mxu1  ;;  %v12183_v20 = vadd.f32 %v4611_v18, %v12010_v15  ;;  %v4613_v28 = vpop.f32.mrb[70].mxu0 }
 0x5a5   : > { %v12180_v5 = vadd.f32 %v4835_v11, %v12006_v31  ;;  %v4837_v9 = vpop.f32.mrb[85].mxu1  ;;  %v5327_v41 = vadd.f32 %v12177_v23, %v5326_v30  ;;  %v12190_v10 = vadd.f32 %v4613_v28, %v12002_v49  ;;  %v4615_v47 = vpop.f32.mrb[71].mxu0 }
 0x5a6   : > { %15166 = vst [vmem:[#allocation46_spill] sm:$0xff] %v12183_v20  ;;  %v12187_v29 = vadd.f32 %v4837_v9, %v12014_v26  ;;  %v4839_v2 = vpop.f32.mrb[86].mxu1  ;;  %v5348_v11 = vadd.f32 %v12183_v20, %v5347_v56  ;;  %v12198_v18 = vadd.f32 %v4615_v47, %v12010_v15 }
 0x5a7   : > { %v5369_v48 = vadd.f32 %v12180_v5, %v5368_v45  ;;  %v12195_v14 = vadd.f32 %v4839_v2, %v12006_v31  ;;  %v4841_v61 = vpop.f32.mrb[87].mxu1  ;;  %v5328_v9 = vadd.f32 %v12190_v10, %v5327_v41 }
 0x5a8   : > { %15167 = vst [vmem:[#allocation48_spill] sm:$0xff] %v12187_v29  ;;  %15168 = vst [vmem:[#allocation51_spill] sm:$0xff] %v12198_v18  ;;  %v5390_v30 = vadd.f32 %v12187_v29, %v5389_v44  ;;  %v12203_v28 = vadd.f32 %v4841_v61, %v12014_v26  ;;  %v5349_v45 = vadd.f32 %v12198_v18, %v5348_v11 }
 0x5a9   : > { %v5370_v32 = vadd.f32 %v12195_v14, %v5369_v48 }
 0x5aa   : > { %15169 = vst [vmem:[#allocation56_spill] sm:$0xff] %v12203_v28  ;;  %v5391_v56 = vadd.f32 %v12203_v28, %v5390_v30  ;;  %v4619_v37 = vpop.f32.mrb[72].mxu0 }
 0x5ab   : > { %v12209_v2 = vadd.f32 %v4619_v37, %v12002_v49  ;;  %v4621_v42 = vpop.f32.mrb[73].mxu0 }
 0x5ac   : > { %v4845_v47 = vpop.f32.mrb[88].mxu1  ;;  %v12215_v44 = vadd.f32 %v4621_v42, %v12010_v15  ;;  %v4623_v41 = vpop.f32.mrb[74].mxu0 }
 0x5ad   : > { %v12212_v38 = vadd.f32 %v4845_v47, %v12006_v31  ;;  %v4847_v61 = vpop.f32.mrb[89].mxu1  ;;  %v5329_v48 = vadd.f32 %v12209_v2, %v5328_v9  ;;  %v12222_v30 = vadd.f32 %v4623_v41, %v12002_v49  ;;  %v4625_v28 = vpop.f32.mrb[75].mxu0 }
 0x5ae   : > { %15170 = vst [vmem:[#allocation57_spill] sm:$0xff] %v12215_v44  ;;  %v12219_v11 = vadd.f32 %v4847_v61, %v12014_v26  ;;  %v4849_v37 = vpop.f32.mrb[90].mxu1  ;;  %v5350_v47 = vadd.f32 %v12215_v44, %v5349_v45  ;;  %v12230_v42 = vadd.f32 %v4625_v28, %v12010_v15  ;;  %v9097_v44 = vld [vmem:[#allocation7 + $0xc8] sm:$0xff]  }
 0x5af   : > { %v5371_v29 = vadd.f32 %v12212_v38, %v5370_v32  ;;  %v12227_v17 = vadd.f32 %v4849_v37, %v12006_v31  ;;  %v4851_v59 = vpop.f32.mrb[91].mxu1  ;;  %v5330_v61 = vadd.f32 %v12222_v30, %v5329_v48  ;;  %v9095_v37 = vld [vmem:[#allocation7 + $0x80] sm:$0xff]   ;;  %v9098_v48 = vld [vmem:[#allocation7 + $0x8] sm:$0xff]  }
 0x5b0   : > { %15171 = vst [vmem:[#allocation87_spill] sm:$0xff] %v12219_v11  ;;  %15172 = vst [vmem:[#allocation35_spill] sm:$0xff] %v12230_v42  ;;  %v5392_v9 = vadd.f32 %v12219_v11, %v5391_v56  ;;  %v12235_v41 = vadd.f32 %v4851_v59, %v12014_v26  ;;  %v5351_v45 = vadd.f32 %v12230_v42, %v5350_v47  ;;  %8408 = vmatpush3.bf16.msra.mxu1 %v9095_v37  ;;  %v9100_v47 = vld [vmem:[#allocation7 + $0x50] sm:$0xff]  }
 0x5b1   : > { %v5372_v32 = vadd.f32 %v12227_v17, %v5371_v29  ;;  %8409 = vmatprep.subr.bf16.mxu1 %v9097_v44  ;;  %v9099_v29 = vld [vmem:[#allocation7 + $0x88] sm:$0xff]   ;;  %8346 = vmatpush3.bf16.msra.mxu0 %v9098_v48 }
 0x5b2   : > { %15173 = vst [vmem:[#allocation37_spill] sm:$0xff] %v12235_v41  ;;  %v5393_v28 = vadd.f32 %v12235_v41, %v5392_v9  ;;  %v4629_v56 = vpop.f32.mrb[76].mxu0  ;;  %8347 = vmatprep.subr.bf16.mxu0 %v9100_v47 }
 0x5b3   : > { %v12241_v59 = vadd.f32 %v4629_v56, %v12002_v49  ;;  %v4631_v18 = vpop.f32.mrb[77].mxu0 }
 0x5b4   : > { %v4855_v11 = vpop.f32.mrb[92].mxu1  ;;  %v12247_v9 = vadd.f32 %v4631_v18, %v12010_v15  ;;  %v4633_v0 = vpop.f32.mrb[78].mxu0  ;;  %8410 = vmatpush3.bf16.msra.mxu1 %v9099_v29  ;;  %v9108_v29 = vld [vmem:[#allocation7 + $0x60] sm:$0xff]  }
 0x5b5   : > { %v12244_v42 = vadd.f32 %v4855_v11, %v12006_v31  ;;  %v4857_v1 = vpop.f32.mrb[93].mxu1  ;;  %v5331_v37 = vadd.f32 %v12241_v59, %v5330_v61  ;;  %v12254_v41 = vadd.f32 %v4633_v0, %v12002_v49  ;;  %v4635_v44 = vpop.f32.mrb[79].mxu0  ;;  %v9102_v61 = vld [vmem:[#allocation7 + $0x10] sm:$0xff]   ;;  %8411 = vmatprep.subr.bf16.mxu1 %v9101_v35 }
 0x5b6   : > { %15174 = vst [vmem:[#allocation71_spill] sm:$0xff] %v12247_v9  ;;  %v12251_v56 = vadd.f32 %v4857_v1, %v12014_v26  ;;  %v4859_v24 = vpop.f32.mrb[94].mxu1  ;;  %v5352_v11 = vadd.f32 %v12247_v9, %v5351_v45  ;;  %v12262_v7 = vadd.f32 %v4635_v44, %v12010_v15  ;;  %v9104_v45 = vld [vmem:[#allocation7 + $0x58] sm:$0xff]   ;;  %8348 = vmatpush3.bf16.msra.mxu0 %v9102_v61  ;;  %v9111_v61 = vld [vmem:[#allocation7 + $0xa0] sm:$0xff]  }
 0x5b7   : > { %v5373_v20 = vadd.f32 %v12244_v42, %v5372_v32  ;;  %v12259_v18 = vadd.f32 %v4859_v24, %v12006_v31  ;;  %v4861_v62 = vpop.f32.mrb[95].mxu1  ;;  %v5332_v49 = vadd.f32 %v12254_v41, %v5331_v37  ;;  %v9103_v32 = vld [vmem:[#allocation7 + $0x90] sm:$0xff]   ;;  %v9105_v15 = vld [vmem:[#allocation7 + $0xd8] sm:$0xff]   ;;  %8349 = vmatprep.subr.bf16.mxu0 %v9104_v45 }
 0x5b8   : > { %15175 = vst [vmem:[#allocation73_spill] sm:$0xff] %v12251_v56  ;;  %15176 = vst [vmem:[#allocation74_spill] sm:$0xff] %v12262_v7  ;;  %v5394_v1 = vadd.f32 %v12251_v56, %v5393_v28  ;;  %v12267_v0 = vadd.f32 %v4861_v62, %v12014_v26  ;;  %v5353_v24 = vadd.f32 %v12262_v7, %v5352_v11  ;;  %v9106_v37 = vld [vmem:[#allocation7 + $0x18] sm:$0xff]   ;;  %8412 = vmatpush3.bf16.msra.mxu1 %v9103_v32  ;;  %v9113_v32 = vld [vmem:[#allocation7 + $0xe8] sm:$0xff]  }
 0x5b9   : > { %v5374_v31 = vadd.f32 %v12259_v18, %v5373_v20  ;;  %v5333_v44 = vrot.slane %v5332_v49, 4  ;;  %v9107_v62 = vld [vmem:[#allocation7 + $0x98] sm:$0xff]   ;;  %8413 = vmatprep.subr.bf16.mxu1 %v9105_v15  ;;  %v9109_v20 = vld [vmem:[#allocation7 + $0xe0] sm:$0xff]  }
 0x5ba   : > { %15177 = vst [vmem:[#allocation88_spill] sm:$0xff] %v12267_v0  ;;  %v5395_v48 = vadd.f32 %v12267_v0, %v5394_v1  ;;  %v5354_v28 = vrot.slane %v5353_v24, 4  ;;  %8350 = vmatpush3.bf16.msra.mxu0 %v9106_v37  ;;  %v9110_v1 = vld [vmem:[#allocation7 + $0x20] sm:$0xff]   ;;  %v9117_v37 = vld [vmem:[#allocation7 + $0xf0] sm:$0xff]  }
 0x5bb   : > { %v5375_v9 = vrot.slane %v5374_v31, 4  ;;  %v5334_v56 = vadd.f32 %v5333_v44, %v5332_v49  ;;  %8351 = vmatprep.subr.bf16.mxu0 %v9108_v29  ;;  %v9112_v49 = vld [vmem:[#allocation7 + $0x68] sm:$0xff]  }
 0x5bc   : > { %v5396_v26 = vrot.slane %v5395_v48, 4  ;;  %v5355_v27 = vadd.f32 %v5354_v28, %v5353_v24  ;;  %8414 = vmatpush3.bf16.msra.mxu1 %v9107_v62  ;;  %v9114_v24 = vld [vmem:[#allocation7 + $0x28] sm:$0xff]   ;;  %v9116_v28 = vld [vmem:[#allocation7 + $0x70] sm:$0xff]  }
 0x5bd   : > { %v5376_v47 = vadd.f32 %v5375_v9, %v5374_v31  ;;  %v5335_v11 = vrot.slane %v5334_v56, 2  ;;  %8415 = vmatprep.subr.bf16.mxu1 %v9109_v20 }
 0x5be   : > { %v5356_v7 = vrot.slane %v5355_v27, 2  ;;  %v5397_v39 = vadd.f32 %v5396_v26, %v5395_v48  ;;  %8352 = vmatpush3.bf16.msra.mxu0 %v9110_v1  ;;  %v9115_v48 = vld [vmem:[#allocation7 + $0xa8] sm:$0xff]  }
 0x5bf   : > { %v5377_v35 = vrot.slane %v5376_v47, 2  ;;  %v5336_v0 = vadd.f32 %v5335_v11, %v5334_v56  ;;  %8353 = vmatprep.subr.bf16.mxu0 %v9112_v49  ;;  %v9119_v11 = vld [vmem:[#allocation7 + $0xb0] sm:$0xff]  }
 0x5c0   : > { %v5357_v9 = vadd.f32 %v5356_v7, %v5355_v27  ;;  %v5398_v31 = vrot.slane %v5397_v39, 2  ;;  %8416 = vmatpush3.bf16.msra.mxu1 %v9111_v61 }
 0x5c1   : > { %v5378_v44 = vadd.f32 %v5377_v35, %v5376_v47  ;;  %v5337_v45 = vrot.slane %v5336_v0, 1  ;;  %8417 = vmatprep.subr.bf16.mxu1 %v9113_v32  ;;  %v9118_v47 = vld [vmem:[#allocation7 + $0x30] sm:$0xff]  }
 0x5c2   : > { %v5358_v62 = vrot.slane %v5357_v9, 1  ;;  %v12272_v29 = vadd.f32 %v5398_v31, %v5397_v39  ;;  %8354 = vmatpush3.bf16.msra.mxu0 %v9114_v24 }
 0x5c3   : > { %v5379_v6 = vrot.slane %v5378_v44, 1  ;;  %v5338_v15 = vadd.f32 %v5337_v45, %v5336_v0  ;;  %8355 = vmatprep.subr.bf16.mxu0 %v9116_v28 }
 0x5c4   : > { %8418 = vmatpush3.bf16.msra.mxu1 %v9115_v48 }
 0x5c5   : > { %v5486_v56 = vmul.f32 0.0078125, %v5338_v15  ;;  %v5380_v26 = vadd.f32 %v5379_v6, %v5378_v44  ;;  %8419 = vmatprep.subr.bf16.mxu1 %v9117_v37  ;;  %v5400_v44 = vrot.slane %v12272_v29, 1 }
 0x5c6   : > { %8356 = vmatpush3.bf16.msra.mxu0 %v9118_v47 }
 0x5c7   : > { %v12275_v20 = vsub.f32 %v12017_v34, %v5486_v56  ;;  %v12278_v27 = vsub.f32 %v12020_v54, %v5486_v56  ;;  %v12281_v7 = vsub.f32 %v12049_v25, %v5486_v56  ;;  %v12284_v0 = vsub.f32 %v12062_v60, %v5486_v56  ;;  %v9120_v25 = vld [vmem:[#allocation7 + $0x78] sm:$0xff]  }
 0x5c8   : > { %v12287_v6 = vsub.f32 %v12081_v4, %v5486_v56  ;;  %v12290_v39 = vsub.f32 %v12094_v55, %v5486_v56  ;;  %v12293_v34 = vsub.f32 %v12113_v33, %v5486_v56  ;;  %v12296_v54 = vsub.f32 %v12126_v46, %v5486_v56  ;;  %v9121_v33 = vld [vmem:[#allocation7 + $0xf8] sm:$0xff]   ;;  %8420 = vmatpush3.bf16.msra.mxu1 %v9119_v11 }
 0x5c9   : > { %v12299_v35 = vsub.f32 %v12145_v51, %v5486_v56  ;;  %v12302_v60 = vsub.f32 %v12158_v63, %v5486_v56  ;;  %v12305_v4 = vsub.f32 %v12177_v23, %v5486_v56  ;;  %v12308_v55 = vsub.f32 %v12190_v10, %v5486_v56  ;;  %v9122_v23 = vld [vmem:[#allocation7 + $0x38] sm:$0xff]   ;;  %8357 = vmatprep.subr.bf16.mxu0 %v9120_v25 }
 0x5ca   : > { %15178 = vst [vmem:[#allocation89_spill] sm:$0xff] %v12287_v6  ;;  %15179 = vst [vmem:[#allocation90_spill] sm:$0xff] %v12290_v39  ;;  %v12311_v1 = vsub.f32 %v12209_v2, %v5486_v56  ;;  %v12314_v46 = vsub.f32 %v12222_v30, %v5486_v56  ;;  %v12317_v51 = vsub.f32 %v12241_v59, %v5486_v56  ;;  %v5488_v49 = vmul.f32 0.0078125, %v5380_v26  ;;  %v9123_v2 = vld [vmem:[#allocation7 + $0xb8] sm:$0xff]  }
 0x5cb   : > { %15180 = vst [vmem:[#allocation39_spill] sm:$0xff] %v12293_v34  ;;  %15181 = vst [vmem:[#allocation72_spill] sm:$0xff] %v12296_v54  ;;  %v12320_v63 = vsub.f32 %v12254_v41, %v5486_v56  ;;  %v5622_v10 = vmul.f32 %v12275_v20, %v12275_v20  ;;  %v5630_v61 = vmul.f32 %v12278_v27, %v12278_v27  ;;  %8421 = vmatprep.subr.bf16.mxu1 %v9121_v33 }
 0x5cc   : > { %15182 = vst [vmem:[#allocation67_spill] sm:$0xff] %v12299_v35  ;;  %15183 = vst [vmem:[#allocation41_spill] sm:$0xff] %v12302_v60  ;;  %v5638_v30 = vmul.f32 %v12281_v7, %v12281_v7  ;;  %v5646_v41 = vmul.f32 %v12284_v0, %v12284_v0  ;;  %v5359_v59 = vadd.f32 %v5358_v62, %v5357_v9  ;;  %8358 = vmatpush3.bf16.msra.mxu0 %v9122_v23 }
 0x5cd   : > { %15184 = vst [vmem:[#allocation75_spill] sm:$0xff] %v12305_v4  ;;  %15185 = vst [vmem:[#allocation91_spill] sm:$0xff] %v12308_v55  ;;  %v5750_v32 = vadd.f32 %v5630_v61, %v5622_v10  ;;  %v12332_v45 = vsub.f32 %v12023_v13, %v5488_v49  ;;  %v12335_v31 = vsub.f32 %v12029_v36, %v5488_v49  ;;  %8422 = vmatpush3.bf16.msra.mxu1 %v9123_v2 }
 0x5ce   : > { %15186 = vst [vmem:[#allocation92_spill] sm:$0xff] %v12311_v1  ;;  %15187 = vst [vmem:[#allocation68_spill] sm:$0xff] %v12314_v46  ;;  %v12338_v24 = vsub.f32 %v12052_v53, %v5488_v49  ;;  %v12341_v15 = vsub.f32 %v12067_v58, %v5488_v49  ;;  %v12344_v48 = vsub.f32 %v12084_v43, %v5488_v49  ;;  %v5487_v37 = vmul.f32 0.0078125, %v5359_v59 }
 0x5cf   : > { %15188 = vst [vmem:[#allocation93_spill] sm:$0xff] %v12317_v51  ;;  %v12347_v9 = vsub.f32 %v12099_v19, %v5488_v49  ;;  %v12350_v28 = vsub.f32 %v12116_v52, %v5488_v49  ;;  %v5751_v13 = vadd.f32 %v5750_v32, %v5638_v30  ;;  %v12353_v36 = vsub.f32 %v12131_v21, %v5488_v49  ;;  %v12376_v21 = vld [vmem:[%s14396_s13] sm:$0xff] }
 0x5d0   : > { %15189 = vst [vmem:[#allocation94_spill] sm:$0xff] %v12341_v15  ;;  %15190 = vst [vmem:[#allocation76_spill] sm:$0xff] %v12344_v48  ;;  %v12356_v53 = vsub.f32 %v12148_v3, %v5488_v49  ;;  %v12359_v56 = vsub.f32 %v12163_v40, %v5488_v49  ;;  %v12362_v58 = vsub.f32 %v12180_v5, %v5488_v49 }
 0x5d1   : > { %15191 = vst [vmem:[#allocation95_spill] sm:$0xff] %v12347_v9  ;;  %15192 = vst [vmem:[#allocation96_spill] sm:$0xff] %v12350_v28  ;;  %v12365_v43 = vsub.f32 %v12195_v14, %v5488_v49  ;;  %v12368_v19 = vsub.f32 %v12212_v38, %v5488_v49  ;;  %v12371_v52 = vsub.f32 %v12227_v17, %v5488_v49 }
 0x5d2   : > { %15193 = vst [vmem:[#allocation97_spill] sm:$0xff] %v12353_v36  ;;  %15194 = vst [vmem:[#allocation98_spill] sm:$0xff] %v12356_v53  ;;  %v5654_v3 = vmul.f32 %v12287_v6, %v12287_v6  ;;  %v5752_v40 = vadd.f32 %v5751_v13, %v5646_v41  ;;  %v12381_v5 = vsub.f32 %v12244_v42, %v5488_v49  ;;  %v15203_v13 = vld [vmem:[#allocation65_spill] sm:$0xff] }
 0x5d3   : > { %15195 = vst [vmem:[#allocation108_spill] sm:$0xff] %v12359_v56  ;;  %15196 = vst [vmem:[#allocation107_spill] sm:$0xff] %v12362_v58  ;;  %v12384_v14 = vsub.f32 %v12259_v18, %v5488_v49  ;;  %v5624_v38 = vmul.f32 %v12332_v45, %v12332_v45  ;;  %v5632_v17 = vmul.f32 %v12335_v31, %v12335_v31 }
 0x5d4   : > { %15197 = vst [vmem:[#allocation77_spill] sm:$0xff] %v12365_v43  ;;  %15198 = vst [vmem:[#allocation99_spill] sm:$0xff] %v12368_v19  ;;  %v5662_v26 = vmul.f32 %v12290_v39, %v12290_v39  ;;  %v5753_v62 = vadd.f32 %v5752_v40, %v5654_v3  ;;  %v5670_v47 = vmul.f32 %v12293_v34, %v12293_v34  ;;  %v15205_v40 = vld [vmem:[#allocation83_spill] sm:$0xff] }
 0x5d5   : > { %15199 = vst [vmem:[#allocation100_spill] sm:$0xff] %v12371_v52  ;;  %15200 = vst [vmem:[#allocation101_spill] sm:$0xff] %v12381_v5  ;;  %v5678_v42 = vmul.f32 %v12296_v54, %v12296_v54  ;;  %v12398_v18 = vrot.slane %v12376_v21, %v15147_v50  ;;  %v5401_v11 = vadd.f32 %v5400_v44, %v12272_v29  ;;  %v15223_v54 = vld [vmem:[#allocation74_spill] sm:$0xff] }
 0x5d6   : > { %v5686_v25 = vmul.f32 %v12299_v35, %v12299_v35  ;;  %v5754_v33 = vadd.f32 %v5753_v62, %v5662_v26  ;;  %v5640_v23 = vmul.f32 %v12338_v24, %v12338_v24  ;;  %v5648_v10 = vmul.f32 %v12341_v15, %v12341_v15  ;;  %v15209_v26 = vld [vmem:[#allocation40_spill] sm:$0xff]  ;;  %v15219_v35 = vld [vmem:[#allocation35_spill] sm:$0xff] }
 0x5d7   : > { %15201 = vst [vmem:[#allocation102_spill] sm:$0xff] %v12398_v18  ;;  %v5656_v61 = vmul.f32 %v12344_v48, %v12344_v48  ;;  %v5792_v49 = vadd.f32 %v5632_v17, %v5624_v38  ;;  %v12410_v2 = vsub.f32 %v12026_v57, %v5487_v37  ;;  %v12413_v30 = vsub.f32 %v12032_v16, %v5487_v37  ;;  %v15207_v38 = vld [vmem:[#allocation34_spill] sm:$0xff]  ;;  %v15211_v62 = vld [vmem:[#allocation44_spill] sm:$0xff] }
 0x5d8   : > { %v5755_v29 = vadd.f32 %v5754_v33, %v5670_v47  ;;  %v12416_v41 = vsub.f32 %v12055_v12, %v5487_v37  ;;  %v12419_v59 = vsub.f32 %v12070_v8, %v5487_v37  ;;  %v12422_v44 = vsub.f32 %v12087_v22, %v5487_v37  ;;  %v15213_v47 = vld [vmem:[#allocation46_spill] sm:$0xff] }
 0x5d9   : > { %v5793_v32 = vadd.f32 %v5792_v49, %v5640_v23  ;;  %v12425_v3 = vsub.f32 %v15203_v13, %v5487_v37  ;;  %v12428_v57 = vsub.f32 %v15205_v40, %v5487_v37  ;;  %v12431_v16 = vsub.f32 %v15207_v38, %v5487_v37  ;;  %v15215_v23 = vld [vmem:[#allocation51_spill] sm:$0xff]  ;;  %v15217_v13 = vld [vmem:[#allocation57_spill] sm:$0xff] }
 0x5da   : > { %15202 = vst [vmem:[#allocation78_spill] sm:$0xff] %v12422_v44  ;;  %v5756_v17 = vadd.f32 %v5755_v29, %v5678_v42  ;;  %v12434_v12 = vsub.f32 %v15209_v26, %v5487_v37  ;;  %v12437_v8 = vsub.f32 %v15211_v62, %v5487_v37  ;;  %v12440_v22 = vsub.f32 %v15213_v47, %v5487_v37  ;;  %v15221_v26 = vld [vmem:[#allocation71_spill] sm:$0xff] }
 0x5db   : > { %15204 = vst [vmem:[#allocation103_spill] sm:$0xff] %v12425_v3  ;;  %15206 = vst [vmem:[#allocation104_spill] sm:$0xff] %v12428_v57  ;;  %v5794_v33 = vadd.f32 %v5793_v32, %v5648_v10  ;;  %v12443_v49 = vsub.f32 %v15215_v23, %v5487_v37  ;;  %v12446_v40 = vsub.f32 %v15217_v13, %v5487_v37 }
 0x5dc   : > { %15208 = vst [vmem:[#allocation43_spill] sm:$0xff] %v12431_v16  ;;  %15210 = vst [vmem:[#allocation45_spill] sm:$0xff] %v12434_v12  ;;  %v12449_v38 = vsub.f32 %v15219_v35, %v5487_v37  ;;  %v5694_v42 = vmul.f32 %v12302_v60, %v12302_v60  ;;  %v5757_v29 = vadd.f32 %v5756_v17, %v5686_v25  ;;  %v5489_v60 = vmul.f32 0.0078125, %v5401_v11  ;;  %v15228_v11 = vld [vmem:[#allocation53_spill] sm:$0xff] }
 0x5dd   : > { %15212 = vst [vmem:[#allocation79_spill] sm:$0xff] %v12437_v8  ;;  %15214 = vst [vmem:[#allocation80_spill] sm:$0xff] %v12440_v22  ;;  %v12454_v62 = vsub.f32 %v15221_v26, %v5487_v37  ;;  %v12457_v47 = vsub.f32 %v15223_v54, %v5487_v37  ;;  %v5702_v10 = vmul.f32 %v12305_v4, %v12305_v4 }
 0x5de   : > { %15216 = vst [vmem:[#allocation47_spill] sm:$0xff] %v12443_v49  ;;  %15218 = vst [vmem:[#allocation50_spill] sm:$0xff] %v12446_v40  ;;  %v5710_v32 = vmul.f32 %v12308_v55, %v12308_v55  ;;  %v5664_v35 = vmul.f32 %v12347_v9, %v12347_v9  ;;  %v5795_v23 = vadd.f32 %v5794_v33, %v5656_v61 }
 0x5df   : > { %15220 = vst [vmem:[#allocation81_spill] sm:$0xff] %v12449_v38  ;;  %15222 = vst [vmem:[#allocation82_spill] sm:$0xff] %v12454_v62  ;;  %v5718_v13 = vmul.f32 %v12311_v1, %v12311_v1  ;;  %v5758_v25 = vadd.f32 %v5757_v29, %v5694_v42  ;;  %v5623_v17 = vmul.f32 %v12410_v2, %v12410_v2 }
 0x5e0   : > { %v5631_v54 = vmul.f32 %v12413_v30, %v12413_v30  ;;  %v5726_v37 = vmul.f32 %v12314_v46, %v12314_v46  ;;  %v5734_v26 = vmul.f32 %v12317_v51, %v12317_v51  ;;  %v5672_v55 = vmul.f32 %v12350_v28, %v12350_v28 }
 0x5e1   : > { %v5796_v61 = vadd.f32 %v5795_v23, %v5664_v35  ;;  %v5742_v33 = vmul.f32 %v12320_v63, %v12320_v63  ;;  %v5759_v42 = vadd.f32 %v5758_v25, %v5702_v10  ;;  %v5680_v29 = vmul.f32 %v12353_v36, %v12353_v36 }
 0x5e2   : > { %v5688_v1 = vmul.f32 %v12356_v53, %v12356_v53  ;;  %v5696_v46 = vmul.f32 %v12359_v56, %v12359_v56  ;;  %v5704_v51 = vmul.f32 %v12362_v58, %v12362_v58  ;;  %v5712_v4 = vmul.f32 %v12365_v43, %v12365_v43  ;;  %v15224_v43 = vld [vmem:[#allocation70_spill] sm:$0xff] }
 0x5e3   : > { %v5797_v35 = vadd.f32 %v5796_v61, %v5672_v55  ;;  %v5760_v23 = vadd.f32 %v5759_v42, %v5710_v32  ;;  %v5639_v10 = vmul.f32 %v12416_v41, %v12416_v41  ;;  %v5771_v25 = vadd.f32 %v5631_v54, %v5623_v17  ;;  %v15226_v32 = vld [vmem:[#allocation52_spill] sm:$0xff]  ;;  %v15229_v42 = vld [vmem:[#allocation54_spill] sm:$0xff] }
 0x5e4   : > { %v5647_v53 = vmul.f32 %v12419_v59, %v12419_v59  ;;  %v5655_v56 = vmul.f32 %v12422_v44, %v12422_v44  ;;  %v5663_v58 = vmul.f32 %v12425_v3, %v12425_v3  ;;  %v12498_v55 = vsub.f32 %v15224_v43, %v5489_v60  ;;  %v15232_v43 = vld [vmem:[#allocation84_spill] sm:$0xff]  ;;  %v15246_v3 = vld [vmem:[#allocation73_spill] sm:$0xff] }
 0x5e5   : > { %v5798_v36 = vadd.f32 %v5797_v35, %v5680_v29  ;;  %v5761_v28 = vadd.f32 %v5760_v23, %v5718_v13  ;;  %v5772_v34 = vadd.f32 %v5771_v25, %v5639_v10  ;;  %v12501_v61 = vsub.f32 %v15226_v32, %v5489_v60  ;;  %v15230_v35 = vld [vmem:[#allocation55_spill] sm:$0xff]  ;;  %v15231_v13 = vld [vmem:[#allocation66_spill] sm:$0xff] }
 0x5e6   : > { %15225 = vst [vmem:[#allocation26_spill] sm:$0xff] %v12498_v55  ;;  %v12504_v54 = vsub.f32 %v15228_v11, %v5489_v60  ;;  %v12507_v29 = vsub.f32 %v15229_v42, %v5489_v60  ;;  %v12510_v9 = vsub.f32 %v15230_v35, %v5489_v60  ;;  %v12513_v23 = vsub.f32 %v15231_v13, %v5489_v60  ;;  %v15233_v32 = vld [vmem:[#allocation38_spill] sm:$0xff]  ;;  %v15236_v42 = vld [vmem:[#allocation64_spill] sm:$0xff] }
 0x5e7   : > { %15227 = vst [vmem:[#allocation28_spill] sm:$0xff] %v12501_v61  ;;  %v5799_v17 = vadd.f32 %v5798_v36, %v5688_v1  ;;  %v5762_v48 = vadd.f32 %v5761_v28, %v5726_v37  ;;  %v5773_v39 = vadd.f32 %v5772_v34, %v5647_v53  ;;  %v12516_v10 = vsub.f32 %v15232_v43, %v5489_v60  ;;  %v15234_v36 = vld [vmem:[#allocation42_spill] sm:$0xff]  ;;  %v12530_v34 = vld [vmem:[%s14397_s14] sm:$0xff]  ;;  %v15242_v43 = vld [vmem:[#allocation87_spill] sm:$0xff] }
 0x5e8   : > { %v12519_v1 = vsub.f32 %v15233_v32, %v5489_v60  ;;  %v12522_v11 = vsub.f32 %v15234_v36, %v5489_v60  ;;  %v12525_v6 = vsub.f32 %v15236_v42, %v5489_v60  ;;  %v15238_v37 = vld [vmem:[#allocation48_spill] sm:$0xff]  ;;  %v12539_v32 = vsub.f32 %v15242_v43, %v5489_v60  ;;  %v15244_v36 = vld [vmem:[#allocation37_spill] sm:$0xff] }
 0x5e9   : > { %v5800_v25 = vadd.f32 %v5799_v17, %v5696_v46  ;;  %v5763_v28 = vadd.f32 %v5762_v48, %v5734_v26  ;;  %v5774_v53 = vadd.f32 %v5773_v39, %v5655_v56  ;;  %v12533_v35 = vsub.f32 %v15238_v37, %v5489_v60  ;;  %v15240_v46 = vld [vmem:[#allocation56_spill] sm:$0xff] }
 0x5ea   : > { %15235 = vst [vmem:[#allocation85_spill] sm:$0xff] %v12522_v11  ;;  %15237 = vst [vmem:[#allocation86_spill] sm:$0xff] %v12525_v6  ;;  %v12536_v17 = vsub.f32 %v15240_v46, %v5489_v60  ;;  %v12542_v42 = vsub.f32 %v15244_v36, %v5489_v60  ;;  %v12545_v44 = vsub.f32 %v15246_v3, %v5489_v60  ;;  %v15248_v56 = vld [vmem:[#allocation88_spill] sm:$0xff]  ;;  %v15250_v46 = vld [vmem:[#allocation23_spill] sm:$0xff] }
 0x5eb   : > { %15239 = vst [vmem:[#allocation36_spill] sm:$0xff] %v12533_v35  ;;  %v5801_v13 = vadd.f32 %v5800_v25, %v5704_v51  ;;  %15243 = vst [vmem:[#allocation32_spill] sm:$0xff] %v12539_v32  ;;  %v5764_v15 = vadd.f32 %v5763_v28, %v5742_v33  ;;  %v5671_v39 = vmul.f32 %v12428_v57, %v12428_v57 }
 0x5ec   : > { %15241 = vst [vmem:[#allocation30_spill] sm:$0xff] %v12536_v17  ;;  %15245 = vst [vmem:[#allocation49_spill] sm:$0xff] %v12542_v42  ;;  %v5775_v48 = vadd.f32 %v5774_v53, %v5663_v58  ;;  %v12550_v26 = vsub.f32 %v15248_v56, %v5489_v60  ;;  %v12554_v51 = vrot.slane %v12530_v34, %v15147_v50 }
 0x5ed   : > { %15247 = vst [vmem:[#allocation105_spill] sm:$0xff] %v12545_v44  ;;  %v5720_v25 = vmul.f32 %v12368_v19, %v12368_v19  ;;  %v5802_v37 = vadd.f32 %v5801_v13, %v5712_v4  ;;  %v12560_v3 = vrot.slane %v12376_v21, %v15250_v46  ;;  %v5765_v33 = vrot.slane %v5764_v15, 4 }
 0x5ee   : > { %15249 = vst [vmem:[#allocation58_spill] sm:$0xff] %v12554_v51  ;;  %v12564_v28 = vrot.slane %v12530_v34, %v15250_v46  ;;  %v5679_v60 = vmul.f32 %v12431_v16, %v12431_v16  ;;  %v5776_v58 = vadd.f32 %v5775_v48, %v5671_v39  ;;  %v5728_v50 = vmul.f32 %v12371_v52, %v12371_v52  ;;  %v15253_v46 = vld [vmem:[#allocation22_spill] sm:$0xff] }
 0x5ef   : > { %15251 = vst [vmem:[#allocation106_spill] sm:$0xff] %v12560_v3  ;;  %v5803_v53 = vadd.f32 %v5802_v37, %v5720_v25  ;;  %v5625_v4 = vmul.f32 %v12498_v55, %v12498_v55  ;;  %v5633_v13 = vmul.f32 %v12501_v61, %v12501_v61  ;;  %v5766_v43 = vadd.f32 %v5765_v33, %v5764_v15  ;;  %v15255_v37 = vld [vmem:[#allocation20_spill] sm:$0xff] }
 0x5f0   : > { %15252 = vst [vmem:[#allocation59_spill] sm:$0xff] %v12564_v28  ;;  %v5687_v36 = vmul.f32 %v12434_v12, %v12434_v12  ;;  %v5777_v56 = vadd.f32 %v5776_v58, %v5679_v60  ;;  %v12578_v19 = vrot.slane %v12376_v21, %v15253_v46  ;;  %v5736_v39 = vmul.f32 %v12381_v5, %v12381_v5 }
 0x5f1   : > { %v5804_v48 = vadd.f32 %v5803_v53, %v5728_v50  ;;  %v12584_v25 = vrot.slane %v12530_v34, %v15253_v46  ;;  %v12587_v52 = vsub.s32 4, %v15255_v37  ;;  %v5767_v15 = vrot.slane %v5766_v43, 2 }
 0x5f2   : > { %15254 = vst [vmem:[#allocation60_spill] sm:$0xff] %v12578_v19  ;;  %v5695_v33 = vmul.f32 %v12437_v8, %v12437_v8  ;;  %v5778_v60 = vadd.f32 %v5777_v56, %v5687_v36  ;;  %v12592_v58 = vsub.s32 6, %v15255_v37  ;;  %v5744_v12 = vmul.f32 %v12384_v14, %v12384_v14 }
 0x5f3   : > { %15256 = vst [vmem:[#allocation31_spill] sm:$0xff] %v12587_v52  ;;  %v5805_v5 = vadd.f32 %v5804_v48, %v5736_v39  ;;  %v5641_v50 = vmul.f32 %v12504_v54, %v12504_v54  ;;  %v5813_v53 = vadd.f32 %v5633_v13, %v5625_v4  ;;  %v5768_v46 = vadd.f32 %v5767_v15, %v5766_v43  ;;  %v15260_v43 = vld [vmem:[#allocation69_spill] sm:$0xff] }
 0x5f4   : > { %15257 = vst [vmem:[#allocation61_spill] sm:$0xff] %v12592_v58  ;;  %v5703_v16 = vmul.f32 %v12440_v22, %v12440_v22  ;;  %v5779_v57 = vadd.f32 %v5778_v60, %v5695_v33  ;;  %v12601_v61 = vsub.s32 5, %v15255_v37  ;;  %v5649_v56 = vmul.f32 %v12507_v29, %v12507_v29 }
 0x5f5   : > { %v5806_v36 = vadd.f32 %v5805_v5, %v5744_v12  ;;  %v5814_v8 = vadd.f32 %v5813_v53, %v5641_v50  ;;  %v12606_v55 = vsub.s32 7, %v15255_v37  ;;  %v5769_v39 = vrot.slane %v5768_v46, 1 }
 0x5f6   : > { %15258 = vst [vmem:[#allocation62_spill] sm:$0xff] %v12601_v61  ;;  %v5711_v4 = vmul.f32 %v12443_v49, %v12443_v49  ;;  %v5780_v13 = vadd.f32 %v5779_v57, %v5703_v16  ;;  %v12612_v48 = vrot.slane %v15260_v43, %v12587_v52  ;;  %v5657_v5 = vmul.f32 %v12510_v9, %v12510_v9 }
 0x5f7   : > { %15259 = vst [vmem:[#allocation63_spill] sm:$0xff] %v12606_v55  ;;  %v5807_v15 = vrot.slane %v5806_v36, 4  ;;  %v5815_v12 = vadd.f32 %v5814_v8, %v5649_v56  ;;  %v12618_v33 = vrot.slane %v15260_v43, %v12592_v58  ;;  %v5770_v37 = vadd.f32 %v5769_v39, %v5768_v46 }
 0x5f8   : > { %v5719_v60 = vmul.f32 %v12446_v40, %v12446_v40  ;;  %v5781_v50 = vadd.f32 %v5780_v13, %v5711_v4  ;;  %v12624_v57 = vrot.slane %v15260_v43, %v12601_v61  ;;  %v5665_v53 = vmul.f32 %v12513_v23, %v12513_v23 }
 0x5f9   : > { %v5808_v16 = vadd.f32 %v5807_v15, %v5806_v36  ;;  %v5816_v52 = vadd.f32 %v5815_v12, %v5657_v5  ;;  %v12630_v8 = vrot.slane %v15260_v43, %v12606_v55  ;;  %v5918_v56 = vmul.f32 0.0078125, %v5770_v37 }
 0x5fa   : > { %v5727_v46 = vmul.f32 %v12449_v38, %v12449_v38  ;;  %v5735_v39 = vmul.f32 %v12454_v62, %v12454_v62  ;;  %v5782_v4 = vadd.f32 %v5781_v50, %v5719_v60  ;;  %v5743_v36 = vmul.f32 %v12457_v47, %v12457_v47 }
 0x5fb   : > { %v5809_v13 = vrot.slane %v5808_v16, 2  ;;  %v5673_v15 = vmul.f32 %v12516_v10, %v12516_v10  ;;  %v5817_v5 = vadd.f32 %v5816_v52, %v5665_v53  ;;  %v5926_v40 = vadd.f32 0.8, %v5918_v56 }
 0x5fc   : > { %v5011_v12 = vpop.f32.mrb[80].mxu0  ;;  %v5783_v43 = vadd.f32 %v5782_v4, %v5727_v46  ;;  %v5681_v37 = vmul.f32 %v12519_v1, %v12519_v1  ;;  %v5689_v38 = vmul.f32 %v12522_v11, %v12522_v11  ;;  %v5697_v60 = vmul.f32 %v12525_v6, %v12525_v6 }
 0x5fd   : > { %v5013_v55 = vpop.f32.mrb[81].mxu0  ;;  %v5810_v62 = vadd.f32 %v5809_v13, %v5808_v16  ;;  %v5818_v50 = vadd.f32 %v5817_v5, %v5673_v15  ;;  %v12647_v61 = vadd.f32 %v5011_v12, %v12612_v48  ;;  %9168 = vrsqrt.f32 %v5926_v40 }
 0x5fe   : > { %v5237_v58 = vpop.f32.mrb[96].mxu1  ;;  %v5015_v52 = vpop.f32.mrb[82].mxu0  ;;  %v5784_v53 = vadd.f32 %v5783_v43, %v5735_v39  ;;  %v12650_v56 = vadd.f32 %v5013_v55, %v12624_v57 }
 0x5ff   : > { %15261 = vst [vmem:[#allocation25_spill] sm:$0xff] %v12647_v61  ;;  %v5239_v46 = vpop.f32.mrb[97].mxu1  ;;  %v12653_v4 = vadd.f32 %v5015_v52, %v12612_v48  ;;  %v5017_v49 = vpop.f32.mrb[83].mxu0  ;;  %v5811_v16 = vrot.slane %v5810_v62, 1  ;;  %v5819_v13 = vadd.f32 %v5818_v50, %v5681_v37  ;;  %v12656_v22 = vadd.f32 %v5237_v58, %v12618_v33 }
 0x600   : > { %15262 = vst [vmem:[#allocation27_spill] sm:$0xff] %v12650_v56  ;;  %v5241_v15 = vpop.f32.mrb[98].mxu1  ;;  %v12659_v5 = vadd.f32 %v5017_v49, %v12624_v57  ;;  %v5785_v12 = vadd.f32 %v5784_v53, %v5743_v36  ;;  %v12662_v40 = vadd.f32 %v5239_v46, %v12630_v8  ;;  %v5705_v36 = vmul.f32 %v12533_v35, %v12533_v35  ;;  %v15269_v53 = vld [vmem:[#allocation24_spill] sm:$0xff] }
 0x601   : > { %15263 = vst [vmem:[#allocation29_spill] sm:$0xff] %v12653_v4  ;;  %15264 = vst [vmem:[#allocation33_spill] sm:$0xff] %v12656_v22  ;;  %v5402_v55 = vadd.f32 %v12653_v4, %v12647_v61  ;;  %v12667_v39 = vadd.f32 %v5241_v15, %v12618_v33  ;;  %v5243_v43 = vpop.f32.mrb[99].mxu1  ;;  %v5812_v52 = vadd.f32 %v5811_v16, %v5810_v62 }
 0x602   : > { %15265 = vst [vmem:[#allocation21_spill] sm:$0xff] %v12659_v5  ;;  %15266 = vst [vmem:[#allocation65_spill] sm:$0xff] %v12662_v40  ;;  %v5820_v37 = vadd.f32 %v5819_v13, %v5689_v38  ;;  %v5423_v58 = vadd.f32 %v12659_v5, %v12650_v56  ;;  %v12672_v50 = vadd.f32 %v5243_v43, %v12630_v8  ;;  %v5786_v49 = vrot.slane %v5785_v12, 4 }
 0x603   : > { %15267 = vst [vmem:[#allocation83_spill] sm:$0xff] %v12667_v39  ;;  %v12678_v46 = vrot.slane %v12376_v21, %v15269_v53  ;;  %v5444_v15 = vadd.f32 %v12667_v39, %v12656_v22  ;;  %v5920_v4 = vmul.f32 0.0078125, %v5812_v52  ;;  %v5713_v38 = vmul.f32 %v12536_v17, %v12536_v17 }
 0x604   : > { %15268 = vst [vmem:[#allocation34_spill] sm:$0xff] %v12672_v50  ;;  %v5821_v62 = vadd.f32 %v5820_v37, %v5697_v60  ;;  %v5465_v16 = vadd.f32 %v12672_v50, %v12662_v40  ;;  %v5021_v13 = vpop.f32.mrb[84].mxu0  ;;  %v5787_v43 = vadd.f32 %v5786_v49, %v5785_v12  ;;  %v5721_v5 = vmul.f32 %v12539_v32, %v12539_v32 }
 0x605   : > { %v5729_v21 = vmul.f32 %v12542_v42, %v12542_v42  ;;  %v12691_v56 = vadd.f32 %v5021_v13, %v12612_v48  ;;  %v5023_v39 = vpop.f32.mrb[85].mxu0  ;;  %v5928_v52 = vadd.f32 0.8, %v5920_v4  ;;  %v5737_v22 = vmul.f32 %v12545_v44, %v12545_v44 }
 0x606   : > { %v5822_v60 = vadd.f32 %v5821_v62, %v5705_v36  ;;  %v5247_v37 = vpop.f32.mrb[100].mxu1  ;;  %v12696_v50 = vadd.f32 %v5023_v39, %v12624_v57  ;;  %v5025_v12 = vpop.f32.mrb[86].mxu0  ;;  %v5788_v49 = vrot.slane %v5787_v43, 2 }
 0x607   : > { %15270 = vst [vmem:[#allocation40_spill] sm:$0xff] %v12691_v56  ;;  %v5403_v40 = vadd.f32 %v12691_v56, %v5402_v55  ;;  %v12700_v32 = vadd.f32 %v5247_v37, %v12618_v33  ;;  %v5249_v42 = vpop.f32.mrb[101].mxu1  ;;  %v12703_v13 = vadd.f32 %v5025_v12, %v12612_v48  ;;  %v5027_v4 = vpop.f32.mrb[87].mxu0  ;;  %9170 = vrsqrt.f32 %v5928_v52 }
 0x608   : > { %15271 = vst [vmem:[#allocation44_spill] sm:$0xff] %v12696_v50  ;;  %v5823_v61 = vadd.f32 %v5822_v60, %v5713_v38  ;;  %v5424_v36 = vadd.f32 %v12696_v50, %v5423_v58  ;;  %v12707_v62 = vadd.f32 %v5249_v42, %v12630_v8  ;;  %v5251_v39 = vpop.f32.mrb[102].mxu1  ;;  %v12709_v44 = vpop.eup %9168  ;;  %v5789_v17 = vadd.f32 %v5788_v49, %v5787_v43 }
 0x609   : > { %15272 = vst [vmem:[#allocation46_spill] sm:$0xff] %v12700_v32  ;;  %15273 = vst [vmem:[#allocation51_spill] sm:$0xff] %v12703_v13  ;;  %v5445_v55 = vadd.f32 %v12700_v32, %v5444_v15  ;;  %v5404_v37 = vadd.f32 %v12703_v13, %v5403_v40  ;;  %v12714_v56 = vadd.f32 %v5251_v39, %v12618_v33  ;;  %v5253_v12 = vpop.f32.mrb[103].mxu1 }
 0x60a   : > { %15274 = vst [vmem:[#allocation57_spill] sm:$0xff] %v12707_v62  ;;  %v6062_v38 = vmul.f32 %v12709_v44, %v12320_v63  ;;  %v5824_v52 = vadd.f32 %v5823_v61, %v5721_v5  ;;  %v5466_v58 = vadd.f32 %v12707_v62, %v5465_v16  ;;  %v12720_v42 = vadd.f32 %v5027_v4, %v12624_v57 }
 0x60b   : > { %15275 = vst [vmem:[#allocation35_spill] sm:$0xff] %v12714_v56  ;;  %v5790_v60 = vrot.slane %v5789_v17, 1  ;;  %v5446_v43 = vadd.f32 %v12714_v56, %v5445_v55  ;;  %v12724_v15 = vadd.f32 %v5253_v12, %v12630_v8  ;;  %v5942_v40 = vmul.f32 %v12709_v44, %v12275_v20 }
 0x60c   : > { %15276 = vst [vmem:[#allocation71_spill] sm:$0xff] %v12720_v42  ;;  %v5745_v49 = vmul.f32 %v12550_v26, %v12550_v26  ;;  %v5825_v39 = vadd.f32 %v5824_v52, %v5729_v21  ;;  %v5425_v63 = vadd.f32 %v12720_v42, %v5424_v36  ;;  %v5031_v61 = vpop.f32.mrb[88].mxu0  ;;  %v5950_v5 = vmul.f32 %v12709_v44, %v12278_v27 }
 0x60d   : > { %15277 = vst [vmem:[#allocation74_spill] sm:$0xff] %v12724_v15  ;;  %v6231_v16 = vmul.f32 %v12398_v18, %v6062_v38  ;;  %v5791_v4 = vadd.f32 %v5790_v60, %v5789_v17  ;;  %v5467_v55 = vadd.f32 %v12724_v15, %v5466_v58  ;;  %v12736_v12 = vadd.f32 %v5031_v61, %v12612_v48  ;;  %v5033_v62 = vpop.f32.mrb[89].mxu0 }
 0x60e   : > { %v5826_v20 = vadd.f32 %v5825_v39, %v5737_v22  ;;  %v5257_v50 = vpop.f32.mrb[104].mxu1  ;;  %v12739_v56 = vadd.f32 %v5033_v62, %v12624_v57  ;;  %v5035_v21 = vpop.f32.mrb[90].mxu0  ;;  %v6111_v36 = vmul.f32 %v12398_v18, %v5942_v40  ;;  %v6119_v52 = vmul.f32 %v12398_v18, %v5950_v5 }
 0x60f   : > { %15278 = vst [vmem:[#allocation70_spill] sm:$0xff] %v12736_v12  ;;  %v5919_v27 = vmul.f32 0.0078125, %v5791_v4  ;;  %v5405_v38 = vadd.f32 %v12736_v12, %v5404_v37  ;;  %v12745_v17 = vadd.f32 %v5257_v50, %v12618_v33  ;;  %v5259_v58 = vpop.f32.mrb[105].mxu1  ;;  %v12748_v60 = vadd.f32 %v5035_v21, %v12612_v48  ;;  %v5037_v22 = vpop.f32.mrb[91].mxu0 }
 0x610   : > { %15279 = vst [vmem:[#allocation52_spill] sm:$0xff] %v12739_v56  ;;  %v5827_v39 = vadd.f32 %v5826_v20, %v5745_v49  ;;  %v5426_v62 = vadd.f32 %v12739_v56, %v5425_v63  ;;  %v12752_v61 = vadd.f32 %v5259_v58, %v12630_v8  ;;  %v5261_v40 = vpop.f32.mrb[106].mxu1  ;;  %v12755_v5 = vadd.f32 %v5037_v22, %v12624_v57 }
 0x611   : > { %15280 = vst [vmem:[#allocation53_spill] sm:$0xff] %v12745_v17  ;;  %15281 = vst [vmem:[#allocation54_spill] sm:$0xff] %v12748_v60  ;;  %v5927_v4 = vadd.f32 0.8, %v5919_v27  ;;  %v5447_v37 = vadd.f32 %v12745_v17, %v5446_v43  ;;  %v5406_v50 = vadd.f32 %v12748_v60, %v5405_v38  ;;  %v12760_v15 = vadd.f32 %v5261_v40, %v12618_v33  ;;  %v5263_v21 = vpop.f32.mrb[107].mxu1  ;;  %v12762_v42 = vpop.eup %9170 }
 0x612   : > { %15282 = vst [vmem:[#allocation55_spill] sm:$0xff] %v12752_v61  ;;  %15283 = vst [vmem:[#allocation66_spill] sm:$0xff] %v12755_v5  ;;  %v5828_v49 = vrot.slane %v5827_v39, 4  ;;  %v5468_v63 = vadd.f32 %v12752_v61, %v5467_v55  ;;  %v5427_v20 = vadd.f32 %v12755_v5, %v5426_v62  ;;  %v12767_v58 = vadd.f32 %v5263_v21, %v12630_v8 }
 0x613   : > { %15284 = vst [vmem:[#allocation84_spill] sm:$0xff] %v12760_v15  ;;  %15285 = vst [vmem:[#allocation38_spill] sm:$0xff] %v12762_v42  ;;  %9172 = vrsqrt.f32 %v5927_v4  ;;  %v12771_v43 = vrot.slane %v12530_v34, %v15269_v53  ;;  %v5448_v27 = vadd.f32 %v12760_v15, %v5447_v37  ;;  %v6280_v38 = vadd.f32 %v12554_v51, %v6111_v36 }
 0x614   : > { %15286 = vst [vmem:[#allocation42_spill] sm:$0xff] %v12767_v58  ;;  %v5829_v22 = vadd.f32 %v5828_v49, %v5827_v39  ;;  %v5469_v40 = vadd.f32 %v12767_v58, %v5468_v63  ;;  %v6288_v56 = vadd.f32 %v12554_v51, %v6119_v52  ;;  %v5944_v55 = vmul.f32 %v12762_v42, %v12332_v45  ;;  %v5041_v62 = vpop.f32.mrb[92].mxu0 }
 0x615   : > { %v12780_v21 = vadd.f32 %v12554_v51, %v6231_v16  ;;  %vm6408_vm1 = vcmp.gt.f32.partialorder %v6280_v38, 0.0  ;;  %v6536_v4 = vmul.f32 0.2, %v6280_v38  ;;  %v5952_v34 = vmul.f32 %v12762_v42, %v12335_v31  ;;  %v5043_v53 = vpop.f32.mrb[93].mxu0 }
 0x616   : > { %v5830_v37 = vrot.slane %v5829_v22, 2  ;;  %vm6416_vm2 = vcmp.gt.f32.partialorder %v6288_v56, 0.0  ;;  %v6544_v36 = vmul.f32 0.2, %v6288_v56  ;;  %v6113_v39 = vmul.f32 %v12560_v3, %v5944_v55  ;;  %v5267_v49 = vpop.f32.mrb[108].mxu1  ;;  %v5045_v52 = vpop.f32.mrb[94].mxu0 }
 0x617   : > { %15287 = vst [vmem:[#allocation64_spill] sm:$0xff] %v12780_v21  ;;  %v6064_v45 = vmul.f32 %v12762_v42, %v12384_v14  ;;  %v12787_v63 = vsel %vm6408_vm1, %v6280_v38, %v6536_v4  ;;  %v6121_v16 = vmul.f32 %v12560_v3, %v5952_v34  ;;  %v12791_v21 = vadd.f32 %v5041_v62, %v12612_v48  ;;  %v5269_v58 = vpop.f32.mrb[109].mxu1  ;;  %v5047_v31 = vpop.f32.mrb[95].mxu0 }
 0x618   : > { %v5831_v61 = vadd.f32 %v5830_v37, %v5829_v22  ;;  %v12793_v5 = vsel %vm6416_vm2, %v6288_v56, %v6544_v36  ;;  %v6282_v15 = vadd.f32 %v12564_v28, %v6113_v39  ;;  %v12797_v55 = vadd.f32 %v5267_v49, %v12618_v33  ;;  %v5271_v17 = vpop.f32.mrb[110].mxu1 }
 0x619   : > { %15288 = vst [vmem:[#allocation48_spill] sm:$0xff] %v12791_v21  ;;  %v6290_v38 = vadd.f32 %v12564_v28, %v6121_v16  ;;  %v5407_v4 = vadd.f32 %v12791_v21, %v5406_v50  ;;  %v12804_v62 = vadd.f32 %v5043_v53, %v12624_v57  ;;  %v5273_v34 = vpop.f32.mrb[111].mxu1  ;;  %v12809_v49 = vadd.f32 %v5269_v58, %v12630_v8 }
 0x61a   : > { %15289 = vst [vmem:[#allocation56_spill] sm:$0xff] %v12797_v55  ;;  %v5832_v22 = vrot.slane %v5831_v61, 1  ;;  %vm6410_vm3 = vcmp.gt.f32.partialorder %v6282_v15, 0.0  ;;  %v6538_v56 = vmul.f32 0.2, %v6282_v15  ;;  %v5449_v37 = vadd.f32 %v12797_v55, %v5448_v27 }
 0x61b   : > { %15290 = vst [vmem:[#allocation87_spill] sm:$0xff] %v12804_v62  ;;  %vm6418_vm4 = vcmp.gt.f32.partialorder %v6290_v38, 0.0  ;;  %v6546_v36 = vmul.f32 0.2, %v6290_v38  ;;  %v5428_v39 = vadd.f32 %v12804_v62, %v5427_v20  ;;  %15291 = vst [vmem:[#allocation37_spill] sm:$0xff] %v12809_v49  ;;  %v6233_v16 = vmul.f32 %v12560_v3, %v6064_v45 }
 0x61c   : > { %v5833_v14 = vadd.f32 %v5832_v22, %v5831_v61  ;;  %v12812_v50 = vsel %vm6410_vm3, %v6282_v15, %v6538_v56  ;;  %v12815_v53 = vadd.f32 %v5045_v52, %v12612_v48  ;;  %v12817_v32 = vpop.f32.mrb[96].mxu0  ;;  %v5470_v55 = vadd.f32 %v12809_v49, %v5469_v40 }
 0x61d   : > { %v12819_v21 = vpop.eup %9172  ;;  %v12821_v27 = vsel %vm6418_vm4, %v6290_v38, %v6546_v36  ;;  %v12825_v20 = vadd.f32 %v5271_v17, %v12618_v33  ;;  %v12828_v58 = vadd.f32 %v5047_v31, %v12624_v57  ;;  %v12830_v61 = vpop.f32.mrb[97].mxu0  ;;  %v12837_v38 = vadd.f32 %v5273_v34, %v12630_v8 }
 0x61e   : > { %15292 = vst [vmem:[#allocation73_spill] sm:$0xff] %v12815_v53  ;;  %v5921_v15 = vmul.f32 0.0078125, %v5833_v14  ;;  %v5943_v52 = vmul.f32 %v12819_v21, %v12410_v2  ;;  %v5951_v45 = vmul.f32 %v12819_v21, %v12413_v30  ;;  %v5277_v22 = vpop.f32.mrb[112].mxu1  ;;  %v12839_v40 = vpop.f32.mrb[98].mxu0  ;;  %v5959_v31 = vmul.f32 %v12819_v21, %v12416_v41 }
 0x61f   : > { %15293 = vst [vmem:[#allocation88_spill] sm:$0xff] %v12825_v20  ;;  %15294 = vst [vmem:[#allocation23_spill] sm:$0xff] %v12828_v58  ;;  %v5967_v14 = vmul.f32 %v12819_v21, %v12419_v59  ;;  %v5408_v2 = vadd.f32 %v12815_v53, %v5407_v4  ;;  %v12848_v56 = vpop.f32.mrb[113].mxu1  ;;  %v12850_v30 = vpop.f32.mrb[99].mxu0  ;;  %v12853_v34 = vadd.f32 %v12564_v28, %v6233_v16 }
 0x620   : > { %15295 = vst [vmem:[#allocation22_spill] sm:$0xff] %v12837_v38  ;;  %v5929_v36 = vadd.f32 0.8, %v5921_v15  ;;  %v6112_v49 = vmul.f32 %v12578_v19, %v5943_v52  ;;  %v6120_v17 = vmul.f32 %v12578_v19, %v5951_v45  ;;  %v12857_v62 = vpop.f32.mrb[114].mxu1  ;;  %v6128_v41 = vmul.f32 %v12578_v19, %v5959_v31 }
 0x621   : > { %15296 = vst [vmem:[#allocation20_spill] sm:$0xff] %v12853_v34  ;;  %v6136_v59 = vmul.f32 %v12578_v19, %v5967_v14  ;;  %v5450_v4 = vadd.f32 %v12825_v20, %v5449_v37  ;;  %v12863_v53 = vadd.f32 %v12828_v58, %v5428_v39  ;;  %v12865_v60 = vpop.f32.mrb[115].mxu1  ;;  %v6063_v16 = vmul.f32 %v12819_v21, %v12457_v47 }
 0x622   : > { %9174 = vrsqrt.f32 %v5929_v36  ;;  %v6281_v15 = vadd.f32 %v12584_v25, %v6112_v49  ;;  %v6289_v52 = vadd.f32 %v12584_v25, %v6120_v17  ;;  %v6297_v45 = vadd.f32 %v12584_v25, %v6128_v41 }
 0x623   : > { %v6305_v31 = vadd.f32 %v12584_v25, %v6136_v59  ;;  %v12874_v14 = vadd.f32 %v12837_v38, %v5470_v55  ;;  %v5958_v37 = vmul.f32 %v12709_v44, %v12281_v7  ;;  %v5966_v41 = vmul.f32 %v12709_v44, %v12284_v0 }
 0x624   : > { %vm6409_vm5 = vcmp.gt.f32.partialorder %v6281_v15, 0.0  ;;  %vm6417_vm6 = vcmp.gt.f32.partialorder %v6289_v52, 0.0  ;;  %v6537_v39 = vmul.f32 0.2, %v6281_v15  ;;  %v6545_v34 = vmul.f32 0.2, %v6289_v52 }
 0x625   : > { %vm6425_vm7 = vcmp.gt.f32.partialorder %v6297_v45, 0.0  ;;  %vm6433_vm8 = vcmp.gt.f32.partialorder %v6305_v31, 0.0  ;;  %v6553_v47 = vmul.f32 0.2, %v6297_v45  ;;  %v6561_v49 = vmul.f32 0.2, %v6305_v31 }
 0x626   : > { %v6665_v36 = vsel %vm6409_vm5, %v6281_v15, %v6537_v39  ;;  %v6673_v17 = vsel %vm6417_vm6, %v6289_v52, %v6545_v34  ;;  %v6127_v59 = vmul.f32 %v12398_v18, %v5958_v37  ;;  %v12881_v55 = vpop.f32.mrb[100].mxu0  ;;  %v12883_v38 = vpop.f32.mrb[116].mxu1  ;;  %v5960_v12 = vmul.f32 %v12762_v42, %v12338_v24  ;;  %v15297_v52 = vld [vmem:[#allocation94_spill] sm:$0xff] }
 0x627   : > { %v6922_v7 = vpack.c.bf16 %v6673_v17, %v6665_v36  ;;  %v6681_v58 = vsel %vm6425_vm7, %v6297_v45, %v6553_v47  ;;  %v6689_v20 = vsel %vm6433_vm8, %v6305_v31, %v6561_v49  ;;  %v12887_v13 = vpop.f32.mrb[101].mxu0  ;;  %v12889_v35 = vpop.f32.mrb[117].mxu1  ;;  %v6135_v15 = vmul.f32 %v12398_v18, %v5966_v41 }
 0x628   : > { %v6930_v34 = vpack.c.bf16 %v6689_v20, %v6681_v58  ;;  %v6296_v0 = vadd.f32 %v12554_v51, %v6127_v59  ;;  %v5968_v37 = vmul.f32 %v12762_v42, %v15297_v52  ;;  %v12895_v39 = vpop.f32.mrb[102].mxu0  ;;  %v12897_v36 = vpop.f32.mrb[118].mxu1  ;;  %v12900_v45 = vmul.f32 %v12578_v19, %v6063_v16  ;;  %v15302_v59 = vld [vmem:[#allocation78_spill] sm:$0xff] }
 0x629   : > { %7407 = vmatprep.mubr.bf16.mxu0 %v6922_v7  ;;  %v6129_v24 = vmul.f32 %v12560_v3, %v5960_v12  ;;  %v12905_v20 = vadd.f32 %v12817_v32, %v12612_v48  ;;  %v12908_v58 = vadd.f32 %v5277_v22, %v12618_v33  ;;  %v12910_v31 = vpop.f32.mrb[103].mxu0  ;;  %v12912_v47 = vpop.f32.mrb[119].mxu1  ;;  %v15301_v49 = vpack.c.bf16 %v12793_v5, %v12787_v63 }
 0x62a   : > { %15298 = vst [vmem:[#allocation69_spill] sm:$0xff] %v12900_v45  ;;  %v6304_v16 = vadd.f32 %v12554_v51, %v6135_v15  ;;  %vm6424_vm9 = vcmp.gt.f32.partialorder %v6296_v0, 0.0  ;;  %v6552_v17 = vmul.f32 0.2, %v6296_v0  ;;  %v6137_v12 = vmul.f32 %v12560_v3, %v5968_v37 }
 0x62b   : > { %15299 = vst [vmem:[#allocation24_spill] sm:$0xff] %v12905_v20  ;;  %15300 = vst [vmem:[#allocation94_spill] sm:$0xff] %v12908_v58  ;;  %7408 = vmatmul.mubr.bf16.vlgmr.msra.gmra.mrb[112].mxu0 %v15301_v49  ;;  %v6298_v32 = vadd.f32 %v12564_v28, %v6129_v24  ;;  %v12921_v22 = vadd.f32 %v12905_v20, %v5408_v2  ;;  %v12924_v41 = vadd.f32 %v12908_v58, %v5450_v4  ;;  %v15304_v2 = vld [vmem:[#allocation26_spill] sm:$0xff]  ;;  %v15305_v4 = vld [vmem:[#allocation28_spill] sm:$0xff] }
 0x62c   : > { %7415 = vmatprep.mubr.bf16.mxu0 %v6930_v34  ;;  %v5975_v7 = vmul.f32 %v12819_v21, %v15302_v59  ;;  %v12928_v5 = vpop.eup %9174  ;;  %vm6432_vm10 = vcmp.gt.f32.partialorder %v6304_v16, 0.0  ;;  %v6560_v63 = vmul.f32 0.2, %v6304_v16  ;;  %v6680_v15 = vsel %vm6424_vm9, %v6296_v0, %v6552_v17  ;;  %v12931_v37 = vpop.f32.mrb[104].mxu0 }
 0x62d   : > { %v6306_v52 = vadd.f32 %v12564_v28, %v6137_v12  ;;  %15303 = vst [vmem:[#allocation78_spill] sm:$0xff] %v12931_v37  ;;  %v6065_v34 = vmul.f32 %v12928_v5, %v12550_v26  ;;  %v5945_v24 = vmul.f32 %v12928_v5, %v15304_v2  ;;  %v5953_v49 = vmul.f32 %v12928_v5, %v15305_v4  ;;  %v12941_v58 = vpop.f32.mrb[105].mxu0  ;;  %v15307_v12 = vld [vmem:[#allocation103_spill] sm:$0xff] }
 0x62e   : > { %v5961_v59 = vmul.f32 %v12928_v5, %v12504_v54  ;;  %15306 = vst [vmem:[#allocation26_spill] sm:$0xff] %v12941_v58  ;;  %v5969_v0 = vmul.f32 %v12928_v5, %v12507_v29  ;;  %v6688_v17 = vsel %vm6432_vm10, %v6304_v16, %v6560_v63  ;;  %vm6426_vm11 = vcmp.gt.f32.partialorder %v6298_v32, 0.0  ;;  %v12947_v26 = vpop.f32.mrb[120].mxu1  ;;  %v12949_v45 = vpop.f32.mrb[106].mxu0 }
 0x62f   : > { %v5983_v20 = vmul.f32 %v12819_v21, %v15307_v12  ;;  %15308 = vst [vmem:[#allocation28_spill] sm:$0xff] %v12947_v26  ;;  %15309 = vst [vmem:[#allocation103_spill] sm:$0xff] %v12949_v45  ;;  %v6114_v2 = vmul.f32 %v12678_v46, %v5945_v24  ;;  %v6122_v4 = vmul.f32 %v12678_v46, %v5953_v49  ;;  %vm6434_vm12 = vcmp.gt.f32.partialorder %v6306_v52, 0.0  ;;  %v12954_v58 = vpop.f32.mrb[121].mxu1  ;;  %v12956_v6 = vpop.f32.mrb[107].mxu0 }
 0x630   : > { %v6130_v54 = vmul.f32 %v12678_v46, %v5961_v59  ;;  %15310 = vst [vmem:[#allocation109_spill] sm:$0xff] %v12954_v58  ;;  %15311 = vst [vmem:[#allocation110_spill] sm:$0xff] %v12956_v6  ;;  %v6138_v29 = vmul.f32 %v12678_v46, %v5969_v0  ;;  %v6929_v16 = vpack.c.bf16 %v6688_v17, %v6680_v15  ;;  %v6554_v63 = vmul.f32 0.2, %v6298_v32  ;;  %v12959_v11 = vpop.f32.mrb[122].mxu1 }
 0x631   : > { %v6562_v12 = vmul.f32 0.2, %v6306_v52  ;;  %15312 = vst [vmem:[#allocation111_spill] sm:$0xff] %v12959_v11  ;;  %v12962_v45 = vmul.f32 %v12678_v46, %v6065_v34  ;;  %v6283_v24 = vadd.f32 %v12771_v43, %v6114_v2  ;;  %v6291_v49 = vadd.f32 %v12771_v43, %v6122_v4  ;;  %v12967_v26 = vpop.f32.mrb[123].mxu1 }
 0x632   : > { %v6299_v59 = vadd.f32 %v12771_v43, %v6130_v54  ;;  %15314 = vst [vmem:[#allocation113_spill] sm:$0xff] %v12967_v26  ;;  %v6307_v6 = vadd.f32 %v12771_v43, %v6138_v29  ;;  %v12971_v15 = vsel %vm6426_vm11, %v6298_v32, %v6554_v63  ;;  %v6144_v34 = vmul.f32 %v12578_v19, %v5975_v7 }
 0x633   : > { %15313 = vst [vmem:[#allocation112_spill] sm:$0xff] %v12962_v45  ;;  %7416 = vmatmul.mubr.bf16.gmra.mrb[116].mxu0 %v6929_v16  ;;  %v12974_v0 = vsel %vm6434_vm12, %v6306_v52, %v6562_v12  ;;  %vm6411_vm13 = vcmp.gt.f32.partialorder %v6283_v24, 0.0  ;;  %vm6419_vm14 = vcmp.gt.f32.partialorder %v6291_v49, 0.0  ;;  %v6539_v17 = vmul.f32 0.2, %v6283_v24 }
 0x634   : > { %v6547_v2 = vmul.f32 0.2, %v6291_v49  ;;  %vm6427_vm15 = vcmp.gt.f32.partialorder %v6299_v59, 0.0  ;;  %vm6435_vm0 = vcmp.gt.f32.partialorder %v6307_v6, 0.0  ;;  %v6555_v4 = vmul.f32 0.2, %v6299_v59 }
 0x635   : > { %v6563_v54 = vmul.f32 0.2, %v6307_v6  ;;  %v6667_v45 = vsel %vm6411_vm13, %v6283_v24, %v6539_v17  ;;  %v6931_v29 = vpack.c.bf16 %v12974_v0, %v12971_v15  ;;  %v6152_v32 = vmul.f32 %v12578_v19, %v5983_v20  ;;  %v12980_v16 = vpop.f32.mrb[108].mxu0 }
 0x636   : > { %v6675_v26 = vsel %vm6419_vm14, %v6291_v49, %v6547_v2  ;;  %v6683_v63 = vsel %vm6427_vm15, %v6299_v59, %v6555_v4  ;;  %v6313_v12 = vadd.f32 %v12584_v25, %v6144_v34  ;;  %v12983_v11 = vpop.f32.mrb[124].mxu1  ;;  %v12985_v58 = vpop.f32.mrb[109].mxu0  ;;  %v5977_v49 = vmul.f32 %v12928_v5, %v12510_v9 }
 0x637   : > { %v6924_v52 = vpack.c.bf16 %v6675_v26, %v6667_v45  ;;  %v6691_v7 = vsel %vm6435_vm0, %v6307_v6, %v6563_v54  ;;  %v6321_v24 = vadd.f32 %v12584_v25, %v6152_v32  ;;  %v5985_v20 = vmul.f32 %v12928_v5, %v12513_v23  ;;  %v12992_v15 = vpop.f32.mrb[125].mxu1  ;;  %v12994_v45 = vpop.f32.mrb[110].mxu0 }
 0x638   : > { %v6932_v37 = vpack.c.bf16 %v6691_v7, %v6683_v63  ;;  %vm6441_vm1 = vcmp.gt.f32.partialorder %v6313_v12, 0.0  ;;  %v6569_v6 = vmul.f32 0.2, %v6313_v12  ;;  %v12998_v26 = vadd.f32 %v12830_v61, %v12624_v57  ;;  %v13004_v0 = vpop.f32.mrb[126].mxu1  ;;  %v13006_v9 = vpop.f32.mrb[111].mxu0 }
 0x639   : > { %7504 = vmatprep.mubr.bf16.mxu1 %v6924_v52  ;;  %v13002_v59 = vadd.f32 %v12848_v56, %v12630_v8  ;;  %v15316_v23 = vpack.c.bf16 %v12821_v27, %v12812_v50  ;;  %vm6449_vm2 = vcmp.gt.f32.partialorder %v6321_v24, 0.0  ;;  %v6577_v34 = vmul.f32 0.2, %v6321_v24  ;;  %v13013_v61 = vpop.f32.mrb[127].mxu1 }
 0x63a   : > { %v6146_v17 = vmul.f32 %v12678_v46, %v5977_v49  ;;  %v6154_v2 = vmul.f32 %v12678_v46, %v5985_v20  ;;  %v6697_v4 = vsel %vm6441_vm1, %v6313_v12, %v6569_v6  ;;  %v5430_v56 = vadd.f32 %v12998_v26, %v12863_v53  ;;  %v15318_v49 = vld [vmem:[#allocation89_spill] sm:$0xff] }
 0x63b   : > { %15315 = vst [vmem:[#allocation114_spill] sm:$0xff] %v13002_v59  ;;  %7505 = vmatmul.mubr.bf16.vlgmr.msra.gmra.mrb[128].mxu1 %v15316_v23  ;;  %v5472_v54 = vadd.f32 %v13002_v59, %v12874_v14  ;;  %v13021_v50 = vadd.f32 %v12839_v40, %v12612_v48  ;;  %v6705_v27 = vsel %vm6449_vm2, %v6321_v24, %v6577_v34  ;;  %v15319_v23 = vld [vmem:[#allocation90_spill] sm:$0xff]  ;;  %v15320_v34 = vld [vmem:[#allocation76_spill] sm:$0xff] }
 0x63c   : > { %7512 = vmatprep.mubr.bf16.mxu1 %v6932_v37  ;;  %v6315_v32 = vadd.f32 %v12771_v43, %v6146_v17  ;;  %v6323_v52 = vadd.f32 %v12771_v43, %v6154_v2  ;;  %v13027_v63 = vadd.f32 %v12857_v62, %v12618_v33  ;;  %v6938_v37 = vpack.c.bf16 %v6705_v27, %v6697_v4  ;;  %v15321_v27 = vld [vmem:[#allocation95_spill] sm:$0xff] }
 0x63d   : > { %v5410_v53 = vadd.f32 %v13021_v50, %v12921_v22  ;;  %v13033_v14 = vadd.f32 %v12850_v30, %v12624_v57  ;;  %v13037_v40 = vadd.f32 %v12865_v60, %v12630_v8  ;;  %v5974_v30 = vmul.f32 %v12709_v44, %v15318_v49 }
 0x63e   : > { %vm6443_vm3 = vcmp.gt.f32.partialorder %v6315_v32, 0.0  ;;  %vm6451_vm4 = vcmp.gt.f32.partialorder %v6323_v52, 0.0  ;;  %v6571_v7 = vmul.f32 0.2, %v6315_v32  ;;  %v6579_v12 = vmul.f32 0.2, %v6323_v52  ;;  %7423 = vmatprep.mubr.bf16.mxu0 %v6938_v37 }
 0x63f   : > { %15317 = vst [vmem:[#allocation115_spill] sm:$0xff] %v13037_v40  ;;  %v5452_v62 = vadd.f32 %v13027_v63, %v12924_v41  ;;  %v5431_v24 = vadd.f32 %v13033_v14, %v5430_v56  ;;  %v5473_v22 = vadd.f32 %v13037_v40, %v5472_v54  ;;  %v5982_v60 = vmul.f32 %v12709_v44, %v15319_v23  ;;  %v15322_v37 = vld [vmem:[#allocation104_spill] sm:$0xff] }
 0x640   : > { %v6699_v20 = vsel %vm6443_vm3, %v6315_v32, %v6571_v7  ;;  %v6707_v6 = vsel %vm6451_vm4, %v6323_v52, %v6579_v12  ;;  %v5976_v17 = vmul.f32 %v12762_v42, %v15320_v34  ;;  %v6143_v4 = vmul.f32 %v12398_v18, %v5974_v30  ;;  %v15323_v30 = vld [vmem:[#allocation43_spill] sm:$0xff] }
 0x641   : > { %v6940_v2 = vpack.c.bf16 %v6707_v6, %v6699_v20  ;;  %v5984_v41 = vmul.f32 %v12762_v42, %v15321_v27  ;;  %v13054_v56 = vadd.f32 %v12881_v55, %v12612_v48  ;;  %v6151_v54 = vmul.f32 %v12398_v18, %v5982_v60 }
 0x642   : > { %v6145_v32 = vmul.f32 %v12560_v3, %v5976_v17  ;;  %v13060_v52 = vadd.f32 %v12883_v38, %v12618_v33  ;;  %v5991_v7 = vmul.f32 %v12819_v21, %v15322_v37  ;;  %v6312_v12 = vadd.f32 %v12554_v51, %v6143_v4 }
 0x643   : > { %7513 = vmatmul.mubr.bf16.gmra.mrb[132].mxu1 %v6931_v29  ;;  %v6153_v49 = vmul.f32 %v12560_v3, %v5984_v41  ;;  %v5411_v55 = vadd.f32 %v13054_v56, %v5410_v53  ;;  %v5999_v29 = vmul.f32 %v12819_v21, %v15323_v30  ;;  %v6320_v20 = vadd.f32 %v12554_v51, %v6151_v54 }
 0x644   : > { %7520 = vmatprep.mubr.bf16.mxu1 %v6940_v2  ;;  %v6314_v6 = vadd.f32 %v12564_v28, %v6145_v32  ;;  %v5453_v38 = vadd.f32 %v13060_v52, %v5452_v62  ;;  %v6160_v23 = vmul.f32 %v12578_v19, %v5991_v7  ;;  %vm6440_vm5 = vcmp.gt.f32.partialorder %v6312_v12, 0.0 }
 0x645   : > { %v6568_v60 = vmul.f32 0.2, %v6312_v12  ;;  %v6322_v34 = vadd.f32 %v12564_v28, %v6153_v49  ;;  %v6168_v17 = vmul.f32 %v12578_v19, %v5999_v29  ;;  %vm6448_vm6 = vcmp.gt.f32.partialorder %v6320_v20, 0.0 }
 0x646   : > { %v6576_v2 = vmul.f32 0.2, %v6320_v20  ;;  %vm6442_vm7 = vcmp.gt.f32.partialorder %v6314_v6, 0.0  ;;  %v6570_v53 = vmul.f32 0.2, %v6314_v6  ;;  %v6329_v41 = vadd.f32 %v12584_v25, %v6160_v23 }
 0x647   : > { %v6696_v4 = vsel %vm6440_vm5, %v6312_v12, %v6568_v60  ;;  %vm6450_vm8 = vcmp.gt.f32.partialorder %v6322_v34, 0.0  ;;  %v6578_v27 = vmul.f32 0.2, %v6322_v34  ;;  %v6337_v62 = vadd.f32 %v12584_v25, %v6168_v17 }
 0x648   : > { %v6704_v54 = vsel %vm6448_vm6, %v6320_v20, %v6576_v2  ;;  %v6698_v32 = vsel %vm6442_vm7, %v6314_v6, %v6570_v53  ;;  %v5993_v37 = vmul.f32 %v12928_v5, %v12516_v10  ;;  %vm6457_vm9 = vcmp.gt.f32.partialorder %v6329_v41, 0.0 }
 0x649   : > { %v6937_v7 = vpack.c.bf16 %v6704_v54, %v6696_v4  ;;  %v6706_v49 = vsel %vm6450_vm8, %v6322_v34, %v6578_v27  ;;  %v6585_v30 = vmul.f32 0.2, %v6329_v41  ;;  %vm6465_vm10 = vcmp.gt.f32.partialorder %v6337_v62, 0.0 }
 0x64a   : > { %v6939_v29 = vpack.c.bf16 %v6706_v49, %v6698_v32  ;;  %v6593_v40 = vmul.f32 0.2, %v6337_v62  ;;  %v6001_v12 = vmul.f32 %v12928_v5, %v12519_v1  ;;  %v6162_v20 = vmul.f32 %v12678_v46, %v5993_v37  ;;  %v15328_v32 = vld [vmem:[#allocation72_spill] sm:$0xff] }
 0x64b   : > { %7424 = vmatmul.mubr.bf16.gmra.mrb[120].mxu0 %v6937_v7  ;;  %v6713_v60 = vsel %vm6457_vm9, %v6329_v41, %v6585_v30  ;;  %v13084_v6 = vadd.f32 %v12887_v13, %v12624_v57  ;;  %v13088_v10 = vadd.f32 %v12889_v35, %v12630_v8  ;;  %v13093_v17 = vadd.f32 %v12895_v39, %v12612_v48  ;;  %v15329_v7 = vld [vmem:[#allocation96_spill] sm:$0xff] }
 0x64c   : > { %7521 = vmatmul.mubr.bf16.gmra.mrb[136].mxu1 %v6939_v29  ;;  %v6721_v23 = vsel %vm6465_vm10, %v6337_v62, %v6593_v40  ;;  %v6170_v34 = vmul.f32 %v12678_v46, %v6001_v12  ;;  %v13097_v1 = vadd.f32 %v12897_v36, %v12618_v33  ;;  %v6331_v13 = vadd.f32 %v12771_v43, %v6162_v20  ;;  %v15330_v29 = vld [vmem:[#allocation97_spill] sm:$0xff] }
 0x64d   : > { %15324 = vst [vmem:[#allocation89_spill] sm:$0xff] %v13088_v10  ;;  %v6946_v2 = vpack.c.bf16 %v6721_v23, %v6713_v60  ;;  %v5432_v53 = vadd.f32 %v13084_v6, %v5431_v24  ;;  %v5474_v35 = vadd.f32 %v13088_v10, %v5473_v22  ;;  %v5412_v40 = vadd.f32 %v13093_v17, %v5411_v55  ;;  %v15327_v24 = vld [vmem:[#allocation39_spill] sm:$0xff]  ;;  %v15331_v60 = vld [vmem:[#allocation78_spill] sm:$0xff] }
 0x64e   : > { %v6339_v4 = vadd.f32 %v12771_v43, %v6170_v34  ;;  %v5454_v27 = vadd.f32 %v13097_v1, %v5453_v38  ;;  %v13107_v39 = vadd.f32 %v12910_v31, %v12624_v57  ;;  %vm6459_vm11 = vcmp.gt.f32.partialorder %v6331_v13, 0.0  ;;  %v15354_v10 = vld [vmem:[#allocation30_spill] sm:$0xff] }
 0x64f   : > { %7431 = vmatprep.mubr.bf16.mxu0 %v6946_v2  ;;  %v6587_v36 = vmul.f32 0.2, %v6331_v13  ;;  %v13111_v41 = vadd.f32 %v12912_v47, %v12630_v8  ;;  %v5990_v22 = vmul.f32 %v12709_v44, %v15327_v24  ;;  %v5998_v38 = vmul.f32 %v12709_v44, %v15328_v32  ;;  %v15333_v24 = vld [vmem:[#allocation45_spill] sm:$0xff] }
 0x650   : > { %15325 = vst [vmem:[#allocation90_spill] sm:$0xff] %v13107_v39  ;;  %vm6467_vm12 = vcmp.gt.f32.partialorder %v6339_v4, 0.0  ;;  %v6595_v54 = vmul.f32 0.2, %v6339_v4  ;;  %v5433_v55 = vadd.f32 %v13107_v39, %v5432_v53  ;;  %v5992_v49 = vmul.f32 %v12762_v42, %v15329_v7  ;;  %v15334_v7 = vld [vmem:[#allocation79_spill] sm:$0xff]  ;;  %v9125_v39 = vld [vmem:[#allocation7 + $0x100] sm:$0xff]  }
 0x651   : > { %15326 = vst [vmem:[#allocation76_spill] sm:$0xff] %v13111_v41  ;;  %v6715_v62 = vsel %vm6459_vm11, %v6331_v13, %v6587_v36  ;;  %v5475_v31 = vadd.f32 %v13111_v41, %v5474_v35  ;;  %v6159_v37 = vmul.f32 %v12398_v18, %v5990_v22  ;;  %v6167_v30 = vmul.f32 %v12398_v18, %v5998_v38  ;;  %v15332_v13 = vld [vmem:[#allocation28_spill] sm:$0xff] }
 0x652   : > { %v6723_v47 = vsel %vm6467_vm12, %v6339_v4, %v6595_v54  ;;  %v6000_v12 = vmul.f32 %v12762_v42, %v15330_v29  ;;  %v13127_v20 = vadd.f32 %v15331_v60, %v12612_v48  ;;  %v6161_v2 = vmul.f32 %v12560_v3, %v5992_v49 }
 0x653   : > { %v6948_v23 = vpack.c.bf16 %v6723_v47, %v6715_v62  ;;  %v6328_v34 = vadd.f32 %v12554_v51, %v6159_v37  ;;  %v13133_v53 = vadd.f32 %v15332_v13, %v12618_v33  ;;  %v6336_v35 = vadd.f32 %v12554_v51, %v6167_v30  ;;  %v15335_v13 = vld [vmem:[#allocation85_spill] sm:$0xff] }
 0x654   : > { %v6169_v4 = vmul.f32 %v12560_v3, %v6000_v12  ;;  %v5413_v36 = vadd.f32 %v13127_v20, %v5412_v40  ;;  %v6007_v22 = vmul.f32 %v12819_v21, %v15333_v24  ;;  %v6330_v32 = vadd.f32 %v12564_v28, %v6161_v2 }
 0x655   : > { %7528 = vmatprep.mubr.bf16.mxu1 %v6948_v23  ;;  %vm6456_vm13 = vcmp.gt.f32.partialorder %v6328_v34, 0.0  ;;  %v6584_v54 = vmul.f32 0.2, %v6328_v34  ;;  %v5455_v38 = vadd.f32 %v13133_v53, %v5454_v27  ;;  %vm6464_vm14 = vcmp.gt.f32.partialorder %v6336_v35, 0.0 }
 0x656   : > { %v6592_v62 = vmul.f32 0.2, %v6336_v35  ;;  %v6338_v37 = vadd.f32 %v12564_v28, %v6169_v4  ;;  %v6015_v49 = vmul.f32 %v12819_v21, %v15334_v7  ;;  %vm6458_vm15 = vcmp.gt.f32.partialorder %v6330_v32, 0.0 }
 0x657   : > { %v6712_v47 = vsel %vm6456_vm13, %v6328_v34, %v6584_v54  ;;  %v6586_v40 = vmul.f32 0.2, %v6330_v32  ;;  %v6176_v30 = vmul.f32 %v12578_v19, %v6007_v22  ;;  %v6009_v4 = vmul.f32 %v12928_v5, %v15335_v13  ;;  %v15336_v34 = vld [vmem:[#allocation86_spill] sm:$0xff] }
 0x658   : > { %v6720_v29 = vsel %vm6464_vm14, %v6336_v35, %v6592_v62  ;;  %vm6466_vm0 = vcmp.gt.f32.partialorder %v6338_v37, 0.0  ;;  %v6594_v12 = vmul.f32 0.2, %v6338_v37  ;;  %v6184_v60 = vmul.f32 %v12578_v19, %v6015_v49  ;;  %v15337_v22 = vld [vmem:[#allocation26_spill] sm:$0xff] }
 0x659   : > { %v6945_v23 = vpack.c.bf16 %v6720_v29, %v6712_v47  ;;  %v6714_v2 = vsel %vm6458_vm15, %v6330_v32, %v6586_v40  ;;  %v6345_v27 = vadd.f32 %v12584_v25, %v6176_v30  ;;  %v6017_v54 = vmul.f32 %v12928_v5, %v15336_v34 }
 0x65a   : > { %v6722_v24 = vsel %vm6466_vm0, %v6338_v37, %v6594_v12  ;;  %v6353_v7 = vadd.f32 %v12584_v25, %v6184_v60  ;;  %v13155_v35 = vadd.f32 %v15337_v22, %v12624_v57  ;;  %v6178_v32 = vmul.f32 %v12678_v46, %v6009_v4  ;;  %v15339_v12 = vld [vmem:[#allocation109_spill] sm:$0xff] }
 0x65b   : > { %7432 = vmatmul.mubr.bf16.gmra.mrb[124].mxu0 %v6945_v23  ;;  %v6947_v62 = vpack.c.bf16 %v6722_v24, %v6714_v2  ;;  %vm6473_vm1 = vcmp.gt.f32.partialorder %v6345_v27, 0.0  ;;  %v6601_v49 = vmul.f32 0.2, %v6345_v27  ;;  %v6186_v40 = vmul.f32 %v12678_v46, %v6017_v54  ;;  %v15341_v23 = vld [vmem:[#allocation103_spill] sm:$0xff] }
 0x65c   : > { %15338 = vst [vmem:[#allocation95_spill] sm:$0xff] %v13155_v35  ;;  %vm6481_vm2 = vcmp.gt.f32.partialorder %v6353_v7, 0.0  ;;  %v6609_v47 = vmul.f32 0.2, %v6353_v7  ;;  %v5434_v37 = vadd.f32 %v13155_v35, %v5433_v55  ;;  %v6347_v29 = vadd.f32 %v12771_v43, %v6178_v32  ;;  %v15342_v24 = vld [vmem:[#allocation111_spill] sm:$0xff]  ;;  %v15343_v55 = vld [vmem:[#allocation110_spill] sm:$0xff] }
 0x65d   : > { %7529 = vmatmul.mubr.bf16.gmra.mrb[140].mxu1 %v6947_v62  ;;  %v6729_v30 = vsel %vm6473_vm1, %v6345_v27, %v6601_v49  ;;  %v13163_v60 = vadd.f32 %v15339_v12, %v12630_v8  ;;  %v13167_v2 = vadd.f32 %v15341_v23, %v12612_v48  ;;  %v6355_v4 = vadd.f32 %v12771_v43, %v6186_v40  ;;  %v15345_v12 = vld [vmem:[#allocation113_spill] sm:$0xff] }
 0x65e   : > { %v6737_v13 = vsel %vm6481_vm2, %v6353_v7, %v6609_v47  ;;  %v13172_v34 = vadd.f32 %v15342_v24, %v12618_v33  ;;  %v13176_v27 = vadd.f32 %v15343_v55, %v12624_v57  ;;  %vm6475_vm3 = vcmp.gt.f32.partialorder %v6347_v29, 0.0 }
 0x65f   : > { %15340 = vst [vmem:[#allocation104_spill] sm:$0xff] %v13163_v60  ;;  %v6954_v54 = vpack.c.bf16 %v6737_v13, %v6729_v30  ;;  %v6603_v22 = vmul.f32 0.2, %v6347_v29  ;;  %v5476_v62 = vadd.f32 %v13163_v60, %v5475_v31  ;;  %vm6483_vm4 = vcmp.gt.f32.partialorder %v6355_v4, 0.0  ;;  %v15347_v30 = vld [vmem:[#allocation67_spill] sm:$0xff]  ;;  %v15348_v31 = vld [vmem:[#allocation41_spill] sm:$0xff] }
 0x660   : > { %15344 = vst [vmem:[#allocation43_spill] sm:$0xff] %v13176_v27  ;;  %v6611_v49 = vmul.f32 0.2, %v6355_v4  ;;  %v5414_v32 = vadd.f32 %v13167_v2, %v5413_v36  ;;  %v5456_v7 = vadd.f32 %v13172_v34, %v5455_v38  ;;  %v13182_v40 = vadd.f32 %v13176_v27, %v5434_v37  ;;  %v15349_v60 = vld [vmem:[#allocation98_spill] sm:$0xff]  ;;  %v15350_v38 = vld [vmem:[#allocation108_spill] sm:$0xff] }
 0x661   : > { %7439 = vmatprep.mubr.bf16.mxu0 %v6954_v54  ;;  %v6731_v47 = vsel %vm6475_vm3, %v6347_v29, %v6603_v22  ;;  %v13186_v23 = vadd.f32 %v15345_v12, %v12630_v8  ;;  %v6006_v13 = vmul.f32 %v12709_v44, %v15347_v30  ;;  %v6014_v55 = vmul.f32 %v12709_v44, %v15348_v31  ;;  %v9124_v27 = vld [vmem:[#allocation7 + $0x140] sm:$0xff]  }
 0x662   : > { %v6739_v24 = vsel %vm6483_vm4, %v6355_v4, %v6611_v49  ;;  %v6008_v36 = vmul.f32 %v12762_v42, %v15349_v60  ;;  %v6016_v29 = vmul.f32 %v12762_v42, %v15350_v38  ;;  %v13200_v12 = vadd.f32 %v12980_v16, %v12612_v48  ;;  %v15352_v16 = vld [vmem:[#allocation47_spill] sm:$0xff]  ;;  %8471 = vmatprep.subr.bf16.mxu0 %v9124_v27 }
 0x663   : > { %15346 = vst [vmem:[#allocation39_spill] sm:$0xff] %v13186_v23  ;;  %v6956_v54 = vpack.c.bf16 %v6739_v24, %v6731_v47  ;;  %v5477_v37 = vadd.f32 %v13186_v23, %v5476_v62  ;;  %v6175_v22 = vmul.f32 %v12398_v18, %v6006_v13  ;;  %v6183_v4 = vmul.f32 %v12398_v18, %v6014_v55  ;;  %v15351_v13 = vld [vmem:[#allocation80_spill] sm:$0xff] }
 0x664   : > { %v6177_v49 = vmul.f32 %v12560_v3, %v6008_v36  ;;  %v6185_v30 = vmul.f32 %v12560_v3, %v6016_v29  ;;  %v13207_v60 = vadd.f32 %v12983_v11, %v12618_v33  ;;  %v5415_v62 = vadd.f32 %v13200_v12, %v5414_v32  ;;  %8472 = vmatpush3.bf16.msra.mxu0 %v9125_v39 }
 0x665   : > { %7536 = vmatprep.mubr.bf16.mxu1 %v6956_v54  ;;  %v6344_v47 = vadd.f32 %v12554_v51, %v6175_v22  ;;  %v6023_v24 = vmul.f32 %v12819_v21, %v15351_v13  ;;  %v6031_v31 = vmul.f32 %v12819_v21, %v15352_v16  ;;  %v6352_v55 = vadd.f32 %v12554_v51, %v6183_v4 }
 0x666   : > { %v6346_v36 = vadd.f32 %v12564_v28, %v6177_v49  ;;  %v6354_v38 = vadd.f32 %v12564_v28, %v6185_v30  ;;  %v13219_v11 = vadd.f32 %v13207_v60, %v5456_v7  ;;  %v15353_v7 = vld [vmem:[#allocation36_spill] sm:$0xff] }
 0x667   : > { %vm6472_vm5 = vcmp.gt.f32.partialorder %v6344_v47, 0.0  ;;  %v6600_v29 = vmul.f32 0.2, %v6344_v47  ;;  %v6192_v54 = vmul.f32 %v12578_v19, %v6023_v24  ;;  %v6200_v32 = vmul.f32 %v12578_v19, %v6031_v31 }
 0x668   : > { %vm6480_vm6 = vcmp.gt.f32.partialorder %v6352_v55, 0.0  ;;  %v6608_v22 = vmul.f32 0.2, %v6352_v55  ;;  %vm6474_vm7 = vcmp.gt.f32.partialorder %v6346_v36, 0.0  ;;  %vm6482_vm8 = vcmp.gt.f32.partialorder %v6354_v38, 0.0 }
 0x669   : > { %v6728_v13 = vsel %vm6472_vm5, %v6344_v47, %v6600_v29  ;;  %v6602_v16 = vmul.f32 0.2, %v6346_v36  ;;  %v6610_v4 = vmul.f32 0.2, %v6354_v38  ;;  %v6361_v49 = vadd.f32 %v12584_v25, %v6192_v54 }
 0x66a   : > { %v6736_v23 = vsel %vm6480_vm6, %v6352_v55, %v6608_v22  ;;  %v6369_v30 = vadd.f32 %v12584_v25, %v6200_v32  ;;  %v6025_v41 = vmul.f32 %v12928_v5, %v15353_v7  ;;  %v6033_v24 = vmul.f32 %v12928_v5, %v15354_v10  ;;  %v13247_v22 = vld [vmem:[#allocation7 + $0x1c0] sm:$0xff]  }
 0x66b   : > { %v6953_v59 = vpack.c.bf16 %v6736_v23, %v6728_v13  ;;  %v6730_v31 = vsel %vm6474_vm7, %v6346_v36, %v6602_v16  ;;  %v6738_v19 = vsel %vm6482_vm8, %v6354_v38, %v6610_v4  ;;  %vm6489_vm9 = vcmp.gt.f32.partialorder %v6361_v49, 0.0  ;;  %v9126_v23 = vld [vmem:[#allocation7 + $0x148] sm:$0xff]   ;;  %v9131_v4 = vld [vmem:[#allocation7 + $0x180] sm:$0xff]   ;;  %8619 = vmatprep.subr.bf16.mxu1 %v13247_v22 }
 0x66c   : > { %v6955_v35 = vpack.c.bf16 %v6738_v19, %v6730_v31  ;;  %vm6497_vm10 = vcmp.gt.f32.partialorder %v6369_v30, 0.0  ;;  %v6617_v47 = vmul.f32 0.2, %v6361_v49  ;;  %v6625_v29 = vmul.f32 0.2, %v6369_v30  ;;  %v15355_v36 = vld [vmem:[#allocation69_spill] sm:$0xff]  ;;  %8473 = vmatprep.subr.bf16.mxu0 %v9126_v23  ;;  %8627 = vmatpush3.bf16.msra.mxu1 %v9131_v4 }
 0x66d   : > { %7440 = vmatmul.mubr.bf16.gmra.mrb[128].mxu0 %v6953_v59  ;;  %v6194_v55 = vmul.f32 %v12678_v46, %v6025_v41  ;;  %v6202_v54 = vmul.f32 %v12678_v46, %v6033_v24  ;;  %v13233_v32 = vadd.f32 %v12985_v58, %v12624_v57  ;;  %v13237_v10 = vadd.f32 %v12992_v15, %v12630_v8  ;;  %v15357_v7 = vld [vmem:[#allocation112_spill] sm:$0xff]  ;;  %v9128_v24 = vld [vmem:[#allocation7 + $0x150] sm:$0xff]   ;;  %v9133_v31 = vld [vmem:[#allocation7 + $0x1c8] sm:$0xff]  }
 0x66e   : > { %v13241_v19 = vadd.f32 %v12584_v25, %v15355_v36  ;;  %7537 = vmatmul.mubr.bf16.gmra.mrb[144].mxu1 %v6955_v35  ;;  %v6745_v38 = vsel %vm6489_vm9, %v6361_v49, %v6617_v47  ;;  %v6753_v59 = vsel %vm6497_vm10, %v6369_v30, %v6625_v29  ;;  %v13245_v41 = vadd.f32 %v12994_v45, %v12612_v48  ;;  %v9127_v30 = vld [vmem:[#allocation7 + $0x108] sm:$0xff]   ;;  %v9132_v4 = vld [vmem:[#allocation7 + $0x158] sm:$0xff]  }
 0x66f   : > { %v6962_v58 = vpack.c.bf16 %v6753_v59, %v6745_v38  ;;  %v6363_v13 = vadd.f32 %v12771_v43, %v6194_v55  ;;  %v6371_v15 = vadd.f32 %v12771_v43, %v6202_v54  ;;  %v5436_v16 = vadd.f32 %v13233_v32, %v13182_v40  ;;  %v15362_v23 = vld [vmem:[#allocation61_spill] sm:$0xff]  ;;  %8474 = vmatpush3.bf16.msra.mxu0 %v9127_v30 }
 0x670   : > { %15356 = vst [vmem:[#allocation72_spill] sm:$0xff] %v13241_v19  ;;  %v13255_v35 = vadd.f32 %v12771_v43, %v15357_v7  ;;  %v5478_v49 = vadd.f32 %v13237_v10, %v5477_v37  ;;  %v5416_v48 = vadd.f32 %v13245_v41, %v5415_v62  ;;  %v13261_v45 = vadd.f32 %v13004_v0, %v12618_v33  ;;  %v9216_v37 = vld [vmem:[%s14396_s13] sm:$0xff]  ;;  %v15359_v62 = vld [vmem:[#allocation31_spill] sm:$0xff]  ;;  %v9135_v59 = vld [vmem:[#allocation7 + $0x188] sm:$0xff]  }
 0x671   : > { %7447 = vmatprep.mubr.bf16.mxu0 %v6962_v58  ;;  %vm6491_vm11 = vcmp.gt.f32.partialorder %v6363_v13, 0.0  ;;  %vm6499_vm12 = vcmp.gt.f32.partialorder %v6371_v15, 0.0  ;;  %v6619_v27 = vmul.f32 0.2, %v6363_v13  ;;  %v6627_v40 = vmul.f32 0.2, %v6371_v15  ;;  %8620 = vmatprep.subr.bf16.mxu1 %v9133_v31 }
 0x672   : > { %15358 = vst [vmem:[#allocation96_spill] sm:$0xff] %v13255_v35  ;;  %v5417_v47 = vrot.slane %v5416_v48, 4  ;;  %v13267_v29 = vrot.slane %v9216_v37, %v15359_v62  ;;  %v9217_v33 = vld [vmem:[%s14397_s14] sm:$0xff]  ;;  %v5458_v39 = vadd.f32 %v13261_v45, %v13219_v11  ;;  %v13279_v36 = vrot.slane %v9216_v37, %v15362_v23  ;;  %v9130_v11 = vld [vmem:[#allocation7 + $0x110] sm:$0xff]   ;;  %8475 = vmatprep.subr.bf16.mxu0 %v9128_v24 }
 0x673   : > { %v13273_v0 = vrot.slane %v9217_v33, %v15359_v62  ;;  %v6747_v55 = vsel %vm6491_vm11, %v6363_v13, %v6619_v27  ;;  %v6755_v54 = vsel %vm6499_vm12, %v6371_v15, %v6627_v40  ;;  %v13283_v38 = vadd.f32 %v13006_v9, %v12624_v57  ;;  %v9137_v13 = vld [vmem:[#allocation7 + $0x1d0] sm:$0xff]   ;;  %8628 = vmatpush3.bf16.msra.mxu1 %v9135_v59 }
 0x674   : > { %15360 = vst [vmem:[#allocation97_spill] sm:$0xff] %v13267_v29  ;;  %15363 = vst [vmem:[#allocation28_spill] sm:$0xff] %v13279_v36  ;;  %v6964_v58 = vpack.c.bf16 %v6755_v54, %v6747_v55  ;;  %v5418_v7 = vadd.f32 %v5417_v47, %v5416_v48  ;;  %v5459_v62 = vrot.slane %v5458_v39, 4  ;;  %v13286_v35 = vrot.slane %v9217_v33, %v15362_v23  ;;  %v15365_v27 = vld [vmem:[#allocation62_spill] sm:$0xff]  ;;  %v15368_v47 = vld [vmem:[#allocation75_spill] sm:$0xff] }
 0x675   : > { %15361 = vst [vmem:[#allocation78_spill] sm:$0xff] %v13273_v0  ;;  %v5437_v15 = vadd.f32 %v13283_v38, %v5436_v16  ;;  %v13290_v40 = vrot.slane %v9216_v37, %v15365_v27  ;;  %v13293_v57 = vrot.slane %v9217_v33, %v15365_v27  ;;  %v13297_v9 = vadd.f32 %v13013_v61, %v12630_v8  ;;  %v15369_v55 = vld [vmem:[#allocation91_spill] sm:$0xff]  ;;  %v9139_v61 = vld [vmem:[#allocation7 + $0x190] sm:$0xff]  }
 0x676   : > { %15364 = vst [vmem:[#allocation45_spill] sm:$0xff] %v13286_v35  ;;  %7544 = vmatprep.mubr.bf16.mxu1 %v6964_v58  ;;  %v5419_v48 = vrot.slane %v5418_v7, 2  ;;  %v5460_v30 = vadd.f32 %v5459_v62, %v5458_v39  ;;  %v6022_v31 = vmul.f32 %v12709_v44, %v15368_v47  ;;  %v6030_v16 = vmul.f32 %v12709_v44, %v15369_v55  ;;  %v15370_v27 = vld [vmem:[#allocation107_spill] sm:$0xff] }
 0x677   : > { %15366 = vst [vmem:[#allocation79_spill] sm:$0xff] %v13290_v40  ;;  %15367 = vst [vmem:[#allocation85_spill] sm:$0xff] %v13293_v57  ;;  %v5438_v54 = vrot.slane %v5437_v15, 4  ;;  %v5479_v23 = vadd.f32 %v13297_v9, %v5478_v49  ;;  %v6024_v57 = vmul.f32 %v12762_v42, %v15370_v27  ;;  %v15371_v40 = vld [vmem:[#allocation77_spill] sm:$0xff]  ;;  %8476 = vmatpush3.bf16.msra.mxu0 %v9130_v11  ;;  %v9134_v47 = vld [vmem:[#allocation7 + $0x118] sm:$0xff]   ;;  %8621 = vmatprep.subr.bf16.mxu1 %v9137_v13 }
 0x678   : > { %v6032_v8 = vmul.f32 %v12762_v42, %v15371_v40  ;;  %v5420_v24 = vadd.f32 %v5419_v48, %v5418_v7  ;;  %v5461_v58 = vrot.slane %v5460_v30, 2  ;;  %v6191_v39 = vmul.f32 %v12398_v18, %v6022_v31  ;;  %v9141_v55 = vld [vmem:[#allocation7 + $0x1d8] sm:$0xff]   ;;  %8477 = vmatprep.subr.bf16.mxu0 %v9132_v4  ;;  %v9136_v40 = vld [vmem:[#allocation7 + $0x160] sm:$0xff]   ;;  %8629 = vmatpush3.bf16.msra.mxu1 %v9139_v61 }
 0x679   : > { %v6199_v62 = vmul.f32 %v12398_v18, %v6030_v16  ;;  %v5439_v35 = vadd.f32 %v5438_v54, %v5437_v15  ;;  %v5480_v49 = vrot.slane %v5479_v23, 4  ;;  %v6193_v36 = vmul.f32 %v12560_v3, %v6024_v57  ;;  %v15372_v11 = vld [vmem:[#allocation63_spill] sm:$0xff]  ;;  %v9138_v4 = vld [vmem:[#allocation7 + $0x120] sm:$0xff]   ;;  %8622 = vmatprep.subr.bf16.mxu1 %v9141_v55 }
 0x67a   : > { %v6201_v27 = vmul.f32 %v12560_v3, %v6032_v8  ;;  %v5421_v59 = vrot.slane %v5420_v24, 1  ;;  %v5462_v0 = vadd.f32 %v5461_v58, %v5460_v30  ;;  %v6360_v7 = vadd.f32 %v12554_v51, %v6191_v39  ;;  %v9143_v15 = vld [vmem:[#allocation7 + $0x198] sm:$0xff]  }
 0x67b   : > { %v6368_v48 = vadd.f32 %v12554_v51, %v6199_v62  ;;  %v5440_v31 = vrot.slane %v5439_v35, 2  ;;  %v5481_v16 = vadd.f32 %v5480_v49, %v5479_v23  ;;  %v13315_v19 = vrot.slane %v9216_v37, %v15372_v11  ;;  %8478 = vmatpush3.bf16.msra.mxu0 %v9134_v47  ;;  %v9140_v37 = vld [vmem:[#allocation7 + $0x168] sm:$0xff]   ;;  %v9154_v29 = vld [vmem:[#allocation7 + $0x1f8] sm:$0xff]  }
 0x67c   : > { %v13318_v13 = vrot.slane %v9217_v33, %v15372_v11  ;;  %v5422_v57 = vadd.f32 %v5421_v59, %v5420_v24  ;;  %v5463_v54 = vrot.slane %v5462_v0, 1  ;;  %vm6488_vm13 = vcmp.gt.f32.partialorder %v6360_v7, 0.0  ;;  %8479 = vmatprep.subr.bf16.mxu0 %v9136_v40  ;;  %v9145_v24 = vld [vmem:[#allocation7 + $0x1e0] sm:$0xff]   ;;  %8630 = vmatpush3.bf16.msra.mxu1 %v9143_v15  ;;  %v15407_v51 = vld [vmem:[#allocation53_spill] sm:$0xff] }
 0x67d   : > { %15373 = vst [vmem:[#allocation86_spill] sm:$0xff] %v13315_v19  ;;  %vm6496_vm14 = vcmp.gt.f32.partialorder %v6368_v48, 0.0  ;;  %v13320_v30 = vadd.f32 %v5440_v31, %v5439_v35  ;;  %v5482_v8 = vrot.slane %v5481_v16, 2  ;;  %v6616_v58 = vmul.f32 0.2, %v6360_v7  ;;  %v9147_v40 = vld [vmem:[#allocation7 + $0x1a0] sm:$0xff]   ;;  %8623 = vmatprep.subr.bf16.mxu1 %v9145_v24 }
 0x67e   : > { %15374 = vst [vmem:[#allocation26_spill] sm:$0xff] %v13318_v13  ;;  %v6624_v23 = vmul.f32 0.2, %v6368_v48  ;;  %v5490_v39 = vmul.f32 0.0078125, %v5422_v57  ;;  %v5464_v62 = vadd.f32 %v5463_v54, %v5462_v0  ;;  %v13323_v33 = vadd.f32 %v12564_v28, %v6193_v36  ;;  %v15375_v0 = vld [vmem:[#allocation25_spill] sm:$0xff]  ;;  %v15381_v57 = vld [vmem:[#allocation51_spill] sm:$0xff] }
 0x67f   : > { %v13326_v61 = vadd.f32 %v12564_v28, %v6201_v27  ;;  %v5442_v47 = vrot.slane %v13320_v30, 1  ;;  %v13329_v49 = vadd.f32 %v5482_v8, %v5481_v16  ;;  %v13332_v35 = vsel %vm6488_vm13, %v6360_v7, %v6616_v58  ;;  %v15377_v36 = vld [vmem:[#allocation29_spill] sm:$0xff]  ;;  %v15379_v27 = vld [vmem:[#allocation40_spill] sm:$0xff]  ;;  %8480 = vmatpush3.bf16.msra.mxu0 %v9138_v4  ;;  %v15383_v54 = vld [vmem:[#allocation70_spill] sm:$0xff] }
 0x680   : > { %v13335_v55 = vsel %vm6496_vm14, %v6368_v48, %v6624_v23  ;;  %v13338_v59 = vsub.f32 %v15375_v0, %v5490_v39  ;;  %v13341_v31 = vsub.f32 %v15377_v36, %v5490_v39  ;;  %v13344_v11 = vsub.f32 %v15379_v27, %v5490_v39  ;;  %v9142_v7 = vld [vmem:[#allocation7 + $0x128] sm:$0xff]   ;;  %v15385_v48 = vld [vmem:[#allocation54_spill] sm:$0xff]  ;;  %v15387_v58 = vld [vmem:[#allocation48_spill] sm:$0xff]  ;;  %8481 = vmatprep.subr.bf16.mxu0 %v9140_v37 }
 0x681   : > { %v13347_v16 = vsub.f32 %v15381_v57, %v5490_v39  ;;  %v13350_v8 = vsub.f32 %v15383_v54, %v5490_v39  ;;  %v13353_v15 = vsub.f32 %v15385_v48, %v5490_v39  ;;  %v13356_v23 = vsub.f32 %v15387_v58, %v5490_v39  ;;  %v15389_v0 = vld [vmem:[#allocation73_spill] sm:$0xff]  ;;  %v9144_v27 = vld [vmem:[#allocation7 + $0x170] sm:$0xff]   ;;  %v15391_v13 = vld [vmem:[#allocation24_spill] sm:$0xff]  ;;  %8631 = vmatpush3.bf16.msra.mxu1 %v9147_v40 }
 0x682   : > { %15376 = vst [vmem:[#allocation109_spill] sm:$0xff] %v13338_v59  ;;  %15378 = vst [vmem:[#allocation103_spill] sm:$0xff] %v13341_v31  ;;  %v13359_v36 = vsub.f32 %v15389_v0, %v5490_v39  ;;  %v13362_v19 = vsub.f32 %v15391_v13, %v5490_v39  ;;  %v13365_v4 = vsub.f32 %v13021_v50, %v5490_v39  ;;  %v9148_v48 = vld [vmem:[#allocation7 + $0x1e8] sm:$0xff]   ;;  %v9152_v0 = vld [vmem:[#allocation7 + $0x1f0] sm:$0xff]   ;;  %vm6490_vm15 = vcmp.gt.f32.partialorder %v13323_v33, 0.0 }
 0x683   : > { %15380 = vst [vmem:[#allocation111_spill] sm:$0xff] %v13344_v11  ;;  %15382 = vst [vmem:[#allocation110_spill] sm:$0xff] %v13347_v16  ;;  %v13368_v57 = vsub.f32 %v13054_v56, %v5490_v39  ;;  %v13371_v54 = vsub.f32 %v13093_v17, %v5490_v39  ;;  %v13374_v58 = vsub.f32 %v13127_v20, %v5490_v39  ;;  %v9149_v56 = vld [vmem:[#allocation7 + $0x1a8] sm:$0xff]   ;;  %8482 = vmatpush3.bf16.msra.mxu0 %v9142_v7 }
 0x684   : > { %15384 = vst [vmem:[#allocation113_spill] sm:$0xff] %v13350_v8  ;;  %15386 = vst [vmem:[#allocation67_spill] sm:$0xff] %v13353_v15  ;;  %v13377_v37 = vsub.f32 %v13167_v2, %v5490_v39  ;;  %v13380_v13 = vsub.f32 %v13200_v12, %v5490_v39  ;;  %v13383_v50 = vsub.f32 %v13245_v41, %v5490_v39  ;;  %v9146_v12 = vld [vmem:[#allocation7 + $0x130] sm:$0xff]   ;;  %8483 = vmatprep.subr.bf16.mxu0 %v9144_v27 }
 0x685   : > { %15388 = vst [vmem:[#allocation41_spill] sm:$0xff] %v13356_v23  ;;  %15390 = vst [vmem:[#allocation98_spill] sm:$0xff] %v13359_v36  ;;  %v5626_v17 = vmul.f32 %v13338_v59, %v13338_v59  ;;  %v5634_v24 = vmul.f32 %v13341_v31, %v13341_v31  ;;  %v5642_v20 = vmul.f32 %v13344_v11, %v13344_v11  ;;  %v9150_v11 = vld [vmem:[#allocation7 + $0x178] sm:$0xff]   ;;  %8624 = vmatprep.subr.bf16.mxu1 %v9148_v48 }
 0x686   : > { %15392 = vst [vmem:[#allocation108_spill] sm:$0xff] %v13362_v19  ;;  %15393 = vst [vmem:[#allocation80_spill] sm:$0xff] %v13365_v4  ;;  %v5650_v2 = vmul.f32 %v13347_v16, %v13347_v16  ;;  %v5658_v41 = vmul.f32 %v13350_v8, %v13350_v8  ;;  %v5666_v39 = vmul.f32 %v13353_v15, %v13353_v15  ;;  %8632 = vmatpush3.bf16.msra.mxu1 %v9149_v56  ;;  %v9151_v16 = vld [vmem:[#allocation7 + $0x138] sm:$0xff]  }
 0x687   : > { %15394 = vst [vmem:[#allocation47_spill] sm:$0xff] %v13368_v57  ;;  %15395 = vst [vmem:[#allocation36_spill] sm:$0xff] %v13371_v54  ;;  %v13399_v40 = vmul.f32 %v13356_v23, %v13356_v23  ;;  %v13403_v31 = vmul.f32 %v13359_v36, %v13359_v36  ;;  %v13407_v7 = vmul.f32 %v13362_v19, %v13362_v19  ;;  %v5492_v36 = vmul.f32 0.0078125, %v5464_v62 }
 0x688   : > { %15396 = vst [vmem:[#allocation30_spill] sm:$0xff] %v13374_v58  ;;  %15397 = vst [vmem:[#allocation69_spill] sm:$0xff] %v13377_v37  ;;  %v13411_v8 = vmul.f32 %v13365_v4, %v13365_v4  ;;  %v13415_v15 = vmul.f32 %v13368_v57, %v13368_v57  ;;  %v13419_v23 = vmul.f32 %v13371_v54, %v13371_v54  ;;  %8484 = vmatpush3.bf16.msra.mxu0 %v9146_v12 }
 0x689   : > { %15398 = vst [vmem:[#allocation112_spill] sm:$0xff] %v13380_v13  ;;  %15399 = vst [vmem:[#allocation31_spill] sm:$0xff] %v13383_v50  ;;  %v13423_v27 = vmul.f32 %v13374_v58, %v13374_v58  ;;  %v13427_v19 = vmul.f32 %v13377_v37, %v13377_v37  ;;  %v13431_v4 = vmul.f32 %v13380_v13, %v13380_v13  ;;  %v5484_v58 = vrot.slane %v13329_v49, 1 }
 0x68a   : > { %v13435_v57 = vmul.f32 %v13383_v50, %v13383_v50  ;;  %v5834_v54 = vadd.f32 %v5634_v24, %v5626_v17  ;;  %v5443_v48 = vadd.f32 %v5442_v47, %v13320_v30  ;;  %8625 = vmatprep.subr.bf16.mxu1 %v9152_v0  ;;  %v6961_v37 = vpack.c.bf16 %v13335_v55, %v13332_v35  ;;  %v15400_v17 = vld [vmem:[#allocation50_spill] sm:$0xff]  ;;  %v15401_v24 = vld [vmem:[#allocation33_spill] sm:$0xff]  ;;  %v15403_v0 = vld [vmem:[#allocation83_spill] sm:$0xff] }
 0x68b   : > { %vm6498_vm0 = vcmp.gt.f32.partialorder %v13326_v61, 0.0  ;;  %v6618_v13 = vmul.f32 0.2, %v13323_v33  ;;  %v6626_v56 = vmul.f32 0.2, %v13326_v61  ;;  %v13447_v62 = vmul.f32 %v12819_v21, %v15400_v17  ;;  %8485 = vmatprep.subr.bf16.mxu0 %v9150_v11  ;;  %v9153_v30 = vld [vmem:[#allocation7 + $0x1b0] sm:$0xff]  }
 0x68c   : > { %v5835_v47 = vadd.f32 %v5834_v54, %v5642_v20  ;;  %v13450_v12 = vsub.f32 %v15401_v24, %v5492_v36  ;;  %v13453_v35 = vsub.f32 %v15403_v0, %v5492_v36  ;;  %v15405_v55 = vld [vmem:[#allocation46_spill] sm:$0xff]  ;;  %v15406_v50 = vld [vmem:[#allocation35_spill] sm:$0xff]  ;;  %v13462_v3 = vsub.f32 %v15407_v51, %v5492_v36  ;;  %v15409_v17 = vld [vmem:[#allocation84_spill] sm:$0xff]  ;;  %7448 = vmatmul.mubr.bf16.gmra.mrb[132].mxu0 %v6961_v37 }
 0x68d   : > { %v13456_v59 = vsub.f32 %v15405_v55, %v5492_v36  ;;  %v13459_v28 = vsub.f32 %v15406_v50, %v5492_v36  ;;  %v13465_v11 = vsub.f32 %v15409_v17, %v5492_v36  ;;  %v15411_v54 = vld [vmem:[#allocation56_spill] sm:$0xff]  ;;  %v15415_v55 = vld [vmem:[#allocation94_spill] sm:$0xff]  ;;  %v13477_v50 = vsub.f32 %v13027_v63, %v5492_v36  ;;  %8486 = vmatpush3.bf16.msra.mxu0 %v9151_v16 }
 0x68e   : > { %15402 = vst [vmem:[#allocation61_spill] sm:$0xff] %v13450_v12  ;;  %15404 = vst [vmem:[#allocation62_spill] sm:$0xff] %v13453_v35  ;;  %v13468_v20 = vsub.f32 %v15411_v54, %v5492_v36  ;;  %v5836_v24 = vadd.f32 %v5835_v47, %v5650_v2  ;;  %v15413_v0 = vld [vmem:[#allocation88_spill] sm:$0xff]  ;;  %v13474_v42 = vsub.f32 %v15415_v55, %v5492_v36  ;;  %8633 = vmatpush3.bf16.msra.mxu1 %v9153_v30  ;;  %v9155_v2 = vld [vmem:[#allocation7 + $0x1b8] sm:$0xff]  }
 0x68f   : > { %15408 = vst [vmem:[#allocation75_spill] sm:$0xff] %v13462_v3  ;;  %15410 = vst [vmem:[#allocation91_spill] sm:$0xff] %v13465_v11  ;;  %v13471_v18 = vsub.f32 %v15413_v0, %v5492_v36  ;;  %v13480_v51 = vsub.f32 %v13060_v52, %v5492_v36  ;;  %v13483_v17 = vsub.f32 %v13097_v1, %v5492_v36  ;;  %8626 = vmatprep.subr.bf16.mxu1 %v9154_v29 }
 0x690   : > { %15412 = vst [vmem:[#allocation107_spill] sm:$0xff] %v13468_v20  ;;  %15416 = vst [vmem:[#allocation63_spill] sm:$0xff] %v13474_v42  ;;  %v13486_v54 = vsub.f32 %v13133_v53, %v5492_v36  ;;  %v13489_v37 = vsub.f32 %v13172_v34, %v5492_v36  ;;  %v5837_v47 = vadd.f32 %v5836_v24, %v5658_v41  ;;  %8535 = vmatprep.subr.bf16.mxu0 %v13247_v22 }
 0x691   : > { %15414 = vst [vmem:[#allocation77_spill] sm:$0xff] %v13471_v18  ;;  %15417 = vst [vmem:[#allocation25_spill] sm:$0xff] %v13477_v50  ;;  %v13492_v0 = vsub.f32 %v13207_v60, %v5492_v36  ;;  %v13495_v63 = vsub.f32 %v13261_v45, %v5492_v36  ;;  %v5628_v52 = vmul.f32 %v13450_v12, %v13450_v12 }
 0x692   : > { %15418 = vst [vmem:[#allocation29_spill] sm:$0xff] %v13480_v51  ;;  %15419 = vst [vmem:[#allocation40_spill] sm:$0xff] %v13483_v17  ;;  %v5636_v1 = vmul.f32 %v13453_v35, %v13453_v35  ;;  %v5644_v53 = vmul.f32 %v13456_v59, %v13456_v59  ;;  %v5652_v34 = vmul.f32 %v13459_v28, %v13459_v28  ;;  %8634 = vmatpush3.bf16.msra.mxu1 %v9155_v2 }
 0x693   : > { %15420 = vst [vmem:[#allocation51_spill] sm:$0xff] %v13486_v54  ;;  %15421 = vst [vmem:[#allocation70_spill] sm:$0xff] %v13489_v37  ;;  %v5660_v60 = vmul.f32 %v13462_v3, %v13462_v3  ;;  %v5838_v45 = vadd.f32 %v5837_v47, %v5666_v39  ;;  %v5668_v16 = vmul.f32 %v13465_v11, %v13465_v11  ;;  %v5491_v2 = vmul.f32 0.0078125, %v5443_v48  ;;  %v15425_v48 = vld [vmem:[#allocation21_spill] sm:$0xff] }
 0x694   : > { %15422 = vst [vmem:[#allocation54_spill] sm:$0xff] %v13492_v0  ;;  %v5676_v29 = vmul.f32 %v13468_v20, %v13468_v20  ;;  %v5684_v36 = vmul.f32 %v13471_v18, %v13471_v18  ;;  %v13516_v41 = vmul.f32 %v13474_v42, %v13474_v42  ;;  %v13520_v30 = vmul.f32 %v13477_v50, %v13477_v50  ;;  %v15424_v42 = vld [vmem:[#allocation27_spill] sm:$0xff]  ;;  %v15448_v11 = vld [vmem:[#allocation65_spill] sm:$0xff] }
 0x695   : > { %v13524_v22 = vmul.f32 %v13480_v51, %v13480_v51  ;;  %v13528_v39 = vmul.f32 %v13483_v17, %v13483_v17  ;;  %v5839_v24 = vadd.f32 %v5838_v45, %v13399_v40  ;;  %v13533_v55 = vmul.f32 %v13486_v54, %v13486_v54 }
 0x696   : > { %v13537_v47 = vmul.f32 %v13489_v37, %v13489_v37  ;;  %v13541_v35 = vmul.f32 %v13492_v0, %v13492_v0  ;;  %v13545_v12 = vmul.f32 %v13495_v63, %v13495_v63  ;;  %v5876_v17 = vadd.f32 %v5636_v1, %v5628_v52  ;;  %v15423_v0 = vld [vmem:[#allocation81_spill] sm:$0xff]  ;;  %v15428_v1 = vld [vmem:[#allocation52_spill] sm:$0xff] }
 0x697   : > { %v5485_v40 = vadd.f32 %v5484_v58, %v13329_v49  ;;  %v5840_v45 = vadd.f32 %v5839_v24, %v13403_v31  ;;  %v6746_v54 = vsel %vm6490_vm15, %v13323_v33, %v6618_v13  ;;  %v6754_v37 = vsel %vm6498_vm0, %v13326_v61, %v6626_v56  ;;  %v15426_v49 = vld [vmem:[#allocation44_spill] sm:$0xff]  ;;  %v15427_v33 = vld [vmem:[#allocation71_spill] sm:$0xff]  ;;  %v15430_v56 = vld [vmem:[#allocation66_spill] sm:$0xff] }
 0x698   : > { %v6047_v51 = vmul.f32 %v12819_v21, %v15423_v0  ;;  %v5877_v50 = vadd.f32 %v5876_v17, %v5644_v53  ;;  %v13558_v18 = vsub.f32 %v15424_v42, %v5491_v2  ;;  %v13561_v52 = vsub.f32 %v15425_v48, %v5491_v2  ;;  %v15432_v42 = vld [vmem:[#allocation87_spill] sm:$0xff] }
 0x699   : > { %v13564_v31 = vsub.f32 %v15426_v49, %v5491_v2  ;;  %v5841_v58 = vadd.f32 %v5840_v45, %v13407_v7  ;;  %v13568_v13 = vsub.f32 %v15427_v33, %v5491_v2  ;;  %v13571_v61 = vsub.f32 %v15428_v1, %v5491_v2  ;;  %v15434_v24 = vld [vmem:[#allocation23_spill] sm:$0xff]  ;;  %v15439_v1 = vld [vmem:[#allocation90_spill] sm:$0xff] }
 0x69a   : > { %v13574_v0 = vsub.f32 %v15430_v56, %v5491_v2  ;;  %v5878_v17 = vadd.f32 %v5877_v50, %v5652_v34  ;;  %v13577_v53 = vsub.f32 %v15432_v42, %v5491_v2  ;;  %v13580_v48 = vsub.f32 %v15434_v24, %v5491_v2  ;;  %v15441_v34 = vld [vmem:[#allocation95_spill] sm:$0xff] }
 0x69b   : > { %15429 = vst [vmem:[#allocation48_spill] sm:$0xff] %v13571_v61  ;;  %v13583_v49 = vsub.f32 %v12998_v26, %v5491_v2  ;;  %v5842_v7 = vadd.f32 %v5841_v58, %v13411_v8  ;;  %v13587_v45 = vsub.f32 %v13033_v14, %v5491_v2  ;;  %v13590_v33 = vsub.f32 %v13084_v6, %v5491_v2  ;;  %v15443_v24 = vld [vmem:[#allocation43_spill] sm:$0xff] }
 0x69c   : > { %15431 = vst [vmem:[#allocation73_spill] sm:$0xff] %v13574_v0  ;;  %15433 = vst [vmem:[#allocation24_spill] sm:$0xff] %v13577_v53  ;;  %v13593_v56 = vsub.f32 %v15439_v1, %v5491_v2  ;;  %v5879_v50 = vadd.f32 %v5878_v17, %v5660_v60  ;;  %v13596_v42 = vsub.f32 %v15441_v34, %v5491_v2 }
 0x69d   : > { %15435 = vst [vmem:[#allocation50_spill] sm:$0xff] %v13580_v48  ;;  %15436 = vst [vmem:[#allocation33_spill] sm:$0xff] %v13583_v49  ;;  %v13599_v20 = vsub.f32 %v15443_v24, %v5491_v2  ;;  %v13602_v26 = vsub.f32 %v13233_v32, %v5491_v2  ;;  %v5843_v8 = vadd.f32 %v5842_v7, %v13415_v15 }
 0x69e   : > { %15437 = vst [vmem:[#allocation83_spill] sm:$0xff] %v13587_v45  ;;  %15438 = vst [vmem:[#allocation46_spill] sm:$0xff] %v13590_v33  ;;  %v13606_v14 = vsub.f32 %v13283_v38, %v5491_v2  ;;  %v5627_v6 = vmul.f32 %v13558_v18, %v13558_v18  ;;  %v5635_v60 = vmul.f32 %v13561_v52, %v13561_v52 }
 0x69f   : > { %15440 = vst [vmem:[#allocation35_spill] sm:$0xff] %v13593_v56  ;;  %15442 = vst [vmem:[#allocation53_spill] sm:$0xff] %v13596_v42  ;;  %v5880_v58 = vadd.f32 %v5879_v50, %v5668_v16  ;;  %v5643_v17 = vmul.f32 %v13564_v31, %v13564_v31  ;;  %v5651_v1 = vmul.f32 %v13568_v13, %v13568_v13 }
 0x6a0   : > { %15444 = vst [vmem:[#allocation84_spill] sm:$0xff] %v13599_v20  ;;  %15445 = vst [vmem:[#allocation56_spill] sm:$0xff] %v13602_v26  ;;  %v5659_v32 = vmul.f32 %v13571_v61, %v13571_v61  ;;  %v5844_v15 = vadd.f32 %v5843_v8, %v13419_v23  ;;  %v5667_v38 = vmul.f32 %v13574_v0, %v13574_v0 }
 0x6a1   : > { %v5675_v2 = vmul.f32 %v13577_v53, %v13577_v53  ;;  %v5683_v16 = vmul.f32 %v13580_v48, %v13580_v48  ;;  %v5881_v7 = vadd.f32 %v5880_v58, %v5676_v29  ;;  %v13627_v50 = vmul.f32 %v13583_v49, %v13583_v49 }
 0x6a2   : > { %v13631_v34 = vmul.f32 %v13587_v45, %v13587_v45  ;;  %v13635_v23 = vmul.f32 %v13590_v33, %v13590_v33  ;;  %v5845_v24 = vadd.f32 %v5844_v15, %v13423_v27  ;;  %v13640_v8 = vmul.f32 %v13593_v56, %v13593_v56 }
 0x6a3   : > { %v13644_v29 = vmul.f32 %v13596_v42, %v13596_v42  ;;  %v13648_v58 = vmul.f32 %v13599_v20, %v13599_v20  ;;  %v5882_v45 = vadd.f32 %v5881_v7, %v5684_v36  ;;  %v13652_v49 = vmul.f32 %v13602_v26, %v13602_v26  ;;  %v15446_v42 = vld [vmem:[#allocation60_spill] sm:$0xff] }
 0x6a4   : > { %v13656_v27 = vmul.f32 %v13606_v14, %v13606_v14  ;;  %v5855_v15 = vadd.f32 %v5635_v60, %v5627_v6  ;;  %v5846_v56 = vadd.f32 %v5845_v24, %v13427_v19  ;;  %v5493_v33 = vmul.f32 0.0078125, %v5485_v40  ;;  %v15447_v7 = vld [vmem:[#allocation32_spill] sm:$0xff]  ;;  %v15450_v6 = vld [vmem:[#allocation34_spill] sm:$0xff] }
 0x6a5   : > { %v6963_v48 = vpack.c.bf16 %v6754_v37, %v6746_v54  ;;  %v6208_v53 = vmul.f32 %v15446_v42, %v13447_v62  ;;  %v5883_v20 = vadd.f32 %v5882_v45, %v13516_v41  ;;  %v6216_v36 = vmul.f32 %v15446_v42, %v6047_v51  ;;  %v15452_v54 = vld [vmem:[#allocation57_spill] sm:$0xff]  ;;  %v15453_v40 = vld [vmem:[#allocation74_spill] sm:$0xff]  ;;  %v15454_v45 = vld [vmem:[#allocation55_spill] sm:$0xff] }
 0x6a6   : > { %v5856_v0 = vadd.f32 %v5855_v15, %v5643_v17  ;;  %v6041_v26 = vmul.f32 %v12928_v5, %v15447_v7  ;;  %v5847_v61 = vadd.f32 %v5846_v56, %v13431_v4  ;;  %v13667_v3 = vsub.f32 %v15448_v11, %v5493_v33  ;;  %v15455_v11 = vld [vmem:[#allocation42_spill] sm:$0xff]  ;;  %v15456_v17 = vld [vmem:[#allocation37_spill] sm:$0xff] }
 0x6a7   : > { %v13670_v19 = vsub.f32 %v15450_v6, %v5493_v33  ;;  %v13673_v37 = vsub.f32 %v15452_v54, %v5493_v33  ;;  %7545 = vmatmul.mubr.bf16.gmra.mrb[148].mxu1 %v6963_v48  ;;  %v5884_v62 = vadd.f32 %v5883_v20, %v13520_v30  ;;  %v13677_v51 = vsub.f32 %v15453_v40, %v5493_v33  ;;  %v15457_v15 = vld [vmem:[#allocation22_spill] sm:$0xff]  ;;  %v15465_v40 = vld [vmem:[#allocation76_spill] sm:$0xff] }
 0x6a8   : > { %15449 = vst [vmem:[#allocation88_spill] sm:$0xff] %v13667_v3  ;;  %v5857_v41 = vadd.f32 %v5856_v0, %v5651_v1  ;;  %v13680_v60 = vsub.f32 %v15454_v45, %v5493_v33  ;;  %v5848_v4 = vadd.f32 %v5847_v61, %v13435_v57  ;;  %v13684_v56 = vsub.f32 %v15455_v11, %v5493_v33  ;;  %v15459_v0 = vld [vmem:[#allocation114_spill] sm:$0xff]  ;;  %v15461_v1 = vld [vmem:[#allocation115_spill] sm:$0xff]  ;;  %v15463_v57 = vld [vmem:[#allocation89_spill] sm:$0xff] }
 0x6a9   : > { %15451 = vst [vmem:[#allocation94_spill] sm:$0xff] %v13670_v19  ;;  %v13687_v24 = vsub.f32 %v15456_v17, %v5493_v33  ;;  %v13690_v7 = vsub.f32 %v15457_v15, %v5493_v33  ;;  %v5885_v20 = vadd.f32 %v5884_v62, %v13524_v22  ;;  %v13694_v48 = vsub.f32 %v15459_v0, %v5493_v33  ;;  %v15467_v11 = vld [vmem:[#allocation104_spill] sm:$0xff] }
 0x6aa   : > { %v5858_v30 = vadd.f32 %v5857_v41, %v5659_v32  ;;  %v13697_v6 = vsub.f32 %v15461_v1, %v5493_v33  ;;  %v5849_v54 = vrot.slane %v5848_v4, 4  ;;  %v13700_v61 = vsub.f32 %v15463_v57, %v5493_v33  ;;  %v15469_v32 = vld [vmem:[#allocation39_spill] sm:$0xff] }
 0x6ab   : > { %15458 = vst [vmem:[#allocation81_spill] sm:$0xff] %v13690_v7  ;;  %15460 = vst [vmem:[#allocation27_spill] sm:$0xff] %v13694_v48  ;;  %v13703_v45 = vsub.f32 %v15465_v40, %v5493_v33  ;;  %v13706_v17 = vsub.f32 %v15467_v11, %v5493_v33  ;;  %v5886_v15 = vadd.f32 %v5885_v20, %v13528_v39 }
 0x6ac   : > { %15462 = vst [vmem:[#allocation21_spill] sm:$0xff] %v13697_v6  ;;  %15464 = vst [vmem:[#allocation44_spill] sm:$0xff] %v13700_v61  ;;  %v5859_v22 = vadd.f32 %v5858_v30, %v5667_v38  ;;  %v13710_v62 = vsub.f32 %v15469_v32, %v5493_v33  ;;  %v13713_v41 = vsub.f32 %v13237_v10, %v5493_v33 }
 0x6ad   : > { %15466 = vst [vmem:[#allocation71_spill] sm:$0xff] %v13703_v45  ;;  %15468 = vst [vmem:[#allocation52_spill] sm:$0xff] %v13706_v17  ;;  %v5850_v0 = vadd.f32 %v5849_v54, %v5848_v4  ;;  %v13716_v1 = vsub.f32 %v13297_v9, %v5493_v33  ;;  %v5629_v57 = vmul.f32 %v13667_v3, %v13667_v3 }
 0x6ae   : > { %15470 = vst [vmem:[#allocation66_spill] sm:$0xff] %v13710_v62  ;;  %15471 = vst [vmem:[#allocation87_spill] sm:$0xff] %v13713_v41  ;;  %v5637_v40 = vmul.f32 %v13670_v19, %v13670_v19  ;;  %v5887_v11 = vadd.f32 %v5886_v15, %v13533_v55  ;;  %v5860_v39 = vadd.f32 %v5859_v22, %v5675_v2 }
 0x6af   : > { %v5645_v38 = vmul.f32 %v13673_v37, %v13673_v37  ;;  %v5653_v10 = vmul.f32 %v13677_v51, %v13677_v51  ;;  %v5851_v20 = vrot.slane %v5850_v0, 2  ;;  %v5661_v9 = vmul.f32 %v13680_v60, %v13680_v60 }
 0x6b0   : > { %v5669_v33 = vmul.f32 %v13684_v56, %v13684_v56  ;;  %v5677_v4 = vmul.f32 %v13687_v24, %v13687_v24  ;;  %v5888_v30 = vadd.f32 %v5887_v11, %v13537_v47  ;;  %v5861_v55 = vadd.f32 %v5860_v39, %v5683_v16 }
 0x6b1   : > { %v5685_v2 = vmul.f32 %v13690_v7, %v13690_v7  ;;  %v13738_v54 = vmul.f32 %v13694_v48, %v13694_v48  ;;  %v5852_v15 = vadd.f32 %v5851_v20, %v5850_v0  ;;  %v13742_v22 = vmul.f32 %v13697_v6, %v13697_v6 }
 0x6b2   : > { %v13746_v32 = vmul.f32 %v13700_v61, %v13700_v61  ;;  %v13750_v47 = vmul.f32 %v13703_v45, %v13703_v45  ;;  %v5889_v16 = vadd.f32 %v5888_v30, %v13541_v35  ;;  %v5862_v11 = vadd.f32 %v5861_v55, %v13627_v50  ;;  %v15472_v61 = vld [vmem:[#allocation49_spill] sm:$0xff] }
 0x6b3   : > { %v13756_v39 = vmul.f32 %v13706_v17, %v13706_v17  ;;  %v13760_v0 = vmul.f32 %v13710_v62, %v13710_v62  ;;  %v5853_v20 = vrot.slane %v5852_v15, 1  ;;  %v13764_v19 = vmul.f32 %v13713_v41, %v13713_v41 }
 0x6b4   : > { %v13768_v3 = vmul.f32 %v13716_v1, %v13716_v1  ;;  %v5897_v35 = vadd.f32 %v5637_v40, %v5629_v57  ;;  %v5890_v50 = vadd.f32 %v5889_v16, %v13545_v12  ;;  %v5863_v30 = vadd.f32 %v5862_v11, %v13631_v34 }
 0x6b5   : > { %v6377_v55 = vadd.f32 %v12584_v25, %v6208_v53  ;;  %v6385_v17 = vadd.f32 %v12584_v25, %v6216_v36  ;;  %v5854_v62 = vadd.f32 %v5853_v20, %v5852_v15  ;;  %v6049_v6 = vmul.f32 %v12928_v5, %v15472_v61 }
 0x6b6   : > { %v5898_v45 = vadd.f32 %v5897_v35, %v5645_v38  ;;  %v6210_v41 = vmul.f32 %v12678_v46, %v6041_v26  ;;  %v5891_v48 = vrot.slane %v5890_v50, 4  ;;  %v5864_v7 = vadd.f32 %v5863_v30, %v13635_v23 }
 0x6b7   : > { %vm6505_vm1 = vcmp.gt.f32.partialorder %v6377_v55, 0.0  ;;  %vm6513_vm2 = vcmp.gt.f32.partialorder %v6385_v17, 0.0  ;;  %v5922_v57 = vmul.f32 0.0078125, %v5854_v62  ;;  %v6633_v40 = vmul.f32 0.2, %v6377_v55 }
 0x6b8   : > { %v5899_v12 = vadd.f32 %v5898_v45, %v5653_v10  ;;  %v6641_v34 = vmul.f32 0.2, %v6385_v17  ;;  %v5892_v16 = vadd.f32 %v5891_v48, %v5890_v50  ;;  %v5865_v53 = vadd.f32 %v5864_v7, %v13640_v8  ;;  %v15474_v50 = vld [vmem:[#allocation68_spill] sm:$0xff] }
 0x6b9   : > { %v6218_v36 = vmul.f32 %v12678_v46, %v6049_v6  ;;  %v6379_v38 = vadd.f32 %v12771_v43, %v6210_v41  ;;  %v5930_v15 = vadd.f32 0.8, %v5922_v57  ;;  %v6761_v11 = vsel %vm6505_vm1, %v6377_v55, %v6633_v40  ;;  %v15475_v57 = vld [vmem:[#allocation99_spill] sm:$0xff] }
 0x6ba   : > { %v5900_v61 = vadd.f32 %v5899_v12, %v5661_v9  ;;  %v6769_v26 = vsel %vm6513_vm2, %v6385_v17, %v6641_v34  ;;  %v5893_v20 = vrot.slane %v5892_v16, 2  ;;  %v5866_v23 = vadd.f32 %v5865_v53, %v13644_v29  ;;  %v15473_v9 = vld [vmem:[#allocation92_spill] sm:$0xff]  ;;  %v15476_v12 = vld [vmem:[#allocation38_spill] sm:$0xff] }
 0x6bb   : > { %v6970_v35 = vpack.c.bf16 %v6769_v26, %v6761_v11  ;;  %v6387_v62 = vadd.f32 %v12771_v43, %v6218_v36  ;;  %9176 = vrsqrt.f32 %v5930_v15  ;;  %vm6507_vm3 = vcmp.gt.f32.partialorder %v6379_v38, 0.0  ;;  %v15478_v15 = vld [vmem:[#allocation100_spill] sm:$0xff]  ;;  %v15479_v11 = vld [vmem:[#allocation106_spill] sm:$0xff] }
 0x6bc   : > { %v5901_v45 = vadd.f32 %v5900_v61, %v5669_v33  ;;  %v6635_v48 = vmul.f32 0.2, %v6379_v38  ;;  %v5894_v10 = vadd.f32 %v5893_v20, %v5892_v16  ;;  %v5867_v8 = vadd.f32 %v5866_v23, %v13648_v58  ;;  %v15477_v16 = vld [vmem:[#allocation102_spill] sm:$0xff] }
 0x6bd   : > { %7455 = vmatprep.mubr.bf16.mxu0 %v6970_v35  ;;  %vm6515_vm4 = vcmp.gt.f32.partialorder %v6387_v62, 0.0  ;;  %v6643_v7 = vmul.f32 0.2, %v6387_v62  ;;  %v6038_v17 = vmul.f32 %v12709_v44, %v15473_v9  ;;  %v6046_v29 = vmul.f32 %v12709_v44, %v15474_v50  ;;  %v15480_v20 = vld [vmem:[#allocation58_spill] sm:$0xff] }
 0x6be   : > { %v5902_v6 = vadd.f32 %v5901_v45, %v5677_v4  ;;  %v6763_v41 = vsel %vm6507_vm3, %v6379_v38, %v6635_v48  ;;  %v5895_v30 = vrot.slane %v5894_v10, 1  ;;  %v5868_v55 = vadd.f32 %v5867_v8, %v13652_v49  ;;  %v15481_v35 = vld [vmem:[#allocation82_spill] sm:$0xff] }
 0x6bf   : > { %v6771_v33 = vsel %vm6515_vm4, %v6387_v62, %v6643_v7  ;;  %v6040_v40 = vmul.f32 %v15476_v12, %v15475_v57  ;;  %v6207_v53 = vmul.f32 %v15477_v16, %v6038_v17  ;;  %v6215_v4 = vmul.f32 %v15477_v16, %v6046_v29 }
 0x6c0   : > { %v5903_v34 = vadd.f32 %v5902_v6, %v5685_v2  ;;  %v6972_v58 = vpack.c.bf16 %v6771_v33, %v6763_v41  ;;  %v5896_v36 = vadd.f32 %v5895_v30, %v5894_v10  ;;  %v5869_v38 = vadd.f32 %v5868_v55, %v13656_v27  ;;  %v15482_v27 = vld [vmem:[#allocation59_spill] sm:$0xff] }
 0x6c1   : > { %v6048_v61 = vmul.f32 %v15476_v12, %v15478_v15  ;;  %v6209_v26 = vmul.f32 %v15479_v11, %v6040_v40  ;;  %v6376_v23 = vadd.f32 %v15480_v20, %v6207_v53  ;;  %v6384_v2 = vadd.f32 %v15480_v20, %v6215_v4  ;;  %v15483_v55 = vld [vmem:[#allocation31_spill] sm:$0xff]  ;;  %v15484_v53 = vld [vmem:[#allocation97_spill] sm:$0xff] }
 0x6c2   : > { %v5904_v49 = vadd.f32 %v5903_v34, %v13738_v54  ;;  %7552 = vmatprep.mubr.bf16.mxu1 %v6972_v58  ;;  %v6055_v62 = vmul.f32 %v12819_v21, %v15481_v35  ;;  %v5924_v45 = vmul.f32 0.0078125, %v5896_v36  ;;  %v5870_v48 = vrot.slane %v5869_v38, 4 }
 0x6c3   : > { %v6217_v10 = vmul.f32 %v15479_v11, %v6048_v61  ;;  %v6378_v8 = vadd.f32 %v15482_v27, %v6209_v26  ;;  %vm6504_vm5 = vcmp.gt.f32.partialorder %v6376_v23, 0.0  ;;  %vm6512_vm6 = vcmp.gt.f32.partialorder %v6384_v2, 0.0  ;;  %v15485_v26 = vld [vmem:[#allocation72_spill] sm:$0xff] }
 0x6c4   : > { %v5905_v7 = vadd.f32 %v5904_v49, %v13742_v22  ;;  %v6632_v6 = vmul.f32 0.2, %v6376_v23  ;;  %v5932_v54 = vadd.f32 0.8, %v5924_v45  ;;  %v5871_v41 = vadd.f32 %v5870_v48, %v5869_v38 }
 0x6c5   : > { %v6640_v9 = vmul.f32 0.2, %v6384_v2  ;;  %v6386_v17 = vadd.f32 %v15482_v27, %v6217_v10  ;;  %v13806_v50 = vpop.eup %9176  ;;  %vm6506_vm7 = vcmp.gt.f32.partialorder %v6378_v8, 0.0  ;;  %v6634_v30 = vmul.f32 0.2, %v6378_v8 }
 0x6c6   : > { %v5906_v21 = vadd.f32 %v5905_v7, %v13746_v32  ;;  %v6760_v29 = vsel %vm6504_vm5, %v6376_v23, %v6632_v6  ;;  %v6066_v33 = vmul.f32 %v13806_v50, %v15483_v55  ;;  %9178 = vrsqrt.f32 %v5932_v54  ;;  %v15486_v23 = vld [vmem:[#allocation78_spill] sm:$0xff] }
 0x6c7   : > { %v5872_v22 = vrot.slane %v5871_v41, 2  ;;  %v6768_v57 = vsel %vm6512_vm6, %v6384_v2, %v6640_v9  ;;  %vm6514_vm8 = vcmp.gt.f32.partialorder %v6386_v17, 0.0  ;;  %v6642_v58 = vmul.f32 0.2, %v6386_v17  ;;  %v15490_v9 = vld [vmem:[#allocation64_spill] sm:$0xff] }
 0x6c8   : > { %v5907_v40 = vadd.f32 %v5906_v21, %v13750_v47  ;;  %v6969_v34 = vpack.c.bf16 %v6768_v57, %v6760_v29  ;;  %v6235_v4 = vmul.f32 %v15484_v53, %v6066_v33  ;;  %v6762_v38 = vsel %vm6506_vm7, %v6378_v8, %v6634_v30  ;;  %v15491_v57 = vld [vmem:[#allocation101_spill] sm:$0xff] }
 0x6c9   : > { %v5873_v36 = vadd.f32 %v5872_v22, %v5871_v41  ;;  %v6224_v32 = vmul.f32 %v15446_v42, %v6055_v62  ;;  %v6770_v61 = vsel %vm6514_vm8, %v6386_v17, %v6642_v58  ;;  %vm6529_vm9 = vcmp.gt.f32.partialorder %v15485_v26, 0.0  ;;  %v15487_v42 = vld [vmem:[#allocation105_spill] sm:$0xff]  ;;  %v15488_v62 = vld [vmem:[#allocation96_spill] sm:$0xff] }
 0x6ca   : > { %v5908_v15 = vadd.f32 %v5907_v40, %v13756_v39  ;;  %7456 = vmatmul.mubr.bf16.gmra.mrb[136].mxu0 %v6969_v34  ;;  %v6657_v49 = vmul.f32 0.2, %v15485_v26  ;;  %v13818_v2 = vadd.f32 %v15486_v23, %v6235_v4  ;;  %v6971_v35 = vpack.c.bf16 %v6770_v61, %v6762_v38  ;;  %v15492_v34 = vld [vmem:[#allocation20_spill] sm:$0xff]  ;;  %v15494_v61 = vld [vmem:[#allocation109_spill] sm:$0xff] }
 0x6cb   : > { %v5874_v47 = vrot.slane %v5873_v36, 1  ;;  %v6393_v45 = vadd.f32 %v12584_v25, %v6224_v32  ;;  %v6057_v39 = vmul.f32 %v12928_v5, %v15487_v42  ;;  %vm6531_vm10 = vcmp.gt.f32.partialorder %v15488_v62, 0.0  ;;  %v15489_v25 = vld [vmem:[#allocation93_spill] sm:$0xff]  ;;  %v15493_v38 = vld [vmem:[#allocation28_spill] sm:$0xff] }
 0x6cc   : > { %v5909_v48 = vadd.f32 %v5908_v15, %v13760_v0  ;;  %v6785_v10 = vsel %vm6529_vm9, %v15485_v26, %v6657_v49  ;;  %7553 = vmatmul.mubr.bf16.gmra.mrb[152].mxu1 %v6971_v35  ;;  %v6659_v6 = vmul.f32 0.2, %v15488_v62  ;;  %v6054_v0 = vmul.f32 %v12709_v44, %v15489_v25  ;;  %v15495_v35 = vld [vmem:[#allocation45_spill] sm:$0xff] }
 0x6cd   : > { %v5875_v8 = vadd.f32 %v5874_v47, %v5873_v36  ;;  %vm6521_vm11 = vcmp.gt.f32.partialorder %v6393_v45, 0.0  ;;  %v6649_v7 = vmul.f32 0.2, %v6393_v45  ;;  %v6226_v41 = vmul.f32 %v12678_v46, %v6057_v39 }
 0x6ce   : > { %v5910_v54 = vadd.f32 %v5909_v48, %v13764_v19  ;;  %vm6528_vm12 = vcmp.gt.f32.partialorder %v15490_v9, 0.0  ;;  %v6787_v5 = vsel %vm6531_vm10, %v15488_v62, %v6659_v6  ;;  %v6656_v29 = vmul.f32 0.2, %v15490_v9  ;;  %v15496_v48 = vld [vmem:[#allocation103_spill] sm:$0xff] }
 0x6cf   : > { %v5923_v17 = vmul.f32 0.0078125, %v5875_v8  ;;  %v6777_v21 = vsel %vm6521_vm11, %v6393_v45, %v6649_v7  ;;  %v6395_v33 = vadd.f32 %v12771_v43, %v6226_v41  ;;  %v6223_v19 = vmul.f32 %v15477_v16, %v6054_v0  ;;  %v15497_v0 = vld [vmem:[#allocation111_spill] sm:$0xff] }
 0x6d0   : > { %v5911_v30 = vadd.f32 %v5910_v54, %v13768_v3  ;;  %v6978_v55 = vpack.c.bf16 %v6785_v10, %v6777_v21  ;;  %v13837_v22 = vpop.eup %9178  ;;  %v6784_v44 = vsel %vm6528_vm12, %v15490_v9, %v6656_v29  ;;  %v6056_v40 = vmul.f32 %v15476_v12, %v15491_v57 }
 0x6d1   : > { %v5931_v46 = vadd.f32 0.8, %v5923_v17  ;;  %vm6530_vm13 = vcmp.gt.f32.partialorder %v15492_v34, 0.0  ;;  %v6068_v58 = vmul.f32 %v13837_v22, %v13495_v63  ;;  %vm6523_vm14 = vcmp.gt.f32.partialorder %v6395_v33, 0.0 }
 0x6d2   : > { %v5912_v4 = vrot.slane %v5911_v30, 4  ;;  %7463 = vmatprep.mubr.bf16.mxu0 %v6978_v55  ;;  %v6651_v3 = vmul.f32 0.2, %v6395_v33  ;;  %v6392_v43 = vadd.f32 %v15480_v20, %v6223_v19  ;;  %v6225_v16 = vmul.f32 %v15479_v11, %v6056_v40  ;;  %v15498_v55 = vld [vmem:[#allocation110_spill] sm:$0xff] }
 0x6d3   : > { %9180 = vrsqrt.f32 %v5931_v46  ;;  %v6658_v36 = vmul.f32 0.2, %v15492_v34  ;;  %v6237_v32 = vmul.f32 %v15493_v38, %v6068_v58  ;;  %v5946_v26 = vmul.f32 %v13806_v50, %v15494_v61 }
 0x6d4   : > { %v5913_v15 = vadd.f32 %v5912_v4, %v5911_v30  ;;  %v6779_v12 = vsel %vm6523_vm14, %v6395_v33, %v6651_v3  ;;  %vm6520_vm15 = vcmp.gt.f32.partialorder %v6392_v43, 0.0  ;;  %v6648_v63 = vmul.f32 0.2, %v6392_v43 }
 0x6d5   : > { %v6980_v49 = vpack.c.bf16 %v6787_v5, %v6779_v12  ;;  %v6394_v47 = vadd.f32 %v15482_v27, %v6225_v16  ;;  %v13853_v45 = vadd.f32 %v15495_v35, %v6237_v32  ;;  %v6786_v11 = vsel %vm6530_vm13, %v15492_v34, %v6658_v36 }
 0x6d6   : > { %v5914_v20 = vrot.slane %v5913_v15, 2  ;;  %v5954_v10 = vmul.f32 %v13806_v50, %v15496_v48  ;;  %v6776_v42 = vsel %vm6520_vm15, %v6392_v43, %v6648_v63  ;;  %v6115_v62 = vmul.f32 %v15484_v53, %v5946_v26 }
 0x6d7   : > { %7560 = vmatprep.mubr.bf16.mxu1 %v6980_v49  ;;  %vm6522_vm0 = vcmp.gt.f32.partialorder %v6394_v47, 0.0  ;;  %v6650_v39 = vmul.f32 0.2, %v6394_v47  ;;  %v6977_v7 = vpack.c.bf16 %v6784_v44, %v6776_v42  ;;  %v5964_v6 = vmul.f32 %v13837_v22, %v13456_v59 }
 0x6d8   : > { %v5915_v8 = vadd.f32 %v5914_v20, %v5913_v15  ;;  %v6123_v27 = vmul.f32 %v15484_v53, %v5954_v10  ;;  %v6284_v41 = vadd.f32 %v15486_v23, %v6115_v62  ;;  %v5972_v25 = vmul.f32 %v13837_v22, %v13459_v28  ;;  %v15499_v15 = vld [vmem:[#allocation79_spill] sm:$0xff]  ;;  %v15500_v20 = vld [vmem:[#allocation85_spill] sm:$0xff] }
 0x6d9   : > { %v6778_v54 = vsel %vm6522_vm0, %v6394_v47, %v6650_v39  ;;  %v5962_v9 = vmul.f32 %v13806_v50, %v15497_v0  ;;  %7464 = vmatmul.mubr.bf16.gmra.mrb[140].mxu0 %v6977_v7  ;;  %v6133_v29 = vmul.f32 %v15493_v38, %v5964_v6  ;;  %v5970_v33 = vmul.f32 %v13806_v50, %v15498_v55 }
 0x6da   : > { %v5916_v17 = vrot.slane %v5915_v8, 1  ;;  %v6979_v21 = vpack.c.bf16 %v6786_v11, %v6778_v54  ;;  %v6292_v5 = vadd.f32 %v15486_v23, %v6123_v27  ;;  %vm6412_vm1 = vcmp.gt.f32.partialorder %v6284_v41, 0.0 }
 0x6db   : > { %v6540_v30 = vmul.f32 0.2, %v6284_v41  ;;  %v6141_v59 = vmul.f32 %v15493_v38, %v5972_v25  ;;  %v6302_v46 = vadd.f32 %v15495_v35, %v6133_v29  ;;  %v6131_v34 = vmul.f32 %v15484_v53, %v5962_v9  ;;  %v15501_v29 = vld [vmem:[#allocation75_spill] sm:$0xff] }
 0x6dc   : > { %v5917_v19 = vadd.f32 %v5916_v17, %v5915_v8  ;;  %7561 = vmatmul.mubr.bf16.gmra.mrb[156].mxu1 %v6979_v21  ;;  %vm6420_vm2 = vcmp.gt.f32.partialorder %v6292_v5, 0.0  ;;  %v6548_v28 = vmul.f32 0.2, %v6292_v5  ;;  %v6139_v58 = vmul.f32 %v15484_v53, %v5970_v33  ;;  %v15502_v33 = vld [vmem:[#allocation91_spill] sm:$0xff] }
 0x6dd   : > { %v13875_v44 = vpop.eup %9180  ;;  %v6668_v57 = vsel %vm6412_vm1, %v6284_v41, %v6540_v30  ;;  %v6310_v40 = vadd.f32 %v15495_v35, %v6141_v59  ;;  %vm6430_vm3 = vcmp.gt.f32.partialorder %v6302_v46, 0.0  ;;  %v6558_v32 = vmul.f32 0.2, %v6302_v46 }
 0x6de   : > { %v6067_v4 = vmul.f32 %v13875_v44, %v13606_v14  ;;  %v5925_v3 = vmul.f32 0.0078125, %v5917_v19  ;;  %v5947_v43 = vmul.f32 %v13875_v44, %v13558_v18  ;;  %v5955_v16 = vmul.f32 %v13875_v44, %v13561_v52 }
 0x6df   : > { %v6676_v36 = vsel %vm6420_vm2, %v6292_v5, %v6548_v28  ;;  %vm6438_vm4 = vcmp.gt.f32.partialorder %v6310_v40, 0.0  ;;  %v6566_v14 = vmul.f32 0.2, %v6310_v40  ;;  %v13889_v47 = vsel %vm6430_vm3, %v6302_v46, %v6558_v32 }
 0x6e0   : > { %v6236_v12 = vmul.f32 %v15499_v15, %v6067_v4  ;;  %v5933_v61 = vadd.f32 0.8, %v5925_v3  ;;  %v6116_v26 = vmul.f32 %v15499_v15, %v5947_v43  ;;  %v6124_v49 = vmul.f32 %v15499_v15, %v5955_v16  ;;  %v9218_v4 = vld [vmem:[#allocation7 + $0x180] sm:$0xff]  }
 0x6e1   : > { %v6925_v63 = vpack.c.bf16 %v6676_v36, %v6668_v57  ;;  %v5963_v18 = vmul.f32 %v13875_v44, %v13564_v31  ;;  %v13898_v10 = vsel %vm6438_vm4, %v6310_v40, %v6566_v14  ;;  %v5971_v42 = vmul.f32 %v13875_v44, %v13568_v13  ;;  %v15503_v57 = vld [vmem:[#allocation48_spill] sm:$0xff]  ;;  %v15505_v36 = vld [vmem:[#allocation113_spill] sm:$0xff] }
 0x6e2   : > { %v13894_v52 = vadd.f32 %v15500_v20, %v6236_v12  ;;  %9182 = vrsqrt.f32 %v5933_v61  ;;  %v6285_v11 = vadd.f32 %v15500_v20, %v6116_v26  ;;  %v6293_v48 = vadd.f32 %v15500_v20, %v6124_v49  ;;  %v9219_v26 = vld [vmem:[#allocation7 + $0x1c8] sm:$0xff]  }
 0x6e3   : > { %v6132_v39 = vmul.f32 %v15499_v15, %v5963_v18  ;;  %v6300_v62 = vadd.f32 %v15486_v23, %v6131_v34  ;;  %v6935_v7 = vpack.c.bf16 %v13898_v10, %v13889_v47  ;;  %v6140_v27 = vmul.f32 %v15499_v15, %v5971_v42  ;;  %v15504_v34 = vld [vmem:[#allocation73_spill] sm:$0xff] }
 0x6e4   : > { %vm6413_vm5 = vcmp.gt.f32.partialorder %v6285_v11, 0.0  ;;  %vm6421_vm6 = vcmp.gt.f32.partialorder %v6293_v48, 0.0  ;;  %v6541_v31 = vmul.f32 0.2, %v6285_v11  ;;  %v6549_v8 = vmul.f32 0.2, %v6293_v48 }
 0x6e5   : > { %v6301_v6 = vadd.f32 %v15500_v20, %v6132_v39  ;;  %v6308_v54 = vadd.f32 %v15486_v23, %v6139_v58  ;;  %vm6428_vm7 = vcmp.gt.f32.partialorder %v6300_v62, 0.0  ;;  %v6556_v13 = vmul.f32 0.2, %v6300_v62 }
 0x6e6   : > { %v6669_v41 = vsel %vm6413_vm5, %v6285_v11, %v6541_v31  ;;  %v6677_v25 = vsel %vm6421_vm6, %v6293_v48, %v6549_v8  ;;  %v6309_v9 = vadd.f32 %v15500_v20, %v6140_v27  ;;  %v5980_v30 = vmul.f32 %v13837_v22, %v15501_v29  ;;  %v15506_v8 = vld [vmem:[#allocation86_spill] sm:$0xff] }
 0x6e7   : > { %v6926_v0 = vpack.c.bf16 %v6677_v25, %v6669_v41  ;;  %vm6429_vm8 = vcmp.gt.f32.partialorder %v6301_v6, 0.0  ;;  %v6557_v17 = vmul.f32 0.2, %v6301_v6  ;;  %vm6436_vm9 = vcmp.gt.f32.partialorder %v6308_v54, 0.0  ;;  %v15507_v25 = vld [vmem:[#allocation26_spill] sm:$0xff] }
 0x6e8   : > { %v6564_v21 = vmul.f32 0.2, %v6308_v54  ;;  %v6684_v5 = vsel %vm6428_vm7, %v6300_v62, %v6556_v13  ;;  %vm6437_vm10 = vcmp.gt.f32.partialorder %v6309_v9, 0.0  ;;  %v6565_v59 = vmul.f32 0.2, %v6309_v9 }
 0x6e9   : > { %7601 = vmatprep.mubr.bf16.mxu0 %v6926_v0  ;;  %v6685_v55 = vsel %vm6429_vm8, %v6301_v6, %v6557_v17  ;;  %v5988_v19 = vmul.f32 %v13837_v22, %v15502_v33  ;;  %v6149_v46 = vmul.f32 %v15493_v38, %v5980_v30  ;;  %v5979_v40 = vmul.f32 %v13875_v44, %v15503_v57  ;;  %v9222_v33 = vld [vmem:[#allocation7 + $0x190] sm:$0xff]  }
 0x6ea   : > { %7602 = vmatmul.mubr.bf16.vlgmr.msra.gmra.mrb[144].mxu0 %v6925_v63  ;;  %v6692_v28 = vsel %vm6436_vm9, %v6308_v54, %v6564_v21  ;;  %v5987_v58 = vmul.f32 %v13875_v44, %v15504_v34  ;;  %v6693_v3 = vsel %vm6437_vm10, %v6309_v9, %v6565_v59  ;;  %v13922_v32 = vmul.f32 %v13806_v50, %v15505_v36 }
 0x6eb   : > { %8536 = vmatpush3.bf16.msra.mxu0 %v9218_v4  ;;  %v6933_v43 = vpack.c.bf16 %v6692_v28, %v6684_v5  ;;  %v6157_v16 = vmul.f32 %v15493_v38, %v5988_v19  ;;  %v6934_v61 = vpack.c.bf16 %v6693_v3, %v6685_v55  ;;  %v6318_v49 = vadd.f32 %v15495_v35, %v6149_v46  ;;  %v9223_v46 = vld [vmem:[#allocation7 + $0x1d8] sm:$0xff]  }
 0x6ec   : > { %v13924_v12 = vpop.eup %9182  ;;  %8537 = vmatprep.subr.bf16.mxu0 %v9219_v26  ;;  %v6148_v63 = vmul.f32 %v15499_v15, %v5979_v40  ;;  %v6156_v14 = vmul.f32 %v15499_v15, %v5987_v58  ;;  %v9224_v26 = vld [vmem:[#allocation7 + $0x198] sm:$0xff]  }
 0x6ed   : > { %v6069_v18 = vmul.f32 %v13924_v12, %v13716_v1  ;;  %v5965_v11 = vmul.f32 %v13924_v12, %v13673_v37  ;;  %v5973_v48 = vmul.f32 %v13924_v12, %v13677_v51  ;;  %v5981_v42 = vmul.f32 %v13924_v12, %v13680_v60  ;;  %7609 = vmatprep.mubr.bf16.mxu0 %v6934_v61  ;;  %v9220_v51 = vld [vmem:[#allocation7 + $0x188] sm:$0xff]  }
 0x6ee   : > { %v5989_v39 = vmul.f32 %v13924_v12, %v13684_v56  ;;  %v6326_v62 = vadd.f32 %v15495_v35, %v6157_v16  ;;  %vm6446_vm11 = vcmp.gt.f32.partialorder %v6318_v49, 0.0  ;;  %v6574_v31 = vmul.f32 0.2, %v6318_v49  ;;  %v9221_v56 = vld [vmem:[#allocation7 + $0x1d0] sm:$0xff]  }
 0x6ef   : > { %v6238_v27 = vmul.f32 %v15506_v8, %v6069_v18  ;;  %v6134_v1 = vmul.f32 %v15506_v8, %v5965_v11  ;;  %v6142_v37 = vmul.f32 %v15506_v8, %v5973_v48  ;;  %v6150_v6 = vmul.f32 %v15506_v8, %v5981_v42  ;;  %8538 = vmatpush3.bf16.msra.mxu0 %v9220_v51  ;;  %v15510_v48 = vld [vmem:[#allocation107_spill] sm:$0xff] }
 0x6f0   : > { %v6158_v60 = vmul.f32 %v15506_v8, %v5989_v39  ;;  %vm6454_vm12 = vcmp.gt.f32.partialorder %v6326_v62, 0.0  ;;  %v6582_v54 = vmul.f32 0.2, %v6326_v62  ;;  %v13945_v41 = vsel %vm6446_vm11, %v6318_v49, %v6574_v31  ;;  %8539 = vmatprep.subr.bf16.mxu0 %v9221_v56  ;;  %v15508_v49 = vld [vmem:[#allocation81_spill] sm:$0xff] }
 0x6f1   : > { %v13948_v13 = vadd.f32 %v15507_v25, %v6238_v27  ;;  %v6303_v0 = vadd.f32 %v15507_v25, %v6134_v1  ;;  %v6311_v9 = vadd.f32 %v15507_v25, %v6142_v37  ;;  %v6319_v17 = vadd.f32 %v15507_v25, %v6150_v6  ;;  %v15511_v31 = vld [vmem:[#allocation77_spill] sm:$0xff] }
 0x6f2   : > { %v6327_v21 = vadd.f32 %v15507_v25, %v6158_v60  ;;  %7610 = vmatmul.mubr.bf16.gmra.mrb[148].mxu0 %v6933_v43  ;;  %v13954_v5 = vsel %vm6454_vm12, %v6326_v62, %v6582_v54  ;;  %v6317_v29 = vadd.f32 %v15500_v20, %v6148_v63  ;;  %v6325_v30 = vadd.f32 %v15500_v20, %v6156_v14  ;;  %v15509_v14 = vld [vmem:[#allocation67_spill] sm:$0xff]  ;;  %v9225_v54 = vld [vmem:[#allocation7 + $0x1e0] sm:$0xff]  }
 0x6f3   : > { %vm6431_vm13 = vcmp.gt.f32.partialorder %v6303_v0, 0.0  ;;  %vm6439_vm14 = vcmp.gt.f32.partialorder %v6311_v9, 0.0  ;;  %v6559_v59 = vmul.f32 0.2, %v6303_v0  ;;  %v6567_v55 = vmul.f32 0.2, %v6311_v9  ;;  %8540 = vmatpush3.bf16.msra.mxu0 %v9222_v33 }
 0x6f4   : > { %vm6447_vm15 = vcmp.gt.f32.partialorder %v6319_v17, 0.0  ;;  %vm6455_vm0 = vcmp.gt.f32.partialorder %v6327_v21, 0.0  ;;  %v6575_v19 = vmul.f32 0.2, %v6319_v17  ;;  %v6583_v28 = vmul.f32 0.2, %v6327_v21  ;;  %8541 = vmatprep.subr.bf16.mxu0 %v9223_v46 }
 0x6f5   : > { %v6687_v57 = vsel %vm6431_vm13, %v6303_v0, %v6559_v59  ;;  %v6695_v40 = vsel %vm6439_vm14, %v6311_v9, %v6567_v55  ;;  %v6943_v34 = vpack.c.bf16 %v13954_v5, %v13945_v41  ;;  %vm6445_vm1 = vcmp.gt.f32.partialorder %v6317_v29, 0.0  ;;  %v9226_v9 = vld [vmem:[#allocation7 + $0x1a0] sm:$0xff]  }
 0x6f6   : > { %v6936_v58 = vpack.c.bf16 %v6695_v40, %v6687_v57  ;;  %v6703_v4 = vsel %vm6447_vm15, %v6319_v17, %v6575_v19  ;;  %v6711_v3 = vsel %vm6455_vm0, %v6327_v21, %v6583_v28  ;;  %vm6453_vm2 = vcmp.gt.f32.partialorder %v6325_v30, 0.0  ;;  %v9228_v40 = vld [vmem:[#allocation7 + $0x1a8] sm:$0xff]  }
 0x6f7   : > { %v6944_v43 = vpack.c.bf16 %v6711_v3, %v6703_v4  ;;  %v6573_v16 = vmul.f32 0.2, %v6317_v29  ;;  %v6581_v36 = vmul.f32 0.2, %v6325_v30  ;;  %v5997_v61 = vmul.f32 %v13924_v12, %v13687_v24  ;;  %8542 = vmatpush3.bf16.msra.mxu0 %v9224_v26  ;;  %v15513_v3 = vld [vmem:[#allocation50_spill] sm:$0xff]  ;;  %v15514_v26 = vld [vmem:[#allocation27_spill] sm:$0xff] }
 0x6f8   : > { %7706 = vmatprep.mubr.bf16.mxu1 %v6936_v58  ;;  %v6005_v63 = vmul.f32 %v13924_v12, %v15508_v49  ;;  %v5986_v18 = vmul.f32 %v13806_v50, %v15509_v14  ;;  %v6147_v11 = vmul.f32 %v15484_v53, %v13922_v32  ;;  %v5996_v42 = vmul.f32 %v13837_v22, %v15510_v48 }
 0x6f9   : > { %7707 = vmatmul.mubr.bf16.vlgmr.msra.gmra.mrb[160].mxu1 %v6935_v7  ;;  %v6701_v24 = vsel %vm6445_vm1, %v6317_v29, %v6573_v16  ;;  %v6709_v39 = vsel %vm6453_vm2, %v6325_v30, %v6581_v36  ;;  %v6166_v62 = vmul.f32 %v15506_v8, %v5997_v61  ;;  %v6004_v27 = vmul.f32 %v13837_v22, %v15511_v31  ;;  %v15512_v7 = vld [vmem:[#allocation24_spill] sm:$0xff]  ;;  %v9227_v29 = vld [vmem:[#allocation7 + $0x1e8] sm:$0xff]   ;;  %v15517_v31 = vld [vmem:[#allocation98_spill] sm:$0xff] }
 0x6fa   : > { %7714 = vmatprep.mubr.bf16.mxu1 %v6944_v43  ;;  %v6942_v1 = vpack.c.bf16 %v6709_v39, %v6701_v24  ;;  %v6174_v37 = vmul.f32 %v15506_v8, %v6005_v63  ;;  %v6155_v32 = vmul.f32 %v15484_v53, %v5986_v18  ;;  %v6316_v6 = vadd.f32 %v15486_v23, %v6147_v11  ;;  %v15515_v63 = vld [vmem:[#allocation21_spill] sm:$0xff]  ;;  %v9229_v18 = vld [vmem:[#allocation7 + $0x1f0] sm:$0xff]  }
 0x6fb   : > { %v6335_v51 = vadd.f32 %v15507_v25, %v6166_v62  ;;  %v6165_v47 = vmul.f32 %v15493_v38, %v5996_v42  ;;  %v6173_v10 = vmul.f32 %v15493_v38, %v6004_v27  ;;  %v5995_v60 = vmul.f32 %v13875_v44, %v15512_v7  ;;  %8543 = vmatprep.subr.bf16.mxu0 %v9225_v54  ;;  %v15516_v39 = vld [vmem:[#allocation41_spill] sm:$0xff] }
 0x6fc   : > { %7617 = vmatprep.mubr.bf16.mxu0 %v6942_v1  ;;  %v6343_v41 = vadd.f32 %v15507_v25, %v6174_v37  ;;  %v6324_v56 = vadd.f32 %v15486_v23, %v6155_v32  ;;  %vm6444_vm3 = vcmp.gt.f32.partialorder %v6316_v6, 0.0  ;;  %v6572_v0 = vmul.f32 0.2, %v6316_v6  ;;  %8544 = vmatpush3.bf16.msra.mxu0 %v9226_v9  ;;  %v9230_v1 = vld [vmem:[#allocation7 + $0x1b0] sm:$0xff]  }
 0x6fd   : > { %vm6463_vm4 = vcmp.gt.f32.partialorder %v6335_v51, 0.0  ;;  %v6591_v17 = vmul.f32 0.2, %v6335_v51  ;;  %v6334_v21 = vadd.f32 %v15495_v35, %v6165_v47  ;;  %v6342_v5 = vadd.f32 %v15495_v35, %v6173_v10  ;;  %8545 = vmatprep.subr.bf16.mxu0 %v9227_v29  ;;  %v9231_v10 = vld [vmem:[#allocation7 + $0x1f8] sm:$0xff]  }
 0x6fe   : > { %vm6471_vm5 = vcmp.gt.f32.partialorder %v6343_v41, 0.0  ;;  %v6599_v30 = vmul.f32 0.2, %v6343_v41  ;;  %vm6452_vm6 = vcmp.gt.f32.partialorder %v6324_v56, 0.0  ;;  %v6580_v59 = vmul.f32 0.2, %v6324_v56 }
 0x6ff   : > { %v6719_v55 = vsel %vm6463_vm4, %v6335_v51, %v6591_v17  ;;  %v6700_v33 = vsel %vm6444_vm3, %v6316_v6, %v6572_v0  ;;  %vm6462_vm7 = vcmp.gt.f32.partialorder %v6334_v21, 0.0  ;;  %vm6470_vm8 = vcmp.gt.f32.partialorder %v6342_v5, 0.0  ;;  %v14004_v37 = vpop.f32.mrb[112].mxu0  ;;  %v15518_v51 = vld [vmem:[#allocation63_spill] sm:$0xff] }
 0x700   : > { %v6727_v19 = vsel %vm6471_vm5, %v6343_v41, %v6599_v30  ;;  %v6708_v28 = vsel %vm6452_vm6, %v6324_v56, %v6580_v59  ;;  %v6590_v46 = vmul.f32 0.2, %v6334_v21  ;;  %v6598_v57 = vmul.f32 0.2, %v6342_v5  ;;  %8546 = vmatpush3.bf16.msra.mxu0 %v9228_v40  ;;  %v14009_v7 = vpop.f32.mrb[113].mxu0 }
 0x701   : > { %7715 = vmatmul.mubr.bf16.gmra.mrb[164].mxu1 %v6943_v34  ;;  %v6952_v58 = vpack.c.bf16 %v6727_v19, %v6719_v55  ;;  %v6941_v4 = vpack.c.bf16 %v6708_v28, %v6700_v33  ;;  %v6003_v43 = vmul.f32 %v13875_v44, %v15513_v3  ;;  %v6164_v16 = vmul.f32 %v15499_v15, %v5995_v60  ;;  %v14015_v0 = vpop.f32.mrb[114].mxu0  ;;  %v9232_v55 = vld [vmem:[#allocation7 + $0x1b8] sm:$0xff]  }
 0x702   : > { %v6718_v36 = vsel %vm6462_vm7, %v6334_v21, %v6590_v46  ;;  %v6726_v61 = vsel %vm6470_vm8, %v6342_v5, %v6598_v57  ;;  %v6013_v49 = vmul.f32 %v13924_v12, %v15514_v26  ;;  %v6021_v14 = vmul.f32 %v13924_v12, %v15515_v63  ;;  %8547 = vmatprep.subr.bf16.mxu0 %v9229_v18  ;;  %v15519_v21 = vld [vmem:[#allocation25_spill] sm:$0xff]  ;;  %v14019_v29 = vpop.f32.mrb[115].mxu0  ;;  %v15521_v18 = vld [vmem:[#allocation83_spill] sm:$0xff] }
 0x703   : > { %7722 = vmatprep.mubr.bf16.mxu1 %v6952_v58  ;;  %7618 = vmatmul.mubr.bf16.gmra.mrb[152].mxu0 %v6941_v4  ;;  %v6951_v34 = vpack.c.bf16 %v6726_v61, %v6718_v36  ;;  %v6172_v11 = vmul.f32 %v15499_v15, %v6003_v43  ;;  %v6333_v48 = vadd.f32 %v15500_v20, %v6164_v16  ;;  %v15520_v26 = vld [vmem:[#allocation33_spill] sm:$0xff] }
 0x704   : > { %v6182_v42 = vmul.f32 %v15506_v8, %v6013_v49  ;;  %v6190_v24 = vmul.f32 %v15506_v8, %v6021_v14  ;;  %v5994_v62 = vmul.f32 %v13806_v50, %v15516_v39  ;;  %v6002_v27 = vmul.f32 %v13806_v50, %v15517_v31  ;;  %8548 = vmatpush3.bf16.msra.mxu0 %v9230_v1 }
 0x705   : > { %v6341_v32 = vadd.f32 %v15500_v20, %v6172_v11  ;;  %vm6461_vm9 = vcmp.gt.f32.partialorder %v6333_v48, 0.0  ;;  %v6589_v6 = vmul.f32 0.2, %v6333_v48  ;;  %v6012_v47 = vmul.f32 %v13837_v22, %v15518_v51  ;;  %8549 = vmatprep.subr.bf16.mxu0 %v9231_v10  ;;  %v15522_v11 = vld [vmem:[#allocation44_spill] sm:$0xff] }
 0x706   : > { %v6351_v60 = vadd.f32 %v15507_v25, %v6182_v42  ;;  %v6359_v54 = vadd.f32 %v15507_v25, %v6190_v24  ;;  %v6163_v41 = vmul.f32 %v15484_v53, %v5994_v62  ;;  %v6171_v56 = vmul.f32 %v15484_v53, %v6002_v27  ;;  %v14029_v63 = vpop.f32.mrb[116].mxu0  ;;  %v15523_v42 = vld [vmem:[#allocation71_spill] sm:$0xff] }
 0x707   : > { %vm6469_vm10 = vcmp.gt.f32.partialorder %v6341_v32, 0.0  ;;  %v6597_v9 = vmul.f32 0.2, %v6341_v32  ;;  %v6717_v17 = vsel %vm6461_vm9, %v6333_v48, %v6589_v6  ;;  %v6020_v5 = vmul.f32 %v13837_v22, %v15519_v21  ;;  %v14037_v39 = vpop.f32.mrb[117].mxu0 }
 0x708   : > { %vm6479_vm11 = vcmp.gt.f32.partialorder %v6351_v60, 0.0  ;;  %vm6487_vm12 = vcmp.gt.f32.partialorder %v6359_v54, 0.0  ;;  %v6607_v30 = vmul.f32 0.2, %v6351_v60  ;;  %v6615_v59 = vmul.f32 0.2, %v6359_v54  ;;  %8550 = vmatpush3.bf16.msra.mxu0 %v9232_v55 }
 0x709   : > { %7723 = vmatmul.mubr.bf16.gmra.mrb[168].mxu1 %v6951_v34  ;;  %v6725_v33 = vsel %vm6469_vm10, %v6341_v32, %v6597_v9  ;;  %v6332_v19 = vadd.f32 %v15486_v23, %v6163_v41  ;;  %v6340_v28 = vadd.f32 %v15486_v23, %v6171_v56  ;;  %v6181_v46 = vmul.f32 %v15493_v38, %v6012_v47  ;;  %v14039_v27 = vpop.f32.mrb[118].mxu0  ;;  %v15524_v41 = vld [vmem:[#allocation108_spill] sm:$0xff] }
 0x70a   : > { %v6950_v57 = vpack.c.bf16 %v6725_v33, %v6717_v17  ;;  %v6735_v40 = vsel %vm6479_vm11, %v6351_v60, %v6607_v30  ;;  %v6743_v58 = vsel %vm6487_vm12, %v6359_v54, %v6615_v59  ;;  %v6189_v4 = vmul.f32 %v15493_v38, %v6020_v5  ;;  %v14043_v47 = vpop.f32.mrb[119].mxu0  ;;  %v15525_v5 = vld [vmem:[#allocation80_spill] sm:$0xff] }
 0x70b   : > { %v6960_v3 = vpack.c.bf16 %v6743_v58, %v6735_v40  ;;  %vm6460_vm13 = vcmp.gt.f32.partialorder %v6332_v19, 0.0  ;;  %vm6468_vm14 = vcmp.gt.f32.partialorder %v6340_v28, 0.0  ;;  %v6588_v43 = vmul.f32 0.2, %v6332_v19 }
 0x70c   : > { %7625 = vmatprep.mubr.bf16.mxu0 %v6950_v57  ;;  %v6596_v16 = vmul.f32 0.2, %v6340_v28  ;;  %v6350_v36 = vadd.f32 %v15495_v35, %v6181_v46  ;;  %v6358_v61 = vadd.f32 %v15495_v35, %v6189_v4  ;;  %v6011_v49 = vmul.f32 %v13875_v44, %v15520_v26 }
 0x70d   : > { %7730 = vmatprep.mubr.bf16.mxu1 %v6960_v3  ;;  %v6716_v14 = vsel %vm6460_vm13, %v6332_v19, %v6588_v43  ;;  %v6019_v34 = vmul.f32 %v13875_v44, %v15521_v18  ;;  %v6029_v48 = vmul.f32 %v13924_v12, %v15522_v11  ;;  %v6037_v24 = vmul.f32 %v13924_v12, %v15523_v42 }
 0x70e   : > { %v6724_v62 = vsel %vm6468_vm14, %v6340_v28, %v6596_v16  ;;  %vm6478_vm15 = vcmp.gt.f32.partialorder %v6350_v36, 0.0  ;;  %vm6486_vm0 = vcmp.gt.f32.partialorder %v6358_v61, 0.0  ;;  %v6606_v31 = vmul.f32 0.2, %v6350_v36  ;;  %v14058_v16 = vpop.f32.mrb[128].mxu1 }
 0x70f   : > { %v6949_v1 = vpack.c.bf16 %v6724_v62, %v6716_v14  ;;  %v6614_v32 = vmul.f32 0.2, %v6358_v61  ;;  %v6180_v6 = vmul.f32 %v15499_v15, %v6011_v49  ;;  %v6188_v51 = vmul.f32 %v15499_v15, %v6019_v34  ;;  %v15526_v49 = vld [vmem:[#allocation29_spill] sm:$0xff]  ;;  %v14062_v18 = vpop.f32.mrb[129].mxu1 }
 0x710   : > { %v6734_v10 = vsel %vm6478_vm15, %v6350_v36, %v6606_v31  ;;  %v6198_v60 = vmul.f32 %v15506_v8, %v6029_v48  ;;  %v6206_v54 = vmul.f32 %v15506_v8, %v6037_v24  ;;  %v6010_v56 = vmul.f32 %v13806_v50, %v15524_v41  ;;  %v14065_v42 = vpop.f32.mrb[130].mxu1  ;;  %v15527_v24 = vld [vmem:[#allocation40_spill] sm:$0xff] }
 0x711   : > { %7626 = vmatmul.mubr.bf16.gmra.mrb[156].mxu0 %v6949_v1  ;;  %v6742_v9 = vsel %vm6486_vm0, %v6358_v61, %v6614_v32  ;;  %v6349_v17 = vadd.f32 %v15500_v20, %v6180_v6  ;;  %v6357_v21 = vadd.f32 %v15500_v20, %v6188_v51  ;;  %v6018_v30 = vmul.f32 %v13806_v50, %v15525_v5  ;;  %v15528_v1 = vld [vmem:[#allocation46_spill] sm:$0xff]  ;;  %v15529_v6 = vld [vmem:[#allocation35_spill] sm:$0xff]  ;;  %v15530_v41 = vld [vmem:[#allocation52_spill] sm:$0xff] }
 0x712   : > { %v6959_v59 = vpack.c.bf16 %v6742_v9, %v6734_v10  ;;  %v6367_v55 = vadd.f32 %v15507_v25, %v6198_v60  ;;  %v6375_v33 = vadd.f32 %v15507_v25, %v6206_v54  ;;  %v6179_v19 = vmul.f32 %v15484_v53, %v6010_v56  ;;  %v14074_v10 = vpop.f32.mrb[131].mxu1 }
 0x713   : > { %vm6477_vm1 = vcmp.gt.f32.partialorder %v6349_v17, 0.0  ;;  %vm6485_vm2 = vcmp.gt.f32.partialorder %v6357_v21, 0.0  ;;  %v6605_v28 = vmul.f32 0.2, %v6349_v17  ;;  %v6613_v46 = vmul.f32 0.2, %v6357_v21 }
 0x714   : > { %7731 = vmatmul.mubr.bf16.gmra.mrb[172].mxu1 %v6959_v59  ;;  %vm6495_vm3 = vcmp.gt.f32.partialorder %v6367_v55, 0.0  ;;  %vm6503_vm4 = vcmp.gt.f32.partialorder %v6375_v33, 0.0  ;;  %v6623_v57 = vmul.f32 0.2, %v6367_v55  ;;  %v6631_v40 = vmul.f32 0.2, %v6375_v33 }
 0x715   : > { %v6733_v58 = vsel %vm6477_vm1, %v6349_v17, %v6605_v28  ;;  %v6741_v4 = vsel %vm6485_vm2, %v6357_v21, %v6613_v46  ;;  %v6187_v3 = vmul.f32 %v15484_v53, %v6018_v30  ;;  %v6348_v43 = vadd.f32 %v15486_v23, %v6179_v19  ;;  %v15531_v59 = vld [vmem:[#allocation66_spill] sm:$0xff]  ;;  %v15532_v19 = vld [vmem:[#allocation47_spill] sm:$0xff] }
 0x716   : > { %v6958_v36 = vpack.c.bf16 %v6741_v4, %v6733_v58  ;;  %v6751_v61 = vsel %vm6495_vm3, %v6367_v55, %v6623_v57  ;;  %v6759_v26 = vsel %vm6503_vm4, %v6375_v33, %v6631_v40  ;;  %v6028_v14 = vmul.f32 %v13837_v22, %v15526_v49  ;;  %v14087_v46 = vpop.f32.mrb[132].mxu1 }
 0x717   : > { %v6968_v34 = vpack.c.bf16 %v6759_v26, %v6751_v61  ;;  %v6356_v11 = vadd.f32 %v15486_v23, %v6187_v3  ;;  %vm6476_vm5 = vcmp.gt.f32.partialorder %v6348_v43, 0.0  ;;  %v6604_v48 = vmul.f32 0.2, %v6348_v43  ;;  %v14090_v4 = vpop.f32.mrb[133].mxu1 }
 0x718   : > { %7633 = vmatprep.mubr.bf16.mxu0 %v6958_v36  ;;  %v6036_v62 = vmul.f32 %v13837_v22, %v15527_v24  ;;  %v6197_v31 = vmul.f32 %v15493_v38, %v6028_v14  ;;  %v6027_v32 = vmul.f32 %v13875_v44, %v15528_v1  ;;  %v6035_v51 = vmul.f32 %v13875_v44, %v15529_v6  ;;  %v14096_v26 = vpop.f32.mrb[134].mxu1 }
 0x719   : > { %7738 = vmatprep.mubr.bf16.mxu1 %v6968_v34  ;;  %vm6484_vm6 = vcmp.gt.f32.partialorder %v6356_v11, 0.0  ;;  %v6612_v60 = vmul.f32 0.2, %v6356_v11  ;;  %v6732_v54 = vsel %vm6476_vm5, %v6348_v43, %v6604_v48  ;;  %v6045_v56 = vmul.f32 %v13924_v12, %v15530_v41  ;;  %v15533_v34 = vld [vmem:[#allocation36_spill] sm:$0xff]  ;;  %v14100_v48 = vpop.f32.mrb[135].mxu1 }
 0x71a   : > { %v6205_v9 = vmul.f32 %v15493_v38, %v6036_v62  ;;  %v6366_v17 = vadd.f32 %v15495_v35, %v6197_v31  ;;  %v6196_v21 = vmul.f32 %v15499_v15, %v6027_v32  ;;  %v6204_v5 = vmul.f32 %v15499_v15, %v6035_v51 }
 0x71b   : > { %v6740_v30 = vsel %vm6484_vm6, %v6356_v11, %v6612_v60  ;;  %v6053_v55 = vmul.f32 %v13924_v12, %v15531_v59  ;;  %v6214_v33 = vmul.f32 %v15506_v8, %v6045_v56  ;;  %v6026_v28 = vmul.f32 %v13806_v50, %v15532_v19  ;;  %v15535_v59 = vld [vmem:[#allocation70_spill] sm:$0xff]  ;;  %v15536_v19 = vld [vmem:[#allocation53_spill] sm:$0xff] }
 0x71c   : > { %v6957_v57 = vpack.c.bf16 %v6740_v30, %v6732_v54  ;;  %v6374_v40 = vadd.f32 %v15495_v35, %v6205_v9  ;;  %vm6494_vm7 = vcmp.gt.f32.partialorder %v6366_v17, 0.0  ;;  %v6622_v58 = vmul.f32 0.2, %v6366_v17 }
 0x71d   : > { %v6365_v3 = vadd.f32 %v15500_v20, %v6196_v21  ;;  %v6373_v43 = vadd.f32 %v15500_v20, %v6204_v5  ;;  %v6222_v36 = vmul.f32 %v15506_v8, %v6053_v55  ;;  %v6383_v61 = vadd.f32 %v15507_v25, %v6214_v33  ;;  %v15534_v5 = vld [vmem:[#allocation51_spill] sm:$0xff] }
 0x71e   : > { %7634 = vmatmul.mubr.bf16.gmra.mrb[160].mxu0 %v6957_v57  ;;  %vm6502_vm8 = vcmp.gt.f32.partialorder %v6374_v40, 0.0  ;;  %v6630_v49 = vmul.f32 0.2, %v6374_v40  ;;  %v6750_v14 = vsel %vm6494_vm7, %v6366_v17, %v6622_v58  ;;  %v6034_v11 = vmul.f32 %v13806_v50, %v15533_v34  ;;  %v15537_v57 = vld [vmem:[#allocation84_spill] sm:$0xff]  ;;  %v15538_v58 = vld [vmem:[#allocation87_spill] sm:$0xff] }
 0x71f   : > { %vm6493_vm9 = vcmp.gt.f32.partialorder %v6365_v3, 0.0  ;;  %vm6501_vm10 = vcmp.gt.f32.partialorder %v6373_v43, 0.0  ;;  %v6621_v24 = vmul.f32 0.2, %v6365_v3  ;;  %v6629_v62 = vmul.f32 0.2, %v6373_v43 }
 0x720   : > { %v6758_v31 = vsel %vm6502_vm8, %v6374_v40, %v6630_v49  ;;  %v6391_v1 = vadd.f32 %v15507_v25, %v6222_v36  ;;  %vm6511_vm11 = vcmp.gt.f32.partialorder %v6383_v61, 0.0  ;;  %v6639_v32 = vmul.f32 0.2, %v6383_v61 }
 0x721   : > { %v6967_v6 = vpack.c.bf16 %v6758_v31, %v6750_v14  ;;  %v6749_v51 = vsel %vm6493_vm9, %v6365_v3, %v6621_v24  ;;  %v6757_v60 = vsel %vm6501_vm10, %v6373_v43, %v6629_v62  ;;  %v6195_v54 = vmul.f32 %v15484_v53, %v6026_v28  ;;  %v14117_v43 = vpop.f32.mrb[120].mxu0  ;;  %v14120_v14 = vpop.f32.mrb[136].mxu1 }
 0x722   : > { %v6966_v41 = vpack.c.bf16 %v6757_v60, %v6749_v51  ;;  %vm6519_vm12 = vcmp.gt.f32.partialorder %v6391_v1, 0.0  ;;  %v6647_v56 = vmul.f32 0.2, %v6391_v1  ;;  %v6767_v9 = vsel %vm6511_vm11, %v6383_v61, %v6639_v32  ;;  %v14122_v34 = vpop.f32.mrb[121].mxu0 }
 0x723   : > { %vm6535_vm13 = vcmp.gt.f32.partialorder %v13948_v13, 0.0  ;;  %7739 = vmatmul.mubr.bf16.gmra.mrb[176].mxu1 %v6967_v6  ;;  %v6203_v17 = vmul.f32 %v15484_v53, %v6034_v11  ;;  %v6364_v21 = vadd.f32 %v15486_v23, %v6195_v54  ;;  %v6044_v30 = vmul.f32 %v13837_v22, %v15534_v5  ;;  %v14130_v32 = vpop.f32.mrb[122].mxu0 }
 0x724   : > { %v6052_v55 = vmul.f32 %v13837_v22, %v15535_v59  ;;  %7641 = vmatprep.mubr.bf16.mxu0 %v6966_v41  ;;  %v6775_v33 = vsel %vm6519_vm12, %v6391_v1, %v6647_v56  ;;  %v6043_v28 = vmul.f32 %v13875_v44, %v15536_v19  ;;  %v6051_v40 = vmul.f32 %v13875_v44, %v15537_v57  ;;  %v14128_v1 = vpop.f32.mrb[137].mxu1  ;;  %v14135_v41 = vpop.f32.mrb[123].mxu0 }
 0x725   : > { %v6061_v3 = vmul.f32 %v13924_v12, %v15538_v58  ;;  %v6976_v36 = vpack.c.bf16 %v6775_v33, %v6767_v9  ;;  %v6372_v61 = vadd.f32 %v15486_v23, %v6203_v17  ;;  %vm6492_vm14 = vcmp.gt.f32.partialorder %v6364_v21, 0.0  ;;  %v14133_v54 = vpop.f32.mrb[138].mxu1  ;;  %v15539_v33 = vld [vmem:[#allocation30_spill] sm:$0xff] }
 0x726   : > { %v6620_v49 = vmul.f32 0.2, %v6364_v21  ;;  %v6213_v11 = vmul.f32 %v15493_v38, %v6044_v30  ;;  %v6221_v24 = vmul.f32 %v15493_v38, %v6052_v55  ;;  %v6212_v62 = vmul.f32 %v15499_v15, %v6043_v28  ;;  %v14141_v30 = vpop.f32.mrb[139].mxu1 }
 0x727   : > { %v6220_v31 = vmul.f32 %v15499_v15, %v6051_v40  ;;  %7746 = vmatprep.mubr.bf16.mxu1 %v6976_v36  ;;  %vm6500_vm15 = vcmp.gt.f32.partialorder %v6372_v61, 0.0  ;;  %v6628_v6 = vmul.f32 0.2, %v6372_v61  ;;  %v6230_v60 = vmul.f32 %v15506_v8, %v6061_v3 }
 0x728   : > { %v6748_v51 = vsel %vm6492_vm14, %v6364_v21, %v6620_v49  ;;  %v6382_v56 = vadd.f32 %v15495_v35, %v6213_v11  ;;  %v6390_v9 = vadd.f32 %v15495_v35, %v6221_v24  ;;  %v6381_v17 = vadd.f32 %v15500_v20, %v6212_v62  ;;  %v15540_v62 = vld [vmem:[#allocation69_spill] sm:$0xff] }
 0x729   : > { %v6389_v5 = vadd.f32 %v15500_v20, %v6220_v31  ;;  %v6756_v59 = vsel %vm6500_vm15, %v6372_v61, %v6628_v6  ;;  %v6399_v55 = vadd.f32 %v15507_v25, %v6230_v60  ;;  %v6663_v21 = vmul.f32 0.2, %v13948_v13 }
 0x72a   : > { %v6042_v19 = vmul.f32 %v13806_v50, %v15539_v33  ;;  %v6965_v28 = vpack.c.bf16 %v6756_v59, %v6748_v51  ;;  %vm6510_vm0 = vcmp.gt.f32.partialorder %v6382_v56, 0.0  ;;  %vm6518_vm1 = vcmp.gt.f32.partialorder %v6390_v9, 0.0 }
 0x72b   : > { %v6638_v57 = vmul.f32 0.2, %v6382_v56  ;;  %v6646_v40 = vmul.f32 0.2, %v6390_v9  ;;  %vm6509_vm2 = vcmp.gt.f32.partialorder %v6381_v17, 0.0  ;;  %vm6517_vm3 = vcmp.gt.f32.partialorder %v6389_v5, 0.0 }
 0x72c   : > { %v6637_v58 = vmul.f32 0.2, %v6381_v17  ;;  %7642 = vmatmul.mubr.bf16.gmra.mrb[164].mxu0 %v6965_v28  ;;  %v6645_v36 = vmul.f32 0.2, %v6389_v5  ;;  %vm6527_vm4 = vcmp.gt.f32.partialorder %v6399_v55, 0.0  ;;  %v6791_v24 = vsel %vm6535_vm13, %v13948_v13, %v6663_v21  ;;  %v15542_v21 = vld [vmem:[#allocation56_spill] sm:$0xff] }
 0x72d   : > { %v6766_v3 = vsel %vm6510_vm0, %v6382_v56, %v6638_v57  ;;  %v6655_v61 = vmul.f32 0.2, %v6399_v55  ;;  %v6774_v49 = vsel %vm6518_vm1, %v6390_v9, %v6646_v40  ;;  %v6050_v31 = vmul.f32 %v13806_v50, %v15540_v62  ;;  %v15541_v57 = vld [vmem:[#allocation54_spill] sm:$0xff]  ;;  %v15543_v62 = vld [vmem:[#allocation112_spill] sm:$0xff] }
 0x72e   : > { %v6765_v11 = vsel %vm6509_vm2, %v6381_v17, %v6637_v58  ;;  %v6975_v6 = vpack.c.bf16 %v6774_v49, %v6766_v3  ;;  %v6773_v51 = vsel %vm6517_vm3, %v6389_v5, %v6645_v36  ;;  %v6211_v59 = vmul.f32 %v15484_v53, %v6042_v19 }
 0x72f   : > { %v6783_v60 = vsel %vm6527_vm4, %v6399_v55, %v6655_v61  ;;  %v6974_v33 = vpack.c.bf16 %v6773_v51, %v6765_v11  ;;  %v6219_v56 = vmul.f32 %v15484_v53, %v6050_v31  ;;  %v6060_v9 = vmul.f32 %v13837_v22, %v15541_v57  ;;  %v15544_v57 = vld [vmem:[#allocation88_spill] sm:$0xff] }
 0x730   : > { %v6984_v28 = vpack.c.bf16 %v6791_v24, %v6783_v60  ;;  %7747 = vmatmul.mubr.bf16.gmra.mrb[180].mxu1 %v6975_v6  ;;  %v6380_v17 = vadd.f32 %v15486_v23, %v6211_v59  ;;  %vm6534_vm5 = vcmp.gt.f32.partialorder %v13853_v45, 0.0  ;;  %v6662_v13 = vmul.f32 0.2, %v13853_v45  ;;  %v14173_v6 = vpop.f32.mrb[124].mxu0 }
 0x731   : > { %v6059_v5 = vmul.f32 %v13875_v44, %v15542_v21  ;;  %7649 = vmatprep.mubr.bf16.mxu0 %v6974_v33  ;;  %v6388_v55 = vadd.f32 %v15486_v23, %v6219_v56  ;;  %v6229_v19 = vmul.f32 %v15493_v38, %v6060_v9  ;;  %vm6533_vm6 = vcmp.gt.f32.partialorder %v13894_v52, 0.0  ;;  %v14176_v60 = vpop.f32.mrb[125].mxu0 }
 0x732   : > { %7754 = vmatprep.mubr.bf16.mxu1 %v6984_v28  ;;  %v6661_v40 = vmul.f32 0.2, %v13894_v52  ;;  %vm6508_vm7 = vcmp.gt.f32.partialorder %v6380_v17, 0.0  ;;  %v6636_v58 = vmul.f32 0.2, %v6380_v17  ;;  %v6790_v3 = vsel %vm6534_vm5, %v13853_v45, %v6662_v13  ;;  %v14181_v28 = vpop.f32.mrb[126].mxu0 }
 0x733   : > { %v6228_v36 = vmul.f32 %v15499_v15, %v6059_v5  ;;  %vm6516_vm8 = vcmp.gt.f32.partialorder %v6388_v55, 0.0  ;;  %v6644_v61 = vmul.f32 0.2, %v6388_v55  ;;  %v6398_v44 = vadd.f32 %v15495_v35, %v6229_v19  ;;  %v14190_v5 = vpop.f32.mrb[127].mxu0 }
 0x734   : > { %v6789_v49 = vsel %vm6533_vm6, %v13894_v52, %v6661_v40  ;;  %v6764_v11 = vsel %vm6508_vm7, %v6380_v17, %v6636_v58  ;;  %v6058_v31 = vmul.f32 %v13806_v50, %v15543_v62  ;;  %vm6532_vm9 = vcmp.gt.f32.partialorder %v13818_v2, 0.0  ;;  %v15545_v17 = vld [vmem:[#allocation94_spill] sm:$0xff]  ;;  %v15546_v40 = vld [vmem:[#allocation61_spill] sm:$0xff]  ;;  %v14202_v62 = vld [vmem:[%s15548_s27] ss:$0 sm:$0xff] }
 0x735   : > { %v6397_v24 = vadd.f32 %v15500_v20, %v6228_v36  ;;  %v6772_v51 = vsel %vm6516_vm8, %v6388_v55, %v6644_v61  ;;  %vm6526_vm10 = vcmp.gt.f32.partialorder %v6398_v44, 0.0  ;;  %v6654_v45 = vmul.f32 0.2, %v6398_v44  ;;  %v14179_v20 = vpop.f32.mrb[140].mxu1 }
 0x736   : > { %v6660_v15 = vmul.f32 0.2, %v13818_v2  ;;  %v6973_v59 = vpack.c.bf16 %v6772_v51, %v6764_v11  ;;  %v6227_v33 = vmul.f32 %v15484_v53, %v6058_v31  ;;  %v5949_v9 = vmul.f32 %v13924_v12, %v15544_v57  ;;  %v14188_v21 = vpop.f32.mrb[141].mxu1  ;;  %v15547_v11 = vld [vmem:[#allocation62_spill] sm:$0xff] }
 0x737   : > { %vm6525_vm11 = vcmp.gt.f32.partialorder %v6397_v24, 0.0  ;;  %v6653_v52 = vmul.f32 0.2, %v6397_v24  ;;  %v6782_v50 = vsel %vm6526_vm10, %v6398_v44, %v6654_v45  ;;  %v5957_v13 = vmul.f32 %v13924_v12, %v15545_v17  ;;  %v8444_v36 = vpop.f32.mrb[142].mxu1 }
 0x738   : > { %v6788_v56 = vsel %vm6532_vm9, %v13818_v2, %v6660_v15  ;;  %7650 = vmatmul.mubr.bf16.gmra.mrb[168].mxu0 %v6973_v59  ;;  %v6983_v55 = vpack.c.bf16 %v6790_v3, %v6782_v50  ;;  %v6396_v19 = vadd.f32 %v15486_v23, %v6227_v33  ;;  %v5948_v58 = vmul.f32 %v13837_v22, %v15546_v40  ;;  %v8445_v3 = vpop.f32.mrb[143].mxu1 }
 0x739   : > { %v6781_v53 = vsel %vm6525_vm11, %v6397_v24, %v6653_v52  ;;  %v6118_v61 = vmul.f32 %v15506_v8, %v5949_v9  ;;  %v6126_v44 = vmul.f32 %v15506_v8, %v5957_v13  ;;  %v5956_v12 = vmul.f32 %v13837_v22, %v15547_v11 }
 0x73a   : > { %v6982_v2 = vpack.c.bf16 %v6789_v49, %v6781_v53  ;;  %7755 = vmatmul.mubr.bf16.gmra.mrb[184].mxu1 %v6983_v55  ;;  %vm6524_vm12 = vcmp.gt.f32.partialorder %v6396_v19, 0.0  ;;  %v6652_v23 = vmul.f32 0.2, %v6396_v19  ;;  %v6117_v24 = vmul.f32 %v15493_v38, %v5948_v58 }
 0x73b   : > { %v8361_v49 = vadd.f32 %v14009_v7, %v14004_v37  ;;  %v6287_v8 = vadd.f32 %v15507_v25, %v6118_v61  ;;  %v6295_v31 = vadd.f32 %v15507_v25, %v6126_v44  ;;  %v6125_v22 = vmul.f32 %v15493_v38, %v5956_v12 }
 0x73c   : > { %7657 = vmatprep.mubr.bf16.mxu0 %v6982_v2  ;;  %v8425_v51 = vadd.f32 %v14062_v18, %v14058_v16  ;;  %v6780_v45 = vsel %vm6524_vm12, %v6396_v19, %v6652_v23  ;;  %v6286_v15 = vadd.f32 %v15495_v35, %v6117_v24  ;;  %v8364_v52 = vadd.f32 %v14019_v29, %v14015_v0 }
 0x73d   : > { %v7410_v59 = vadd.f32 %v8361_v49, %v14202_v62  ;;  %v6981_v33 = vpack.c.bf16 %v6788_v56, %v6780_v45  ;;  %vm6415_vm13 = vcmp.gt.f32.partialorder %v6287_v8, 0.0  ;;  %vm6423_vm14 = vcmp.gt.f32.partialorder %v6295_v31, 0.0 }
 0x73e   : > { %v6543_v37 = vmul.f32 0.2, %v6287_v8  ;;  %v6551_v7 = vmul.f32 0.2, %v6295_v31  ;;  %v6294_v25 = vadd.f32 %v15495_v35, %v6125_v22  ;;  %vm6414_vm15 = vcmp.gt.f32.partialorder %v6286_v15, 0.0 }
 0x73f   : > { %v6542_v38 = vmul.f32 0.2, %v6286_v15  ;;  %v14217_v57 = vadd.f32 %v8425_v51, %v7410_v59  ;;  %v7413_v16 = vadd.f32 %v8364_v52, %v14202_v62  ;;  %v8428_v18 = vadd.f32 %v14074_v10, %v14065_v42 }
 0x740   : > { %v6671_v50 = vsel %vm6415_vm13, %v6287_v8, %v6543_v37  ;;  %7658 = vmatmul.mubr.bf16.gmra.mrb[172].mxu0 %v6981_v33  ;;  %v6679_v9 = vsel %vm6423_vm14, %v6295_v31, %v6551_v7  ;;  %vm6422_vm0 = vcmp.gt.f32.partialorder %v6294_v25, 0.0  ;;  %v6550_v0 = vmul.f32 0.2, %v6294_v25 }
 0x741   : > { %v6670_v29 = vsel %vm6414_vm15, %v6286_v15, %v6542_v38  ;;  %v6928_v56 = vpack.c.bf16 %v6679_v9, %v6671_v50  ;;  %v14222_v17 = vadd.f32 %v8428_v18, %v7413_v16  ;;  %v8367_v35 = vadd.f32 %v14037_v39, %v14029_v63 }
 0x742   : > { %v8431_v13 = vadd.f32 %v14090_v4, %v14087_v46  ;;  %v6678_v55 = vsel %vm6422_vm0, %v6294_v25, %v6550_v0  ;;  %v8370_v53 = vadd.f32 %v14043_v47, %v14039_v27  ;;  %v8434_v42 = vadd.f32 %v14100_v48, %v14096_v26 }
 0x743   : > { %v8373_v10 = vadd.f32 %v14122_v34, %v14117_v43  ;;  %7698 = vmatprep.mubr.bf16.mxu0 %v6928_v56  ;;  %v6927_v19 = vpack.c.bf16 %v6678_v55, %v6670_v29  ;;  %v7418_v40 = vadd.f32 %v8367_v35, %v14202_v62  ;;  %v8437_v63 = vadd.f32 %v14128_v1, %v14120_v14 }
 0x744   : > { %v8376_v39 = vadd.f32 %v14135_v41, %v14130_v32  ;;  %v7421_v46 = vadd.f32 %v8370_v53, %v14202_v62  ;;  %v8440_v47 = vadd.f32 %v14141_v30, %v14133_v54  ;;  %v8379_v4 = vadd.f32 %v14176_v60, %v14173_v6  ;;  %v8383_v41 = vpop.f32.mrb[128].mxu0  ;;  %v8447_v60 = vpop.f32.mrb[144].mxu1 }
 0x745   : > { %v7426_v27 = vadd.f32 %v8373_v10, %v14202_v62  ;;  %v14245_v26 = vadd.f32 %v8431_v13, %v7418_v40  ;;  %v8443_v43 = vadd.f32 %v14188_v21, %v14179_v20  ;;  %v8382_v14 = vadd.f32 %v14190_v5, %v14181_v28  ;;  %v8384_v58 = vpop.f32.mrb[129].mxu0  ;;  %v8448_v21 = vpop.f32.mrb[145].mxu1 }
 0x746   : > { %v7429_v48 = vadd.f32 %v8376_v39, %v14202_v62  ;;  %v14252_v34 = vadd.f32 %v8434_v42, %v7421_v46  ;;  %v7434_v32 = vadd.f32 %v8379_v4, %v14202_v62  ;;  %v8446_v54 = vadd.f32 %v8445_v3, %v8444_v36  ;;  %v8386_v28 = vpop.f32.mrb[130].mxu0  ;;  %v8450_v44 = vpop.f32.mrb[146].mxu1 }
 0x747   : > { %v14254_v1 = vadd.f32 %v8437_v63, %v7426_v27  ;;  %v7437_v6 = vadd.f32 %v8382_v14, %v14202_v62  ;;  %v8385_v20 = vadd.f32 %v8384_v58, %v8383_v41  ;;  %v8449_v61 = vadd.f32 %v8448_v21, %v8447_v60  ;;  %v8387_v11 = vpop.f32.mrb[131].mxu0  ;;  %v8451_v3 = vpop.f32.mrb[147].mxu1 }
 0x748   : > { %v14257_v30 = vadd.f32 %v8440_v47, %v7429_v48  ;;  %7699 = vmatmul.mubr.bf16.vlgmr.msra.gmra.mrb[176].mxu0 %v6927_v19  ;;  %v14260_v2 = vadd.f32 %v8443_v43, %v7434_v32  ;;  %v8388_v12 = vadd.f32 %v8387_v11, %v8386_v28  ;;  %v8452_v23 = vadd.f32 %v8451_v3, %v8450_v44 }
 0x749   : > { %v14262_v5 = vadd.f32 %v8446_v54, %v7437_v6  ;;  %v7442_v36 = vadd.f32 %v8385_v20, %v14202_v62 }
 0x74a   : > { %v7445_v49 = vadd.f32 %v8388_v12, %v14202_v62 }
 0x74b   : > { %v14265_v24 = vadd.f32 %v8449_v61, %v7442_v36 }
 0x74c   : > { %v14268_v8 = vadd.f32 %v8452_v23, %v7445_v49 }
 0x75f   : > { %v8389_v31 = vpop.f32.mrb[132].mxu0 }
 0x760   : > { %v8390_v22 = vpop.f32.mrb[133].mxu0 }
 0x761   : > { %v8391_v51 = vadd.f32 %v8390_v22, %v8389_v31  ;;  %v8392_v45 = vpop.f32.mrb[134].mxu0 }
 0x762   : > { %v8393_v15 = vpop.f32.mrb[135].mxu0 }
 0x763   : > { %v8394_v59 = vadd.f32 %v8393_v15, %v8392_v45  ;;  %v7450_v33 = vadd.f32 %v8391_v51, %v14202_v62 }
 0x765   : > { %v7453_v38 = vadd.f32 %v8394_v59, %v14202_v62 }
 0x77a   : > { %v8453_v52 = vpop.f32.mrb[148].mxu1 }
 0x77b   : > { %v8454_v37 = vpop.f32.mrb[149].mxu1 }
 0x77c   : > { %v8455_v7 = vadd.f32 %v8454_v37, %v8453_v52  ;;  %v8456_v25 = vpop.f32.mrb[150].mxu1 }
 0x77d   : > { %v8457_v50 = vpop.f32.mrb[151].mxu1 }
 0x77e   : > { %v14272_v16 = vadd.f32 %v8455_v7, %v7450_v33  ;;  %v8458_v18 = vadd.f32 %v8457_v50, %v8456_v25 }
 0x780   : > { %v14274_v9 = vadd.f32 %v8458_v18, %v7453_v38 }
 0x79d   : > { %v8395_v0 = vpop.f32.mrb[136].mxu0 }
 0x79e   : > { %v8396_v29 = vpop.f32.mrb[137].mxu0 }
 0x79f   : > { %v8397_v56 = vadd.f32 %v8396_v29, %v8395_v0  ;;  %v8398_v35 = vpop.f32.mrb[138].mxu0  ;;  %v8459_v13 = vpop.f32.mrb[152].mxu1 }
 0x7a0   : > { %v8399_v55 = vpop.f32.mrb[139].mxu0  ;;  %v8460_v42 = vpop.f32.mrb[153].mxu1 }
 0x7a1   : > { %v7458_v53 = vadd.f32 %v8397_v56, %v14202_v62  ;;  %v8400_v10 = vadd.f32 %v8399_v55, %v8398_v35  ;;  %v8461_v19 = vadd.f32 %v8460_v42, %v8459_v13  ;;  %v8462_v40 = vpop.f32.mrb[154].mxu1 }
 0x7a2   : > { %v8463_v39 = vpop.f32.mrb[155].mxu1 }
 0x7a3   : > { %v7461_v63 = vadd.f32 %v8400_v10, %v14202_v62  ;;  %v14278_v46 = vadd.f32 %v8461_v19, %v7458_v53  ;;  %v8464_v27 = vadd.f32 %v8463_v39, %v8462_v40 }
 0x7a5   : > { %v14280_v47 = vadd.f32 %v8464_v27, %v7461_v63 }
 0x7ac   : > { %v8401_v4 = vpop.f32.mrb[140].mxu0 }
 0x7ad   : > { %v8402_v48 = vpop.f32.mrb[141].mxu0 }
 0x7ae   : > { %v8403_v14 = vadd.f32 %v8402_v48, %v8401_v4  ;;  %v8404_v32 = vpop.f32.mrb[142].mxu0 }
 0x7af   : > { %v8465_v43 = vpop.f32.mrb[156].mxu1  ;;  %v8405_v41 = vpop.f32.mrb[143].mxu0 }
 0x7b0   : > { %v8466_v54 = vpop.f32.mrb[157].mxu1  ;;  %v7466_v6 = vadd.f32 %v8403_v14, %v14202_v62  ;;  %v8406_v20 = vadd.f32 %v8405_v41, %v8404_v32 }
 0x7b1   : > { %v8467_v60 = vadd.f32 %v8466_v54, %v8465_v43  ;;  %v8468_v58 = vpop.f32.mrb[158].mxu1 }
 0x7b2   : > { %v8469_v21 = vpop.f32.mrb[159].mxu1  ;;  %v7469_v61 = vadd.f32 %v8406_v20, %v14202_v62 }
 0x7b3   : > { %v14283_v28 = vadd.f32 %v8467_v60, %v7466_v6  ;;  %v8470_v44 = vadd.f32 %v8469_v21, %v8468_v58 }
 0x7b5   : > { %v14286_v11 = vadd.f32 %v8470_v44, %v7469_v61 }
 0x7bd   : > { %v8487_v36 = vpop.f32.mrb[144].mxu0 }
 0x7be   : > { %v8488_v12 = vpop.f32.mrb[145].mxu0 }
 0x7bf   : > { %v8489_v3 = vadd.f32 %v8488_v12, %v8487_v36  ;;  %v8490_v23 = vpop.f32.mrb[146].mxu0 }
 0x7c0   : > { %v8491_v49 = vpop.f32.mrb[147].mxu0 }
 0x7c1   : > { %v14289_v31 = vadd.f32 %v8489_v3, %v14217_v57  ;;  %v8492_v22 = vadd.f32 %v8491_v49, %v8490_v23 }
 0x7c3   : > { %v14292_v51 = vadd.f32 %v8492_v22, %v14222_v17 }
 0x7c5   : > { %v8493_v45 = vpop.f32.mrb[148].mxu0 }
 0x7c6   : > { %v8494_v15 = vpop.f32.mrb[149].mxu0 }
 0x7c7   : > { %v8495_v59 = vadd.f32 %v8494_v15, %v8493_v45  ;;  %v8496_v62 = vpop.f32.mrb[150].mxu0 }
 0x7c8   : > { %v8497_v52 = vpop.f32.mrb[151].mxu0 }
 0x7c9   : > { %v7612_v33 = vadd.f32 %v8495_v59, %v14245_v26  ;;  %v8498_v37 = vadd.f32 %v8497_v52, %v8496_v62 }
 0x7cb   : > { %v7615_v7 = vadd.f32 %v8498_v37, %v14252_v34 }
 0x7cc   : > { %v8557_v25 = vpop.f32.mrb[160].mxu1 }
 0x7cd   : > { %v8558_v38 = vpop.f32.mrb[161].mxu1 }
 0x7ce   : > { %v8559_v57 = vadd.f32 %v8558_v38, %v8557_v25  ;;  %v8560_v50 = vpop.f32.mrb[162].mxu1 }
 0x7cf   : > { %v8561_v18 = vpop.f32.mrb[163].mxu1 }
 0x7d0   : > { %v8562_v0 = vadd.f32 %v8561_v18, %v8560_v50  ;;  %v7709_v17 = vadd.f32 %v8559_v57, %v7612_v33 }
 0x7d2   : > { %9184 = vtanh.f32 %v7709_v17  ;;  %v7712_v29 = vadd.f32 %v8562_v0, %v7615_v7 }
 0x7d4   : > { %v8563_v56 = vpop.f32.mrb[164].mxu1  ;;  %9186 = vtanh.f32 %v7712_v29 }
 0x7d5   : > { %v8564_v35 = vpop.f32.mrb[165].mxu1 }
 0x7d6   : > { %v8565_v13 = vadd.f32 %v8564_v35, %v8563_v56  ;;  %v8566_v55 = vpop.f32.mrb[166].mxu1  ;;  %v8499_v26 = vpop.f32.mrb[152].mxu0 }
 0x7d7   : > { %v8567_v34 = vpop.f32.mrb[167].mxu1  ;;  %v8500_v53 = vpop.f32.mrb[153].mxu0 }
 0x7d8   : > { %v8568_v42 = vadd.f32 %v8567_v34, %v8566_v55  ;;  %v8501_v10 = vadd.f32 %v8500_v53, %v8499_v26  ;;  %v8502_v19 = vpop.f32.mrb[154].mxu0 }
 0x7d9   : > { %v8503_v40 = vpop.f32.mrb[155].mxu0 }
 0x7da   : > { %v7620_v63 = vadd.f32 %v8501_v10, %v14254_v1  ;;  %v8504_v39 = vadd.f32 %v8503_v40, %v8502_v19 }
 0x7dc   : > { %v9185_v27 = vpop.eup %9184  ;;  %v8569_v4 = vpop.f32.mrb[168].mxu1  ;;  %v7717_v48 = vadd.f32 %v8565_v13, %v7620_v63  ;;  %v7623_v43 = vadd.f32 %v8504_v39, %v14257_v30 }
 0x7dd   : > { %7781 = vst [vmem:[%s14301_s26 + $0x10] sm:$0xff] %v9185_v27  ;;  %v8570_v14 = vpop.f32.mrb[169].mxu1 }
 0x7de   : > { %v9187_v32 = vpop.eup %9186  ;;  %9188 = vtanh.f32 %v7717_v48  ;;  %v8571_v54 = vadd.f32 %v8570_v14, %v8569_v4  ;;  %v8572_v41 = vpop.f32.mrb[170].mxu1  ;;  %v7720_v6 = vadd.f32 %v8568_v42, %v7623_v43 }
 0x7df   : > { %7782 = vst [vmem:[%s14301_s26 + $0x18] sm:$0xff] %v9187_v32  ;;  %v8573_v1 = vpop.f32.mrb[171].mxu1 }
 0x7e0   : > { %9190 = vtanh.f32 %v7720_v6  ;;  %v8574_v60 = vadd.f32 %v8573_v1, %v8572_v41 }
 0x7e4   : > { %v8505_v58 = vpop.f32.mrb[156].mxu0 }
 0x7e5   : > { %v8506_v20 = vpop.f32.mrb[157].mxu0 }
 0x7e6   : > { %v8507_v30 = vadd.f32 %v8506_v20, %v8505_v58  ;;  %v8508_v21 = vpop.f32.mrb[158].mxu0 }
 0x7e7   : > { %v8575_v61 = vpop.f32.mrb[172].mxu1  ;;  %v8509_v44 = vpop.f32.mrb[159].mxu0 }
 0x7e8   : > { %v9189_v36 = vpop.eup %9188  ;;  %v7628_v12 = vadd.f32 %v8507_v30, %v14260_v2  ;;  %v8576_v3 = vpop.f32.mrb[173].mxu1  ;;  %v8510_v23 = vadd.f32 %v8509_v44, %v8508_v21 }
 0x7e9   : > { %7783 = vst [vmem:[%s14301_s26 + $0x20] sm:$0xff] %v9189_v36  ;;  %v8577_v49 = vadd.f32 %v8576_v3, %v8575_v61  ;;  %v8578_v22 = vpop.f32.mrb[174].mxu1 }
 0x7ea   : > { %v9191_v45 = vpop.eup %9190  ;;  %v7725_v15 = vadd.f32 %v8571_v54, %v7628_v12  ;;  %v7631_v59 = vadd.f32 %v8510_v23, %v14262_v5  ;;  %v8579_v62 = vpop.f32.mrb[175].mxu1 }
 0x7eb   : > { %7784 = vst [vmem:[%s14301_s26 + $0x28] sm:$0xff] %v9191_v45  ;;  %v8580_v52 = vadd.f32 %v8579_v62, %v8578_v22 }
 0x7ec   : > { %9192 = vtanh.f32 %v7725_v15  ;;  %v7728_v33 = vadd.f32 %v8574_v60, %v7631_v59 }
 0x7ee   : > { %9194 = vtanh.f32 %v7728_v33 }
 0x7f1   : > { %v8511_v37 = vpop.f32.mrb[160].mxu0 }
 0x7f2   : > { %v8512_v7 = vpop.f32.mrb[161].mxu0 }
 0x7f3   : > { %v8513_v2 = vadd.f32 %v8512_v7, %v8511_v37  ;;  %v8514_v25 = vpop.f32.mrb[162].mxu0 }
 0x7f4   : > { %v8515_v38 = vpop.f32.mrb[163].mxu0 }
 0x7f5   : > { %v7636_v57 = vadd.f32 %v8513_v2, %v14265_v24  ;;  %v8516_v50 = vadd.f32 %v8515_v38, %v8514_v25 }
 0x7f6   : > { %v9193_v18 = vpop.eup %9192  ;;  %v8581_v0 = vpop.f32.mrb[176].mxu1 }
 0x7f7   : > { %7785 = vst [vmem:[%s14301_s26 + $0x30] sm:$0xff] %v9193_v18  ;;  %v7733_v5 = vadd.f32 %v8577_v49, %v7636_v57  ;;  %v8582_v17 = vpop.f32.mrb[177].mxu1  ;;  %v7639_v29 = vadd.f32 %v8516_v50, %v14268_v8 }
 0x7f8   : > { %v9195_v56 = vpop.eup %9194  ;;  %v8583_v35 = vadd.f32 %v8582_v17, %v8581_v0  ;;  %v8584_v13 = vpop.f32.mrb[178].mxu1 }
 0x7f9   : > { %7786 = vst [vmem:[%s14301_s26 + $0x38] sm:$0xff] %v9195_v56  ;;  %9196 = vtanh.f32 %v7733_v5  ;;  %v7736_v55 = vadd.f32 %v8580_v52, %v7639_v29  ;;  %v8585_v26 = vpop.f32.mrb[179].mxu1 }
 0x7fa   : > { %v8586_v34 = vadd.f32 %v8585_v26, %v8584_v13 }
 0x7fb   : > { %9198 = vtanh.f32 %v7736_v55 }
 0x7ff   : > { %v8517_v53 = vpop.f32.mrb[164].mxu0 }
 0x800   : > { %v8518_v24 = vpop.f32.mrb[165].mxu0 }
 0x801   : > { %v8519_v42 = vadd.f32 %v8518_v24, %v8517_v53  ;;  %v8520_v10 = vpop.f32.mrb[166].mxu0 }
 0x802   : > { %v8521_v19 = vpop.f32.mrb[167].mxu0 }
 0x803   : > { %v9197_v40 = vpop.eup %9196  ;;  %v8587_v63 = vpop.f32.mrb[180].mxu1  ;;  %v7644_v8 = vadd.f32 %v8519_v42, %v14272_v16  ;;  %v8522_v39 = vadd.f32 %v8521_v19, %v8520_v10 }
 0x804   : > { %7787 = vst [vmem:[%s14301_s26 + $0x40] sm:$0xff] %v9197_v40  ;;  %v8588_v27 = vpop.f32.mrb[181].mxu1 }
 0x805   : > { %v9199_v4 = vpop.eup %9198  ;;  %v7741_v48 = vadd.f32 %v8583_v35, %v7644_v8  ;;  %v8589_v43 = vadd.f32 %v8588_v27, %v8587_v63  ;;  %v8590_v14 = vpop.f32.mrb[182].mxu1  ;;  %v7647_v32 = vadd.f32 %v8522_v39, %v14274_v9 }
 0x806   : > { %7788 = vst [vmem:[%s14301_s26 + $0x48] sm:$0xff] %v9199_v4  ;;  %v8591_v54 = vpop.f32.mrb[183].mxu1 }
 0x807   : > { %9200 = vtanh.f32 %v7741_v48  ;;  %v7744_v41 = vadd.f32 %v8586_v34, %v7647_v32  ;;  %v8592_v6 = vadd.f32 %v8591_v54, %v8590_v14 }
 0x809   : > { %9202 = vtanh.f32 %v7744_v41 }
 0x80b   : > { %v8523_v1 = vpop.f32.mrb[168].mxu0 }
 0x80c   : > { %v8524_v60 = vpop.f32.mrb[169].mxu0 }
 0x80d   : > { %v8593_v58 = vpop.f32.mrb[184].mxu1  ;;  %v8525_v16 = vadd.f32 %v8524_v60, %v8523_v1  ;;  %v8526_v20 = vpop.f32.mrb[170].mxu0 }
 0x80e   : > { %v8594_v30 = vpop.f32.mrb[185].mxu1  ;;  %v8527_v21 = vpop.f32.mrb[171].mxu0 }
 0x80f   : > { %v7652_v61 = vadd.f32 %v8525_v16, %v14278_v46  ;;  %v8595_v44 = vadd.f32 %v8594_v30, %v8593_v58  ;;  %v8596_v36 = vpop.f32.mrb[186].mxu1  ;;  %v8528_v9 = vadd.f32 %v8527_v21, %v8526_v20 }
 0x810   : > { %v8597_v12 = vpop.f32.mrb[187].mxu1 }
 0x811   : > { %v9201_v3 = vpop.eup %9200  ;;  %v7749_v23 = vadd.f32 %v8589_v43, %v7652_v61  ;;  %v7655_v49 = vadd.f32 %v8528_v9, %v14280_v47  ;;  %v8598_v22 = vadd.f32 %v8597_v12, %v8596_v36 }
 0x812   : > { %7789 = vst [vmem:[%s14301_s26 + $0x50] sm:$0xff] %v9201_v3 }
 0x813   : > { %v9203_v45 = vpop.eup %9202  ;;  %9204 = vtanh.f32 %v7749_v23  ;;  %v7752_v15 = vadd.f32 %v8592_v6, %v7655_v49  ;;  %v8529_v59 = vpop.f32.mrb[172].mxu0 }
 0x814   : > { %7790 = vst [vmem:[%s14301_s26 + $0x58] sm:$0xff] %v9203_v45  ;;  %v8530_v62 = vpop.f32.mrb[173].mxu0 }
 0x815   : > { %9206 = vtanh.f32 %v7752_v15  ;;  %v8531_v52 = vadd.f32 %v8530_v62, %v8529_v59  ;;  %v8532_v46 = vpop.f32.mrb[174].mxu0 }
 0x816   : > { %v8533_v33 = vpop.f32.mrb[175].mxu0 }
 0x817   : > { %v7660_v37 = vadd.f32 %v8531_v52, %v14283_v28  ;;  %v8534_v7 = vadd.f32 %v8533_v33, %v8532_v46 }
 0x819   : > { %v7757_v2 = vadd.f32 %v8595_v44, %v7660_v37  ;;  %v7663_v47 = vadd.f32 %v8534_v7, %v14286_v11 }
 0x81b   : > { %9208 = vtanh.f32 %v7757_v2  ;;  %v7760_v25 = vadd.f32 %v8598_v22, %v7663_v47  ;;  %v8551_v38 = vpop.f32.mrb[176].mxu0 }
 0x81c   : > { %v8552_v57 = vpop.f32.mrb[177].mxu0 }
 0x81d   : > { %v9205_v50 = vpop.eup %9204  ;;  %9210 = vtanh.f32 %v7760_v25  ;;  %v8553_v18 = vadd.f32 %v8552_v57, %v8551_v38  ;;  %v8554_v0 = vpop.f32.mrb[178].mxu0 }
 0x81e   : > { %7791 = vst [vmem:[%s14301_s26 + $0x60] sm:$0xff] %v9205_v50  ;;  %v8555_v5 = vpop.f32.mrb[179].mxu0 }
 0x81f   : > { %v9207_v28 = vpop.eup %9206  ;;  %v7701_v17 = vadd.f32 %v8553_v18, %v14289_v31  ;;  %v8556_v29 = vadd.f32 %v8555_v5, %v8554_v0 }
 0x820   : > { %7792 = vst [vmem:[%s14301_s26 + $0x68] sm:$0xff] %v9207_v28 }
 0x821   : > { %9212 = vtanh.f32 %v7701_v17  ;;  %v7704_v11 = vadd.f32 %v8556_v29, %v14292_v51 }
 0x823   : > { %9214 = vtanh.f32 %v7704_v11 }
 0x825   : > { %v9209_v56 = vpop.eup %9208 }
 0x826   : > { %7793 = vst [vmem:[%s14301_s26 + $0x70] sm:$0xff] %v9209_v56 }
 0x827   : > { %v9211_v35 = vpop.eup %9210 }
 0x828   : > { %7794 = vst [vmem:[%s14301_s26 + $0x78] sm:$0xff] %v9211_v35 }
 0x82b   : > { %v9213_v13 = vpop.eup %9212 }
 0x82c   : > { %7779 = vst [vmem:[%s14301_s26] sm:$0xff] %v9213_v13 }
 0x82d   : > { %v9215_v31 = vpop.eup %9214 }
 0x82e   : > { %7780 = vst [vmem:[%s14301_s26 + $0x8] sm:$0xff] %v9215_v31 }
 0x82f   : > { %9330 = shalt.err (!%p9327_p11)
}
 0x830   : > { %s9331_s27 = scalar_lea.hbm %s14334_s29, 2048  ;;  %s9335_s30 = scalar_lea.hbm %s15551_s11, 4096 }
 0x831   : > { %p9332_p13 = scmp.ne.s32.totalorder %s14334_s29, %s9331_s27  ;;  %p9336_p6 = scmp.lt.u32.totalorder %s14334_s29, %s15551_s11 }
 0x832   : > { %p9337_p9 = scmp.lt.u32.totalorder %s9335_s30, %s9331_s27  ;;  %p9339_p12 = scmp.lt.u32.totalorder %s9331_s27, %s14334_s29 }
 0x833   : > { %p9333_p5 = pnand %p9332_p13, %p15552_p1 }
 0x834   : > { %p9338_p10 = por %p9337_p9, %p9336_p6 }
 0x835   : > { %p9334_p0 = pneg %p9333_p5 }
 0x836   : > { %p9340_p2 = por %p9339_p12, %p9338_p10 }
 0x838   : > { %p9341_p3 = pnand %p9340_p2, %p9334_p0 }
 0x83a   : > { %9344 = shalt.err (!%p9341_p3)
}
 0x83b   : > { %s9400_s16 = smov 128   ;;  %s9401_s17 = smov 8  }
 0x83c   : > { %8903 = dma.vmem_to_hbm [thread:$0]  (%p15552_p1), %s14336_s25, 2048, %s14334_s29, %s14342_s22, %s9400_s16, %s9400_s16, %s9401_s17  }
 0x83d PF: > { %s15553_s1 = sld [smem:[#allocation15_spill]]  ;;  %s15554_s28 = sld [smem:[#allocation12_spill]] }
 0x83e   : > { %s15555_s21 = sld [smem:[#allocation19_spill]] }
 0x843   : > { %p8925_p4 = scmp.ge.s32.totalorder %s15553_s1, 2  ;;  %s7824_s24 = sand.u32 1, %s15554_s28  }
 0x844   : > { %p15556_p7 = scmp.ne.s32.totalorder %s15555_s21, 0  ;;  %s7825_s27 = scalar_lea.sflag [#allocation4], %s7824_s24 }
 0x846   : > { %p8916_p8 = pnand %p8925_p4, %p15556_p7 }
 0x848   : > { %9370 = dma.done.wait (!%p8916_p8), %s7825_s27, 2048  }
 0x849   : > { %9372 = vsyncadd (!%p8916_p8), %s7825_s27, 4294965248  ;;  %s15557_s27 = sld [smem:[#allocation16_spill]]  ;;  %s15558_s24 = sld [smem:[#allocation13_spill]] }
 0x84a   : > { %s15559_s25 = sld [smem:[#allocation14_spill]]  ;;  %s15560_s26 = sld [smem:[#allocation17_spill]] }
 0x84f   : > { %p29_p11 = scmp.ge.s32.totalorder %s15557_s27, 4  }
 0x851   :  { %31 = sbr.rel (!%p29_p11) target bundleno = 11 (0xb), region = 136 }
 0x858   :  { %7830 = vsyncpa [#allocation3], 1 }
 0x859   :  { %7832 = vsyncpa [#allocation3 + $0x1], 1 }
 0x85a   :  { %7833 = vsyncpa [#allocation6], 1 }
 0x85b   :  { %7834 = vsyncpa [#allocation4], 1 }
 0x85c   :  { %7836 = vsyncpa [#allocation4 + $0x1], 1 }

</bundles_post_ra>
